<compile_context>
chip_gen: v6e
topology: v6e:2x2x1
jax: 0.10.0
libtpu: 0.0.40
codegen_flags: <defaults>
</compile_context>

<pallas_src>
import functools

import jax
import jax.numpy as jnp
from jax.experimental import pallas as pl
from jax.experimental.pallas import tpu as pltpu

K = 7          # conv kernel size
P = K // 2     # padding


def _gam_kernel(x_ref,
                wca1_ref, bca1_ref, wca2_ref, bca2_ref,
                wsp1_ref, sc1_ref, sh1_ref,
                wsp2_ref, sc2_ref, sh2_ref,
                wid_ref, bid_ref,
                out_ref,
                pad1_ref, pad2_ref, col1_ref, col2_ref,
                *, Bb, H, W, C, CR, CO, dense_out):
    M = Bb * H * W
    Hp = H + 2 * P
    Wp = W + 2 * P
    mdt = wca1_ref.dtype                     # matmul-operand dtype (bf16 default)
    f32 = jnp.float32
    zdt = pad1_ref.dtype                     # scratch dtype (== mdt)

    # ---- zero only the conv halo borders (interior is fully rewritten below).
    # Unconditional (tiny, O(border)) so per-core scratch is always initialized
    # when the "parallel" batch axis is sharded across TensorCores.
    pad1_ref[:, 0:P, :, :] = jnp.zeros((Bb, P, Wp, C), zdt)
    pad1_ref[:, P + H:Hp, :, :] = jnp.zeros((Bb, P, Wp, C), zdt)
    pad1_ref[:, :, 0:P, :] = jnp.zeros((Bb, Hp, P, C), zdt)
    pad1_ref[:, :, P + W:Wp, :] = jnp.zeros((Bb, Hp, P, C), zdt)
    pad2_ref[:, 0:P, :, :] = jnp.zeros((Bb, P, Wp, CR), zdt)
    pad2_ref[:, P + H:Hp, :, :] = jnp.zeros((Bb, P, Wp, CR), zdt)
    pad2_ref[:, :, 0:P, :] = jnp.zeros((Bb, Hp, P, CR), zdt)
    pad2_ref[:, :, P + W:Wp, :] = jnp.zeros((Bb, Hp, P, CR), zdt)

    xf = x_ref[...].reshape(M, C)                         # (M, C) f32

    # ---------------- channel attention MLP (per pixel) ----------------
    h1 = jnp.maximum(
        jnp.dot(xf.astype(mdt), wca1_ref[...],
                preferred_element_type=f32) + bca1_ref[...], 0.0)
    att = jnp.dot(h1.astype(mdt), wca2_ref[...],
                  preferred_element_type=f32) + bca2_ref[...]
    yf = xf * att                                          # x = x * x_channel_att
    yf16 = yf.astype(mdt)                                  # cast once, reuse below

    # ---------------- spatial attention: conv7x7 -> BN -> ReLU ----------------
    pad1_ref[:, P:P + H, P:P + W, :] = yf16.reshape(Bb, H, W, C)
    # partial im2col: col1[b, hp, w, dx*C + c] = ypad[b, hp, w + dx, c]
    for dx in range(K):
        col1_ref[:, :, :, dx * C:(dx + 1) * C] = pad1_ref[:, :, dx:dx + W, :]
    acc1 = None
    for dy in range(K):                                    # 7 dots, contraction K*C
        lhs = col1_ref[:, dy:dy + H, :, :].reshape(M, K * C)   # already bf16
        d = jnp.dot(lhs, wsp1_ref[dy], preferred_element_type=f32)
        acc1 = d if acc1 is None else acc1 + d
    s1 = jnp.maximum(acc1 * sc1_ref[...] + sh1_ref[...], 0.0)   # folded BN1 + ReLU

    # -------- conv7x7 -> BN -> sigmoid (output channels pre-shuffled) --------
    pad2_ref[:, P:P + H, P:P + W, :] = s1.astype(mdt).reshape(Bb, H, W, CR)
    for dx in range(K):
        col2_ref[:, :, :, dx * CR:(dx + 1) * CR] = pad2_ref[:, :, dx:dx + W, :]
    acc2 = None
    for dy in range(K):                                    # 7 dots, contraction K*CR
        lhs = col2_ref[:, dy:dy + H, :, :].reshape(M, K * CR)
        d = jnp.dot(lhs, wsp2_ref[dy], preferred_element_type=f32)
        acc2 = d if acc2 is None else acc2 + d
    s_att = jax.nn.sigmoid(acc2 * sc2_ref[...] + sh2_ref[...])   # shuffled channels

    # ---------------- 1x1 identity conv + final multiply ----------------
    xid = jnp.dot(yf16, wid_ref[...], preferred_element_type=f32) + bid_ref[...]
    res = xid * s_att                                      # (M, CO) f32
    if dense_out:
        # lane-dense store: (Bb, H, W*CO) -> unmasked vst on the output slab
        out_ref[...] = res.reshape(Bb, H, W * CO)
    else:
        out_ref[...] = res.reshape(Bb, H, W, CO)


def _full_spec(arr):
    nd = arr.ndim
    return pl.BlockSpec(arr.shape, lambda b, _nd=nd: (0,) * _nd)


def _vmem_limit_bytes():
    """Generation-aware scoped-VMEM limit (~0.8x physical, capped)."""
    try:
        cap = int(pltpu.get_tpu_info().vmem_capacity_bytes)
        return max(32 * 1024 * 1024, min(int(0.8 * cap), 100 * 1024 * 1024))
    except Exception:
        return 48 * 1024 * 1024   # conservative: also fits v7x's 64 MiB VMEM


def _block_bytes(bb, H, W, C, CR, CO, mm_bytes):
    """Scratch + double-buffered input/output block bytes for one grid step."""
    Hp, Wp = H + 2 * P, W + 2 * P
    scratch = bb * (Hp * Wp * (C + CR) + Hp * W * K * (C + CR)) * mm_bytes
    io = 2 * bb * H * W * (C + CO) * 4          # double-buffered f32 in/out blocks
    return scratch + io


def _pick_batch_block(B, H, W, C, CR, CO, vmem_limit_bytes, mm_bytes):
    """Largest Bb that fits the VMEM budget, keeps >=2 grid steps (DMA/compute
    pipelining) and >=4 steps (2 per v7x TensorCore) unless that would starve
    the MXU (M = Bb*H*W below ~2048 rows)."""
    budget = int(0.6 * vmem_limit_bytes)
    divisors = [d for d in range(1, B + 1) if B % d == 0]
    best = 1
    for bb in divisors:
        steps = B // bb
        if B >= 2 and steps < 2:
            break                               # always keep >=2 steps
        if steps < min(B, 4) and best * H * W >= 2048:
            break                               # enough MXU rows; keep >=4 steps
        if _block_bytes(bb, H, W, C, CR, CO, mm_bytes) <= budget:
            best = bb
    return best


def gam_block_forward(x_nchw, params, *, batch_block=None, mm_dtype=jnp.bfloat16,
                      lane_dense_output=True):
    """x_nchw: (B, C, H, W) float32 -> (B, CO, H, W) float32."""
    (wca1, bca1, wca2, bca2,
     wsp1, sc1, sh1,
     wsp2, sc2, sh2,
     wid, bid) = params

    B, C, H, W = x_nchw.shape
    CR = wca1.shape[1]
    CO = wid.shape[1]
    Hp, Wp = H + 2 * P, W + 2 * P

    vmem_limit = _vmem_limit_bytes()
    mm_bytes = jnp.dtype(mm_dtype).itemsize
    Bb = (_pick_batch_block(B, H, W, C, CR, CO, vmem_limit, mm_bytes)
          if batch_block is None else batch_block)
    assert B % Bb == 0
    nb = B // Bb

    x = jnp.transpose(x_nchw, (0, 2, 3, 1))               # NCHW -> NHWC (glue)

    # fold the dx taps of each 7x7 conv into the matmul contraction dimension
    wsp1_r = wsp1.reshape(K, K * C, CR).astype(mm_dtype)
    wsp2_r = wsp2.reshape(K, K * CR, CO).astype(mm_dtype)
    wca1_c = wca1.astype(mm_dtype)
    wca2_c = wca2.astype(mm_dtype)
    wid_c = wid.astype(mm_dtype)

    weight_args = (wca1_c, bca1, wca2_c, bca2,
                   wsp1_r, sc1, sh1, wsp2_r, sc2, sh2, wid_c, bid)

    def run(dense_out):
        kernel = functools.partial(_gam_kernel, Bb=Bb, H=H, W=W, C=C, CR=CR,
                                   CO=CO, dense_out=dense_out)
        in_specs = [pl.BlockSpec((Bb, H, W, C), lambda b: (b, 0, 0, 0))]
        in_specs += [_full_spec(w) for w in weight_args]
        if dense_out:
            out_shape = jax.ShapeDtypeStruct((B, H, W * CO), jnp.float32)
            out_spec = pl.BlockSpec((Bb, H, W * CO), lambda b: (b, 0, 0))
        else:
            out_shape = jax.ShapeDtypeStruct((B, H, W, CO), jnp.float32)
            out_spec = pl.BlockSpec((Bb, H, W, CO), lambda b: (b, 0, 0, 0))
        return pl.pallas_call(
            kernel,
            out_shape=out_shape,
            grid_spec=pltpu.PrefetchScalarGridSpec(
                num_scalar_prefetch=0,
                grid=(nb,),
                in_specs=in_specs,
                out_specs=out_spec,
                scratch_shapes=[
                    pltpu.VMEM((Bb, Hp, Wp, C), mm_dtype),     # pad1 (bf16)
                    pltpu.VMEM((Bb, Hp, Wp, CR), mm_dtype),    # pad2 (bf16)
                    pltpu.VMEM((Bb, Hp, W, K * C), mm_dtype),  # col1 (bf16)
                    pltpu.VMEM((Bb, Hp, W, K * CR), mm_dtype), # col2 (bf16)
                ],
            ),
            compiler_params=pltpu.CompilerParams(
                # batch blocks are independent, scratch is re-initialized each
                # step -> safe to shard across TensorCores on v7x
                dimension_semantics=("parallel",),
                vmem_limit_bytes=vmem_limit,
            ),
        )(x, *weight_args)

    if lane_dense_output:
        try:
            out = jax.block_until_ready(run(True)).reshape(B, H, W, CO)
        except Exception:
            # Fallback if the minor-dim-changing reshape does not lower on this
            # Mosaic version: masked (Bb,H,W,CO) store, otherwise identical.
            out = run(False)
    else:
        out = run(False)

    return jnp.transpose(out, (0, 3, 1, 2))               # NHWC -> NCHW (glue)


def init_params(key, channel, out_channel, rate):
    """Deterministic synthetic parameters (matches gam_block.__init__ shapes)."""
    C, CO = channel, out_channel
    CR = int(C / rate)
    eps = 1e-5
    ks = jax.random.split(key, 20)

    def rnd(k, shape, scale=0.2):
        return jax.random.normal(k, shape, jnp.float32) * scale

    # channel attention: Linear(C, CR) -> ReLU -> Linear(CR, C)  (stored (in,out))
    wca1 = rnd(ks[0], (C, CR));  bca1 = rnd(ks[1], (1, CR))
    wca2 = rnd(ks[2], (CR, C));  bca2 = rnd(ks[3], (1, C))

    # spatial attention: Conv7x7(C->CR)+BN, Conv7x7(CR->CO)+BN   (weights HWIO)
    wsp1 = rnd(ks[4], (K, K, C, CR));  bsp1 = rnd(ks[5], (CR,))
    g1 = 1.0 + rnd(ks[6], (CR,), 0.05); b1 = rnd(ks[7], (CR,), 0.05)
    m1 = rnd(ks[8], (CR,), 0.05);       v1 = 1.0 + jnp.abs(rnd(ks[9], (CR,), 0.05))

    wsp2 = rnd(ks[10], (K, K, CR, CO)); bsp2 = rnd(ks[11], (CO,))
    g2 = 1.0 + rnd(ks[12], (CO,), 0.05); b2 = rnd(ks[13], (CO,), 0.05)
    m2 = rnd(ks[14], (CO,), 0.05);       v2 = 1.0 + jnp.abs(rnd(ks[15], (CO,), 0.05))

    # 1x1 identity conv  (C -> CO), stored as a plain matmul weight
    wid = rnd(ks[16], (C, CO)); bid = rnd(ks[17], (1, CO))

    # fold conv bias + BN (eval mode) into per-channel scale/shift
    scale1 = g1 / jnp.sqrt(v1 + eps)
    shift1 = (bsp1 - m1) * scale1 + b1
    scale2 = g2 / jnp.sqrt(v2 + eps)
    shift2 = (bsp2 - m2) * scale2 + b2

    # channel_shuffle(groups=4) folded as a permutation of conv2 output channels
    groups = 4
    assert CO % groups == 0
    perm = jnp.array([(c % groups) * (CO // groups) + (c // groups) for c in range(CO)],
                     dtype=jnp.int32)
    wsp2 = wsp2[..., perm]
    scale2 = scale2[perm]
    shift2 = shift2[perm]

    return (wca1, bca1, wca2, bca2,
            wsp1, scale1.reshape(1, CR), shift1.reshape(1, CR),
            wsp2, scale2.reshape(1, CO), shift2.reshape(1, CO),
            wid, bid)


if __name__ == "__main__":
    B, C, H, W = 2, 16, 8, 8
    CO, RATE = 16, 4                     # rate chosen so channel/rate >= 1

    key = jax.random.PRNGKey(0)
    kx, kp = jax.random.split(key)
    x = jax.random.normal(kx, (B, C, H, W), jnp.float32)   # NCHW like PyTorch
    params = init_params(kp, C, CO, RATE)

    out = gam_block_forward(x, params)
    jax.block_until_ready(out)
    assert out.shape == (B, CO, H, W) and out.dtype == jnp.float32
    print("KERNEL_OK")
</pallas_src>

<mosaic_0001>
module attributes {stable_mosaic.version = 11 : i64} {
  func.func @_gam_kernel(%arg0: i32, %arg1: memref<1x8x8x16xf32, #tpu.memory_space<vmem>>, %arg2: memref<16x4xbf16, #tpu.memory_space<vmem>>, %arg3: memref<1x4xf32, #tpu.memory_space<vmem>>, %arg4: memref<4x16xbf16, #tpu.memory_space<vmem>>, %arg5: memref<1x16xf32, #tpu.memory_space<vmem>>, %arg6: memref<7x112x4xbf16, #tpu.memory_space<vmem>>, %arg7: memref<1x4xf32, #tpu.memory_space<vmem>>, %arg8: memref<1x4xf32, #tpu.memory_space<vmem>>, %arg9: memref<7x28x16xbf16, #tpu.memory_space<vmem>>, %arg10: memref<1x16xf32, #tpu.memory_space<vmem>>, %arg11: memref<1x16xf32, #tpu.memory_space<vmem>>, %arg12: memref<16x16xbf16, #tpu.memory_space<vmem>>, %arg13: memref<1x16xf32, #tpu.memory_space<vmem>>, %arg14: memref<1x8x128xf32, #tpu.memory_space<vmem>>, %arg15: memref<1x14x14x16xbf16, #tpu.memory_space<vmem>>, %arg16: memref<1x14x14x4xbf16, #tpu.memory_space<vmem>>, %arg17: memref<1x14x8x112xbf16, #tpu.memory_space<vmem>>, %arg18: memref<1x14x8x28xbf16, #tpu.memory_space<vmem>>) attributes {dimension_semantics = [#tpu.dimension_semantics<parallel>], iteration_bounds = array<i64: 2>, scalar_prefetch = 0 : i64, scratch_operands = 4 : i64, tpu.core_type = #tpu.core_type<tc>, window_params = [{transform_indices = @transform_0, window_bounds = array<i64: 1, 8, 8, 16>}, {pipeline_mode = #tpu.pipeline_mode<synchronous>, transform_indices = @transform_1, window_bounds = array<i64: 16, 4>}, {pipeline_mode = #tpu.pipeline_mode<synchronous>, transform_indices = @transform_2, window_bounds = array<i64: 1, 4>}, {pipeline_mode = #tpu.pipeline_mode<synchronous>, transform_indices = @transform_3, window_bounds = array<i64: 4, 16>}, {pipeline_mode = #tpu.pipeline_mode<synchronous>, transform_indices = @transform_4, window_bounds = array<i64: 1, 16>}, {pipeline_mode = #tpu.pipeline_mode<synchronous>, transform_indices = @transform_5, window_bounds = array<i64: 7, 112, 4>}, {pipeline_mode = #tpu.pipeline_mode<synchronous>, transform_indices = @transform_6, window_bounds = array<i64: 1, 4>}, {pipeline_mode = #tpu.pipeline_mode<synchronous>, transform_indices = @transform_7, window_bounds = array<i64: 1, 4>}, {pipeline_mode = #tpu.pipeline_mode<synchronous>, transform_indices = @transform_8, window_bounds = array<i64: 7, 28, 16>}, {pipeline_mode = #tpu.pipeline_mode<synchronous>, transform_indices = @transform_9, window_bounds = array<i64: 1, 16>}, {pipeline_mode = #tpu.pipeline_mode<synchronous>, transform_indices = @transform_10, window_bounds = array<i64: 1, 16>}, {pipeline_mode = #tpu.pipeline_mode<synchronous>, transform_indices = @transform_11, window_bounds = array<i64: 16, 16>}, {pipeline_mode = #tpu.pipeline_mode<synchronous>, transform_indices = @transform_12, window_bounds = array<i64: 1, 16>}, {transform_indices = @transform_13, window_bounds = array<i64: 1, 8, 128>}]} {
    %cst = arith.constant 0.000000e+00 : bf16
    %0 = vector.broadcast %cst : bf16 to vector<1x3x14x16xbf16>
    %c0 = arith.constant 0 : index
    %c0_0 = arith.constant 0 : index
    %c0_1 = arith.constant 0 : index
    %c0_2 = arith.constant 0 : index
    %1 = vector.load %arg15[%c0, %c0_0, %c0_1, %c0_2] : memref<1x14x14x16xbf16, #tpu.memory_space<vmem>>, vector<1x3x14x16xbf16>
    tpu.vector_store %arg15[%c0, %c0_0, %c0_1, %c0_2], %0 {strides = array<i32>} : memref<1x14x14x16xbf16, #tpu.memory_space<vmem>>, vector<1x3x14x16xbf16>,
    %cst_3 = arith.constant 0.000000e+00 : bf16
    %2 = vector.broadcast %cst_3 : bf16 to vector<1x3x14x16xbf16>
    %c0_4 = arith.constant 0 : index
    %c11 = arith.constant 11 : index
    %c0_5 = arith.constant 0 : index
    %c0_6 = arith.constant 0 : index
    %3 = vector.load %arg15[%c0_4, %c11, %c0_5, %c0_6] : memref<1x14x14x16xbf16, #tpu.memory_space<vmem>>, vector<1x3x14x16xbf16>
    tpu.vector_store %arg15[%c0_4, %c11, %c0_5, %c0_6], %2 {strides = array<i32>} : memref<1x14x14x16xbf16, #tpu.memory_space<vmem>>, vector<1x3x14x16xbf16>,
    %cst_7 = arith.constant 0.000000e+00 : bf16
    %4 = vector.broadcast %cst_7 : bf16 to vector<1x14x3x16xbf16>
    %c0_8 = arith.constant 0 : index
    %c0_9 = arith.constant 0 : index
    %c0_10 = arith.constant 0 : index
    %c0_11 = arith.constant 0 : index
    %5 = vector.load %arg15[%c0_8, %c0_9, %c0_10, %c0_11] : memref<1x14x14x16xbf16, #tpu.memory_space<vmem>>, vector<1x14x3x16xbf16>
    tpu.vector_store %arg15[%c0_8, %c0_9, %c0_10, %c0_11], %4 {strides = array<i32>} : memref<1x14x14x16xbf16, #tpu.memory_space<vmem>>, vector<1x14x3x16xbf16>,
    %cst_12 = arith.constant 0.000000e+00 : bf16
    %6 = vector.broadcast %cst_12 : bf16 to vector<1x14x3x16xbf16>
    %c0_13 = arith.constant 0 : index
    %c0_14 = arith.constant 0 : index
    %c11_15 = arith.constant 11 : index
    %c0_16 = arith.constant 0 : index
    %7 = vector.load %arg15[%c0_13, %c0_14, %c11_15, %c0_16] : memref<1x14x14x16xbf16, #tpu.memory_space<vmem>>, vector<1x14x3x16xbf16>
    tpu.vector_store %arg15[%c0_13, %c0_14, %c11_15, %c0_16], %6 {strides = array<i32>} : memref<1x14x14x16xbf16, #tpu.memory_space<vmem>>, vector<1x14x3x16xbf16>,
    %cst_17 = arith.constant 0.000000e+00 : bf16
    %8 = vector.broadcast %cst_17 : bf16 to vector<1x3x14x4xbf16>
    %c0_18 = arith.constant 0 : index
    %c0_19 = arith.constant 0 : index
    %c0_20 = arith.constant 0 : index
    %c0_21 = arith.constant 0 : index
    %9 = vector.load %arg16[%c0_18, %c0_19, %c0_20, %c0_21] : memref<1x14x14x4xbf16, #tpu.memory_space<vmem>>, vector<1x3x14x4xbf16>
    tpu.vector_store %arg16[%c0_18, %c0_19, %c0_20, %c0_21], %8 {strides = array<i32>} : memref<1x14x14x4xbf16, #tpu.memory_space<vmem>>, vector<1x3x14x4xbf16>,
    %cst_22 = arith.constant 0.000000e+00 : bf16
    %10 = vector.broadcast %cst_22 : bf16 to vector<1x3x14x4xbf16>
    %c0_23 = arith.constant 0 : index
    %c11_24 = arith.constant 11 : index
    %c0_25 = arith.constant 0 : index
    %c0_26 = arith.constant 0 : index
    %11 = vector.load %arg16[%c0_23, %c11_24, %c0_25, %c0_26] : memref<1x14x14x4xbf16, #tpu.memory_space<vmem>>, vector<1x3x14x4xbf16>
    tpu.vector_store %arg16[%c0_23, %c11_24, %c0_25, %c0_26], %10 {strides = array<i32>} : memref<1x14x14x4xbf16, #tpu.memory_space<vmem>>, vector<1x3x14x4xbf16>,
    %cst_27 = arith.constant 0.000000e+00 : bf16
    %12 = vector.broadcast %cst_27 : bf16 to vector<1x14x3x4xbf16>
    %c0_28 = arith.constant 0 : index
    %c0_29 = arith.constant 0 : index
    %c0_30 = arith.constant 0 : index
    %c0_31 = arith.constant 0 : index
    %13 = vector.load %arg16[%c0_28, %c0_29, %c0_30, %c0_31] : memref<1x14x14x4xbf16, #tpu.memory_space<vmem>>, vector<1x14x3x4xbf16>
    tpu.vector_store %arg16[%c0_28, %c0_29, %c0_30, %c0_31], %12 {strides = array<i32>} : memref<1x14x14x4xbf16, #tpu.memory_space<vmem>>, vector<1x14x3x4xbf16>,
    %cst_32 = arith.constant 0.000000e+00 : bf16
    %14 = vector.broadcast %cst_32 : bf16 to vector<1x14x3x4xbf16>
    %c0_33 = arith.constant 0 : index
    %c0_34 = arith.constant 0 : index
    %c11_35 = arith.constant 11 : index
    %c0_36 = arith.constant 0 : index
    %15 = vector.load %arg16[%c0_33, %c0_34, %c11_35, %c0_36] : memref<1x14x14x4xbf16, #tpu.memory_space<vmem>>, vector<1x14x3x4xbf16>
    tpu.vector_store %arg16[%c0_33, %c0_34, %c11_35, %c0_36], %14 {strides = array<i32>} : memref<1x14x14x4xbf16, #tpu.memory_space<vmem>>, vector<1x14x3x4xbf16>,
    %c0_37 = arith.constant 0 : index
    %c0_38 = arith.constant 0 : index
    %c0_39 = arith.constant 0 : index
    %c0_40 = arith.constant 0 : index
    %16 = vector.load %arg1[%c0_37, %c0_38, %c0_39, %c0_40] : memref<1x8x8x16xf32, #tpu.memory_space<vmem>>, vector<1x8x8x16xf32>
    %17 = vector.shape_cast %16 : vector<1x8x8x16xf32> to vector<64x16xf32>
    %18 = arith.truncf %17 : vector<64x16xf32> to vector<64x16xbf16>
    %c0_41 = arith.constant 0 : index
    %c0_42 = arith.constant 0 : index
    %19 = vector.load %arg2[%c0_41, %c0_42] : memref<16x4xbf16, #tpu.memory_space<vmem>>, vector<16x4xbf16>
    %cst_43 = arith.constant dense<0.000000e+00> : vector<64x4xf32>
    %20 = tpu.matmul %18, %19, %cst_43 {dimension_numbers = #tpu.dot_dimension_numbers<[1], [0], [0], [1], [0, 0, 1, 1], [], []>} : vector<64x16xbf16>, vector<16x4xbf16>, vector<64x4xf32> -> vector<64x4xf32>
    %c0_44 = arith.constant 0 : index
    %c0_45 = arith.constant 0 : index
    %21 = vector.load %arg3[%c0_44, %c0_45] : memref<1x4xf32, #tpu.memory_space<vmem>>, vector<1x4xf32>
    %22 = vector.broadcast %21 : vector<1x4xf32> to vector<64x4xf32>
    %23 = arith.addf %20, %22 : vector<64x4xf32>
    %cst_46 = arith.constant 0.000000e+00 : f32
    %24 = vector.broadcast %cst_46 : f32 to vector<64x4xf32>
    %25 = arith.maximumf %23, %24 : vector<64x4xf32>
    %26 = arith.truncf %25 : vector<64x4xf32> to vector<64x4xbf16>
    %c0_47 = arith.constant 0 : index
    %c0_48 = arith.constant 0 : index
    %27 = vector.load %arg4[%c0_47, %c0_48] : memref<4x16xbf16, #tpu.memory_space<vmem>>, vector<4x16xbf16>
    %cst_49 = arith.constant dense<0.000000e+00> : vector<64x16xf32>
    %28 = tpu.matmul %26, %27, %cst_49 {dimension_numbers = #tpu.dot_dimension_numbers<[1], [0], [0], [1], [0, 0, 1, 1], [], []>} : vector<64x4xbf16>, vector<4x16xbf16>, vector<64x16xf32> -> vector<64x16xf32>
    %c0_50 = arith.constant 0 : index
    %c0_51 = arith.constant 0 : index
    %29 = vector.load %arg5[%c0_50, %c0_51] : memref<1x16xf32, #tpu.memory_space<vmem>>, vector<1x16xf32>
    %30 = vector.broadcast %29 : vector<1x16xf32> to vector<64x16xf32>
    %31 = arith.addf %28, %30 : vector<64x16xf32>
    %32 = arith.mulf %17, %31 : vector<64x16xf32>
    %33 = arith.truncf %32 : vector<64x16xf32> to vector<64x16xbf16>
    %34 = vector.shape_cast %33 : vector<64x16xbf16> to vector<1x8x8x16xbf16>
    %c0_52 = arith.constant 0 : index
    %c3 = arith.constant 3 : index
    %c3_53 = arith.constant 3 : index
    %c0_54 = arith.constant 0 : index
    %35 = vector.load %arg15[%c0_52, %c3, %c3_53, %c0_54] : memref<1x14x14x16xbf16, #tpu.memory_space<vmem>>, vector<1x8x8x16xbf16>
    tpu.vector_store %arg15[%c0_52, %c3, %c3_53, %c0_54], %34 {strides = array<i32>} : memref<1x14x14x16xbf16, #tpu.memory_space<vmem>>, vector<1x8x8x16xbf16>,
    %c0_55 = arith.constant 0 : index
    %c0_56 = arith.constant 0 : index
    %c0_57 = arith.constant 0 : index
    %c0_58 = arith.constant 0 : index
    %36 = vector.load %arg15[%c0_55, %c0_56, %c0_57, %c0_58] : memref<1x14x14x16xbf16, #tpu.memory_space<vmem>>, vector<1x14x8x16xbf16>
    %c0_59 = arith.constant 0 : index
    %c0_60 = arith.constant 0 : index
    %c0_61 = arith.constant 0 : index
    %c0_62 = arith.constant 0 : index
    %37 = vector.load %arg17[%c0_59, %c0_60, %c0_61, %c0_62] : memref<1x14x8x112xbf16, #tpu.memory_space<vmem>>, vector<1x14x8x16xbf16>
    tpu.vector_store %arg17[%c0_59, %c0_60, %c0_61, %c0_62], %36 {strides = array<i32>} : memref<1x14x8x112xbf16, #tpu.memory_space<vmem>>, vector<1x14x8x16xbf16>,
    %c0_63 = arith.constant 0 : index
    %c0_64 = arith.constant 0 : index
    %c1 = arith.constant 1 : index
    %c0_65 = arith.constant 0 : index
    %38 = vector.load %arg15[%c0_63, %c0_64, %c1, %c0_65] : memref<1x14x14x16xbf16, #tpu.memory_space<vmem>>, vector<1x14x8x16xbf16>
    %c0_66 = arith.constant 0 : index
    %c0_67 = arith.constant 0 : index
    %c0_68 = arith.constant 0 : index
    %c16 = arith.constant 16 : index
    %39 = vector.load %arg17[%c0_66, %c0_67, %c0_68, %c16] : memref<1x14x8x112xbf16, #tpu.memory_space<vmem>>, vector<1x14x8x16xbf16>
    tpu.vector_store %arg17[%c0_66, %c0_67, %c0_68, %c16], %38 {strides = array<i32>} : memref<1x14x8x112xbf16, #tpu.memory_space<vmem>>, vector<1x14x8x16xbf16>,
    %c0_69 = arith.constant 0 : index
    %c0_70 = arith.constant 0 : index
    %c2 = arith.constant 2 : index
    %c0_71 = arith.constant 0 : index
    %40 = vector.load %arg15[%c0_69, %c0_70, %c2, %c0_71] : memref<1x14x14x16xbf16, #tpu.memory_space<vmem>>, vector<1x14x8x16xbf16>
    %c0_72 = arith.constant 0 : index
    %c0_73 = arith.constant 0 : index
    %c0_74 = arith.constant 0 : index
    %c32 = arith.constant 32 : index
    %41 = vector.load %arg17[%c0_72, %c0_73, %c0_74, %c32] : memref<1x14x8x112xbf16, #tpu.memory_space<vmem>>, vector<1x14x8x16xbf16>
    tpu.vector_store %arg17[%c0_72, %c0_73, %c0_74, %c32], %40 {strides = array<i32>} : memref<1x14x8x112xbf16, #tpu.memory_space<vmem>>, vector<1x14x8x16xbf16>,
    %c0_75 = arith.constant 0 : index
    %c0_76 = arith.constant 0 : index
    %c3_77 = arith.constant 3 : index
    %c0_78 = arith.constant 0 : index
    %42 = vector.load %arg15[%c0_75, %c0_76, %c3_77, %c0_78] : memref<1x14x14x16xbf16, #tpu.memory_space<vmem>>, vector<1x14x8x16xbf16>
    %c0_79 = arith.constant 0 : index
    %c0_80 = arith.constant 0 : index
    %c0_81 = arith.constant 0 : index
    %c48 = arith.constant 48 : index
    %43 = vector.load %arg17[%c0_79, %c0_80, %c0_81, %c48] : memref<1x14x8x112xbf16, #tpu.memory_space<vmem>>, vector<1x14x8x16xbf16>
    tpu.vector_store %arg17[%c0_79, %c0_80, %c0_81, %c48], %42 {strides = array<i32>} : memref<1x14x8x112xbf16, #tpu.memory_space<vmem>>, vector<1x14x8x16xbf16>,
    %c0_82 = arith.constant 0 : index
    %c0_83 = arith.constant 0 : index
    %c4 = arith.constant 4 : index
    %c0_84 = arith.constant 0 : index
    %44 = vector.load %arg15[%c0_82, %c0_83, %c4, %c0_84] : memref<1x14x14x16xbf16, #tpu.memory_space<vmem>>, vector<1x14x8x16xbf16>
    %c0_85 = arith.constant 0 : index
    %c0_86 = arith.constant 0 : index
    %c0_87 = arith.constant 0 : index
    %c64 = arith.constant 64 : index
    %45 = vector.load %arg17[%c0_85, %c0_86, %c0_87, %c64] : memref<1x14x8x112xbf16, #tpu.memory_space<vmem>>, vector<1x14x8x16xbf16>
    tpu.vector_store %arg17[%c0_85, %c0_86, %c0_87, %c64], %44 {strides = array<i32>} : memref<1x14x8x112xbf16, #tpu.memory_space<vmem>>, vector<1x14x8x16xbf16>,
    %c0_88 = arith.constant 0 : index
    %c0_89 = arith.constant 0 : index
    %c5 = arith.constant 5 : index
    %c0_90 = arith.constant 0 : index
    %46 = vector.load %arg15[%c0_88, %c0_89, %c5, %c0_90] : memref<1x14x14x16xbf16, #tpu.memory_space<vmem>>, vector<1x14x8x16xbf16>
    %c0_91 = arith.constant 0 : index
    %c0_92 = arith.constant 0 : index
    %c0_93 = arith.constant 0 : index
    %c80 = arith.constant 80 : index
    %47 = vector.load %arg17[%c0_91, %c0_92, %c0_93, %c80] : memref<1x14x8x112xbf16, #tpu.memory_space<vmem>>, vector<1x14x8x16xbf16>
    tpu.vector_store %arg17[%c0_91, %c0_92, %c0_93, %c80], %46 {strides = array<i32>} : memref<1x14x8x112xbf16, #tpu.memory_space<vmem>>, vector<1x14x8x16xbf16>,
    %c0_94 = arith.constant 0 : index
    %c0_95 = arith.constant 0 : index
    %c6 = arith.constant 6 : index
    %c0_96 = arith.constant 0 : index
    %48 = vector.load %arg15[%c0_94, %c0_95, %c6, %c0_96] : memref<1x14x14x16xbf16, #tpu.memory_space<vmem>>, vector<1x14x8x16xbf16>
    %c0_97 = arith.constant 0 : index
    %c0_98 = arith.constant 0 : index
    %c0_99 = arith.constant 0 : index
    %c96 = arith.constant 96 : index
    %49 = vector.load %arg17[%c0_97, %c0_98, %c0_99, %c96] : memref<1x14x8x112xbf16, #tpu.memory_space<vmem>>, vector<1x14x8x16xbf16>
    tpu.vector_store %arg17[%c0_97, %c0_98, %c0_99, %c96], %48 {strides = array<i32>} : memref<1x14x8x112xbf16, #tpu.memory_space<vmem>>, vector<1x14x8x16xbf16>,
    %c0_100 = arith.constant 0 : index
    %c0_101 = arith.constant 0 : index
    %c0_102 = arith.constant 0 : index
    %c0_103 = arith.constant 0 : index
    %50 = vector.load %arg17[%c0_100, %c0_101, %c0_102, %c0_103] : memref<1x14x8x112xbf16, #tpu.memory_space<vmem>>, vector<1x8x8x112xbf16>
    %51 = vector.shape_cast %50 : vector<1x8x8x112xbf16> to vector<64x112xbf16>
    %c0_104 = arith.constant 0 : index
    %c0_105 = arith.constant 0 : index
    %c0_106 = arith.constant 0 : index
    %52 = vector.load %arg6[%c0_104, %c0_105, %c0_106] : memref<7x112x4xbf16, #tpu.memory_space<vmem>>, vector<1x112x4xbf16>
    %53 = vector.shape_cast %52 : vector<1x112x4xbf16> to vector<112x4xbf16>
    %cst_107 = arith.constant dense<0.000000e+00> : vector<64x4xf32>
    %54 = tpu.matmul %51, %53, %cst_107 {dimension_numbers = #tpu.dot_dimension_numbers<[1], [0], [0], [1], [0, 0, 1, 1], [], []>} : vector<64x112xbf16>, vector<112x4xbf16>, vector<64x4xf32> -> vector<64x4xf32>
    %c0_108 = arith.constant 0 : index
    %c1_109 = arith.constant 1 : index
    %c0_110 = arith.constant 0 : index
    %c0_111 = arith.constant 0 : index
    %55 = vector.load %arg17[%c0_108, %c1_109, %c0_110, %c0_111] : memref<1x14x8x112xbf16, #tpu.memory_space<vmem>>, vector<1x8x8x112xbf16>
    %56 = vector.shape_cast %55 : vector<1x8x8x112xbf16> to vector<64x112xbf16>
    %c1_112 = arith.constant 1 : index
    %c0_113 = arith.constant 0 : index
    %c0_114 = arith.constant 0 : index
    %57 = vector.load %arg6[%c1_112, %c0_113, %c0_114] : memref<7x112x4xbf16, #tpu.memory_space<vmem>>, vector<1x112x4xbf16>
    %58 = vector.shape_cast %57 : vector<1x112x4xbf16> to vector<112x4xbf16>
    %cst_115 = arith.constant dense<0.000000e+00> : vector<64x4xf32>
    %59 = tpu.matmul %56, %58, %cst_115 {dimension_numbers = #tpu.dot_dimension_numbers<[1], [0], [0], [1], [0, 0, 1, 1], [], []>} : vector<64x112xbf16>, vector<112x4xbf16>, vector<64x4xf32> -> vector<64x4xf32>
    %60 = arith.addf %54, %59 : vector<64x4xf32>
    %c0_116 = arith.constant 0 : index
    %c2_117 = arith.constant 2 : index
    %c0_118 = arith.constant 0 : index
    %c0_119 = arith.constant 0 : index
    %61 = vector.load %arg17[%c0_116, %c2_117, %c0_118, %c0_119] : memref<1x14x8x112xbf16, #tpu.memory_space<vmem>>, vector<1x8x8x112xbf16>
    %62 = vector.shape_cast %61 : vector<1x8x8x112xbf16> to vector<64x112xbf16>
    %c2_120 = arith.constant 2 : index
    %c0_121 = arith.constant 0 : index
    %c0_122 = arith.constant 0 : index
    %63 = vector.load %arg6[%c2_120, %c0_121, %c0_122] : memref<7x112x4xbf16, #tpu.memory_space<vmem>>, vector<1x112x4xbf16>
    %64 = vector.shape_cast %63 : vector<1x112x4xbf16> to vector<112x4xbf16>
    %cst_123 = arith.constant dense<0.000000e+00> : vector<64x4xf32>
    %65 = tpu.matmul %62, %64, %cst_123 {dimension_numbers = #tpu.dot_dimension_numbers<[1], [0], [0], [1], [0, 0, 1, 1], [], []>} : vector<64x112xbf16>, vector<112x4xbf16>, vector<64x4xf32> -> vector<64x4xf32>
    %66 = arith.addf %60, %65 : vector<64x4xf32>
    %c0_124 = arith.constant 0 : index
    %c3_125 = arith.constant 3 : index
    %c0_126 = arith.constant 0 : index
    %c0_127 = arith.constant 0 : index
    %67 = vector.load %arg17[%c0_124, %c3_125, %c0_126, %c0_127] : memref<1x14x8x112xbf16, #tpu.memory_space<vmem>>, vector<1x8x8x112xbf16>
    %68 = vector.shape_cast %67 : vector<1x8x8x112xbf16> to vector<64x112xbf16>
    %c3_128 = arith.constant 3 : index
    %c0_129 = arith.constant 0 : index
    %c0_130 = arith.constant 0 : index
    %69 = vector.load %arg6[%c3_128, %c0_129, %c0_130] : memref<7x112x4xbf16, #tpu.memory_space<vmem>>, vector<1x112x4xbf16>
    %70 = vector.shape_cast %69 : vector<1x112x4xbf16> to vector<112x4xbf16>
    %cst_131 = arith.constant dense<0.000000e+00> : vector<64x4xf32>
    %71 = tpu.matmul %68, %70, %cst_131 {dimension_numbers = #tpu.dot_dimension_numbers<[1], [0], [0], [1], [0, 0, 1, 1], [], []>} : vector<64x112xbf16>, vector<112x4xbf16>, vector<64x4xf32> -> vector<64x4xf32>
    %72 = arith.addf %66, %71 : vector<64x4xf32>
    %c0_132 = arith.constant 0 : index
    %c4_133 = arith.constant 4 : index
    %c0_134 = arith.constant 0 : index
    %c0_135 = arith.constant 0 : index
    %73 = vector.load %arg17[%c0_132, %c4_133, %c0_134, %c0_135] : memref<1x14x8x112xbf16, #tpu.memory_space<vmem>>, vector<1x8x8x112xbf16>
    %74 = vector.shape_cast %73 : vector<1x8x8x112xbf16> to vector<64x112xbf16>
    %c4_136 = arith.constant 4 : index
    %c0_137 = arith.constant 0 : index
    %c0_138 = arith.constant 0 : index
    %75 = vector.load %arg6[%c4_136, %c0_137, %c0_138] : memref<7x112x4xbf16, #tpu.memory_space<vmem>>, vector<1x112x4xbf16>
    %76 = vector.shape_cast %75 : vector<1x112x4xbf16> to vector<112x4xbf16>
    %cst_139 = arith.constant dense<0.000000e+00> : vector<64x4xf32>
    %77 = tpu.matmul %74, %76, %cst_139 {dimension_numbers = #tpu.dot_dimension_numbers<[1], [0], [0], [1], [0, 0, 1, 1], [], []>} : vector<64x112xbf16>, vector<112x4xbf16>, vector<64x4xf32> -> vector<64x4xf32>
    %78 = arith.addf %72, %77 : vector<64x4xf32>
    %c0_140 = arith.constant 0 : index
    %c5_141 = arith.constant 5 : index
    %c0_142 = arith.constant 0 : index
    %c0_143 = arith.constant 0 : index
    %79 = vector.load %arg17[%c0_140, %c5_141, %c0_142, %c0_143] : memref<1x14x8x112xbf16, #tpu.memory_space<vmem>>, vector<1x8x8x112xbf16>
    %80 = vector.shape_cast %79 : vector<1x8x8x112xbf16> to vector<64x112xbf16>
    %c5_144 = arith.constant 5 : index
    %c0_145 = arith.constant 0 : index
    %c0_146 = arith.constant 0 : index
    %81 = vector.load %arg6[%c5_144, %c0_145, %c0_146] : memref<7x112x4xbf16, #tpu.memory_space<vmem>>, vector<1x112x4xbf16>
    %82 = vector.shape_cast %81 : vector<1x112x4xbf16> to vector<112x4xbf16>
    %cst_147 = arith.constant dense<0.000000e+00> : vector<64x4xf32>
    %83 = tpu.matmul %80, %82, %cst_147 {dimension_numbers = #tpu.dot_dimension_numbers<[1], [0], [0], [1], [0, 0, 1, 1], [], []>} : vector<64x112xbf16>, vector<112x4xbf16>, vector<64x4xf32> -> vector<64x4xf32>
    %84 = arith.addf %78, %83 : vector<64x4xf32>
    %c0_148 = arith.constant 0 : index
    %c6_149 = arith.constant 6 : index
    %c0_150 = arith.constant 0 : index
    %c0_151 = arith.constant 0 : index
    %85 = vector.load %arg17[%c0_148, %c6_149, %c0_150, %c0_151] : memref<1x14x8x112xbf16, #tpu.memory_space<vmem>>, vector<1x8x8x112xbf16>
    %86 = vector.shape_cast %85 : vector<1x8x8x112xbf16> to vector<64x112xbf16>
    %c6_152 = arith.constant 6 : index
    %c0_153 = arith.constant 0 : index
    %c0_154 = arith.constant 0 : index
    %87 = vector.load %arg6[%c6_152, %c0_153, %c0_154] : memref<7x112x4xbf16, #tpu.memory_space<vmem>>, vector<1x112x4xbf16>
    %88 = vector.shape_cast %87 : vector<1x112x4xbf16> to vector<112x4xbf16>
    %cst_155 = arith.constant dense<0.000000e+00> : vector<64x4xf32>
    %89 = tpu.matmul %86, %88, %cst_155 {dimension_numbers = #tpu.dot_dimension_numbers<[1], [0], [0], [1], [0, 0, 1, 1], [], []>} : vector<64x112xbf16>, vector<112x4xbf16>, vector<64x4xf32> -> vector<64x4xf32>
    %90 = arith.addf %84, %89 : vector<64x4xf32>
    %c0_156 = arith.constant 0 : index
    %c0_157 = arith.constant 0 : index
    %91 = vector.load %arg7[%c0_156, %c0_157] : memref<1x4xf32, #tpu.memory_space<vmem>>, vector<1x4xf32>
    %92 = vector.broadcast %91 : vector<1x4xf32> to vector<64x4xf32>
    %93 = arith.mulf %90, %92 : vector<64x4xf32>
    %c0_158 = arith.constant 0 : index
    %c0_159 = arith.constant 0 : index
    %94 = vector.load %arg8[%c0_158, %c0_159] : memref<1x4xf32, #tpu.memory_space<vmem>>, vector<1x4xf32>
    %95 = vector.broadcast %94 : vector<1x4xf32> to vector<64x4xf32>
    %96 = arith.addf %93, %95 : vector<64x4xf32>
    %cst_160 = arith.constant 0.000000e+00 : f32
    %97 = vector.broadcast %cst_160 : f32 to vector<64x4xf32>
    %98 = arith.maximumf %96, %97 : vector<64x4xf32>
    %99 = arith.truncf %98 : vector<64x4xf32> to vector<64x4xbf16>
    %100 = vector.shape_cast %99 : vector<64x4xbf16> to vector<1x8x8x4xbf16>
    %c0_161 = arith.constant 0 : index
    %c3_162 = arith.constant 3 : index
    %c3_163 = arith.constant 3 : index
    %c0_164 = arith.constant 0 : index
    %101 = vector.load %arg16[%c0_161, %c3_162, %c3_163, %c0_164] : memref<1x14x14x4xbf16, #tpu.memory_space<vmem>>, vector<1x8x8x4xbf16>
    tpu.vector_store %arg16[%c0_161, %c3_162, %c3_163, %c0_164], %100 {strides = array<i32>} : memref<1x14x14x4xbf16, #tpu.memory_space<vmem>>, vector<1x8x8x4xbf16>,
    %c0_165 = arith.constant 0 : index
    %c0_166 = arith.constant 0 : index
    %c0_167 = arith.constant 0 : index
    %c0_168 = arith.constant 0 : index
    %102 = vector.load %arg16[%c0_165, %c0_166, %c0_167, %c0_168] : memref<1x14x14x4xbf16, #tpu.memory_space<vmem>>, vector<1x14x8x4xbf16>
    %c0_169 = arith.constant 0 : index
    %c0_170 = arith.constant 0 : index
    %c0_171 = arith.constant 0 : index
    %c0_172 = arith.constant 0 : index
    %103 = vector.load %arg18[%c0_169, %c0_170, %c0_171, %c0_172] : memref<1x14x8x28xbf16, #tpu.memory_space<vmem>>, vector<1x14x8x4xbf16>
    tpu.vector_store %arg18[%c0_169, %c0_170, %c0_171, %c0_172], %102 {strides = array<i32>} : memref<1x14x8x28xbf16, #tpu.memory_space<vmem>>, vector<1x14x8x4xbf16>,
    %c0_173 = arith.constant 0 : index
    %c0_174 = arith.constant 0 : index
    %c1_175 = arith.constant 1 : index
    %c0_176 = arith.constant 0 : index
    %104 = vector.load %arg16[%c0_173, %c0_174, %c1_175, %c0_176] : memref<1x14x14x4xbf16, #tpu.memory_space<vmem>>, vector<1x14x8x4xbf16>
    %c0_177 = arith.constant 0 : index
    %c0_178 = arith.constant 0 : index
    %c0_179 = arith.constant 0 : index
    %c4_180 = arith.constant 4 : index
    %105 = vector.load %arg18[%c0_177, %c0_178, %c0_179, %c4_180] : memref<1x14x8x28xbf16, #tpu.memory_space<vmem>>, vector<1x14x8x4xbf16>
    tpu.vector_store %arg18[%c0_177, %c0_178, %c0_179, %c4_180], %104 {strides = array<i32>} : memref<1x14x8x28xbf16, #tpu.memory_space<vmem>>, vector<1x14x8x4xbf16>,
    %c0_181 = arith.constant 0 : index
    %c0_182 = arith.constant 0 : index
    %c2_183 = arith.constant 2 : index
    %c0_184 = arith.constant 0 : index
    %106 = vector.load %arg16[%c0_181, %c0_182, %c2_183, %c0_184] : memref<1x14x14x4xbf16, #tpu.memory_space<vmem>>, vector<1x14x8x4xbf16>
    %c0_185 = arith.constant 0 : index
    %c0_186 = arith.constant 0 : index
    %c0_187 = arith.constant 0 : index
    %c8 = arith.constant 8 : index
    %107 = vector.load %arg18[%c0_185, %c0_186, %c0_187, %c8] : memref<1x14x8x28xbf16, #tpu.memory_space<vmem>>, vector<1x14x8x4xbf16>
    tpu.vector_store %arg18[%c0_185, %c0_186, %c0_187, %c8], %106 {strides = array<i32>} : memref<1x14x8x28xbf16, #tpu.memory_space<vmem>>, vector<1x14x8x4xbf16>,
    %c0_188 = arith.constant 0 : index
    %c0_189 = arith.constant 0 : index
    %c3_190 = arith.constant 3 : index
    %c0_191 = arith.constant 0 : index
    %108 = vector.load %arg16[%c0_188, %c0_189, %c3_190, %c0_191] : memref<1x14x14x4xbf16, #tpu.memory_space<vmem>>, vector<1x14x8x4xbf16>
    %c0_192 = arith.constant 0 : index
    %c0_193 = arith.constant 0 : index
    %c0_194 = arith.constant 0 : index
    %c12 = arith.constant 12 : index
    %109 = vector.load %arg18[%c0_192, %c0_193, %c0_194, %c12] : memref<1x14x8x28xbf16, #tpu.memory_space<vmem>>, vector<1x14x8x4xbf16>
    tpu.vector_store %arg18[%c0_192, %c0_193, %c0_194, %c12], %108 {strides = array<i32>} : memref<1x14x8x28xbf16, #tpu.memory_space<vmem>>, vector<1x14x8x4xbf16>,
    %c0_195 = arith.constant 0 : index
    %c0_196 = arith.constant 0 : index
    %c4_197 = arith.constant 4 : index
    %c0_198 = arith.constant 0 : index
    %110 = vector.load %arg16[%c0_195, %c0_196, %c4_197, %c0_198] : memref<1x14x14x4xbf16, #tpu.memory_space<vmem>>, vector<1x14x8x4xbf16>
    %c0_199 = arith.constant 0 : index
    %c0_200 = arith.constant 0 : index
    %c0_201 = arith.constant 0 : index
    %c16_202 = arith.constant 16 : index
    %111 = vector.load %arg18[%c0_199, %c0_200, %c0_201, %c16_202] : memref<1x14x8x28xbf16, #tpu.memory_space<vmem>>, vector<1x14x8x4xbf16>
    tpu.vector_store %arg18[%c0_199, %c0_200, %c0_201, %c16_202], %110 {strides = array<i32>} : memref<1x14x8x28xbf16, #tpu.memory_space<vmem>>, vector<1x14x8x4xbf16>,
    %c0_203 = arith.constant 0 : index
    %c0_204 = arith.constant 0 : index
    %c5_205 = arith.constant 5 : index
    %c0_206 = arith.constant 0 : index
    %112 = vector.load %arg16[%c0_203, %c0_204, %c5_205, %c0_206] : memref<1x14x14x4xbf16, #tpu.memory_space<vmem>>, vector<1x14x8x4xbf16>
    %c0_207 = arith.constant 0 : index
    %c0_208 = arith.constant 0 : index
    %c0_209 = arith.constant 0 : index
    %c20 = arith.constant 20 : index
    %113 = vector.load %arg18[%c0_207, %c0_208, %c0_209, %c20] : memref<1x14x8x28xbf16, #tpu.memory_space<vmem>>, vector<1x14x8x4xbf16>
    tpu.vector_store %arg18[%c0_207, %c0_208, %c0_209, %c20], %112 {strides = array<i32>} : memref<1x14x8x28xbf16, #tpu.memory_space<vmem>>, vector<1x14x8x4xbf16>,
    %c0_210 = arith.constant 0 : index
    %c0_211 = arith.constant 0 : index
    %c6_212 = arith.constant 6 : index
    %c0_213 = arith.constant 0 : index
    %114 = vector.load %arg16[%c0_210, %c0_211, %c6_212, %c0_213] : memref<1x14x14x4xbf16, #tpu.memory_space<vmem>>, vector<1x14x8x4xbf16>
    %c0_214 = arith.constant 0 : index
    %c0_215 = arith.constant 0 : index
    %c0_216 = arith.constant 0 : index
    %c24 = arith.constant 24 : index
    %115 = vector.load %arg18[%c0_214, %c0_215, %c0_216, %c24] : memref<1x14x8x28xbf16, #tpu.memory_space<vmem>>, vector<1x14x8x4xbf16>
    tpu.vector_store %arg18[%c0_214, %c0_215, %c0_216, %c24], %114 {strides = array<i32>} : memref<1x14x8x28xbf16, #tpu.memory_space<vmem>>, vector<1x14x8x4xbf16>,
    %c0_217 = arith.constant 0 : index
    %c0_218 = arith.constant 0 : index
    %c0_219 = arith.constant 0 : index
    %c0_220 = arith.constant 0 : index
    %116 = vector.load %arg18[%c0_217, %c0_218, %c0_219, %c0_220] : memref<1x14x8x28xbf16, #tpu.memory_space<vmem>>, vector<1x8x8x28xbf16>
    %117 = vector.shape_cast %116 : vector<1x8x8x28xbf16> to vector<64x28xbf16>
    %c0_221 = arith.constant 0 : index
    %c0_222 = arith.constant 0 : index
    %c0_223 = arith.constant 0 : index
    %118 = vector.load %arg9[%c0_221, %c0_222, %c0_223] : memref<7x28x16xbf16, #tpu.memory_space<vmem>>, vector<1x28x16xbf16>
    %119 = vector.shape_cast %118 : vector<1x28x16xbf16> to vector<28x16xbf16>
    %cst_224 = arith.constant dense<0.000000e+00> : vector<64x16xf32>
    %120 = tpu.matmul %117, %119, %cst_224 {dimension_numbers = #tpu.dot_dimension_numbers<[1], [0], [0], [1], [0, 0, 1, 1], [], []>} : vector<64x28xbf16>, vector<28x16xbf16>, vector<64x16xf32> -> vector<64x16xf32>
    %c0_225 = arith.constant 0 : index
    %c1_226 = arith.constant 1 : index
    %c0_227 = arith.constant 0 : index
    %c0_228 = arith.constant 0 : index
    %121 = vector.load %arg18[%c0_225, %c1_226, %c0_227, %c0_228] : memref<1x14x8x28xbf16, #tpu.memory_space<vmem>>, vector<1x8x8x28xbf16>
    %122 = vector.shape_cast %121 : vector<1x8x8x28xbf16> to vector<64x28xbf16>
    %c1_229 = arith.constant 1 : index
    %c0_230 = arith.constant 0 : index
    %c0_231 = arith.constant 0 : index
    %123 = vector.load %arg9[%c1_229, %c0_230, %c0_231] : memref<7x28x16xbf16, #tpu.memory_space<vmem>>, vector<1x28x16xbf16>
    %124 = vector.shape_cast %123 : vector<1x28x16xbf16> to vector<28x16xbf16>
    %cst_232 = arith.constant dense<0.000000e+00> : vector<64x16xf32>
    %125 = tpu.matmul %122, %124, %cst_232 {dimension_numbers = #tpu.dot_dimension_numbers<[1], [0], [0], [1], [0, 0, 1, 1], [], []>} : vector<64x28xbf16>, vector<28x16xbf16>, vector<64x16xf32> -> vector<64x16xf32>
    %126 = arith.addf %120, %125 : vector<64x16xf32>
    %c0_233 = arith.constant 0 : index
    %c2_234 = arith.constant 2 : index
    %c0_235 = arith.constant 0 : index
    %c0_236 = arith.constant 0 : index
    %127 = vector.load %arg18[%c0_233, %c2_234, %c0_235, %c0_236] : memref<1x14x8x28xbf16, #tpu.memory_space<vmem>>, vector<1x8x8x28xbf16>
    %128 = vector.shape_cast %127 : vector<1x8x8x28xbf16> to vector<64x28xbf16>
    %c2_237 = arith.constant 2 : index
    %c0_238 = arith.constant 0 : index
    %c0_239 = arith.constant 0 : index
    %129 = vector.load %arg9[%c2_237, %c0_238, %c0_239] : memref<7x28x16xbf16, #tpu.memory_space<vmem>>, vector<1x28x16xbf16>
    %130 = vector.shape_cast %129 : vector<1x28x16xbf16> to vector<28x16xbf16>
    %cst_240 = arith.constant dense<0.000000e+00> : vector<64x16xf32>
    %131 = tpu.matmul %128, %130, %cst_240 {dimension_numbers = #tpu.dot_dimension_numbers<[1], [0], [0], [1], [0, 0, 1, 1], [], []>} : vector<64x28xbf16>, vector<28x16xbf16>, vector<64x16xf32> -> vector<64x16xf32>
    %132 = arith.addf %126, %131 : vector<64x16xf32>
    %c0_241 = arith.constant 0 : index
    %c3_242 = arith.constant 3 : index
    %c0_243 = arith.constant 0 : index
    %c0_244 = arith.constant 0 : index
    %133 = vector.load %arg18[%c0_241, %c3_242, %c0_243, %c0_244] : memref<1x14x8x28xbf16, #tpu.memory_space<vmem>>, vector<1x8x8x28xbf16>
    %134 = vector.shape_cast %133 : vector<1x8x8x28xbf16> to vector<64x28xbf16>
    %c3_245 = arith.constant 3 : index
    %c0_246 = arith.constant 0 : index
    %c0_247 = arith.constant 0 : index
    %135 = vector.load %arg9[%c3_245, %c0_246, %c0_247] : memref<7x28x16xbf16, #tpu.memory_space<vmem>>, vector<1x28x16xbf16>
    %136 = vector.shape_cast %135 : vector<1x28x16xbf16> to vector<28x16xbf16>
    %cst_248 = arith.constant dense<0.000000e+00> : vector<64x16xf32>
    %137 = tpu.matmul %134, %136, %cst_248 {dimension_numbers = #tpu.dot_dimension_numbers<[1], [0], [0], [1], [0, 0, 1, 1], [], []>} : vector<64x28xbf16>, vector<28x16xbf16>, vector<64x16xf32> -> vector<64x16xf32>
    %138 = arith.addf %132, %137 : vector<64x16xf32>
    %c0_249 = arith.constant 0 : index
    %c4_250 = arith.constant 4 : index
    %c0_251 = arith.constant 0 : index
    %c0_252 = arith.constant 0 : index
    %139 = vector.load %arg18[%c0_249, %c4_250, %c0_251, %c0_252] : memref<1x14x8x28xbf16, #tpu.memory_space<vmem>>, vector<1x8x8x28xbf16>
    %140 = vector.shape_cast %139 : vector<1x8x8x28xbf16> to vector<64x28xbf16>
    %c4_253 = arith.constant 4 : index
    %c0_254 = arith.constant 0 : index
    %c0_255 = arith.constant 0 : index
    %141 = vector.load %arg9[%c4_253, %c0_254, %c0_255] : memref<7x28x16xbf16, #tpu.memory_space<vmem>>, vector<1x28x16xbf16>
    %142 = vector.shape_cast %141 : vector<1x28x16xbf16> to vector<28x16xbf16>
    %cst_256 = arith.constant dense<0.000000e+00> : vector<64x16xf32>
    %143 = tpu.matmul %140, %142, %cst_256 {dimension_numbers = #tpu.dot_dimension_numbers<[1], [0], [0], [1], [0, 0, 1, 1], [], []>} : vector<64x28xbf16>, vector<28x16xbf16>, vector<64x16xf32> -> vector<64x16xf32>
    %144 = arith.addf %138, %143 : vector<64x16xf32>
    %c0_257 = arith.constant 0 : index
    %c5_258 = arith.constant 5 : index
    %c0_259 = arith.constant 0 : index
    %c0_260 = arith.constant 0 : index
    %145 = vector.load %arg18[%c0_257, %c5_258, %c0_259, %c0_260] : memref<1x14x8x28xbf16, #tpu.memory_space<vmem>>, vector<1x8x8x28xbf16>
    %146 = vector.shape_cast %145 : vector<1x8x8x28xbf16> to vector<64x28xbf16>
    %c5_261 = arith.constant 5 : index
    %c0_262 = arith.constant 0 : index
    %c0_263 = arith.constant 0 : index
    %147 = vector.load %arg9[%c5_261, %c0_262, %c0_263] : memref<7x28x16xbf16, #tpu.memory_space<vmem>>, vector<1x28x16xbf16>
    %148 = vector.shape_cast %147 : vector<1x28x16xbf16> to vector<28x16xbf16>
    %cst_264 = arith.constant dense<0.000000e+00> : vector<64x16xf32>
    %149 = tpu.matmul %146, %148, %cst_264 {dimension_numbers = #tpu.dot_dimension_numbers<[1], [0], [0], [1], [0, 0, 1, 1], [], []>} : vector<64x28xbf16>, vector<28x16xbf16>, vector<64x16xf32> -> vector<64x16xf32>
    %150 = arith.addf %144, %149 : vector<64x16xf32>
    %c0_265 = arith.constant 0 : index
    %c6_266 = arith.constant 6 : index
    %c0_267 = arith.constant 0 : index
    %c0_268 = arith.constant 0 : index
    %151 = vector.load %arg18[%c0_265, %c6_266, %c0_267, %c0_268] : memref<1x14x8x28xbf16, #tpu.memory_space<vmem>>, vector<1x8x8x28xbf16>
    %152 = vector.shape_cast %151 : vector<1x8x8x28xbf16> to vector<64x28xbf16>
    %c6_269 = arith.constant 6 : index
    %c0_270 = arith.constant 0 : index
    %c0_271 = arith.constant 0 : index
    %153 = vector.load %arg9[%c6_269, %c0_270, %c0_271] : memref<7x28x16xbf16, #tpu.memory_space<vmem>>, vector<1x28x16xbf16>
    %154 = vector.shape_cast %153 : vector<1x28x16xbf16> to vector<28x16xbf16>
    %cst_272 = arith.constant dense<0.000000e+00> : vector<64x16xf32>
    %155 = tpu.matmul %152, %154, %cst_272 {dimension_numbers = #tpu.dot_dimension_numbers<[1], [0], [0], [1], [0, 0, 1, 1], [], []>} : vector<64x28xbf16>, vector<28x16xbf16>, vector<64x16xf32> -> vector<64x16xf32>
    %156 = arith.addf %150, %155 : vector<64x16xf32>
    %c0_273 = arith.constant 0 : index
    %c0_274 = arith.constant 0 : index
    %157 = vector.load %arg10[%c0_273, %c0_274] : memref<1x16xf32, #tpu.memory_space<vmem>>, vector<1x16xf32>
    %158 = vector.broadcast %157 : vector<1x16xf32> to vector<64x16xf32>
    %159 = arith.mulf %156, %158 : vector<64x16xf32>
    %c0_275 = arith.constant 0 : index
    %c0_276 = arith.constant 0 : index
    %160 = vector.load %arg11[%c0_275, %c0_276] : memref<1x16xf32, #tpu.memory_space<vmem>>, vector<1x16xf32>
    %161 = vector.broadcast %160 : vector<1x16xf32> to vector<64x16xf32>
    %162 = arith.addf %159, %161 : vector<64x16xf32>
    %163 = arith.negf %162 : vector<64x16xf32>
    %164 = math.exp %163 : vector<64x16xf32>
    %cst_277 = arith.constant 1.000000e+00 : f32
    %165 = vector.broadcast %cst_277 : f32 to vector<64x16xf32>
    %166 = arith.addf %165, %164 : vector<64x16xf32>
    %167 = arith.divf %165, %166 : vector<64x16xf32>
    %c0_278 = arith.constant 0 : index
    %c0_279 = arith.constant 0 : index
    %168 = vector.load %arg12[%c0_278, %c0_279] : memref<16x16xbf16, #tpu.memory_space<vmem>>, vector<16x16xbf16>
    %cst_280 = arith.constant dense<0.000000e+00> : vector<64x16xf32>
    %169 = tpu.matmul %33, %168, %cst_280 {dimension_numbers = #tpu.dot_dimension_numbers<[1], [0], [0], [1], [0, 0, 1, 1], [], []>} : vector<64x16xbf16>, vector<16x16xbf16>, vector<64x16xf32> -> vector<64x16xf32>
    %c0_281 = arith.constant 0 : index
    %c0_282 = arith.constant 0 : index
    %170 = vector.load %arg13[%c0_281, %c0_282] : memref<1x16xf32, #tpu.memory_space<vmem>>, vector<1x16xf32>
    %171 = vector.broadcast %170 : vector<1x16xf32> to vector<64x16xf32>
    %172 = arith.addf %169, %171 : vector<64x16xf32>
    %173 = arith.mulf %172, %167 : vector<64x16xf32>
    %174 = vector.shape_cast %173 : vector<64x16xf32> to vector<1x8x128xf32>
    %c0_283 = arith.constant 0 : index
    %c0_284 = arith.constant 0 : index
    %c0_285 = arith.constant 0 : index
    %175 = vector.load %arg14[%c0_283, %c0_284, %c0_285] : memref<1x8x128xf32, #tpu.memory_space<vmem>>, vector<1x8x128xf32>
    tpu.vector_store %arg14[%c0_283, %c0_284, %c0_285], %174 {strides = array<i32>} : memref<1x8x128xf32, #tpu.memory_space<vmem>>, vector<1x8x128xf32>,
    return
  }
  func.func @transform_0(%arg0: i32) -> (i32, i32, i32, i32) {
    %c0_i32 = arith.constant 0 : i32
    %c0_i32_0 = arith.constant 0 : i32
    %c0_i32_1 = arith.constant 0 : i32
    %c0_i32_2 = arith.constant 0 : i32
    return %arg0, %c0_i32, %c0_i32_0, %c0_i32_1 : i32, i32, i32, i32
  }
  func.func @transform_1(%arg0: i32) -> (i32, i32) {
    %c0_i32 = arith.constant 0 : i32
    %c0_i32_0 = arith.constant 0 : i32
    %c0_i32_1 = arith.constant 0 : i32
    return %c0_i32, %c0_i32_0 : i32, i32
  }
  func.func @transform_2(%arg0: i32) -> (i32, i32) {
    %c0_i32 = arith.constant 0 : i32
    %c0_i32_0 = arith.constant 0 : i32
    %c0_i32_1 = arith.constant 0 : i32
    return %c0_i32, %c0_i32_0 : i32, i32
  }
  func.func @transform_3(%arg0: i32) -> (i32, i32) {
    %c0_i32 = arith.constant 0 : i32
    %c0_i32_0 = arith.constant 0 : i32
    %c0_i32_1 = arith.constant 0 : i32
    return %c0_i32, %c0_i32_0 : i32, i32
  }
  func.func @transform_4(%arg0: i32) -> (i32, i32) {
    %c0_i32 = arith.constant 0 : i32
    %c0_i32_0 = arith.constant 0 : i32
    %c0_i32_1 = arith.constant 0 : i32
    return %c0_i32, %c0_i32_0 : i32, i32
  }
  func.func @transform_5(%arg0: i32) -> (i32, i32, i32) {
    %c0_i32 = arith.constant 0 : i32
    %c0_i32_0 = arith.constant 0 : i32
    %c0_i32_1 = arith.constant 0 : i32
    %c0_i32_2 = arith.constant 0 : i32
    return %c0_i32, %c0_i32_0, %c0_i32_1 : i32, i32, i32
  }
  func.func @transform_6(%arg0: i32) -> (i32, i32) {
    %c0_i32 = arith.constant 0 : i32
    %c0_i32_0 = arith.constant 0 : i32
    %c0_i32_1 = arith.constant 0 : i32
    return %c0_i32, %c0_i32_0 : i32, i32
  }
  func.func @transform_7(%arg0: i32) -> (i32, i32) {
    %c0_i32 = arith.constant 0 : i32
    %c0_i32_0 = arith.constant 0 : i32
    %c0_i32_1 = arith.constant 0 : i32
    return %c0_i32, %c0_i32_0 : i32, i32
  }
  func.func @transform_8(%arg0: i32) -> (i32, i32, i32) {
    %c0_i32 = arith.constant 0 : i32
    %c0_i32_0 = arith.constant 0 : i32
    %c0_i32_1 = arith.constant 0 : i32
    %c0_i32_2 = arith.constant 0 : i32
    return %c0_i32, %c0_i32_0, %c0_i32_1 : i32, i32, i32
  }
  func.func @transform_9(%arg0: i32) -> (i32, i32) {
    %c0_i32 = arith.constant 0 : i32
    %c0_i32_0 = arith.constant 0 : i32
    %c0_i32_1 = arith.constant 0 : i32
    return %c0_i32, %c0_i32_0 : i32, i32
  }
  func.func @transform_10(%arg0: i32) -> (i32, i32) {
    %c0_i32 = arith.constant 0 : i32
    %c0_i32_0 = arith.constant 0 : i32
    %c0_i32_1 = arith.constant 0 : i32
    return %c0_i32, %c0_i32_0 : i32, i32
  }
  func.func @transform_11(%arg0: i32) -> (i32, i32) {
    %c0_i32 = arith.constant 0 : i32
    %c0_i32_0 = arith.constant 0 : i32
    %c0_i32_1 = arith.constant 0 : i32
    return %c0_i32, %c0_i32_0 : i32, i32
  }
  func.func @transform_12(%arg0: i32) -> (i32, i32) {
    %c0_i32 = arith.constant 0 : i32
    %c0_i32_0 = arith.constant 0 : i32
    %c0_i32_1 = arith.constant 0 : i32
    return %c0_i32, %c0_i32_0 : i32, i32
  }
  func.func @transform_13(%arg0: i32) -> (i32, i32, i32) {
    %c0_i32 = arith.constant 0 : i32
    %c0_i32_0 = arith.constant 0 : i32
    %c0_i32_1 = arith.constant 0 : i32
    return %arg0, %c0_i32, %c0_i32_0 : i32, i32, i32
  }
}

module attributes {stable_mosaic.version = 11 : i64} {
  func.func @_gam_kernel(%arg0: i32, %arg1: memref<1x8x8x16xf32, #tpu.memory_space<vmem>>, %arg2: memref<16x4xbf16, #tpu.memory_space<vmem>>, %arg3: memref<1x4xf32, #tpu.memory_space<vmem>>, %arg4: memref<4x16xbf16, #tpu.memory_space<vmem>>, %arg5: memref<1x16xf32, #tpu.memory_space<vmem>>, %arg6: memref<7x112x4xbf16, #tpu.memory_space<vmem>>, %arg7: memref<1x4xf32, #tpu.memory_space<vmem>>, %arg8: memref<1x4xf32, #tpu.memory_space<vmem>>, %arg9: memref<7x28x16xbf16, #tpu.memory_space<vmem>>, %arg10: memref<1x16xf32, #tpu.memory_space<vmem>>, %arg11: memref<1x16xf32, #tpu.memory_space<vmem>>, %arg12: memref<16x16xbf16, #tpu.memory_space<vmem>>, %arg13: memref<1x16xf32, #tpu.memory_space<vmem>>, %arg14: memref<1x8x8x16xf32, #tpu.memory_space<vmem>>, %arg15: memref<1x14x14x16xbf16, #tpu.memory_space<vmem>>, %arg16: memref<1x14x14x4xbf16, #tpu.memory_space<vmem>>, %arg17: memref<1x14x8x112xbf16, #tpu.memory_space<vmem>>, %arg18: memref<1x14x8x28xbf16, #tpu.memory_space<vmem>>) attributes {dimension_semantics = [#tpu.dimension_semantics<parallel>], iteration_bounds = array<i64: 2>, scalar_prefetch = 0 : i64, scratch_operands = 4 : i64, tpu.core_type = #tpu.core_type<tc>, window_params = [{transform_indices = @transform_0, window_bounds = array<i64: 1, 8, 8, 16>}, {pipeline_mode = #tpu.pipeline_mode<synchronous>, transform_indices = @transform_1, window_bounds = array<i64: 16, 4>}, {pipeline_mode = #tpu.pipeline_mode<synchronous>, transform_indices = @transform_2, window_bounds = array<i64: 1, 4>}, {pipeline_mode = #tpu.pipeline_mode<synchronous>, transform_indices = @transform_3, window_bounds = array<i64: 4, 16>}, {pipeline_mode = #tpu.pipeline_mode<synchronous>, transform_indices = @transform_4, window_bounds = array<i64: 1, 16>}, {pipeline_mode = #tpu.pipeline_mode<synchronous>, transform_indices = @transform_5, window_bounds = array<i64: 7, 112, 4>}, {pipeline_mode = #tpu.pipeline_mode<synchronous>, transform_indices = @transform_6, window_bounds = array<i64: 1, 4>}, {pipeline_mode = #tpu.pipeline_mode<synchronous>, transform_indices = @transform_7, window_bounds = array<i64: 1, 4>}, {pipeline_mode = #tpu.pipeline_mode<synchronous>, transform_indices = @transform_8, window_bounds = array<i64: 7, 28, 16>}, {pipeline_mode = #tpu.pipeline_mode<synchronous>, transform_indices = @transform_9, window_bounds = array<i64: 1, 16>}, {pipeline_mode = #tpu.pipeline_mode<synchronous>, transform_indices = @transform_10, window_bounds = array<i64: 1, 16>}, {pipeline_mode = #tpu.pipeline_mode<synchronous>, transform_indices = @transform_11, window_bounds = array<i64: 16, 16>}, {pipeline_mode = #tpu.pipeline_mode<synchronous>, transform_indices = @transform_12, window_bounds = array<i64: 1, 16>}, {transform_indices = @transform_13, window_bounds = array<i64: 1, 8, 8, 16>}]} {
    %cst = arith.constant 0.000000e+00 : bf16
    %0 = vector.broadcast %cst : bf16 to vector<1x3x14x16xbf16>
    %c0 = arith.constant 0 : index
    %c0_0 = arith.constant 0 : index
    %c0_1 = arith.constant 0 : index
    %c0_2 = arith.constant 0 : index
    %1 = vector.load %arg15[%c0, %c0_0, %c0_1, %c0_2] : memref<1x14x14x16xbf16, #tpu.memory_space<vmem>>, vector<1x3x14x16xbf16>
    tpu.vector_store %arg15[%c0, %c0_0, %c0_1, %c0_2], %0 {strides = array<i32>} : memref<1x14x14x16xbf16, #tpu.memory_space<vmem>>, vector<1x3x14x16xbf16>,
    %cst_3 = arith.constant 0.000000e+00 : bf16
    %2 = vector.broadcast %cst_3 : bf16 to vector<1x3x14x16xbf16>
    %c0_4 = arith.constant 0 : index
    %c11 = arith.constant 11 : index
    %c0_5 = arith.constant 0 : index
    %c0_6 = arith.constant 0 : index
    %3 = vector.load %arg15[%c0_4, %c11, %c0_5, %c0_6] : memref<1x14x14x16xbf16, #tpu.memory_space<vmem>>, vector<1x3x14x16xbf16>
    tpu.vector_store %arg15[%c0_4, %c11, %c0_5, %c0_6], %2 {strides = array<i32>} : memref<1x14x14x16xbf16, #tpu.memory_space<vmem>>, vector<1x3x14x16xbf16>,
    %cst_7 = arith.constant 0.000000e+00 : bf16
    %4 = vector.broadcast %cst_7 : bf16 to vector<1x14x3x16xbf16>
    %c0_8 = arith.constant 0 : index
    %c0_9 = arith.constant 0 : index
    %c0_10 = arith.constant 0 : index
    %c0_11 = arith.constant 0 : index
    %5 = vector.load %arg15[%c0_8, %c0_9, %c0_10, %c0_11] : memref<1x14x14x16xbf16, #tpu.memory_space<vmem>>, vector<1x14x3x16xbf16>
    tpu.vector_store %arg15[%c0_8, %c0_9, %c0_10, %c0_11], %4 {strides = array<i32>} : memref<1x14x14x16xbf16, #tpu.memory_space<vmem>>, vector<1x14x3x16xbf16>,
    %cst_12 = arith.constant 0.000000e+00 : bf16
    %6 = vector.broadcast %cst_12 : bf16 to vector<1x14x3x16xbf16>
    %c0_13 = arith.constant 0 : index
    %c0_14 = arith.constant 0 : index
    %c11_15 = arith.constant 11 : index
    %c0_16 = arith.constant 0 : index
    %7 = vector.load %arg15[%c0_13, %c0_14, %c11_15, %c0_16] : memref<1x14x14x16xbf16, #tpu.memory_space<vmem>>, vector<1x14x3x16xbf16>
    tpu.vector_store %arg15[%c0_13, %c0_14, %c11_15, %c0_16], %6 {strides = array<i32>} : memref<1x14x14x16xbf16, #tpu.memory_space<vmem>>, vector<1x14x3x16xbf16>,
    %cst_17 = arith.constant 0.000000e+00 : bf16
    %8 = vector.broadcast %cst_17 : bf16 to vector<1x3x14x4xbf16>
    %c0_18 = arith.constant 0 : index
    %c0_19 = arith.constant 0 : index
    %c0_20 = arith.constant 0 : index
    %c0_21 = arith.constant 0 : index
    %9 = vector.load %arg16[%c0_18, %c0_19, %c0_20, %c0_21] : memref<1x14x14x4xbf16, #tpu.memory_space<vmem>>, vector<1x3x14x4xbf16>
    tpu.vector_store %arg16[%c0_18, %c0_19, %c0_20, %c0_21], %8 {strides = array<i32>} : memref<1x14x14x4xbf16, #tpu.memory_space<vmem>>, vector<1x3x14x4xbf16>,
    %cst_22 = arith.constant 0.000000e+00 : bf16
    %10 = vector.broadcast %cst_22 : bf16 to vector<1x3x14x4xbf16>
    %c0_23 = arith.constant 0 : index
    %c11_24 = arith.constant 11 : index
    %c0_25 = arith.constant 0 : index
    %c0_26 = arith.constant 0 : index
    %11 = vector.load %arg16[%c0_23, %c11_24, %c0_25, %c0_26] : memref<1x14x14x4xbf16, #tpu.memory_space<vmem>>, vector<1x3x14x4xbf16>
    tpu.vector_store %arg16[%c0_23, %c11_24, %c0_25, %c0_26], %10 {strides = array<i32>} : memref<1x14x14x4xbf16, #tpu.memory_space<vmem>>, vector<1x3x14x4xbf16>,
    %cst_27 = arith.constant 0.000000e+00 : bf16
    %12 = vector.broadcast %cst_27 : bf16 to vector<1x14x3x4xbf16>
    %c0_28 = arith.constant 0 : index
    %c0_29 = arith.constant 0 : index
    %c0_30 = arith.constant 0 : index
    %c0_31 = arith.constant 0 : index
    %13 = vector.load %arg16[%c0_28, %c0_29, %c0_30, %c0_31] : memref<1x14x14x4xbf16, #tpu.memory_space<vmem>>, vector<1x14x3x4xbf16>
    tpu.vector_store %arg16[%c0_28, %c0_29, %c0_30, %c0_31], %12 {strides = array<i32>} : memref<1x14x14x4xbf16, #tpu.memory_space<vmem>>, vector<1x14x3x4xbf16>,
    %cst_32 = arith.constant 0.000000e+00 : bf16
    %14 = vector.broadcast %cst_32 : bf16 to vector<1x14x3x4xbf16>
    %c0_33 = arith.constant 0 : index
    %c0_34 = arith.constant 0 : index
    %c11_35 = arith.constant 11 : index
    %c0_36 = arith.constant 0 : index
    %15 = vector.load %arg16[%c0_33, %c0_34, %c11_35, %c0_36] : memref<1x14x14x4xbf16, #tpu.memory_space<vmem>>, vector<1x14x3x4xbf16>
    tpu.vector_store %arg16[%c0_33, %c0_34, %c11_35, %c0_36], %14 {strides = array<i32>} : memref<1x14x14x4xbf16, #tpu.memory_space<vmem>>, vector<1x14x3x4xbf16>,
    %c0_37 = arith.constant 0 : index
    %c0_38 = arith.constant 0 : index
    %c0_39 = arith.constant 0 : index
    %c0_40 = arith.constant 0 : index
    %16 = vector.load %arg1[%c0_37, %c0_38, %c0_39, %c0_40] : memref<1x8x8x16xf32, #tpu.memory_space<vmem>>, vector<1x8x8x16xf32>
    %17 = vector.shape_cast %16 : vector<1x8x8x16xf32> to vector<64x16xf32>
    %18 = arith.truncf %17 : vector<64x16xf32> to vector<64x16xbf16>
    %c0_41 = arith.constant 0 : index
    %c0_42 = arith.constant 0 : index
    %19 = vector.load %arg2[%c0_41, %c0_42] : memref<16x4xbf16, #tpu.memory_space<vmem>>, vector<16x4xbf16>
    %cst_43 = arith.constant dense<0.000000e+00> : vector<64x4xf32>
    %20 = tpu.matmul %18, %19, %cst_43 {dimension_numbers = #tpu.dot_dimension_numbers<[1], [0], [0], [1], [0, 0, 1, 1], [], []>} : vector<64x16xbf16>, vector<16x4xbf16>, vector<64x4xf32> -> vector<64x4xf32>
    %c0_44 = arith.constant 0 : index
    %c0_45 = arith.constant 0 : index
    %21 = vector.load %arg3[%c0_44, %c0_45] : memref<1x4xf32, #tpu.memory_space<vmem>>, vector<1x4xf32>
    %22 = vector.broadcast %21 : vector<1x4xf32> to vector<64x4xf32>
    %23 = arith.addf %20, %22 : vector<64x4xf32>
    %cst_46 = arith.constant 0.000000e+00 : f32
    %24 = vector.broadcast %cst_46 : f32 to vector<64x4xf32>
    %25 = arith.maximumf %23, %24 : vector<64x4xf32>
    %26 = arith.truncf %25 : vector<64x4xf32> to vector<64x4xbf16>
    %c0_47 = arith.constant 0 : index
    %c0_48 = arith.constant 0 : index
    %27 = vector.load %arg4[%c0_47, %c0_48] : memref<4x16xbf16, #tpu.memory_space<vmem>>, vector<4x16xbf16>
    %cst_49 = arith.constant dense<0.000000e+00> : vector<64x16xf32>
    %28 = tpu.matmul %26, %27, %cst_49 {dimension_numbers = #tpu.dot_dimension_numbers<[1], [0], [0], [1], [0, 0, 1, 1], [], []>} : vector<64x4xbf16>, vector<4x16xbf16>, vector<64x16xf32> -> vector<64x16xf32>
    %c0_50 = arith.constant 0 : index
    %c0_51 = arith.constant 0 : index
    %29 = vector.load %arg5[%c0_50, %c0_51] : memref<1x16xf32, #tpu.memory_space<vmem>>, vector<1x16xf32>
    %30 = vector.broadcast %29 : vector<1x16xf32> to vector<64x16xf32>
    %31 = arith.addf %28, %30 : vector<64x16xf32>
    %32 = arith.mulf %17, %31 : vector<64x16xf32>
    %33 = arith.truncf %32 : vector<64x16xf32> to vector<64x16xbf16>
    %34 = vector.shape_cast %33 : vector<64x16xbf16> to vector<1x8x8x16xbf16>
    %c0_52 = arith.constant 0 : index
    %c3 = arith.constant 3 : index
    %c3_53 = arith.constant 3 : index
    %c0_54 = arith.constant 0 : index
    %35 = vector.load %arg15[%c0_52, %c3, %c3_53, %c0_54] : memref<1x14x14x16xbf16, #tpu.memory_space<vmem>>, vector<1x8x8x16xbf16>
    tpu.vector_store %arg15[%c0_52, %c3, %c3_53, %c0_54], %34 {strides = array<i32>} : memref<1x14x14x16xbf16, #tpu.memory_space<vmem>>, vector<1x8x8x16xbf16>,
    %c0_55 = arith.constant 0 : index
    %c0_56 = arith.constant 0 : index
    %c0_57 = arith.constant 0 : index
    %c0_58 = arith.constant 0 : index
    %36 = vector.load %arg15[%c0_55, %c0_56, %c0_57, %c0_58] : memref<1x14x14x16xbf16, #tpu.memory_space<vmem>>, vector<1x14x8x16xbf16>
    %c0_59 = arith.constant 0 : index
    %c0_60 = arith.constant 0 : index
    %c0_61 = arith.constant 0 : index
    %c0_62 = arith.constant 0 : index
    %37 = vector.load %arg17[%c0_59, %c0_60, %c0_61, %c0_62] : memref<1x14x8x112xbf16, #tpu.memory_space<vmem>>, vector<1x14x8x16xbf16>
    tpu.vector_store %arg17[%c0_59, %c0_60, %c0_61, %c0_62], %36 {strides = array<i32>} : memref<1x14x8x112xbf16, #tpu.memory_space<vmem>>, vector<1x14x8x16xbf16>,
    %c0_63 = arith.constant 0 : index
    %c0_64 = arith.constant 0 : index
    %c1 = arith.constant 1 : index
    %c0_65 = arith.constant 0 : index
    %38 = vector.load %arg15[%c0_63, %c0_64, %c1, %c0_65] : memref<1x14x14x16xbf16, #tpu.memory_space<vmem>>, vector<1x14x8x16xbf16>
    %c0_66 = arith.constant 0 : index
    %c0_67 = arith.constant 0 : index
    %c0_68 = arith.constant 0 : index
    %c16 = arith.constant 16 : index
    %39 = vector.load %arg17[%c0_66, %c0_67, %c0_68, %c16] : memref<1x14x8x112xbf16, #tpu.memory_space<vmem>>, vector<1x14x8x16xbf16>
    tpu.vector_store %arg17[%c0_66, %c0_67, %c0_68, %c16], %38 {strides = array<i32>} : memref<1x14x8x112xbf16, #tpu.memory_space<vmem>>, vector<1x14x8x16xbf16>,
    %c0_69 = arith.constant 0 : index
    %c0_70 = arith.constant 0 : index
    %c2 = arith.constant 2 : index
    %c0_71 = arith.constant 0 : index
    %40 = vector.load %arg15[%c0_69, %c0_70, %c2, %c0_71] : memref<1x14x14x16xbf16, #tpu.memory_space<vmem>>, vector<1x14x8x16xbf16>
    %c0_72 = arith.constant 0 : index
    %c0_73 = arith.constant 0 : index
    %c0_74 = arith.constant 0 : index
    %c32 = arith.constant 32 : index
    %41 = vector.load %arg17[%c0_72, %c0_73, %c0_74, %c32] : memref<1x14x8x112xbf16, #tpu.memory_space<vmem>>, vector<1x14x8x16xbf16>
    tpu.vector_store %arg17[%c0_72, %c0_73, %c0_74, %c32], %40 {strides = array<i32>} : memref<1x14x8x112xbf16, #tpu.memory_space<vmem>>, vector<1x14x8x16xbf16>,
    %c0_75 = arith.constant 0 : index
    %c0_76 = arith.constant 0 : index
    %c3_77 = arith.constant 3 : index
    %c0_78 = arith.constant 0 : index
    %42 = vector.load %arg15[%c0_75, %c0_76, %c3_77, %c0_78] : memref<1x14x14x16xbf16, #tpu.memory_space<vmem>>, vector<1x14x8x16xbf16>
    %c0_79 = arith.constant 0 : index
    %c0_80 = arith.constant 0 : index
    %c0_81 = arith.constant 0 : index
    %c48 = arith.constant 48 : index
    %43 = vector.load %arg17[%c0_79, %c0_80, %c0_81, %c48] : memref<1x14x8x112xbf16, #tpu.memory_space<vmem>>, vector<1x14x8x16xbf16>
    tpu.vector_store %arg17[%c0_79, %c0_80, %c0_81, %c48], %42 {strides = array<i32>} : memref<1x14x8x112xbf16, #tpu.memory_space<vmem>>, vector<1x14x8x16xbf16>,
    %c0_82 = arith.constant 0 : index
    %c0_83 = arith.constant 0 : index
    %c4 = arith.constant 4 : index
    %c0_84 = arith.constant 0 : index
    %44 = vector.load %arg15[%c0_82, %c0_83, %c4, %c0_84] : memref<1x14x14x16xbf16, #tpu.memory_space<vmem>>, vector<1x14x8x16xbf16>
    %c0_85 = arith.constant 0 : index
    %c0_86 = arith.constant 0 : index
    %c0_87 = arith.constant 0 : index
    %c64 = arith.constant 64 : index
    %45 = vector.load %arg17[%c0_85, %c0_86, %c0_87, %c64] : memref<1x14x8x112xbf16, #tpu.memory_space<vmem>>, vector<1x14x8x16xbf16>
    tpu.vector_store %arg17[%c0_85, %c0_86, %c0_87, %c64], %44 {strides = array<i32>} : memref<1x14x8x112xbf16, #tpu.memory_space<vmem>>, vector<1x14x8x16xbf16>,
    %c0_88 = arith.constant 0 : index
    %c0_89 = arith.constant 0 : index
    %c5 = arith.constant 5 : index
    %c0_90 = arith.constant 0 : index
    %46 = vector.load %arg15[%c0_88, %c0_89, %c5, %c0_90] : memref<1x14x14x16xbf16, #tpu.memory_space<vmem>>, vector<1x14x8x16xbf16>
    %c0_91 = arith.constant 0 : index
    %c0_92 = arith.constant 0 : index
    %c0_93 = arith.constant 0 : index
    %c80 = arith.constant 80 : index
    %47 = vector.load %arg17[%c0_91, %c0_92, %c0_93, %c80] : memref<1x14x8x112xbf16, #tpu.memory_space<vmem>>, vector<1x14x8x16xbf16>
    tpu.vector_store %arg17[%c0_91, %c0_92, %c0_93, %c80], %46 {strides = array<i32>} : memref<1x14x8x112xbf16, #tpu.memory_space<vmem>>, vector<1x14x8x16xbf16>,
    %c0_94 = arith.constant 0 : index
    %c0_95 = arith.constant 0 : index
    %c6 = arith.constant 6 : index
    %c0_96 = arith.constant 0 : index
    %48 = vector.load %arg15[%c0_94, %c0_95, %c6, %c0_96] : memref<1x14x14x16xbf16, #tpu.memory_space<vmem>>, vector<1x14x8x16xbf16>
    %c0_97 = arith.constant 0 : index
    %c0_98 = arith.constant 0 : index
    %c0_99 = arith.constant 0 : index
    %c96 = arith.constant 96 : index
    %49 = vector.load %arg17[%c0_97, %c0_98, %c0_99, %c96] : memref<1x14x8x112xbf16, #tpu.memory_space<vmem>>, vector<1x14x8x16xbf16>
    tpu.vector_store %arg17[%c0_97, %c0_98, %c0_99, %c96], %48 {strides = array<i32>} : memref<1x14x8x112xbf16, #tpu.memory_space<vmem>>, vector<1x14x8x16xbf16>,
    %c0_100 = arith.constant 0 : index
    %c0_101 = arith.constant 0 : index
    %c0_102 = arith.constant 0 : index
    %c0_103 = arith.constant 0 : index
    %50 = vector.load %arg17[%c0_100, %c0_101, %c0_102, %c0_103] : memref<1x14x8x112xbf16, #tpu.memory_space<vmem>>, vector<1x8x8x112xbf16>
    %51 = vector.shape_cast %50 : vector<1x8x8x112xbf16> to vector<64x112xbf16>
    %c0_104 = arith.constant 0 : index
    %c0_105 = arith.constant 0 : index
    %c0_106 = arith.constant 0 : index
    %52 = vector.load %arg6[%c0_104, %c0_105, %c0_106] : memref<7x112x4xbf16, #tpu.memory_space<vmem>>, vector<1x112x4xbf16>
    %53 = vector.shape_cast %52 : vector<1x112x4xbf16> to vector<112x4xbf16>
    %cst_107 = arith.constant dense<0.000000e+00> : vector<64x4xf32>
    %54 = tpu.matmul %51, %53, %cst_107 {dimension_numbers = #tpu.dot_dimension_numbers<[1], [0], [0], [1], [0, 0, 1, 1], [], []>} : vector<64x112xbf16>, vector<112x4xbf16>, vector<64x4xf32> -> vector<64x4xf32>
    %c0_108 = arith.constant 0 : index
    %c1_109 = arith.constant 1 : index
    %c0_110 = arith.constant 0 : index
    %c0_111 = arith.constant 0 : index
    %55 = vector.load %arg17[%c0_108, %c1_109, %c0_110, %c0_111] : memref<1x14x8x112xbf16, #tpu.memory_space<vmem>>, vector<1x8x8x112xbf16>
    %56 = vector.shape_cast %55 : vector<1x8x8x112xbf16> to vector<64x112xbf16>
    %c1_112 = arith.constant 1 : index
    %c0_113 = arith.constant 0 : index
    %c0_114 = arith.constant 0 : index
    %57 = vector.load %arg6[%c1_112, %c0_113, %c0_114] : memref<7x112x4xbf16, #tpu.memory_space<vmem>>, vector<1x112x4xbf16>
    %58 = vector.shape_cast %57 : vector<1x112x4xbf16> to vector<112x4xbf16>
    %cst_115 = arith.constant dense<0.000000e+00> : vector<64x4xf32>
    %59 = tpu.matmul %56, %58, %cst_115 {dimension_numbers = #tpu.dot_dimension_numbers<[1], [0], [0], [1], [0, 0, 1, 1], [], []>} : vector<64x112xbf16>, vector<112x4xbf16>, vector<64x4xf32> -> vector<64x4xf32>
    %60 = arith.addf %54, %59 : vector<64x4xf32>
    %c0_116 = arith.constant 0 : index
    %c2_117 = arith.constant 2 : index
    %c0_118 = arith.constant 0 : index
    %c0_119 = arith.constant 0 : index
    %61 = vector.load %arg17[%c0_116, %c2_117, %c0_118, %c0_119] : memref<1x14x8x112xbf16, #tpu.memory_space<vmem>>, vector<1x8x8x112xbf16>
    %62 = vector.shape_cast %61 : vector<1x8x8x112xbf16> to vector<64x112xbf16>
    %c2_120 = arith.constant 2 : index
    %c0_121 = arith.constant 0 : index
    %c0_122 = arith.constant 0 : index
    %63 = vector.load %arg6[%c2_120, %c0_121, %c0_122] : memref<7x112x4xbf16, #tpu.memory_space<vmem>>, vector<1x112x4xbf16>
    %64 = vector.shape_cast %63 : vector<1x112x4xbf16> to vector<112x4xbf16>
    %cst_123 = arith.constant dense<0.000000e+00> : vector<64x4xf32>
    %65 = tpu.matmul %62, %64, %cst_123 {dimension_numbers = #tpu.dot_dimension_numbers<[1], [0], [0], [1], [0, 0, 1, 1], [], []>} : vector<64x112xbf16>, vector<112x4xbf16>, vector<64x4xf32> -> vector<64x4xf32>
    %66 = arith.addf %60, %65 : vector<64x4xf32>
    %c0_124 = arith.constant 0 : index
    %c3_125 = arith.constant 3 : index
    %c0_126 = arith.constant 0 : index
    %c0_127 = arith.constant 0 : index
    %67 = vector.load %arg17[%c0_124, %c3_125, %c0_126, %c0_127] : memref<1x14x8x112xbf16, #tpu.memory_space<vmem>>, vector<1x8x8x112xbf16>
    %68 = vector.shape_cast %67 : vector<1x8x8x112xbf16> to vector<64x112xbf16>
    %c3_128 = arith.constant 3 : index
    %c0_129 = arith.constant 0 : index
    %c0_130 = arith.constant 0 : index
    %69 = vector.load %arg6[%c3_128, %c0_129, %c0_130] : memref<7x112x4xbf16, #tpu.memory_space<vmem>>, vector<1x112x4xbf16>
    %70 = vector.shape_cast %69 : vector<1x112x4xbf16> to vector<112x4xbf16>
    %cst_131 = arith.constant dense<0.000000e+00> : vector<64x4xf32>
    %71 = tpu.matmul %68, %70, %cst_131 {dimension_numbers = #tpu.dot_dimension_numbers<[1], [0], [0], [1], [0, 0, 1, 1], [], []>} : vector<64x112xbf16>, vector<112x4xbf16>, vector<64x4xf32> -> vector<64x4xf32>
    %72 = arith.addf %66, %71 : vector<64x4xf32>
    %c0_132 = arith.constant 0 : index
    %c4_133 = arith.constant 4 : index
    %c0_134 = arith.constant 0 : index
    %c0_135 = arith.constant 0 : index
    %73 = vector.load %arg17[%c0_132, %c4_133, %c0_134, %c0_135] : memref<1x14x8x112xbf16, #tpu.memory_space<vmem>>, vector<1x8x8x112xbf16>
    %74 = vector.shape_cast %73 : vector<1x8x8x112xbf16> to vector<64x112xbf16>
    %c4_136 = arith.constant 4 : index
    %c0_137 = arith.constant 0 : index
    %c0_138 = arith.constant 0 : index
    %75 = vector.load %arg6[%c4_136, %c0_137, %c0_138] : memref<7x112x4xbf16, #tpu.memory_space<vmem>>, vector<1x112x4xbf16>
    %76 = vector.shape_cast %75 : vector<1x112x4xbf16> to vector<112x4xbf16>
    %cst_139 = arith.constant dense<0.000000e+00> : vector<64x4xf32>
    %77 = tpu.matmul %74, %76, %cst_139 {dimension_numbers = #tpu.dot_dimension_numbers<[1], [0], [0], [1], [0, 0, 1, 1], [], []>} : vector<64x112xbf16>, vector<112x4xbf16>, vector<64x4xf32> -> vector<64x4xf32>
    %78 = arith.addf %72, %77 : vector<64x4xf32>
    %c0_140 = arith.constant 0 : index
    %c5_141 = arith.constant 5 : index
    %c0_142 = arith.constant 0 : index
    %c0_143 = arith.constant 0 : index
    %79 = vector.load %arg17[%c0_140, %c5_141, %c0_142, %c0_143] : memref<1x14x8x112xbf16, #tpu.memory_space<vmem>>, vector<1x8x8x112xbf16>
    %80 = vector.shape_cast %79 : vector<1x8x8x112xbf16> to vector<64x112xbf16>
    %c5_144 = arith.constant 5 : index
    %c0_145 = arith.constant 0 : index
    %c0_146 = arith.constant 0 : index
    %81 = vector.load %arg6[%c5_144, %c0_145, %c0_146] : memref<7x112x4xbf16, #tpu.memory_space<vmem>>, vector<1x112x4xbf16>
    %82 = vector.shape_cast %81 : vector<1x112x4xbf16> to vector<112x4xbf16>
    %cst_147 = arith.constant dense<0.000000e+00> : vector<64x4xf32>
    %83 = tpu.matmul %80, %82, %cst_147 {dimension_numbers = #tpu.dot_dimension_numbers<[1], [0], [0], [1], [0, 0, 1, 1], [], []>} : vector<64x112xbf16>, vector<112x4xbf16>, vector<64x4xf32> -> vector<64x4xf32>
    %84 = arith.addf %78, %83 : vector<64x4xf32>
    %c0_148 = arith.constant 0 : index
    %c6_149 = arith.constant 6 : index
    %c0_150 = arith.constant 0 : index
    %c0_151 = arith.constant 0 : index
    %85 = vector.load %arg17[%c0_148, %c6_149, %c0_150, %c0_151] : memref<1x14x8x112xbf16, #tpu.memory_space<vmem>>, vector<1x8x8x112xbf16>
    %86 = vector.shape_cast %85 : vector<1x8x8x112xbf16> to vector<64x112xbf16>
    %c6_152 = arith.constant 6 : index
    %c0_153 = arith.constant 0 : index
    %c0_154 = arith.constant 0 : index
    %87 = vector.load %arg6[%c6_152, %c0_153, %c0_154] : memref<7x112x4xbf16, #tpu.memory_space<vmem>>, vector<1x112x4xbf16>
    %88 = vector.shape_cast %87 : vector<1x112x4xbf16> to vector<112x4xbf16>
    %cst_155 = arith.constant dense<0.000000e+00> : vector<64x4xf32>
    %89 = tpu.matmul %86, %88, %cst_155 {dimension_numbers = #tpu.dot_dimension_numbers<[1], [0], [0], [1], [0, 0, 1, 1], [], []>} : vector<64x112xbf16>, vector<112x4xbf16>, vector<64x4xf32> -> vector<64x4xf32>
    %90 = arith.addf %84, %89 : vector<64x4xf32>
    %c0_156 = arith.constant 0 : index
    %c0_157 = arith.constant 0 : index
    %91 = vector.load %arg7[%c0_156, %c0_157] : memref<1x4xf32, #tpu.memory_space<vmem>>, vector<1x4xf32>
    %92 = vector.broadcast %91 : vector<1x4xf32> to vector<64x4xf32>
    %93 = arith.mulf %90, %92 : vector<64x4xf32>
    %c0_158 = arith.constant 0 : index
    %c0_159 = arith.constant 0 : index
    %94 = vector.load %arg8[%c0_158, %c0_159] : memref<1x4xf32, #tpu.memory_space<vmem>>, vector<1x4xf32>
    %95 = vector.broadcast %94 : vector<1x4xf32> to vector<64x4xf32>
    %96 = arith.addf %93, %95 : vector<64x4xf32>
    %cst_160 = arith.constant 0.000000e+00 : f32
    %97 = vector.broadcast %cst_160 : f32 to vector<64x4xf32>
    %98 = arith.maximumf %96, %97 : vector<64x4xf32>
    %99 = arith.truncf %98 : vector<64x4xf32> to vector<64x4xbf16>
    %100 = vector.shape_cast %99 : vector<64x4xbf16> to vector<1x8x8x4xbf16>
    %c0_161 = arith.constant 0 : index
    %c3_162 = arith.constant 3 : index
    %c3_163 = arith.constant 3 : index
    %c0_164 = arith.constant 0 : index
    %101 = vector.load %arg16[%c0_161, %c3_162, %c3_163, %c0_164] : memref<1x14x14x4xbf16, #tpu.memory_space<vmem>>, vector<1x8x8x4xbf16>
    tpu.vector_store %arg16[%c0_161, %c3_162, %c3_163, %c0_164], %100 {strides = array<i32>} : memref<1x14x14x4xbf16, #tpu.memory_space<vmem>>, vector<1x8x8x4xbf16>,
    %c0_165 = arith.constant 0 : index
    %c0_166 = arith.constant 0 : index
    %c0_167 = arith.constant 0 : index
    %c0_168 = arith.constant 0 : index
    %102 = vector.load %arg16[%c0_165, %c0_166, %c0_167, %c0_168] : memref<1x14x14x4xbf16, #tpu.memory_space<vmem>>, vector<1x14x8x4xbf16>
    %c0_169 = arith.constant 0 : index
    %c0_170 = arith.constant 0 : index
    %c0_171 = arith.constant 0 : index
    %c0_172 = arith.constant 0 : index
    %103 = vector.load %arg18[%c0_169, %c0_170, %c0_171, %c0_172] : memref<1x14x8x28xbf16, #tpu.memory_space<vmem>>, vector<1x14x8x4xbf16>
    tpu.vector_store %arg18[%c0_169, %c0_170, %c0_171, %c0_172], %102 {strides = array<i32>} : memref<1x14x8x28xbf16, #tpu.memory_space<vmem>>, vector<1x14x8x4xbf16>,
    %c0_173 = arith.constant 0 : index
    %c0_174 = arith.constant 0 : index
    %c1_175 = arith.constant 1 : index
    %c0_176 = arith.constant 0 : index
    %104 = vector.load %arg16[%c0_173, %c0_174, %c1_175, %c0_176] : memref<1x14x14x4xbf16, #tpu.memory_space<vmem>>, vector<1x14x8x4xbf16>
    %c0_177 = arith.constant 0 : index
    %c0_178 = arith.constant 0 : index
    %c0_179 = arith.constant 0 : index
    %c4_180 = arith.constant 4 : index
    %105 = vector.load %arg18[%c0_177, %c0_178, %c0_179, %c4_180] : memref<1x14x8x28xbf16, #tpu.memory_space<vmem>>, vector<1x14x8x4xbf16>
    tpu.vector_store %arg18[%c0_177, %c0_178, %c0_179, %c4_180], %104 {strides = array<i32>} : memref<1x14x8x28xbf16, #tpu.memory_space<vmem>>, vector<1x14x8x4xbf16>,
    %c0_181 = arith.constant 0 : index
    %c0_182 = arith.constant 0 : index
    %c2_183 = arith.constant 2 : index
    %c0_184 = arith.constant 0 : index
    %106 = vector.load %arg16[%c0_181, %c0_182, %c2_183, %c0_184] : memref<1x14x14x4xbf16, #tpu.memory_space<vmem>>, vector<1x14x8x4xbf16>
    %c0_185 = arith.constant 0 : index
    %c0_186 = arith.constant 0 : index
    %c0_187 = arith.constant 0 : index
    %c8 = arith.constant 8 : index
    %107 = vector.load %arg18[%c0_185, %c0_186, %c0_187, %c8] : memref<1x14x8x28xbf16, #tpu.memory_space<vmem>>, vector<1x14x8x4xbf16>
    tpu.vector_store %arg18[%c0_185, %c0_186, %c0_187, %c8], %106 {strides = array<i32>} : memref<1x14x8x28xbf16, #tpu.memory_space<vmem>>, vector<1x14x8x4xbf16>,
    %c0_188 = arith.constant 0 : index
    %c0_189 = arith.constant 0 : index
    %c3_190 = arith.constant 3 : index
    %c0_191 = arith.constant 0 : index
    %108 = vector.load %arg16[%c0_188, %c0_189, %c3_190, %c0_191] : memref<1x14x14x4xbf16, #tpu.memory_space<vmem>>, vector<1x14x8x4xbf16>
    %c0_192 = arith.constant 0 : index
    %c0_193 = arith.constant 0 : index
    %c0_194 = arith.constant 0 : index
    %c12 = arith.constant 12 : index
    %109 = vector.load %arg18[%c0_192, %c0_193, %c0_194, %c12] : memref<1x14x8x28xbf16, #tpu.memory_space<vmem>>, vector<1x14x8x4xbf16>
    tpu.vector_store %arg18[%c0_192, %c0_193, %c0_194, %c12], %108 {strides = array<i32>} : memref<1x14x8x28xbf16, #tpu.memory_space<vmem>>, vector<1x14x8x4xbf16>,
    %c0_195 = arith.constant 0 : index
    %c0_196 = arith.constant 0 : index
    %c4_197 = arith.constant 4 : index
    %c0_198 = arith.constant 0 : index
    %110 = vector.load %arg16[%c0_195, %c0_196, %c4_197, %c0_198] : memref<1x14x14x4xbf16, #tpu.memory_space<vmem>>, vector<1x14x8x4xbf16>
    %c0_199 = arith.constant 0 : index
    %c0_200 = arith.constant 0 : index
    %c0_201 = arith.constant 0 : index
    %c16_202 = arith.constant 16 : index
    %111 = vector.load %arg18[%c0_199, %c0_200, %c0_201, %c16_202] : memref<1x14x8x28xbf16, #tpu.memory_space<vmem>>, vector<1x14x8x4xbf16>
    tpu.vector_store %arg18[%c0_199, %c0_200, %c0_201, %c16_202], %110 {strides = array<i32>} : memref<1x14x8x28xbf16, #tpu.memory_space<vmem>>, vector<1x14x8x4xbf16>,
    %c0_203 = arith.constant 0 : index
    %c0_204 = arith.constant 0 : index
    %c5_205 = arith.constant 5 : index
    %c0_206 = arith.constant 0 : index
    %112 = vector.load %arg16[%c0_203, %c0_204, %c5_205, %c0_206] : memref<1x14x14x4xbf16, #tpu.memory_space<vmem>>, vector<1x14x8x4xbf16>
    %c0_207 = arith.constant 0 : index
    %c0_208 = arith.constant 0 : index
    %c0_209 = arith.constant 0 : index
    %c20 = arith.constant 20 : index
    %113 = vector.load %arg18[%c0_207, %c0_208, %c0_209, %c20] : memref<1x14x8x28xbf16, #tpu.memory_space<vmem>>, vector<1x14x8x4xbf16>
    tpu.vector_store %arg18[%c0_207, %c0_208, %c0_209, %c20], %112 {strides = array<i32>} : memref<1x14x8x28xbf16, #tpu.memory_space<vmem>>, vector<1x14x8x4xbf16>,
    %c0_210 = arith.constant 0 : index
    %c0_211 = arith.constant 0 : index
    %c6_212 = arith.constant 6 : index
    %c0_213 = arith.constant 0 : index
    %114 = vector.load %arg16[%c0_210, %c0_211, %c6_212, %c0_213] : memref<1x14x14x4xbf16, #tpu.memory_space<vmem>>, vector<1x14x8x4xbf16>
    %c0_214 = arith.constant 0 : index
    %c0_215 = arith.constant 0 : index
    %c0_216 = arith.constant 0 : index
    %c24 = arith.constant 24 : index
    %115 = vector.load %arg18[%c0_214, %c0_215, %c0_216, %c24] : memref<1x14x8x28xbf16, #tpu.memory_space<vmem>>, vector<1x14x8x4xbf16>
    tpu.vector_store %arg18[%c0_214, %c0_215, %c0_216, %c24], %114 {strides = array<i32>} : memref<1x14x8x28xbf16, #tpu.memory_space<vmem>>, vector<1x14x8x4xbf16>,
    %c0_217 = arith.constant 0 : index
    %c0_218 = arith.constant 0 : index
    %c0_219 = arith.constant 0 : index
    %c0_220 = arith.constant 0 : index
    %116 = vector.load %arg18[%c0_217, %c0_218, %c0_219, %c0_220] : memref<1x14x8x28xbf16, #tpu.memory_space<vmem>>, vector<1x8x8x28xbf16>
    %117 = vector.shape_cast %116 : vector<1x8x8x28xbf16> to vector<64x28xbf16>
    %c0_221 = arith.constant 0 : index
    %c0_222 = arith.constant 0 : index
    %c0_223 = arith.constant 0 : index
    %118 = vector.load %arg9[%c0_221, %c0_222, %c0_223] : memref<7x28x16xbf16, #tpu.memory_space<vmem>>, vector<1x28x16xbf16>
    %119 = vector.shape_cast %118 : vector<1x28x16xbf16> to vector<28x16xbf16>
    %cst_224 = arith.constant dense<0.000000e+00> : vector<64x16xf32>
    %120 = tpu.matmul %117, %119, %cst_224 {dimension_numbers = #tpu.dot_dimension_numbers<[1], [0], [0], [1], [0, 0, 1, 1], [], []>} : vector<64x28xbf16>, vector<28x16xbf16>, vector<64x16xf32> -> vector<64x16xf32>
    %c0_225 = arith.constant 0 : index
    %c1_226 = arith.constant 1 : index
    %c0_227 = arith.constant 0 : index
    %c0_228 = arith.constant 0 : index
    %121 = vector.load %arg18[%c0_225, %c1_226, %c0_227, %c0_228] : memref<1x14x8x28xbf16, #tpu.memory_space<vmem>>, vector<1x8x8x28xbf16>
    %122 = vector.shape_cast %121 : vector<1x8x8x28xbf16> to vector<64x28xbf16>
    %c1_229 = arith.constant 1 : index
    %c0_230 = arith.constant 0 : index
    %c0_231 = arith.constant 0 : index
    %123 = vector.load %arg9[%c1_229, %c0_230, %c0_231] : memref<7x28x16xbf16, #tpu.memory_space<vmem>>, vector<1x28x16xbf16>
    %124 = vector.shape_cast %123 : vector<1x28x16xbf16> to vector<28x16xbf16>
    %cst_232 = arith.constant dense<0.000000e+00> : vector<64x16xf32>
    %125 = tpu.matmul %122, %124, %cst_232 {dimension_numbers = #tpu.dot_dimension_numbers<[1], [0], [0], [1], [0, 0, 1, 1], [], []>} : vector<64x28xbf16>, vector<28x16xbf16>, vector<64x16xf32> -> vector<64x16xf32>
    %126 = arith.addf %120, %125 : vector<64x16xf32>
    %c0_233 = arith.constant 0 : index
    %c2_234 = arith.constant 2 : index
    %c0_235 = arith.constant 0 : index
    %c0_236 = arith.constant 0 : index
    %127 = vector.load %arg18[%c0_233, %c2_234, %c0_235, %c0_236] : memref<1x14x8x28xbf16, #tpu.memory_space<vmem>>, vector<1x8x8x28xbf16>
    %128 = vector.shape_cast %127 : vector<1x8x8x28xbf16> to vector<64x28xbf16>
    %c2_237 = arith.constant 2 : index
    %c0_238 = arith.constant 0 : index
    %c0_239 = arith.constant 0 : index
    %129 = vector.load %arg9[%c2_237, %c0_238, %c0_239] : memref<7x28x16xbf16, #tpu.memory_space<vmem>>, vector<1x28x16xbf16>
    %130 = vector.shape_cast %129 : vector<1x28x16xbf16> to vector<28x16xbf16>
    %cst_240 = arith.constant dense<0.000000e+00> : vector<64x16xf32>
    %131 = tpu.matmul %128, %130, %cst_240 {dimension_numbers = #tpu.dot_dimension_numbers<[1], [0], [0], [1], [0, 0, 1, 1], [], []>} : vector<64x28xbf16>, vector<28x16xbf16>, vector<64x16xf32> -> vector<64x16xf32>
    %132 = arith.addf %126, %131 : vector<64x16xf32>
    %c0_241 = arith.constant 0 : index
    %c3_242 = arith.constant 3 : index
    %c0_243 = arith.constant 0 : index
    %c0_244 = arith.constant 0 : index
    %133 = vector.load %arg18[%c0_241, %c3_242, %c0_243, %c0_244] : memref<1x14x8x28xbf16, #tpu.memory_space<vmem>>, vector<1x8x8x28xbf16>
    %134 = vector.shape_cast %133 : vector<1x8x8x28xbf16> to vector<64x28xbf16>
    %c3_245 = arith.constant 3 : index
    %c0_246 = arith.constant 0 : index
    %c0_247 = arith.constant 0 : index
    %135 = vector.load %arg9[%c3_245, %c0_246, %c0_247] : memref<7x28x16xbf16, #tpu.memory_space<vmem>>, vector<1x28x16xbf16>
    %136 = vector.shape_cast %135 : vector<1x28x16xbf16> to vector<28x16xbf16>
    %cst_248 = arith.constant dense<0.000000e+00> : vector<64x16xf32>
    %137 = tpu.matmul %134, %136, %cst_248 {dimension_numbers = #tpu.dot_dimension_numbers<[1], [0], [0], [1], [0, 0, 1, 1], [], []>} : vector<64x28xbf16>, vector<28x16xbf16>, vector<64x16xf32> -> vector<64x16xf32>
    %138 = arith.addf %132, %137 : vector<64x16xf32>
    %c0_249 = arith.constant 0 : index
    %c4_250 = arith.constant 4 : index
    %c0_251 = arith.constant 0 : index
    %c0_252 = arith.constant 0 : index
    %139 = vector.load %arg18[%c0_249, %c4_250, %c0_251, %c0_252] : memref<1x14x8x28xbf16, #tpu.memory_space<vmem>>, vector<1x8x8x28xbf16>
    %140 = vector.shape_cast %139 : vector<1x8x8x28xbf16> to vector<64x28xbf16>
    %c4_253 = arith.constant 4 : index
    %c0_254 = arith.constant 0 : index
    %c0_255 = arith.constant 0 : index
    %141 = vector.load %arg9[%c4_253, %c0_254, %c0_255] : memref<7x28x16xbf16, #tpu.memory_space<vmem>>, vector<1x28x16xbf16>
    %142 = vector.shape_cast %141 : vector<1x28x16xbf16> to vector<28x16xbf16>
    %cst_256 = arith.constant dense<0.000000e+00> : vector<64x16xf32>
    %143 = tpu.matmul %140, %142, %cst_256 {dimension_numbers = #tpu.dot_dimension_numbers<[1], [0], [0], [1], [0, 0, 1, 1], [], []>} : vector<64x28xbf16>, vector<28x16xbf16>, vector<64x16xf32> -> vector<64x16xf32>
    %144 = arith.addf %138, %143 : vector<64x16xf32>
    %c0_257 = arith.constant 0 : index
    %c5_258 = arith.constant 5 : index
    %c0_259 = arith.constant 0 : index
    %c0_260 = arith.constant 0 : index
    %145 = vector.load %arg18[%c0_257, %c5_258, %c0_259, %c0_260] : memref<1x14x8x28xbf16, #tpu.memory_space<vmem>>, vector<1x8x8x28xbf16>
    %146 = vector.shape_cast %145 : vector<1x8x8x28xbf16> to vector<64x28xbf16>
    %c5_261 = arith.constant 5 : index
    %c0_262 = arith.constant 0 : index
    %c0_263 = arith.constant 0 : index
    %147 = vector.load %arg9[%c5_261, %c0_262, %c0_263] : memref<7x28x16xbf16, #tpu.memory_space<vmem>>, vector<1x28x16xbf16>
    %148 = vector.shape_cast %147 : vector<1x28x16xbf16> to vector<28x16xbf16>
    %cst_264 = arith.constant dense<0.000000e+00> : vector<64x16xf32>
    %149 = tpu.matmul %146, %148, %cst_264 {dimension_numbers = #tpu.dot_dimension_numbers<[1], [0], [0], [1], [0, 0, 1, 1], [], []>} : vector<64x28xbf16>, vector<28x16xbf16>, vector<64x16xf32> -> vector<64x16xf32>
    %150 = arith.addf %144, %149 : vector<64x16xf32>
    %c0_265 = arith.constant 0 : index
    %c6_266 = arith.constant 6 : index
    %c0_267 = arith.constant 0 : index
    %c0_268 = arith.constant 0 : index
    %151 = vector.load %arg18[%c0_265, %c6_266, %c0_267, %c0_268] : memref<1x14x8x28xbf16, #tpu.memory_space<vmem>>, vector<1x8x8x28xbf16>
    %152 = vector.shape_cast %151 : vector<1x8x8x28xbf16> to vector<64x28xbf16>
    %c6_269 = arith.constant 6 : index
    %c0_270 = arith.constant 0 : index
    %c0_271 = arith.constant 0 : index
    %153 = vector.load %arg9[%c6_269, %c0_270, %c0_271] : memref<7x28x16xbf16, #tpu.memory_space<vmem>>, vector<1x28x16xbf16>
    %154 = vector.shape_cast %153 : vector<1x28x16xbf16> to vector<28x16xbf16>
    %cst_272 = arith.constant dense<0.000000e+00> : vector<64x16xf32>
    %155 = tpu.matmul %152, %154, %cst_272 {dimension_numbers = #tpu.dot_dimension_numbers<[1], [0], [0], [1], [0, 0, 1, 1], [], []>} : vector<64x28xbf16>, vector<28x16xbf16>, vector<64x16xf32> -> vector<64x16xf32>
    %156 = arith.addf %150, %155 : vector<64x16xf32>
    %c0_273 = arith.constant 0 : index
    %c0_274 = arith.constant 0 : index
    %157 = vector.load %arg10[%c0_273, %c0_274] : memref<1x16xf32, #tpu.memory_space<vmem>>, vector<1x16xf32>
    %158 = vector.broadcast %157 : vector<1x16xf32> to vector<64x16xf32>
    %159 = arith.mulf %156, %158 : vector<64x16xf32>
    %c0_275 = arith.constant 0 : index
    %c0_276 = arith.constant 0 : index
    %160 = vector.load %arg11[%c0_275, %c0_276] : memref<1x16xf32, #tpu.memory_space<vmem>>, vector<1x16xf32>
    %161 = vector.broadcast %160 : vector<1x16xf32> to vector<64x16xf32>
    %162 = arith.addf %159, %161 : vector<64x16xf32>
    %163 = arith.negf %162 : vector<64x16xf32>
    %164 = math.exp %163 : vector<64x16xf32>
    %cst_277 = arith.constant 1.000000e+00 : f32
    %165 = vector.broadcast %cst_277 : f32 to vector<64x16xf32>
    %166 = arith.addf %165, %164 : vector<64x16xf32>
    %167 = arith.divf %165, %166 : vector<64x16xf32>
    %c0_278 = arith.constant 0 : index
    %c0_279 = arith.constant 0 : index
    %168 = vector.load %arg12[%c0_278, %c0_279] : memref<16x16xbf16, #tpu.memory_space<vmem>>, vector<16x16xbf16>
    %cst_280 = arith.constant dense<0.000000e+00> : vector<64x16xf32>
    %169 = tpu.matmul %33, %168, %cst_280 {dimension_numbers = #tpu.dot_dimension_numbers<[1], [0], [0], [1], [0, 0, 1, 1], [], []>} : vector<64x16xbf16>, vector<16x16xbf16>, vector<64x16xf32> -> vector<64x16xf32>
    %c0_281 = arith.constant 0 : index
    %c0_282 = arith.constant 0 : index
    %170 = vector.load %arg13[%c0_281, %c0_282] : memref<1x16xf32, #tpu.memory_space<vmem>>, vector<1x16xf32>
    %171 = vector.broadcast %170 : vector<1x16xf32> to vector<64x16xf32>
    %172 = arith.addf %169, %171 : vector<64x16xf32>
    %173 = arith.mulf %172, %167 : vector<64x16xf32>
    %174 = vector.shape_cast %173 : vector<64x16xf32> to vector<1x8x8x16xf32>
    %c0_283 = arith.constant 0 : index
    %c0_284 = arith.constant 0 : index
    %c0_285 = arith.constant 0 : index
    %c0_286 = arith.constant 0 : index
    %175 = vector.load %arg14[%c0_283, %c0_284, %c0_285, %c0_286] : memref<1x8x8x16xf32, #tpu.memory_space<vmem>>, vector<1x8x8x16xf32>
    tpu.vector_store %arg14[%c0_283, %c0_284, %c0_285, %c0_286], %174 {strides = array<i32>} : memref<1x8x8x16xf32, #tpu.memory_space<vmem>>, vector<1x8x8x16xf32>,
    return
  }
  func.func @transform_0(%arg0: i32) -> (i32, i32, i32, i32) {
    %c0_i32 = arith.constant 0 : i32
    %c0_i32_0 = arith.constant 0 : i32
    %c0_i32_1 = arith.constant 0 : i32
    %c0_i32_2 = arith.constant 0 : i32
    return %arg0, %c0_i32, %c0_i32_0, %c0_i32_1 : i32, i32, i32, i32
  }
  func.func @transform_1(%arg0: i32) -> (i32, i32) {
    %c0_i32 = arith.constant 0 : i32
    %c0_i32_0 = arith.constant 0 : i32
    %c0_i32_1 = arith.constant 0 : i32
    return %c0_i32, %c0_i32_0 : i32, i32
  }
  func.func @transform_2(%arg0: i32) -> (i32, i32) {
    %c0_i32 = arith.constant 0 : i32
    %c0_i32_0 = arith.constant 0 : i32
    %c0_i32_1 = arith.constant 0 : i32
    return %c0_i32, %c0_i32_0 : i32, i32
  }
  func.func @transform_3(%arg0: i32) -> (i32, i32) {
    %c0_i32 = arith.constant 0 : i32
    %c0_i32_0 = arith.constant 0 : i32
    %c0_i32_1 = arith.constant 0 : i32
    return %c0_i32, %c0_i32_0 : i32, i32
  }
  func.func @transform_4(%arg0: i32) -> (i32, i32) {
    %c0_i32 = arith.constant 0 : i32
    %c0_i32_0 = arith.constant 0 : i32
    %c0_i32_1 = arith.constant 0 : i32
    return %c0_i32, %c0_i32_0 : i32, i32
  }
  func.func @transform_5(%arg0: i32) -> (i32, i32, i32) {
    %c0_i32 = arith.constant 0 : i32
    %c0_i32_0 = arith.constant 0 : i32
    %c0_i32_1 = arith.constant 0 : i32
    %c0_i32_2 = arith.constant 0 : i32
    return %c0_i32, %c0_i32_0, %c0_i32_1 : i32, i32, i32
  }
  func.func @transform_6(%arg0: i32) -> (i32, i32) {
    %c0_i32 = arith.constant 0 : i32
    %c0_i32_0 = arith.constant 0 : i32
    %c0_i32_1 = arith.constant 0 : i32
    return %c0_i32, %c0_i32_0 : i32, i32
  }
  func.func @transform_7(%arg0: i32) -> (i32, i32) {
    %c0_i32 = arith.constant 0 : i32
    %c0_i32_0 = arith.constant 0 : i32
    %c0_i32_1 = arith.constant 0 : i32
    return %c0_i32, %c0_i32_0 : i32, i32
  }
  func.func @transform_8(%arg0: i32) -> (i32, i32, i32) {
    %c0_i32 = arith.constant 0 : i32
    %c0_i32_0 = arith.constant 0 : i32
    %c0_i32_1 = arith.constant 0 : i32
    %c0_i32_2 = arith.constant 0 : i32
    return %c0_i32, %c0_i32_0, %c0_i32_1 : i32, i32, i32
  }
  func.func @transform_9(%arg0: i32) -> (i32, i32) {
    %c0_i32 = arith.constant 0 : i32
    %c0_i32_0 = arith.constant 0 : i32
    %c0_i32_1 = arith.constant 0 : i32
    return %c0_i32, %c0_i32_0 : i32, i32
  }
  func.func @transform_10(%arg0: i32) -> (i32, i32) {
    %c0_i32 = arith.constant 0 : i32
    %c0_i32_0 = arith.constant 0 : i32
    %c0_i32_1 = arith.constant 0 : i32
    return %c0_i32, %c0_i32_0 : i32, i32
  }
  func.func @transform_11(%arg0: i32) -> (i32, i32) {
    %c0_i32 = arith.constant 0 : i32
    %c0_i32_0 = arith.constant 0 : i32
    %c0_i32_1 = arith.constant 0 : i32
    return %c0_i32, %c0_i32_0 : i32, i32
  }
  func.func @transform_12(%arg0: i32) -> (i32, i32) {
    %c0_i32 = arith.constant 0 : i32
    %c0_i32_0 = arith.constant 0 : i32
    %c0_i32_1 = arith.constant 0 : i32
    return %c0_i32, %c0_i32_0 : i32, i32
  }
  func.func @transform_13(%arg0: i32) -> (i32, i32, i32, i32) {
    %c0_i32 = arith.constant 0 : i32
    %c0_i32_0 = arith.constant 0 : i32
    %c0_i32_1 = arith.constant 0 : i32
    %c0_i32_2 = arith.constant 0 : i32
    return %arg0, %c0_i32, %c0_i32_0, %c0_i32_1 : i32, i32, i32, i32
  }
}

</mosaic_0001>

<bundles_post_ra>
// kernel: tpu_custom_call.1
= control target key start
LH: loop header
LB: loop body
LE: loop exit
PB: predicated region body
PF: predicated region fallthrough
CT: control target
= control target key end

     0   :  { %s9497_s0 = inlined_call_operand.vmem [shape: f32[2,8,8,16], index: 0, kind: input, shape index: {}]   ;;  %s9498_s1 = inlined_call_operand.vmem [shape: bf16[16,4], index: 1, kind: input, shape index: {}]   ;;  %s9499_s2 = inlined_call_operand.vmem [shape: f32[1,4], index: 2, kind: input, shape index: {}]   ;;  %s9500_s3 = inlined_call_operand.vmem [shape: bf16[4,16], index: 3, kind: input, shape index: {}]   ;;  %s9501_s4 = inlined_call_operand.vmem [shape: f32[1,16], index: 4, kind: input, shape index: {}]   ;;  %s9502_s5 = inlined_call_operand.vmem [shape: bf16[7,112,4], index: 5, kind: input, shape index: {}]   ;;  %s9503_s6 = inlined_call_operand.vmem [shape: f32[1,4], index: 6, kind: input, shape index: {}]   ;;  %s9504_s7 = inlined_call_operand.vmem [shape: f32[1,4], index: 7, kind: input, shape index: {}]   ;;  %s9505_s8 = inlined_call_operand.vmem [shape: bf16[7,28,16], index: 8, kind: input, shape index: {}]   ;;  %s9506_s9 = inlined_call_operand.vmem [shape: f32[1,16], index: 9, kind: input, shape index: {}]   ;;  %s9507_s10 = inlined_call_operand.vmem [shape: f32[1,16], index: 10, kind: input, shape index: {}]   ;;  %s9508_s11 = inlined_call_operand.vmem [shape: bf16[16,16], index: 11, kind: input, shape index: {}]   ;;  %s9509_s12 = inlined_call_operand.vmem [shape: f32[1,16], index: 12, kind: input, shape index: {}]   ;;  %s9510_s13 = inlined_call_operand.hbm [shape: f32[2,8,8,16], index: 13, kind: output, shape index: {}]  }
   0x1   :  { %9532 = sst [smem:[#allocation12_spill]] %s9497_s0 }
   0x2   :  { %9533 = sst [smem:[#allocation13_spill]] %s9498_s1 }
   0x3   :  { %9534 = sst [smem:[#allocation14_spill]] %s9499_s2 }
   0x4   :  { %9535 = sst [smem:[#allocation15_spill]] %s9500_s3 }
   0x5   :  { %18 = vsyncpa [#allocation7], 0 }
   0x6   :  { %20 = vsyncpa [#allocation7 + $0x1], 0  ;;  %s7789_s25 = smov 0   ;;  %s7791_s26 = smov 0  }
   0x7   :  { %s7793_s27 = smov 0   ;;  %s7795_s28 = smov 0  }
   0x8 LB: > { %s7810_s29 = sadd.s32 4294967295, %s7703_s28   ;;  %s6581_s30 = sadd.s32 4294967294, %s7703_s28   ;;  %s7703_s28 = sphi %s7795_s28, %s9641_s28   ;;  %s7699_s27 = sphi %s7793_s27, %s9640_s27   ;;  %s7695_s26 = sphi %s7791_s26, %s9639_s26   ;;  %s7691_s25 = sphi %s7789_s25, %s9638_s25  }
   0x9   : > { %s7814_s14 = sadd.s32 1, %s7703_s28   ;;  %s311_s15 = sadd.s32 1, %s7699_s27 }
   0xa   : > { %s308_s16 = ssub.s32 %s7703_s28, %s7814_s14  ;;  %p321_p0 = scmp.ne.s32.totalorder %s7699_s27, %s7695_s26 }
   0xb   : > { %p309_p1 = scmp.eq.s32.totalorder %s308_s16, 0  ;;  %p322_p2 = scmp.eq.s32.totalorder %s7810_s29, 1 }
   0xc   : > { %p327_p3 = scmp.ne.s32.totalorder %s7695_s26, %s7691_s25  ;;  %p328_p4 = scmp.eq.s32.totalorder %s6581_s30, 1 }
   0xd   : > { %s7825_s17 = scalar_select %p309_p1, %s7699_s27, %s311_s15  }
   0xe   : > { %p7827_p5 = por %p322_p2, %p321_p0  ;;  %p7831_p6 = por %p328_p4, %p327_p3 }
   0xf   : > { %p6584_p7 = scmp.ge.s32.totalorder %s7703_s28, 1  ;;  %p390_p8 = scmp.lt.s32.totalorder %s7703_s28, 3 }
  0x11   : > { %p391_p9 = pnand %p6584_p7, %p390_p8 }
  0x13   : > { %394 = sbr.rel (%p391_p9) target bundleno = 1471 (0x5bf), region = 72 }
  0x18   : > { %s9538_s1 = sld [smem:[#allocation13_spill]]  ;;  %p434_p10 = scmp.lt.s32.totalorder %s7810_s29, 1  ;;  %vm9513_vm0 = vcmask 130048   ;;  %vm786_vm1 = vcmask 1041408   ;;  %vm440_vm2 = vcmask 125952   ;;  %vm442_vm3 = vcmask 124928  }
  0x19   : > { %s9539_s0 = sld [smem:[#allocation12_spill]]  ;;  %vm455_vm4 = vcmask 123904   ;;  %v7705_v15 = vmov 0   ;;  %vm9514_vm5 = vsmask.f32 1280  ;;  %vm500_vm7 = vcmask 124929  }
  0x1a   : > { %s435_s22 = scalar_select %p434_p10, %s7810_s29, 1  ;;  %444 = vst.msk [vmem:[#allocation2 + $0x8] sm:$0xf] %vm440_vm2, %v7705_v15  ;;  %441 = vst.msk [vmem:[#allocation2] sm:$0xf] %vm440_vm2, %v7705_v15  ;;  %vm1394_vm10 = vcmask 1042432  }
  0x1b   : > { %s9540_s3 = sld [smem:[#allocation15_spill]]  ;;  %445 = vst.msk [vmem:[#allocation2 + $0xc] sm:$0x7] %vm442_vm3, %v7705_v15  ;;  %443 = vst.msk [vmem:[#allocation2 + $0x4] sm:$0x7] %vm442_vm3, %v7705_v15  ;;  %vm1395_vm11 = vcmask 1046532  }
  0x1c   : > { %s7005_s23 = sshll.u32 %s435_s22, 6  ;;  %446 = vst.msk [vmem:[#allocation2 + $0x10] sm:$0xf] %vm440_vm2, %v7705_v15  ;;  %449 = vst.msk [vmem:[#allocation2 + $0x58] sm:$0xf] %vm440_vm2, %v7705_v15  ;;  %vm1907_vm12 = vcmask 1045508  }
  0x1d   : > { %447 = vst.msk [vmem:[#allocation2 + $0x14] sm:$0x7] %vm442_vm3, %v7705_v15  ;;  %450 = vst.msk [vmem:[#allocation2 + $0x5c] sm:$0x7] %vm442_vm3, %v7705_v15  ;;  %vm501_vm8 = vsmask.f32 7942 }
  0x1e   : > { %v7485_v0 = vld [vmem:[%s9538_s1] sm:$0xff]   ;;  %451 = vst.msk [vmem:[#allocation2 + $0x60] sm:$0xf] %vm440_vm2, %v7705_v15  ;;  %453 = vst.msk [vmem:[#allocation2 + $0x68] sm:$0xf] %vm440_vm2, %v7705_v15  ;;  %vm2417_vm15 = vcmask 1040384  }
  0x1f   : > { %7157 = vmatprep.subr.bf16.mxu0 %v7485_v0  ;;  %s7845_s15 = scalar_lea.vmem %s9539_s0, %s7005_s23  ;;  %452 = vst.msk [vmem:[#allocation2 + $0x64] sm:$0x7] %vm442_vm3, %v7705_v15  ;;  %454 = vst.msk [vmem:[#allocation2 + $0x6c] sm:$0x7] %vm442_vm3, %v7705_v15  ;;  %v473_v17 = vld [vmem:[#allocation2 + $0x28] sm:$0x3] }
  0x20   : > { %7158 = vmatpush3.bf16.msra.mxu0 %v7485_v0  ;;  %v7848_v1 = vld [vmem:[%s7845_s15] sm:$0xff]  ;;  %v7851_v2 = vld [vmem:[%s7845_s15 + $0x8] sm:$0xff]  ;;  %v7854_v3 = vld [vmem:[%s7845_s15 + $0x10] sm:$0xff]  ;;  %vm2418_vm3 = vcmask 1044484   ;;  %s9521_s21 = smov 32   ;;  %s9519_s22 = smov 64  }
  0x21   : > { %v656_v4 = vpack.c.bf16 %v7851_v2, %v7848_v1  ;;  %v7859_v5 = vld [vmem:[%s7845_s15 + $0x18] sm:$0xff]  ;;  %v652_v6 = vld [vmem:[%s7845_s15 + $0x20] sm:$0xff]  ;;  %v653_v7 = vld [vmem:[%s7845_s15 + $0x28] sm:$0xff]  ;;  %s9523_s23 = smov 96   ;;  %s9511_s24 = smov 80  }
  0x22   : > { %v657_v8 = vpack.c.bf16 %v7859_v5, %v7854_v3  ;;  %v658_v9 = vpack.c.bf16 %v653_v7, %v652_v6  ;;  %v654_v10 = vld [vmem:[%s7845_s15 + $0x30] sm:$0xff]  ;;  %v655_v11 = vld [vmem:[%s7845_s15 + $0x38] sm:$0xff]  ;;  %v765_v13 = vld [vmem:[%s9540_s3] sm:$0x3]  ;;  %s9553_s2 = sld [smem:[#allocation14_spill]]  ;;  %s9517_s20 = smov 16  }
  0x23   : > { %7159 = vmatprep.mubr.msk.bf16.mxu0 %vm9513_vm0, %v656_v4  ;;  %v659_v12 = vpack.c.bf16 %v655_v11, %v654_v10  ;;  %7425 = vmatprep.subr.msk.bf16.mxu1 %vm786_vm1, %v765_v13  ;;  %v788_v14 = vsel %vm786_vm1, %v765_v13, 0  ;;  %vm7896_vm6 = vmand %vm455_vm4, %vm9514_vm5  ;;  %v518_v19 = vld [vmem:[#allocation2 + $0x2c] sm:$0x6]  ;;  %v461_v22 = vld [vmem:[#allocation2 + $0x8] sm:$0x3]  ;;  %s7711_s30 = smov 48  }
  0x24   : > { %7160 = vmatmul.mubr.msk.bf16.vlgmr.msra.gmra.mxu0 %vm9513_vm0, %v657_v8  ;;  %7168 = vmatpush3.bf16.msra.mxu1 %v788_v14  ;;  %v474_v18 = vsel %vm7896_vm6, 0, %v473_v17  ;;  %vm7903_vm9 = vmand %vm500_vm7, %vm501_vm8  ;;  %v506_v23 = vld [vmem:[#allocation2 + $0xc] sm:$0x6]  ;;  %v462_v24 = vsel %vm7896_vm6, 0, %v461_v22  ;;  %v464_v26 = vld [vmem:[#allocation2 + $0x10] sm:$0x3] }
  0x25   : > { %7163 = vmatprep.mubr.msk.bf16.mxu0 %vm9513_vm0, %v658_v9  ;;  %475 = vst [vmem:[#allocation2 + $0x28] sm:$0x3] %v474_v18  ;;  %v519_v21 = vsel %vm7903_vm9, 0, %v518_v19  ;;  %v507_v25 = vsel %vm7903_vm9, 0, %v506_v23  ;;  %463 = vst [vmem:[#allocation2 + $0x8] sm:$0x3] %v462_v24 }
  0x26   : > { %520 = vst [vmem:[#allocation2 + $0x2c] sm:$0x6] %v519_v21  ;;  %508 = vst [vmem:[#allocation2 + $0xc] sm:$0x6] %v507_v25  ;;  %v465_v27 = vsel %vm7896_vm6, 0, %v464_v26  ;;  %s9566_s16 = smov 16  }
  0x27   : > { %v2024_v28 = vld [vmem:[#allocation2 + $0x8] sm:$0xc]  ;;  %v1341_v29 = vld [vmem:[#allocation2 + $0xc] sm:$0x1]  ;;  %466 = vst [vmem:[#allocation2 + $0x10] sm:$0x3] %v465_v27  ;;  %vm7917_vm13 = vmor %vm1394_vm10, %vm1395_vm11 }
  0x28   : > { %v1852_v30 = vld [vmem:[#allocation2 + $0x8] sm:$0xc]  ;;  %v509_v31 = vld [vmem:[#allocation2 + $0x14] sm:$0x6]  ;;  %v1343_v32 = vld [vmem:[#allocation2 + $0x14] sm:$0x1] }
  0x29   : > { %v2071_v33 = vshrl.u32 %v2024_v28, 16  ;;  %v2074_v34 = vshll.u32 %v2024_v28, 16  ;;  %v510_v35 = vsel %vm7903_vm9, 0, %v509_v31  ;;  %v1403_v36 = vrot.slane %v1341_v29, 5  ;;  %v2363_v38 = vld [vmem:[#allocation2 + $0x8] sm:$0x8]  ;;  %vm7922_vm14 = vmor %vm786_vm1, %vm1907_vm12 }
  0x2a   : > { %511 = vst [vmem:[#allocation2 + $0x14] sm:$0x6] %v510_v35  ;;  %v6622_v37 = vrot.slane %v1852_v30, 10  ;;  %v1407_v39 = vrot.slane %v1343_v32, 5  ;;  %v1854_v40 = vld [vmem:[#allocation2 + $0x10] sm:$0xc]  ;;  %vm7934_vm1 = vmor %vm2417_vm15, %vm2418_vm3 }
  0x2b   : > { %v2073_v44 = vrot.slane %v2071_v33, 6  ;;  %v2076_v45 = vrot.slane %v2074_v34, 7  ;;  %v6623_v56 = vrot.slane %v1854_v40, 10  ;;  %v6636_v58 = vrot.slane %v2363_v38, 11  ;;  %v6588_v17 = vld [vmem:[%s9553_s2] ss:$0 sm:$0xff] }
  0x2c   : > { %7164 = vmatmul.mubr.msk.bf16.gmra.mxu0 %vm9513_vm0, %v659_v12  ;;  %v1340_v41 = vld [vmem:[#allocation2 + $0x8] sm:$0xe]  ;;  %vm2050_vm4 = vsmask.f32 5392  ;;  %vm773_vm10 = vcmask 31744   ;;  %vm2346_vm0 = vcmask 781952  }
  0x2d   : > { %v1853_v43 = vld [vmem:[#allocation2 + $0xc] sm:$0x3]  ;;  %v6608_v47 = vrot.slane %v1340_v41, 9  ;;  %v2077_v60 = vor.u32 %v2076_v45, %v2073_v44  ;;  %vm7945_vm7 = vmor %vm9514_vm5, %vm2050_vm4  ;;  %vm1082_vm11 = vsmask.f32 3328  ;;  %vm2518_vm5 = vcmask 913152  }
  0x2e   : > { %v1915_v48 = vrot.slane %v1853_v43, 6  ;;  %v2364_v49 = vld [vmem:[#allocation2 + $0xc] sm:$0x7]  ;;  %v1342_v51 = vld [vmem:[#allocation2 + $0x10] sm:$0xe]  ;;  %s7716_s0 = smov 24  }
  0x2f   : > { %v2025_v50 = vld [vmem:[#allocation2 + $0xc] sm:$0x7]  ;;  %v1404_v54 = vsel %vm7917_vm13, %v6608_v47, %v1403_v36  ;;  %v6609_v55 = vrot.slane %v1342_v51, 9  ;;  %v2426_v59 = vrot.slane %v2364_v49, 7  ;;  %v2078_v9 = vrot.slane %v2077_v60, 4 }
  0x30   : > { %v2080_v52 = vshrl.u32 %v2025_v50, 16  ;;  %v2083_v53 = vshll.u32 %v2025_v50, 16  ;;  %1455 = vrot.lane.b32.xlu0 %v1404_v54, %s9521_s21  ;;  %v1916_v57 = vsel %vm7922_vm14, %v6622_v37, %v1915_v48  ;;  %v1056_v47 = vld [vmem:[#allocation2 + $0x8] sm:$0xf]  ;;  %vm1083_vm12 = vsmask.f32 7440 }
  0x31   : > { %v1855_v61 = vld [vmem:[#allocation2 + $0x14] sm:$0x3]  ;;  %v1408_v62 = vsel %vm7917_vm13, %v6609_v55, %v1407_v39  ;;  %v2427_v8 = vsel %vm7934_vm1, %v6636_v58, %v2426_v59  ;;  %v1100_v48 = vshrl.u32 %v1056_v47, 16  ;;  %v1103_v49 = vshll.u32 %v1056_v47, 16  ;;  %v1058_v55 = vld [vmem:[#allocation2 + $0x10] sm:$0xf]  ;;  %vm7961_vm15 = vmor %vm1082_vm11, %vm1083_vm12 }
  0x32   : > { %v2082_v63 = vrot.slane %v2080_v52, 6  ;;  %v2085_v0 = vrot.slane %v2083_v53, 7  ;;  %v1919_v4 = vrot.slane %v1855_v61, 6  ;;  %1457 = vrot.lane.b32.xlu1 %v1408_v62, %s9521_s21  ;;  %v1057_v52 = vld [vmem:[#allocation2 + $0xc] sm:$0x1]  ;;  %vm1323_vm11 = vcmask 257152  }
  0x33   : > { %v1102_v50 = vrot.slane %v1100_v48, 4  ;;  %v1105_v51 = vrot.slane %v1103_v49, 5  ;;  %v1109_v54 = vshll.u32 %v1057_v52, 16  ;;  %v2026_v58 = vld [vmem:[#allocation2 + $0x10] sm:$0xc]  ;;  %vm9515_vm12 = vcmask 388352  }
  0x34   : > { %v1920_v7 = vsel %vm7922_vm14, %v6623_v56, %v1919_v4  ;;  %1967 = vrot.lane.b32.xlu0 %v1916_v57, %s9519_s22  ;;  %v2086_v10 = vor.u32 %v2085_v0, %v2082_v63  ;;  %v1114_v56 = vshrl.u32 %v1058_v55, 16  ;;  %v1117_v57 = vshll.u32 %v1058_v55, 16  ;;  %v2365_v62 = vld [vmem:[#allocation2 + $0x10] sm:$0x8]  ;;  %v2366_v63 = vld [vmem:[#allocation2 + $0x14] sm:$0x7] }
  0x35   : > { %v1106_v53 = vor.u32 %v1105_v51, %v1102_v50  ;;  %v1111_v60 = vrot.slane %v1109_v54, 5  ;;  %v476_v47 = vld [vmem:[#allocation2 + $0x30] sm:$0x3]  ;;  %vm1538_vm3 = vsmask.f32 2304 }
  0x36   : > { %1969 = vrot.lane.b32.xlu1 %v1920_v7, %s9519_s22  ;;  %v2087_v12 = vsel %vm7945_vm7, %v2078_v9, %v2086_v10  ;;  %v1116_v0 = vrot.slane %v1114_v56, 4  ;;  %v1119_v4 = vrot.slane %v1117_v57, 5  ;;  %v2430_v9 = vrot.slane %v2366_v63, 7 }
  0x37   : > { %v1107_v59 = vrot.slane %v1106_v53, 4  ;;  %v2089_v10 = vshrl.u32 %v2026_v58, 16  ;;  %v477_v52 = vsel %vm7896_vm6, 0, %v476_v47  ;;  %vm1539_vm4 = vsmask.f32 6416 }
  0x38   : > { %2478 = vrot.lane.b32.xlu0 %v2427_v8, %s9523_s23  ;;  %v6637_v8 = vrot.slane %v2365_v62, 11  ;;  %478 = vst [vmem:[#allocation2 + $0x30] sm:$0x3] %v477_v52  ;;  %v521_v53 = vld [vmem:[#allocation2 + $0x34] sm:$0x6] }
  0x39   : > { %v1112_v7 = vsel %vm7961_vm15, %v1107_v59, %v1111_v60  ;;  %v522_v59 = vsel %vm7903_vm9, 0, %v521_v53  ;;  %v470_v60 = vld [vmem:[#allocation2 + $0x20] sm:$0x3] }
  0x3a   : > { %523 = vst [vmem:[#allocation2 + $0x34] sm:$0x6] %v522_v59  ;;  %v485_v59 = vld [vmem:[#allocation2 + $0x48] sm:$0x3] }
  0x3c   : > { %2306 = vrot.lane.b32.xlu0 %v2087_v12, %s9511_s24  ;;  %v1059_v12 = vld [vmem:[#allocation2 + $0x14] sm:$0x1] }
  0x40   : > { %1283 = vrot.lane.b32.xlu0 %v1112_v7, %s9517_s20  ;;  %v471_v7 = vsel %vm7896_vm6, 0, %v470_v60  ;;  %v530_v60 = vld [vmem:[#allocation2 + $0x4c] sm:$0x6] }
  0x41   : > { %472 = vst [vmem:[#allocation2 + $0x20] sm:$0x3] %v471_v7 }
  0xe4   : > { %v7161_v13 = vpop.f32.mrf.mxu0 }
  0xe5   : > { %v731_v22 = vadd.f32 %v7161_v13, %v6588_v17  ;;  %v1120_v13 = vor.u32 %v1119_v4, %v1116_v0 }
  0xe6   : > { %v722_v14 = vpop.f32.mrf.mxu0 }
  0xe7   : > { %v723_v19 = vadd.f32 %v6588_v17, %v722_v14  ;;  %v755_v29 = vmax.f32 %v731_v22, 0.0  ;;  %v2027_v14 = vld [vmem:[#allocation2 + $0x14] sm:$0x7] }
  0xe8   : > { %v7162_v18 = vpop.f32.mrf.mxu0  ;;  %v2098_v22 = vshrl.u32 %v2027_v14, 16 }
  0xe9   : > { %v734_v21 = vadd.f32 %v7162_v18, %v6588_v17  ;;  %v753_v27 = vmax.f32 %v723_v19, 0.0  ;;  %v2431_v18 = vsel %vm7934_vm1, %v6637_v8, %v2430_v9  ;;  %v1123_v19 = vshll.u32 %v1059_v12, 16 }
  0xea   : > { %v725_v23 = vpop.f32.mrf.mxu0  ;;  %2480 = vrot.lane.b32.xlu1 %v2431_v18, %s9523_s23 }
  0xeb   : > { %v726_v24 = vadd.f32 %v6588_v17, %v725_v23  ;;  %v756_v25 = vmax.f32 %v734_v21, 0.0  ;;  %v2091_v21 = vrot.slane %v2089_v10, 6  ;;  %v1512_v23 = vld [vmem:[#allocation2 + $0x8] sm:$0xe]  ;;  %v515_v10 = vld [vmem:[#allocation2 + $0x24] sm:$0x6] }
  0xec   : > { %v7165_v26 = vpop.f32.mrf.mxu0 }
  0xed   : > { %v754_v28 = vmax.f32 %v726_v24, 0.0  ;;  %v747_v30 = vadd.f32 %v7165_v26, %v6588_v17  ;;  %v762_v34 = vpack.c.bf16 %v756_v25, %v755_v29  ;;  %v1121_v24 = vrot.slane %v1120_v13, 4 }
  0xee   : > { %v738_v31 = vpop.f32.mrf.mxu0  ;;  %v2101_v26 = vshll.u32 %v2027_v14, 16  ;;  %v1125_v29 = vrot.slane %v1123_v19, 5  ;;  %v503_v14 = vld [vmem:[#allocation2 + $0x4] sm:$0x6] }
  0xef   : > { %v761_v32 = vpack.c.bf16 %v754_v28, %v753_v27  ;;  %v739_v33 = vadd.f32 %v6588_v17, %v738_v31  ;;  %v759_v37 = vmax.f32 %v747_v30, 0.0  ;;  %v1513_v27 = vld [vmem:[#allocation2 + $0xc] sm:$0x3]  ;;  %v1560_v28 = vshrl.u32 %v1512_v23, 16 }
  0xf0   : > { %v7166_v35 = vpop.f32.mrf.mxu0  ;;  %v2100_v30 = vrot.slane %v2098_v22, 6  ;;  %v1563_v31 = vshll.u32 %v1512_v23, 16 }
  0xf1   : > { %7169 = vmatprep.mubr.msk.bf16.mxu1 %vm773_vm10, %v761_v32  ;;  %v750_v36 = vadd.f32 %v7166_v35, %v6588_v17  ;;  %v757_v39 = vmax.f32 %v739_v33, 0.0  ;;  %v1569_v32 = vshrl.u32 %v1513_v27, 16  ;;  %v1514_v33 = vld [vmem:[#allocation2 + $0x10] sm:$0xe] }
  0xf2   : > { %7170 = vmatmul.mubr.msk.bf16.vlgmr.msra.gmra.mxu1 %vm773_vm10, %v762_v34  ;;  %v741_v38 = vpop.f32.mrf.mxu0  ;;  %v467_v34 = vld [vmem:[#allocation2 + $0x18] sm:$0x3]  ;;  %v1578_v57 = vshrl.u32 %v1514_v33, 16  ;;  %v1581_v63 = vshll.u32 %v1514_v33, 16 }
  0xf3   : > { %v760_v40 = vmax.f32 %v750_v36, 0.0  ;;  %v742_v41 = vadd.f32 %v6588_v17, %v741_v38  ;;  %v2092_v17 = vshll.u32 %v2026_v58, 16  ;;  %v2103_v36 = vrot.slane %v2101_v26, 7  ;;  %v458_v58 = vld [vmem:[#allocation2] sm:$0x3] }
  0xf4   : > { %v1572_v38 = vshll.u32 %v1513_v27, 16  ;;  %v1580_v9 = vrot.slane %v1578_v57, 5  ;;  %v1583_v12 = vrot.slane %v1581_v63, 6  ;;  %v1055_v27 = vld [vmem:[#allocation2 + $0x4] sm:$0x1] }
  0xf5   : > { %v758_v43 = vmax.f32 %v742_v41, 0.0  ;;  %v764_v44 = vpack.c.bf16 %v760_v40, %v759_v37  ;;  %v2094_v25 = vrot.slane %v2092_v17, 7  ;;  %v1562_v37 = vrot.slane %v1560_v28, 5  ;;  %v479_v63 = vld [vmem:[#allocation2 + $0x38] sm:$0x3] }
  0xf6   : > { %v1126_v40 = vsel %vm7961_vm15, %v1121_v24, %v1125_v29  ;;  %v1565_v41 = vrot.slane %v1563_v31, 6  ;;  %v2104_v49 = vor.u32 %v2103_v36, %v2100_v30  ;;  %v1574_v50 = vrot.slane %v1572_v38, 6 }
  0xf7   : > { %v763_v45 = vpack.c.bf16 %v758_v43, %v757_v39  ;;  %v2095_v35 = vor.u32 %v2094_v25, %v2091_v21  ;;  %v468_v39 = vsel %vm7896_vm6, 0, %v467_v34  ;;  %v1571_v43 = vrot.slane %v1569_v32, 5  ;;  %1285 = vrot.lane.b32.xlu0 %v1126_v40, %s9517_s20 }
  0xf8   : > { %469 = vst [vmem:[#allocation2 + $0x18] sm:$0x3] %v468_v39  ;;  %v1566_v55 = vor.u32 %v1565_v41, %v1562_v37  ;;  %v516_v17 = vsel %vm7903_vm9, 0, %v515_v10  ;;  %v459_v21 = vsel %vm7896_vm6, 0, %v458_v58  ;;  %v1584_v22 = vor.u32 %v1583_v12, %v1580_v9  ;;  %v1339_v37 = vld [vmem:[#allocation2 + $0x4] sm:$0x1] }
  0xf9   : > { %7173 = vmatprep.mubr.msk.bf16.mxu1 %vm773_vm10, %v763_v45  ;;  %v512_v45 = vld [vmem:[#allocation2 + $0x1c] sm:$0x6]  ;;  %v2096_v48 = vrot.slane %v2095_v35, 4  ;;  %v1575_v56 = vor.u32 %v1574_v50, %v1571_v43  ;;  %517 = vst [vmem:[#allocation2 + $0x24] sm:$0x6] %v516_v17  ;;  %v504_v24 = vsel %vm7903_vm9, 0, %v503_v14 }
  0xfa   : > { %7174 = vmatmul.mubr.msk.bf16.gmra.mxu1 %vm773_vm10, %v764_v44  ;;  %v1515_v44 = vld [vmem:[#allocation2 + $0x14] sm:$0x3]  ;;  %v513_v51 = vsel %vm7903_vm9, 0, %v512_v45  ;;  %vm7985_vm10 = vmor %vm1538_vm3, %vm1539_vm4  ;;  %v1567_v8 = vrot.slane %v1566_v55, 4  ;;  %460 = vst [vmem:[#allocation2] sm:$0x3] %v459_v21 }
  0xfb   : > { %514 = vst [vmem:[#allocation2 + $0x1c] sm:$0x6] %v513_v51  ;;  %v2105_v54 = vsel %vm7945_vm7, %v2096_v48, %v2104_v49  ;;  %v1587_v0 = vshrl.u32 %v1515_v44, 16  ;;  %v1590_v4 = vshll.u32 %v1515_v44, 16  ;;  %v1585_v25 = vrot.slane %v1584_v22, 4  ;;  %v1456_v22 = vpop.permute.xlu0 %1455 }
  0xfc   : > { %2308 = vrot.lane.b32.xlu1 %v2105_v54, %s9511_s24  ;;  %v1576_v18 = vsel %vm7985_vm10, %v1567_v8, %v1575_v56  ;;  %505 = vst [vmem:[#allocation2 + $0x4] sm:$0x6] %v504_v24  ;;  %v1095_v29 = vshll.u32 %v1055_v27, 16  ;;  %v1399_v47 = vrot.slane %v1339_v37, 5  ;;  %v480_v7 = vsel %vm7896_vm6, 0, %v479_v63  ;;  %s9568_s24 = smov 32  }
  0xfd   : > { %v1589_v13 = vrot.slane %v1587_v0, 5  ;;  %v1592_v19 = vrot.slane %v1590_v4, 6  ;;  %1795 = vrot.lane.b32.xlu0 %v1576_v18, %s7711_s30  ;;  %v486_v0 = vsel %vm7896_vm6, 0, %v485_v59  ;;  %v531_v4 = vsel %vm7903_vm9, 0, %v530_v60  ;;  %v524_v8 = vld [vmem:[#allocation2 + $0x3c] sm:$0x6] }
  0xfe   : > { %v1097_v49 = vrot.slane %v1095_v29, 5  ;;  %487 = vst [vmem:[#allocation2 + $0x48] sm:$0x3] %v486_v0  ;;  %532 = vst [vmem:[#allocation2 + $0x4c] sm:$0x6] %v531_v4  ;;  %v525_v9 = vsel %vm7903_vm9, 0, %v524_v8 }
  0xff   : > { %v1593_v23 = vor.u32 %v1592_v19, %v1589_v13  ;;  %481 = vst [vmem:[#allocation2 + $0x38] sm:$0x3] %v480_v7  ;;  %v488_v10 = vld [vmem:[#allocation2 + $0x50] sm:$0x3]  ;;  %v533_v12 = vld [vmem:[#allocation2 + $0x54] sm:$0x6] }
 0x100   : > { %526 = vst [vmem:[#allocation2 + $0x3c] sm:$0x6] %v525_v9  ;;  %v489_v13 = vsel %vm7896_vm6, 0, %v488_v10  ;;  %v534_v14 = vsel %vm7903_vm9, 0, %v533_v12  ;;  %v482_v17 = vld [vmem:[#allocation2 + $0x40] sm:$0x3] }
 0x101   : > { %v1594_v26 = vsel %vm7985_vm10, %v1585_v25, %v1593_v23  ;;  %v1054_v28 = vld [vmem:[#allocation2] sm:$0xf]  ;;  %490 = vst [vmem:[#allocation2 + $0x50] sm:$0x3] %v489_v13  ;;  %535 = vst [vmem:[#allocation2 + $0x54] sm:$0x6] %v534_v14  ;;  %v1968_v23 = vpop.permute.xlu0 %1967  ;;  %v1458_v25 = vpop.permute.xlu1 %1457 }
 0x102   : > { %1797 = vrot.lane.b32.xlu1 %v1594_v26, %s7711_s30  ;;  %v1510_v30 = vld [vmem:[#allocation2] sm:$0xe]  ;;  %v1086_v31 = vshrl.u32 %v1054_v28, 16  ;;  %v1089_v32 = vshll.u32 %v1054_v28, 16  ;;  %v527_v18 = vld [vmem:[#allocation2 + $0x44] sm:$0x6] }
 0x103   : > { %v1542_v33 = vshrl.u32 %v1510_v30, 16  ;;  %v1545_v34 = vshll.u32 %v1510_v30, 16  ;;  %v1511_v35 = vld [vmem:[#allocation2 + $0x4] sm:$0x3]  ;;  %v1338_v36 = vld [vmem:[#allocation2] sm:$0xe] }
 0x104   : > { %v1088_v38 = vrot.slane %v1086_v31, 4  ;;  %v1091_v39 = vrot.slane %v1089_v32, 5  ;;  %v1551_v43 = vshrl.u32 %v1511_v35, 16  ;;  %v1554_v44 = vshll.u32 %v1511_v35, 16  ;;  %v1027_v27 = vld [vmem:[#allocation2 + $0x8] sm:$0xf] }
 0x105   : > { %v1544_v40 = vrot.slane %v1542_v33, 5  ;;  %v1547_v41 = vrot.slane %v1545_v34, 6  ;;  %v6607_v45 = vrot.slane %v1338_v36, 9  ;;  %v483_v19 = vsel %vm7896_vm6, 0, %v482_v17  ;;  %v2479_v24 = vpop.permute.xlu0 %2478  ;;  %1041 = vst.msk [vmem:[#allocation4 + $0x4] sm:$0xf] %vm440_vm2, %v1027_v27  ;;  %v1970_v28 = vpop.permute.xlu1 %1969 }
 0x106   : > { %v1092_v48 = vor.u32 %v1091_v39, %v1088_v38  ;;  %v1553_v51 = vrot.slane %v1551_v43, 5  ;;  %v1556_v52 = vrot.slane %v1554_v44, 6  ;;  %v528_v21 = vsel %vm7903_vm9, 0, %v527_v18  ;;  %484 = vst [vmem:[#allocation2 + $0x40] sm:$0x3] %v483_v19 }
 0x107   : > { %v1548_v50 = vor.u32 %v1547_v41, %v1544_v40  ;;  %v1400_v53 = vsel %vm7917_vm13, %v6607_v45, %v1399_v47  ;;  %529 = vst [vmem:[#allocation2 + $0x44] sm:$0x6] %v528_v21  ;;  %v1028_v30 = vld [vmem:[#allocation2 + $0x10] sm:$0xf]  ;;  %v2022_v31 = vld [vmem:[#allocation2] sm:$0xc] }
 0x108   : > { %v1093_v54 = vrot.slane %v1092_v48, 4  ;;  %1453 = vrot.lane.b32.xlu1 %v1400_v53, %s9521_s21  ;;  %v1557_v56 = vor.u32 %v1556_v52, %v1553_v51  ;;  %1042 = vst.msk [vmem:[#allocation4 + $0x8] sm:$0xf] %vm440_vm2, %v1028_v30  ;;  %v2053_v34 = vshrl.u32 %v2022_v31, 16  ;;  %v2056_v35 = vshll.u32 %v2022_v31, 16 }
 0x109   : > { %v1549_v55 = vrot.slane %v1548_v50, 4  ;;  %v2307_v26 = vpop.permute.xlu0 %2306  ;;  %v8037_v36 = vld [vmem:[%s9501_s4] ss:$0 sm:$0xff]  ;;  %vm1835_vm3 = vcmask 519552   ;;  %vm9516_vm4 = vcmask 650752  }
 0x10a   : > { %v1098_v57 = vsel %vm7961_vm15, %v1093_v54, %v1097_v49  ;;  %v2055_v39 = vrot.slane %v2053_v34, 6  ;;  %v2058_v40 = vrot.slane %v2056_v35, 7  ;;  %v2023_v44 = vld [vmem:[#allocation2 + $0x4] sm:$0x7]  ;;  %v491_v45 = vld [vmem:[#allocation2 + $0x58] sm:$0x3] }
 0x10b   : > { %1281 = vrot.lane.b32.xlu0 %v1098_v57, %s9517_s20  ;;  %v1558_v58 = vsel %vm7985_vm10, %v1549_v55, %v1557_v56  ;;  %v492_v48 = vsel %vm7896_vm6, 0, %v491_v45  ;;  %v2062_v53 = vshrl.u32 %v2023_v44, 16  ;;  %v2065_v54 = vshll.u32 %v2023_v44, 16  ;;  %v990_v18 = vld [vmem:[#allocation2 + $0x28] sm:$0xe] }
 0x10c   : > { %493 = vst [vmem:[#allocation2 + $0x58] sm:$0x3] %v492_v48  ;;  %v2059_v52 = vor.u32 %v2058_v40, %v2055_v39  ;;  %v978_v30 = vld [vmem:[#allocation2 + $0x18] sm:$0xe]  ;;  %v7638_v39 = vld [vmem:[%s7845_s15 + $0x30] sm:$0xff] }
 0x10d   : > { %v1284_v29 = vpop.permute.xlu0 %1283  ;;  %v8067_v9 = vrot.slane %v2062_v53, 6  ;;  %v8069_v10 = vrot.slane %v2065_v54, 7  ;;  %v999_v53 = vld [vmem:[#allocation2 + $0x34] sm:$0x3] }
 0x10e   : > { %1325 = vst.msk [vmem:[#allocation4 + $0x4] sm:$0xf] %vm1323_vm11, %v1284_v29  ;;  %v8065_v8 = vrot.slane %v2059_v52, 4  ;;  %v993_v29 = vld [vmem:[#allocation2 + $0x2c] sm:$0x3] }
 0x10f   : > { %1793 = vrot.lane.b32.xlu0 %v1558_v58, %s7711_s30  ;;  %1497 = vst.msk [vmem:[#allocation4 + $0x4] sm:$0xf] %vm9515_vm12, %v1456_v22  ;;  %v1026_v58 = vld [vmem:[#allocation2] sm:$0xf]  ;;  %v996_v52 = vld [vmem:[#allocation2 + $0x30] sm:$0xe] }
 0x110   : > { %1040 = vst.msk [vmem:[#allocation4] sm:$0xf] %vm440_vm2, %v1026_v58  ;;  %v984_v58 = vld [vmem:[#allocation2 + $0x20] sm:$0xe] }
 0x15c   : > { %v2481_v32 = vpop.permute.xlu1 %2480 }
 0x169   : > { %v1286_v33 = vpop.permute.xlu0 %1285 }
 0x16a   : > { %1326 = vst.msk [vmem:[#allocation4 + $0x8] sm:$0xf] %vm1323_vm11, %v1286_v33 }
 0x16b   : > { %1498 = vst.msk [vmem:[#allocation4 + $0x8] sm:$0xf] %vm9515_vm12, %v1458_v25  ;;  %vm976_vm12 = vcmask 125953  }
 0x16e   : > { %v2309_v37 = vpop.permute.xlu1 %2308 }
 0x16f   : > { %v1796_v41 = vpop.permute.xlu0 %1795 }
 0x170   : > { %1837 = vst.msk [vmem:[#allocation4 + $0x4] sm:$0xf] %vm1835_vm3, %v1796_v41  ;;  %v981_v41 = vld [vmem:[#allocation2 + $0x1c] sm:$0x3] }
 0x171   : > { %2009 = vst.msk [vmem:[#allocation4 + $0x4] sm:$0xf] %vm9516_vm4, %v1968_v23 }
 0x172   : > { %2348 = vst.msk [vmem:[#allocation4 + $0x4] sm:$0xf] %vm2346_vm0, %v2307_v26 }
 0x173   : > { %2520 = vst.msk [vmem:[#allocation4 + $0x4] sm:$0xf] %vm2518_vm5, %v2479_v24 }
 0x174   : > { %v1798_v57 = vpop.permute.xlu1 %1797 }
 0x175   : > { %1838 = vst.msk [vmem:[#allocation4 + $0x8] sm:$0xf] %vm1835_vm3, %v1798_v57 }
 0x176   : > { %2010 = vst.msk [vmem:[#allocation4 + $0x8] sm:$0xf] %vm9516_vm4, %v1970_v28  ;;  %vm8075_vm4 = vmand %vm976_vm12, %vm501_vm8  ;;  %vm9563_vm12 = vcmask 388352  }
 0x177   : > { %2349 = vst.msk [vmem:[#allocation4 + $0x8] sm:$0xf] %vm2346_vm0, %v2309_v37 }
 0x178   : > { %2521 = vst.msk [vmem:[#allocation4 + $0x8] sm:$0xf] %vm2518_vm5, %v2481_v32 }
 0x1b2   : > { %v7171_v38 = vpop.f32.mrf.mxu1 }
 0x1b3   : > { %v833_v43 = vadd.f32 %v7171_v38, %v8037_v36 }
 0x1b4   : > { %v824_v47 = vpop.f32.mrf.mxu1 }
 0x1b5   : > { %v8045_v49 = vmul.f32 %v833_v43, %v7854_v3  ;;  %v825_v50 = vadd.f32 %v8037_v36, %v824_v47 }
 0x1b6   : > { %v7172_v51 = vpop.f32.mrf.mxu1 }
 0x1b7   : > { %v7008_v55 = vpack.c.bf16 %v8045_v49, %v8045_v49  ;;  %v8053_v56 = vmul.f32 %v825_v50, %v7848_v1  ;;  %v836_v3 = vadd.f32 %v7172_v51, %v8037_v36 }
 0x1b8   : > { %v827_v59 = vpop.f32.mrf.mxu1 }
 0x1b9   : > { %v906_v60 = vshrl.u32 %v7008_v55, 16  ;;  %v909_v63 = vshll.u32 %v7008_v55, 16  ;;  %v7006_v0 = vpack.c.bf16 %v8053_v56, %v8053_v56  ;;  %v8061_v4 = vmul.f32 %v836_v3, %v7859_v5 }
 0x1ba   : > { %v828_v1 = vadd.f32 %v8037_v36, %v827_v59  ;;  %v7175_v7 = vpop.f32.mrf.mxu1  ;;  %v7639_v59 = vld [vmem:[%s7845_s15 + $0x20] sm:$0xff] }
 0x1bb   : > { %v908_v12 = vrot.slane %v906_v60, 6  ;;  %v911_v13 = vrot.slane %v909_v63, 7  ;;  %v888_v14 = vshrl.u32 %v7006_v0, 16  ;;  %v891_v17 = vshll.u32 %v7006_v0, 16  ;;  %v1454_v0 = vpop.permute.xlu1 %1453 }
 0x1bc   : > { %v7009_v21 = vpack.c.bf16 %v8061_v4, %v8061_v4  ;;  %v8084_v22 = vmul.f32 %v828_v1, %v7851_v2  ;;  %v849_v23 = vadd.f32 %v7175_v7, %v8037_v36  ;;  %v840_v24 = vpop.f32.mrf.mxu1 }
 0x1bd   : > { %v912_v25 = vor.u32 %v911_v13, %v908_v12  ;;  %v890_v26 = vrot.slane %v888_v14, 6  ;;  %v893_v27 = vrot.slane %v891_v17, 7  ;;  %v841_v28 = vadd.f32 %v8037_v36, %v840_v24  ;;  %v1282_v14 = vpop.permute.xlu0 %1281  ;;  %v987_v24 = vld [vmem:[#allocation2 + $0x24] sm:$0x3] }
 0x1be   : > { %v915_v31 = vshrl.u32 %v7009_v21, 16  ;;  %v918_v32 = vshll.u32 %v7009_v21, 16  ;;  %v7007_v2 = vpack.c.bf16 %v8084_v22, %v8084_v22  ;;  %v7176_v34 = vpop.f32.mrf.mxu1  ;;  %v8095_v40 = vmul.f32 %v7638_v39, %v849_v23  ;;  %1324 = vst.msk [vmem:[#allocation4] sm:$0xf] %vm1323_vm11, %v1282_v14 }
 0x1bf   : > { %v913_v35 = vrot.slane %v912_v25, 4  ;;  %v991_v37 = vsel %vm8075_vm4, %v912_v25, %v990_v18  ;;  %v894_v38 = vor.u32 %v893_v27, %v890_v26  ;;  %v8104_v60 = vmul.f32 %v7639_v59, %v841_v28  ;;  %v7640_v27 = vld [vmem:[%s7845_s15 + $0x38] sm:$0xff]  ;;  %1496 = vst.msk [vmem:[#allocation4] sm:$0xf] %vm9563_vm12, %v1454_v0 }
 0x1c0   : > { %9560 = vst [vmem:[#allocation9_spill] sm:$0xff] %v8095_v40  ;;  %992 = vst [vmem:[#allocation2 + $0x28] sm:$0xe] %v991_v37  ;;  %v917_v43 = vrot.slane %v915_v31, 6  ;;  %v920_v44 = vrot.slane %v918_v32, 7  ;;  %v897_v45 = vshrl.u32 %v7007_v2, 16  ;;  %v7012_v54 = vpack.c.bf16 %v8095_v40, %v8095_v40  ;;  %v843_v63 = vpop.f32.mrf.mxu1 }
 0x1c1   : > { %v900_v47 = vshll.u32 %v7007_v2, 16  ;;  %v994_v48 = vsel %vm7896_vm6, %v913_v35, %v993_v29  ;;  %v895_v50 = vrot.slane %v894_v38, 4  ;;  %v979_v51 = vsel %vm8075_vm4, %v894_v38, %v978_v30  ;;  %9561 = vst [vmem:[#allocation10_spill] sm:$0xff] %v8104_v60  ;;  %v1014_v2 = vld [vmem:[#allocation2 + $0x48] sm:$0xe] }
 0x1c2   : > { %995 = vst [vmem:[#allocation2 + $0x2c] sm:$0x3] %v994_v48  ;;  %980 = vst [vmem:[#allocation2 + $0x18] sm:$0xe] %v979_v51  ;;  %v921_v55 = vor.u32 %v920_v44, %v917_v43  ;;  %v899_v3 = vrot.slane %v897_v45, 6  ;;  %v942_v7 = vshrl.u32 %v7012_v54, 16  ;;  %v852_v13 = vadd.f32 %v7176_v34, %v8037_v36  ;;  %v1794_v45 = vpop.permute.xlu0 %1793 }
 0x1c3   : > { %v902_v57 = vrot.slane %v900_v47, 7  ;;  %v982_v1 = vsel %vm7896_vm6, %v895_v50, %v981_v41  ;;  %v945_v12 = vshll.u32 %v7012_v54, 16  ;;  %v8113_v23 = vpack.c.bf16 %v8104_v60, %v8104_v60  ;;  %v7641_v43 = vld [vmem:[%s7845_s15 + $0x28] sm:$0xff]  ;;  %1836 = vst.msk [vmem:[#allocation4] sm:$0xf] %vm1835_vm3, %v1794_v45  ;;  %s9564_s15 = smov 80  }
 0x1c4   : > { %983 = vst [vmem:[#allocation2 + $0x1c] sm:$0x3] %v982_v1  ;;  %v922_v17 = vrot.slane %v921_v55, 4  ;;  %v997_v18 = vsel %vm8075_vm4, %v921_v55, %v996_v52  ;;  %v944_v25 = vrot.slane %v942_v7, 6  ;;  %v8117_v28 = vmul.f32 %v7640_v27, %v852_v13  ;;  %v1017_v52 = vld [vmem:[#allocation2 + $0x4c] sm:$0x3] }
 0x1c5   : > { %v903_v21 = vor.u32 %v902_v57, %v899_v3  ;;  %998 = vst [vmem:[#allocation2 + $0x30] sm:$0xe] %v997_v18  ;;  %v947_v26 = vrot.slane %v945_v12, 7  ;;  %v844_v29 = vadd.f32 %v8037_v36, %v843_v63  ;;  %v924_v34 = vshrl.u32 %v8113_v23, 16 }
 0x1c6   : > { %9562 = vst [vmem:[#allocation11_spill] sm:$0xff] %v8117_v28  ;;  %v1000_v30 = vsel %vm7896_vm6, %v922_v17, %v999_v53  ;;  %v8130_v41 = vpack.c.bf16 %v8117_v28, %v8117_v28  ;;  %v927_v14 = vshll.u32 %v8113_v23, 16 }
 0x1c7   : > { %v904_v31 = vrot.slane %v903_v21, 4  ;;  %v985_v32 = vsel %vm8075_vm4, %v903_v21, %v984_v58  ;;  %1001 = vst [vmem:[#allocation2 + $0x34] sm:$0x3] %v1000_v30  ;;  %v1348_v35 = vld [vmem:[#allocation2 + $0x28] sm:$0xe]  ;;  %v948_v39 = vor.u32 %v947_v26, %v944_v25  ;;  %v8133_v44 = vmul.f32 %v7641_v43, %v844_v29 }
 0x1c8   : > { %986 = vst [vmem:[#allocation2 + $0x20] sm:$0xe] %v985_v32  ;;  %v1860_v37 = vld [vmem:[#allocation2 + $0x28] sm:$0xc]  ;;  %v6612_v48 = vrot.slane %v1348_v35, 9  ;;  %v926_v13 = vrot.slane %v924_v34, 6 }
 0x1c9   : > { %v2371_v38 = vld [vmem:[#allocation2 + $0x28] sm:$0x8]  ;;  %v988_v47 = vsel %vm7896_vm6, %v904_v31, %v987_v24  ;;  %v6626_v50 = vrot.slane %v1860_v37, 10  ;;  %v1349_v53 = vld [vmem:[#allocation2 + $0x2c] sm:$0x1]  ;;  %v1015_v3 = vsel %vm8075_vm4, %v948_v39, %v1014_v2  ;;  %v949_v0 = vrot.slane %v948_v39, 4 }
 0x1ca   : > { %v6640_v51 = vrot.slane %v2371_v38, 11  ;;  %989 = vst [vmem:[#allocation2 + $0x24] sm:$0x3] %v988_v47  ;;  %v1861_v54 = vld [vmem:[#allocation2 + $0x2c] sm:$0x3]  ;;  %v1419_v58 = vrot.slane %v1349_v53, 5  ;;  %v7011_v38 = vpack.c.bf16 %v8133_v44, %v8133_v44  ;;  %v2068_v39 = vor.u32 %v8069_v10, %v8067_v9 }
 0x1cb   : > { %v2372_v55 = vld [vmem:[#allocation2 + $0x2c] sm:$0x7]  ;;  %v1931_v59 = vrot.slane %v1861_v54, 6  ;;  %1016 = vst [vmem:[#allocation2 + $0x48] sm:$0xe] %v1015_v3  ;;  %v951_v17 = vshrl.u32 %v8130_v41, 16  ;;  %v1018_v26 = vsel %vm7896_vm6, %v949_v0, %v1017_v52 }
 0x1cc   : > { %v2442_v63 = vrot.slane %v2372_v55, 7  ;;  %v1344_v1 = vld [vmem:[#allocation2 + $0x18] sm:$0xe]  ;;  %v1345_v7 = vld [vmem:[#allocation2 + $0x1c] sm:$0x1]  ;;  %v1420_v18 = vsel %vm7917_vm13, %v6612_v48, %v1419_v58  ;;  %v929_v53 = vrot.slane %v927_v14, 7 }
 0x1cd   : > { %v6610_v12 = vrot.slane %v1344_v1, 9  ;;  %v1350_v21 = vld [vmem:[#allocation2 + $0x30] sm:$0xe]  ;;  %1463 = vrot.lane.b32.xlu0 %v1420_v18, %s9521_s21  ;;  %1019 = vst [vmem:[#allocation2 + $0x4c] sm:$0x3] %v1018_v26  ;;  %v1411_v31 = vrot.slane %v1345_v7, 5  ;;  %v1932_v23 = vsel %vm7922_vm14, %v6626_v50, %v1931_v59 }
 0x1ce   : > { %v1862_v24 = vld [vmem:[#allocation2 + $0x30] sm:$0xc]  ;;  %v6613_v27 = vrot.slane %v1350_v21, 9  ;;  %v1856_v32 = vld [vmem:[#allocation2 + $0x18] sm:$0xc]  ;;  %v2443_v34 = vsel %vm7934_vm1, %v6640_v51, %v2442_v63  ;;  %v953_v54 = vrot.slane %v951_v17, 6 }
 0x1cf   : > { %v2373_v25 = vld [vmem:[#allocation2 + $0x30] sm:$0x8]  ;;  %v6627_v29 = vrot.slane %v1862_v24, 10  ;;  %v1351_v2 = vld [vmem:[#allocation2 + $0x34] sm:$0x1]  ;;  %v1412_v48 = vsel %vm7917_vm13, %v6610_v12, %v1411_v31  ;;  %v954_v51 = vshll.u32 %v8130_v41, 16  ;;  %v930_v12 = vor.u32 %v929_v53, %v926_v13 }
 0x1d0   : > { %v6641_v30 = vrot.slane %v2373_v25, 11  ;;  %v1863_v35 = vld [vmem:[#allocation2 + $0x34] sm:$0x3]  ;;  %v1423_v43 = vrot.slane %v1351_v2, 5  ;;  %v1002_v52 = vld [vmem:[#allocation2 + $0x38] sm:$0xe] }
 0x1d1   : > { %v2374_v37 = vld [vmem:[#allocation2 + $0x34] sm:$0x7]  ;;  %v1935_v45 = vrot.slane %v1863_v35, 6  ;;  %v1857_v50 = vld [vmem:[#allocation2 + $0x1c] sm:$0x3]  ;;  %v6624_v55 = vrot.slane %v1856_v32, 10  ;;  %1975 = vrot.lane.b32.xlu0 %v1932_v23, %s9519_s22  ;;  %v1003_v32 = vsel %vm8075_vm4, %v930_v12, %v1002_v52 }
 0x1d2   : > { %v2446_v47 = vrot.slane %v2374_v37, 7  ;;  %v1060_v3 = vld [vmem:[#allocation2 + $0x18] sm:$0xf]  ;;  %v1424_v58 = vsel %vm7917_vm13, %v6613_v27, %v1423_v43  ;;  %v1005_v0 = vld [vmem:[#allocation2 + $0x3c] sm:$0x3]  ;;  %v1923_v1 = vrot.slane %v1857_v50, 6 }
 0x1d3   : > { %v1936_v59 = vsel %vm7922_vm14, %v6627_v29, %v1935_v45  ;;  %v1061_v7 = vld [vmem:[#allocation2 + $0x1c] sm:$0x1]  ;;  %1465 = vrot.lane.b32.xlu1 %v1424_v58, %s9521_s21  ;;  %v956_v41 = vrot.slane %v954_v51, 7  ;;  %v1020_v14 = vld [vmem:[#allocation2 + $0x50] sm:$0xe]  ;;  %v1128_v17 = vshrl.u32 %v1060_v3, 16 }
 0x1d4   : > { %v2447_v63 = vsel %vm7934_vm1, %v6641_v30, %v2446_v47  ;;  %v1131_v18 = vshll.u32 %v1060_v3, 16  ;;  %v1023_v21 = vld [vmem:[#allocation2 + $0x54] sm:$0x3]  ;;  %v8170_v24 = vsel %vm7922_vm14, %v6624_v55, %v1923_v1  ;;  %v1137_v25 = vshll.u32 %v1061_v7, 16  ;;  %v2367_v29 = vld [vmem:[#allocation2 + $0x18] sm:$0x8] }
 0x1d5   : > { %v933_v26 = vshrl.u32 %v7011_v38, 16  ;;  %v936_v27 = vshll.u32 %v7011_v38, 16  ;;  %v1064_v30 = vld [vmem:[#allocation2 + $0x28] sm:$0xf]  ;;  %v931_v31 = vrot.slane %v930_v12, 4  ;;  %v957_v23 = vor.u32 %v956_v41, %v953_v54  ;;  %2486 = vrot.lane.b32.xlu0 %v2443_v34, %s9523_s23 }
 0x1d6   : > { %v1130_v13 = vrot.slane %v1128_v17, 4  ;;  %v2368_v2 = vld [vmem:[#allocation2 + $0x1c] sm:$0x7]  ;;  %v1346_v35 = vld [vmem:[#allocation2 + $0x20] sm:$0xe]  ;;  %v1133_v37 = vrot.slane %v1131_v18, 5 }
 0x1d7   : > { %1004 = vst [vmem:[#allocation2 + $0x38] sm:$0xe] %v1003_v32  ;;  %v1139_v43 = vrot.slane %v1137_v25, 5  ;;  %v935_v45 = vrot.slane %v933_v26, 6  ;;  %v938_v47 = vrot.slane %v936_v27, 7  ;;  %1977 = vrot.lane.b32.xlu1 %v1936_v59, %s9519_s22  ;;  %v1006_v38 = vsel %vm7896_vm6, %v931_v31, %v1005_v0 }
 0x1d8   : > { %v1347_v50 = vld [vmem:[#allocation2 + $0x24] sm:$0x1]  ;;  %v958_v53 = vrot.slane %v957_v23, 4  ;;  %v1021_v52 = vsel %vm8075_vm4, %v957_v23, %v1020_v14  ;;  %v1008_v54 = vld [vmem:[#allocation2 + $0x40] sm:$0xe]  ;;  %v6638_v55 = vrot.slane %v2367_v29, 11  ;;  %v1134_v34 = vor.u32 %v1133_v37, %v1130_v13 }
 0x1d9   : > { %v1011_v51 = vld [vmem:[#allocation2 + $0x44] sm:$0x3]  ;;  %1007 = vst [vmem:[#allocation2 + $0x3c] sm:$0x3] %v1006_v38  ;;  %1022 = vst [vmem:[#allocation2 + $0x50] sm:$0xe] %v1021_v52  ;;  %v939_v3 = vor.u32 %v938_v47, %v935_v45  ;;  %1459 = vrot.lane.b32.xlu0 %v1412_v48, %s9521_s21 }
 0x1da   : > { %v2434_v58 = vrot.slane %v2368_v2, 7  ;;  %v6611_v1 = vrot.slane %v1346_v35, 9  ;;  %v1065_v7 = vld [vmem:[#allocation2 + $0x2c] sm:$0x1]  ;;  %v1858_v12 = vld [vmem:[#allocation2 + $0x20] sm:$0xc]  ;;  %v1024_v59 = vsel %vm7896_vm6, %v958_v53, %v1023_v21 }
 0x1db   : > { %v1415_v41 = vrot.slane %v1347_v50, 5  ;;  %v1156_v0 = vshrl.u32 %v1064_v30, 16  ;;  %v1159_v17 = vshll.u32 %v1064_v30, 16  ;;  %v1859_v18 = vld [vmem:[#allocation2 + $0x24] sm:$0x3]  ;;  %v1135_v14 = vrot.slane %v1134_v34, 4  ;;  %2488 = vrot.lane.b32.xlu1 %v2447_v63, %s9523_s23 }
 0x1dc   : > { %1025 = vst [vmem:[#allocation2 + $0x54] sm:$0x3] %v1024_v59  ;;  %v940_v25 = vrot.slane %v939_v3, 4  ;;  %v1009_v26 = vsel %vm8075_vm4, %v939_v3, %v1008_v54  ;;  %v2435_v27 = vsel %vm7934_vm1, %v6638_v55, %v2434_v58  ;;  %v1520_v29 = vld [vmem:[#allocation2 + $0x28] sm:$0xe]  ;;  %v1165_v48 = vshll.u32 %v1065_v7, 16 }
 0x1dd   : > { %v1521_v31 = vld [vmem:[#allocation2 + $0x2c] sm:$0x3]  ;;  %1010 = vst [vmem:[#allocation2 + $0x40] sm:$0xe] %v1009_v26  ;;  %v1416_v21 = vsel %vm7917_vm13, %v6611_v1, %v1415_v41  ;;  %v1158_v30 = vrot.slane %v1156_v0, 4  ;;  %v1161_v32 = vrot.slane %v1159_v17, 5  ;;  %v1140_v13 = vsel %vm7961_vm15, %v1135_v14, %v1139_v43  ;;  %1971 = vrot.lane.b32.xlu0 %v8170_v24, %s9519_s22 }
 0x1de   : > { %v2369_v23 = vld [vmem:[#allocation2 + $0x20] sm:$0x8]  ;;  %v1012_v5 = vsel %vm7896_vm6, %v940_v25, %v1011_v51  ;;  %v6625_v2 = vrot.slane %v1858_v12, 10  ;;  %v1927_v35 = vrot.slane %v1859_v18, 6  ;;  %v2370_v37 = vld [vmem:[#allocation2 + $0x24] sm:$0x7] }
 0x1df   : > { %1013 = vst [vmem:[#allocation2 + $0x44] sm:$0x3] %v1012_v5  ;;  %v1162_v45 = vor.u32 %v1161_v32, %v1158_v30  ;;  %v1167_v63 = vrot.slane %v1165_v48, 5  ;;  %v1632_v47 = vshrl.u32 %v1520_v29, 16  ;;  %v1635_v50 = vshll.u32 %v1520_v29, 16  ;;  %1287 = vrot.lane.b32.xlu1 %v1140_v13, %s9517_s20 }
 0x1e0   : > { %v2032_v38 = vld [vmem:[#allocation2 + $0x28] sm:$0xc]  ;;  %v1928_v53 = vsel %vm7922_vm14, %v6625_v2, %v1927_v35  ;;  %v1641_v52 = vshrl.u32 %v1521_v31, 16  ;;  %v1644_v43 = vshll.u32 %v1521_v31, 16  ;;  %v6639_v54 = vrot.slane %v2369_v23, 11 }
 0x1e1   : > { %v2033_v55 = vld [vmem:[#allocation2 + $0x2c] sm:$0x7]  ;;  %v1163_v51 = vrot.slane %v1162_v45, 4  ;;  %v1634_v34 = vrot.slane %v1632_v47, 5  ;;  %v1637_v3 = vrot.slane %v1635_v50, 6  ;;  %v2438_v58 = vrot.slane %v2370_v37, 7  ;;  %2482 = vrot.lane.b32.xlu0 %v2435_v27, %s9523_s23 }
 0x1e2   : > { %v1643_v1 = vrot.slane %v1641_v52, 5  ;;  %v1646_v7 = vrot.slane %v1644_v43, 6  ;;  %v2143_v12 = vshrl.u32 %v2032_v38, 16  ;;  %v2146_v59 = vshll.u32 %v2032_v38, 16  ;;  %v1066_v41 = vld [vmem:[#allocation2 + $0x30] sm:$0xf] }
 0x1e3   : > { %v1168_v24 = vsel %vm7961_vm15, %v1163_v51, %v1167_v63  ;;  %v1638_v0 = vor.u32 %v1637_v3, %v1634_v34  ;;  %v2439_v17 = vsel %vm7934_vm1, %v6639_v54, %v2438_v58  ;;  %v2152_v18 = vshrl.u32 %v2033_v55, 16  ;;  %v1067_v14 = vld [vmem:[#allocation2 + $0x34] sm:$0x1]  ;;  %v1516_v25 = vld [vmem:[#allocation2 + $0x18] sm:$0xe]  ;;  %1461 = vrot.lane.b32.xlu1 %v1416_v21, %s9521_s21  ;;  %v7487_v27 = vld [vmem:[%s9502_s5 + $0x68] sm:$0xff]  }
 0x1e4   : > { %v1647_v26 = vor.u32 %v1646_v7, %v1643_v1  ;;  %v2145_v29 = vrot.slane %v2143_v12, 6  ;;  %v2148_v31 = vrot.slane %v2146_v59, 7  ;;  %v2155_v30 = vshll.u32 %v2033_v55, 16  ;;  %v1517_v5 = vld [vmem:[#allocation2 + $0x1c] sm:$0x3]  ;;  %7177 = vmatprep.subr.bf16.mxu0 %v7487_v27  ;;  %v7488_v7 = vld [vmem:[%s9502_s5 + $0x60] sm:$0xff]  }
 0x1e5   : > { %v1639_v32 = vrot.slane %v1638_v0, 4  ;;  %v2154_v48 = vrot.slane %v2152_v18, 6  ;;  %v1170_v23 = vshrl.u32 %v1066_v41, 16  ;;  %v1173_v13 = vshll.u32 %v1066_v41, 16  ;;  %v1522_v63 = vld [vmem:[#allocation2 + $0x30] sm:$0xe]  ;;  %1291 = vrot.lane.b32.xlu0 %v1168_v24, %s9517_s20  ;;  %7178 = vmatpush3.bf16.msra.mxu0 %v7487_v27 }
 0x1e6   : > { %v2149_v2 = vor.u32 %v2148_v31, %v2145_v29  ;;  %v2157_v35 = vrot.slane %v2155_v30, 7  ;;  %v1179_v37 = vshll.u32 %v1067_v14, 16  ;;  %v1596_v45 = vshrl.u32 %v1516_v25, 16  ;;  %v1523_v52 = vld [vmem:[#allocation2 + $0x34] sm:$0x3]  ;;  %7179 = vmatprep.subr.bf16.mxu0 %v7488_v7 }
 0x1e7   : > { %v1648_v47 = vsel %vm7985_vm10, %v1639_v32, %v1647_v26  ;;  %v1172_v50 = vrot.slane %v1170_v23, 4  ;;  %v1175_v38 = vrot.slane %v1173_v13, 5  ;;  %v1599_v21 = vshll.u32 %v1516_v25, 16  ;;  %1973 = vrot.lane.b32.xlu1 %v1928_v53, %s9519_s22  ;;  %v2028_v0 = vld [vmem:[#allocation2 + $0x18] sm:$0xc] }
 0x1e8   : > { %v2150_v43 = vrot.slane %v2149_v2, 4  ;;  %v2158_v54 = vor.u32 %v2157_v35, %v2154_v48  ;;  %v1181_v55 = vrot.slane %v1179_v37, 5  ;;  %v1598_v51 = vrot.slane %v1596_v45, 5  ;;  %v2029_v26 = vld [vmem:[#allocation2 + $0x1c] sm:$0x7] }
 0x1e9   : > { %v1176_v34 = vor.u32 %v1175_v38, %v1172_v50  ;;  %v1601_v3 = vrot.slane %v1599_v21, 6  ;;  %v1605_v58 = vshrl.u32 %v1517_v5, 16  ;;  %v1608_v1 = vshll.u32 %v1517_v5, 16  ;;  %1803 = vrot.lane.b32.xlu0 %v1648_v47, %s7711_s30  ;;  %v2034_v48 = vld [vmem:[#allocation2 + $0x30] sm:$0xc]  ;;  %7180 = vmatpush3.bf16.msra.mxu0 %v7488_v7  ;;  %v7489_v47 = vld [vmem:[%s9502_s5 + $0x58] sm:$0xff]  }
 0x1ea   : > { %v2159_v12 = vsel %vm7945_vm7, %v2150_v43, %v2158_v54  ;;  %v1650_v59 = vshrl.u32 %v1522_v63, 16  ;;  %v1653_v41 = vshll.u32 %v1522_v63, 16  ;;  %v1659_v24 = vshrl.u32 %v1523_v52, 16  ;;  %v2035_v27 = vld [vmem:[#allocation2 + $0x34] sm:$0x7]  ;;  %7181 = vmatprep.subr.bf16.mxu0 %v7489_v47 }
 0x1eb   : > { %v1177_v18 = vrot.slane %v1176_v34, 4  ;;  %v1602_v14 = vor.u32 %v1601_v3, %v1598_v51  ;;  %v1607_v25 = vrot.slane %v1605_v58, 5  ;;  %v1610_v53 = vrot.slane %v1608_v1, 6  ;;  %2484 = vrot.lane.b32.xlu1 %v2439_v17, %s9523_s23  ;;  %v1353_v34 = vld [vmem:[#allocation2 + $0x3c] sm:$0x1] }
 0x1ec   : > { %v1652_v29 = vrot.slane %v1650_v59, 5  ;;  %v1655_v31 = vrot.slane %v1653_v41, 6  ;;  %v1661_v30 = vrot.slane %v1659_v24, 5  ;;  %v1662_v32 = vshll.u32 %v1523_v52, 16  ;;  %v1352_v52 = vld [vmem:[#allocation2 + $0x38] sm:$0xe] }
 0x1ed   : > { %v1182_v23 = vsel %vm7961_vm15, %v1177_v18, %v1181_v55  ;;  %v1603_v13 = vrot.slane %v1602_v14, 4  ;;  %v1611_v5 = vor.u32 %v1610_v53, %v1607_v25  ;;  %v2107_v2 = vshrl.u32 %v2028_v0, 16  ;;  %2314 = vrot.lane.b32.xlu0 %v2159_v12, %s9564_s15  ;;  %v1062_v59 = vld [vmem:[#allocation2 + $0x20] sm:$0xf]  ;;  %7182 = vmatpush3.bf16.msra.mxu0 %v7489_v47  ;;  %v1063_v18 = vld [vmem:[#allocation2 + $0x24] sm:$0x1] }
 0x1ee   : > { %v1656_v35 = vor.u32 %v1655_v31, %v1652_v29  ;;  %v1664_v37 = vrot.slane %v1662_v32, 6  ;;  %v2110_v45 = vshll.u32 %v2028_v0, 16  ;;  %v2116_v63 = vshrl.u32 %v2029_v26, 16  ;;  %v1864_v14 = vld [vmem:[#allocation2 + $0x38] sm:$0xc] }
 0x1ef   : > { %v1612_v50 = vsel %vm7985_vm10, %v1603_v13, %v1611_v5  ;;  %v2109_v17 = vrot.slane %v2107_v2, 6  ;;  %v2119_v38 = vshll.u32 %v2029_v26, 16  ;;  %v2161_v21 = vshrl.u32 %v2034_v48, 16  ;;  %1293 = vrot.lane.b32.xlu1 %v1182_v23, %s9517_s20  ;;  %v1865_v31 = vld [vmem:[#allocation2 + $0x3c] sm:$0x3] }
 0x1f0   : > { %v1657_v43 = vrot.slane %v1656_v35, 4  ;;  %v1665_v54 = vor.u32 %v1664_v37, %v1661_v30  ;;  %v2112_v55 = vrot.slane %v2110_v45, 7  ;;  %v2118_v51 = vrot.slane %v2116_v63, 6  ;;  %v7490_v30 = vld [vmem:[%s9502_s5 + $0x50] sm:$0xff]   ;;  %v1518_v5 = vld [vmem:[#allocation2 + $0x20] sm:$0xe] }
 0x1f1   : > { %v2121_v3 = vrot.slane %v2119_v38, 7  ;;  %v2163_v58 = vrot.slane %v2161_v21, 6  ;;  %v2164_v1 = vshll.u32 %v2034_v48, 16  ;;  %v2170_v7 = vshrl.u32 %v2035_v27, 16  ;;  %1799 = vrot.lane.b32.xlu0 %v1612_v50, %s7711_s30  ;;  %v1519_v63 = vld [vmem:[#allocation2 + $0x24] sm:$0x3]  ;;  %7183 = vmatprep.subr.bf16.mxu0 %v7490_v30 }
 0x1f2   : > { %v1666_v41 = vsel %vm7985_vm10, %v1657_v43, %v1665_v54  ;;  %v2113_v24 = vor.u32 %v2112_v55, %v2109_v17  ;;  %v2173_v0 = vshll.u32 %v2035_v27, 16  ;;  %v6614_v12 = vrot.slane %v1352_v52, 9  ;;  %v1068_v38 = vld [vmem:[#allocation2 + $0x38] sm:$0xf]  ;;  %7184 = vmatpush3.bf16.msra.mxu0 %v7490_v30  ;;  %v1069_v55 = vld [vmem:[#allocation2 + $0x3c] sm:$0x1] }
 0x1f3   : > { %v2122_v25 = vor.u32 %v2121_v3, %v2118_v51  ;;  %v2166_v53 = vrot.slane %v2164_v1, 7  ;;  %v2172_v26 = vrot.slane %v2170_v7, 6  ;;  %v1427_v29 = vrot.slane %v1353_v34, 5  ;;  %1805 = vrot.lane.b32.xlu1 %v1666_v41, %s7711_s30  ;;  %v2030_v1 = vld [vmem:[#allocation2 + $0x20] sm:$0xc]  ;;  %v7491_v7 = vld [vmem:[%s9502_s5 + $0x48] sm:$0xff]  }
 0x1f4   : > { %v2114_v32 = vrot.slane %v2113_v24, 4  ;;  %v2175_v48 = vrot.slane %v2173_v0, 7  ;;  %v1142_v23 = vshrl.u32 %v1062_v59, 16  ;;  %v1145_v13 = vshll.u32 %v1062_v59, 16  ;;  %7185 = vmatprep.subr.bf16.mxu0 %v7491_v7 }
 0x1f5   : > { %v2167_v2 = vor.u32 %v2166_v53, %v2163_v58  ;;  %v1428_v35 = vsel %vm7917_vm13, %v6614_v12, %v1427_v29  ;;  %v1151_v37 = vshll.u32 %v1063_v18, 16  ;;  %v6628_v45 = vrot.slane %v1864_v14, 10  ;;  %v2031_v53 = vld [vmem:[#allocation2 + $0x24] sm:$0x7] }
 0x1f6   : > { %v2123_v27 = vsel %vm7945_vm7, %v2114_v32, %v2122_v25  ;;  %v2176_v47 = vor.u32 %v2175_v48, %v2172_v26  ;;  %v1144_v50 = vrot.slane %v1142_v23, 4  ;;  %v1147_v17 = vrot.slane %v1145_v13, 5  ;;  %v1524_v32 = vld [vmem:[#allocation2 + $0x38] sm:$0xe]  ;;  %7186 = vmatpush3.bf16.msra.mxu0 %v7491_v7 }
 0x1f7   : > { %v2168_v21 = vrot.slane %v2167_v2, 4  ;;  %v1153_v52 = vrot.slane %v1151_v37, 5  ;;  %v1939_v43 = vrot.slane %v1865_v31, 6  ;;  %v1614_v54 = vshrl.u32 %v1518_v5, 16  ;;  %2310 = vrot.lane.b32.xlu0 %v2123_v27, %s9564_s15  ;;  %v1525_v2 = vld [vmem:[#allocation2 + $0x3c] sm:$0x3] }
 0x1f8   : > { %v1148_v51 = vor.u32 %v1147_v17, %v1144_v50  ;;  %v1617_v34 = vshll.u32 %v1518_v5, 16  ;;  %v1623_v3 = vshrl.u32 %v1519_v63, 16  ;;  %v1626_v58 = vshll.u32 %v1519_v63, 16  ;;  %v7492_v37 = vld [vmem:[%s9502_s5 + $0x40] sm:$0xff]  }
 0x1f9   : > { %v2177_v59 = vsel %vm7945_vm7, %v2168_v21, %v2176_v47  ;;  %v1940_v41 = vsel %vm7922_vm14, %v6628_v45, %v1939_v43  ;;  %v1616_v24 = vrot.slane %v1614_v54, 5  ;;  %v1184_v0 = vshrl.u32 %v1068_v38, 16  ;;  %v8255_v21 = vld [vmem:[#allocation2 + $0x38] sm:$0x8]  ;;  %7187 = vmatprep.subr.bf16.mxu0 %v7492_v37 }
 0x1fa   : > { %2316 = vrot.lane.b32.xlu1 %v2177_v59, %s9564_s15  ;;  %v1149_v12 = vrot.slane %v1148_v51, 4  ;;  %v1619_v18 = vrot.slane %v1617_v34, 6  ;;  %v1625_v14 = vrot.slane %v1623_v3, 5  ;;  %v1628_v25 = vrot.slane %v1626_v58, 6  ;;  %v2376_v51 = vld [vmem:[#allocation2 + $0x3c] sm:$0x7]  ;;  %7188 = vmatpush3.bf16.msra.mxu0 %v7492_v37 }
 0x1fb   : > { %v1186_v26 = vrot.slane %v1184_v0, 4  ;;  %v1187_v29 = vshll.u32 %v1068_v38, 16  ;;  %v1193_v31 = vshll.u32 %v1069_v55, 16  ;;  %v2125_v30 = vshrl.u32 %v2030_v1, 16  ;;  %1467 = vrot.lane.b32.xlu0 %v1428_v35, %s9521_s21  ;;  %v7493_v34 = vld [vmem:[%s9502_s5 + $0x38] sm:$0xff]  }
 0x1fc   : > { %v1154_v48 = vsel %vm7961_vm15, %v1149_v12, %v1153_v52  ;;  %v1620_v23 = vor.u32 %v1619_v18, %v1616_v24  ;;  %v1629_v13 = vor.u32 %v1628_v25, %v1625_v14  ;;  %v2128_v5 = vshll.u32 %v2030_v1, 16  ;;  %v2036_v59 = vld [vmem:[#allocation2 + $0x38] sm:$0xc]  ;;  %v2037_v24 = vld [vmem:[#allocation2 + $0x3c] sm:$0x7]  ;;  %7189 = vmatprep.subr.bf16.mxu0 %v7493_v34 }
 0x1fd   : > { %v1189_v45 = vrot.slane %v1187_v29, 5  ;;  %v1195_v63 = vrot.slane %v1193_v31, 5  ;;  %v2127_v27 = vrot.slane %v2125_v30, 6  ;;  %v2134_v47 = vshrl.u32 %v2031_v53, 16  ;;  %v1354_v25 = vld [vmem:[#allocation2 + $0x40] sm:$0xe] }
 0x1fe   : > { %1289 = vrot.lane.b32.xlu1 %v1154_v48, %s9517_s20  ;;  %v1621_v50 = vrot.slane %v1620_v23, 4  ;;  %v2130_v17 = vrot.slane %v2128_v5, 7  ;;  %v2137_v35 = vshll.u32 %v2031_v53, 16  ;;  %v1668_v38 = vshrl.u32 %v1524_v32, 16  ;;  %v1355_v29 = vld [vmem:[#allocation2 + $0x44] sm:$0x1]  ;;  %7190 = vmatpush3.bf16.msra.mxu0 %v7493_v34 }
 0x1ff   : > { %v1190_v52 = vor.u32 %v1189_v45, %v1186_v26  ;;  %v2136_v43 = vrot.slane %v2134_v47, 6  ;;  %v1671_v54 = vshll.u32 %v1524_v32, 16  ;;  %v1677_v55 = vshrl.u32 %v1525_v2, 16  ;;  %1979 = vrot.lane.b32.xlu0 %v1940_v41, %s9519_s22  ;;  %v2377_v31 = vld [vmem:[#allocation2 + $0x40] sm:$0x8]  ;;  %s9565_s22 = smov 64  }
 0x200   : > { %v1630_v3 = vsel %vm7985_vm10, %v1621_v50, %v1629_v13  ;;  %v2131_v58 = vor.u32 %v2130_v17, %v2127_v27  ;;  %v2139_v1 = vrot.slane %v2137_v35, 7  ;;  %v1670_v7 = vrot.slane %v1668_v38, 5  ;;  %v2378_v5 = vld [vmem:[#allocation2 + $0x44] sm:$0x7]  ;;  %v7496_v17 = vld [vmem:[%s9502_s5 + $0x30] sm:$0xff]  }
 0x201   : > { %v1191_v0 = vrot.slane %v1190_v52, 4  ;;  %v1673_v12 = vrot.slane %v1671_v54, 6  ;;  %v1679_v18 = vrot.slane %v1677_v55, 5  ;;  %v1680_v14 = vshll.u32 %v1525_v2, 16  ;;  %v1866_v2 = vld [vmem:[#allocation2 + $0x40] sm:$0xc]  ;;  %7199 = vmatprep.subr.bf16.mxu1 %v7496_v17 }
 0x202   : > { %1801 = vrot.lane.b32.xlu1 %v1630_v3, %s7711_s30  ;;  %v2132_v53 = vrot.slane %v2131_v58, 4  ;;  %v2140_v26 = vor.u32 %v2139_v1, %v2136_v43  ;;  %v6642_v41 = vrot.slane %v8255_v21, 11  ;;  %v8271_v30 = vsel %vm7945_vm7, %v8065_v8, %v2068_v39  ;;  %v1867_v27 = vld [vmem:[#allocation2 + $0x44] sm:$0x3]  ;;  %v1072_v3 = vld [vmem:[#allocation2 + $0x48] sm:$0xf]  ;;  %7200 = vmatpush3.bf16.msra.mxu1 %v7496_v17 }
 0x203   : > { %v1196_v32 = vsel %vm7961_vm15, %v1191_v0, %v1195_v63  ;;  %v1674_v48 = vor.u32 %v1673_v12, %v1670_v7  ;;  %v1682_v23 = vrot.slane %v1680_v14, 6  ;;  %v2179_v13 = vshrl.u32 %v2036_v59, 16  ;;  %v1070_v63 = vld [vmem:[#allocation2 + $0x40] sm:$0xf]  ;;  %v1071_v43 = vld [vmem:[#allocation2 + $0x44] sm:$0x1] }
 0x204   : > { %1295 = vrot.lane.b32.xlu0 %v1196_v32, %s9517_s20  ;;  %v2141_v37 = vsel %vm7945_vm7, %v2132_v53, %v2140_v26  ;;  %v2450_v9 = vrot.slane %v2376_v51, 7  ;;  %v2182_v10 = vshll.u32 %v2036_v59, 16  ;;  %v2188_v45 = vshrl.u32 %v2037_v24, 16  ;;  %v7497_v58 = vld [vmem:[%s9502_s5 + $0xa0] sm:$0xff]   ;;  %s9567_s20 = smov 96  }
 0x205   : > { %v1675_v8 = vrot.slane %v1674_v48, 4  ;;  %v1683_v39 = vor.u32 %v1682_v23, %v1679_v18  ;;  %v2181_v47 = vrot.slane %v2179_v13, 6  ;;  %v2191_v50 = vshll.u32 %v2037_v24, 16  ;;  %v1526_v53 = vld [vmem:[#allocation2 + $0x40] sm:$0xe]  ;;  %7221 = vmatprep.subr.bf16.mxu0 %v7497_v58  ;;  %v7498_v48 = vld [vmem:[%s9502_s5 + $0x28] sm:$0xff]  }
 0x206   : > { %2312 = vrot.lane.b32.xlu1 %v2141_v37, %s9564_s15  ;;  %v2184_v35 = vrot.slane %v2182_v10, 7  ;;  %v2190_v38 = vrot.slane %v2188_v45, 6  ;;  %v6615_v21 = vrot.slane %v1354_v25, 9  ;;  %v1431_v52 = vrot.slane %v1355_v29, 5  ;;  %v1073_v25 = vld [vmem:[#allocation2 + $0x4c] sm:$0x1]  ;;  %7201 = vmatprep.subr.bf16.mxu1 %v7498_v48 }
 0x207   : > { %v1684_v54 = vsel %vm7985_vm10, %v1675_v8, %v1683_v39  ;;  %v2193_v55 = vrot.slane %v2191_v50, 7  ;;  %v6643_v51 = vrot.slane %v2377_v31, 11  ;;  %v2454_v34 = vrot.slane %v2378_v5, 7  ;;  %v1527_v32 = vld [vmem:[#allocation2 + $0x44] sm:$0x3]  ;;  %7202 = vmatpush3.bf16.msra.mxu1 %v7498_v48 }
 0x208   : > { %1807 = vrot.lane.b32.xlu0 %v1684_v54, %s7711_s30  ;;  %v2451_v1 = vsel %vm7934_vm1, %v6642_v41, %v2450_v9  ;;  %v2185_v7 = vor.u32 %v2184_v35, %v2181_v47  ;;  %v6629_v59 = vrot.slane %v1866_v2, 10  ;;  %v1943_v24 = vrot.slane %v1867_v27, 6  ;;  %v1528_v37 = vld [vmem:[#allocation2 + $0x48] sm:$0xe] }
 0x209   : > { %v2194_v0 = vor.u32 %v2193_v55, %v2190_v38  ;;  %v1432_v12 = vsel %vm7917_vm13, %v6615_v21, %v1431_v52  ;;  %v1198_v18 = vshrl.u32 %v1070_v63, 16  ;;  %v1201_v14 = vshll.u32 %v1070_v63, 16  ;;  %v1529_v63 = vld [vmem:[#allocation2 + $0x4c] sm:$0x3] }
 0x20a   : > { %2490 = vrot.lane.b32.xlu1 %v2451_v1, %s9523_s23  ;;  %v2186_v26 = vrot.slane %v2185_v7, 4  ;;  %v2455_v29 = vsel %vm7934_vm1, %v6643_v51, %v2454_v34  ;;  %v1207_v41 = vshll.u32 %v1071_v43, 16  ;;  %v1212_v31 = vshrl.u32 %v1072_v3, 16  ;;  %v2038_v51 = vld [vmem:[#allocation2 + $0x40] sm:$0xc] }
 0x20b   : > { %v1944_v23 = vsel %vm7922_vm14, %v6629_v59, %v1943_v24  ;;  %v1200_v13 = vrot.slane %v1198_v18, 4  ;;  %v1203_v5 = vrot.slane %v1201_v14, 5  ;;  %v1215_v2 = vshll.u32 %v1072_v3, 16  ;;  %v7500_v34 = vld [vmem:[%s9502_s5 + $0x20] sm:$0xff]  }
 0x20c   : > { %v2195_v9 = vsel %vm7945_vm7, %v2186_v26, %v2194_v0  ;;  %v1214_v10 = vrot.slane %v1212_v31, 4  ;;  %v1221_v45 = vshll.u32 %v1073_v25, 16  ;;  %v1686_v27 = vshrl.u32 %v1526_v53, 16  ;;  %v2039_v18 = vld [vmem:[#allocation2 + $0x44] sm:$0x7]  ;;  %7203 = vmatprep.subr.bf16.mxu1 %v7500_v34 }
 0x20d   : > { %2318 = vrot.lane.b32.xlu0 %v2195_v9, %s9564_s15  ;;  %v1204_v8 = vor.u32 %v1203_v5, %v1200_v13  ;;  %v1209_v39 = vrot.slane %v1207_v41, 5  ;;  %v1217_v47 = vrot.slane %v1215_v2, 5  ;;  %v1689_v50 = vshll.u32 %v1526_v53, 16  ;;  %v2040_v41 = vld [vmem:[#allocation2 + $0x48] sm:$0xc]  ;;  %7204 = vmatpush3.bf16.msra.mxu1 %v7500_v34 }
 0x20e   : > { %1469 = vrot.lane.b32.xlu1 %v1432_v12, %s9521_s21  ;;  %v1688_v17 = vrot.slane %v1686_v27, 5  ;;  %v1695_v35 = vshrl.u32 %v1527_v32, 16  ;;  %v1698_v38 = vshll.u32 %v1527_v32, 16  ;;  %v1704_v21 = vshrl.u32 %v1528_v37, 16  ;;  %v1029_v13 = vld [vmem:[#allocation2 + $0x18] sm:$0xf] }
 0x20f   : > { %v1205_v52 = vrot.slane %v1204_v8, 4  ;;  %v1218_v43 = vor.u32 %v1217_v47, %v1214_v10  ;;  %v1691_v54 = vrot.slane %v1689_v50, 6  ;;  %v1707_v55 = vshll.u32 %v1528_v37, 16  ;;  %v2041_v10 = vld [vmem:[#allocation2 + $0x4c] sm:$0x7]  ;;  %v7502_v47 = vld [vmem:[%s9502_s5 + $0x18] sm:$0xff]  }
 0x210   : > { %v1697_v3 = vrot.slane %v1695_v35, 5  ;;  %v1700_v58 = vrot.slane %v1698_v38, 6  ;;  %v1706_v1 = vrot.slane %v1704_v21, 5  ;;  %v1713_v7 = vshrl.u32 %v1529_v63, 16  ;;  %1043 = vst.msk [vmem:[#allocation4 + $0xc] sm:$0xf] %vm440_vm2, %v1029_v13  ;;  %7205 = vmatprep.subr.bf16.mxu1 %v7502_v47 }
 0x211   : > { %2492 = vrot.lane.b32.xlu0 %v2455_v29, %s9523_s23  ;;  %v1219_v59 = vrot.slane %v1218_v43, 4  ;;  %v1223_v24 = vrot.slane %v1221_v45, 5  ;;  %v1692_v0 = vor.u32 %v1691_v54, %v1688_v17  ;;  %v1709_v12 = vrot.slane %v1707_v55, 6  ;;  %v1850_v43 = vld [vmem:[#allocation2] sm:$0xc]  ;;  %v7504_v54 = vld [vmem:[%s9502_s5 + $0x10] sm:$0xff]   ;;  %7206 = vmatpush3.bf16.msra.mxu1 %v7502_v47 }
 0x212   : > { %1981 = vrot.lane.b32.xlu1 %v1944_v23, %s9565_s22  ;;  %v1210_v14 = vsel %vm7961_vm15, %v1205_v52, %v1209_v39  ;;  %v1701_v25 = vor.u32 %v1700_v58, %v1697_v3  ;;  %v1716_v53 = vshll.u32 %v1529_v63, 16  ;;  %v2197_v26 = vshrl.u32 %v2038_v51, 16  ;;  %v1074_v39 = vld [vmem:[#allocation2 + $0x50] sm:$0xf]  ;;  %v1851_v3 = vld [vmem:[#allocation2 + $0x4] sm:$0x3]  ;;  %7207 = vmatprep.subr.bf16.mxu1 %v7504_v54 }
 0x213   : > { %v1693_v31 = vrot.slane %v1692_v0, 4  ;;  %v1710_v32 = vor.u32 %v1709_v12, %v1706_v1  ;;  %v1715_v48 = vrot.slane %v1713_v7, 5  ;;  %v2200_v29 = vshll.u32 %v2038_v51, 16  ;;  %v1031_v1 = vld [vmem:[#allocation2 + $0x28] sm:$0xf] }
 0x214   : > { %v1718_v5 = vrot.slane %v1716_v53, 6  ;;  %v2199_v2 = vrot.slane %v2197_v26, 6  ;;  %v2206_v37 = vshrl.u32 %v2039_v18, 16  ;;  %v2209_v9 = vshll.u32 %v2039_v18, 16  ;;  %v1075_v0 = vld [vmem:[#allocation2 + $0x54] sm:$0x1] }
 0x215   : > { %2304 = vrot.lane.b32.xlu0 %v8271_v30, %s9564_s15  ;;  %v1224_v23 = vsel %vm7961_vm15, %v1219_v59, %v1223_v24  ;;  %v1702_v45 = vsel %vm7985_vm10, %v1693_v31, %v1701_v25  ;;  %v2202_v27 = vrot.slane %v2200_v29, 7  ;;  %v2215_v8 = vshrl.u32 %v2040_v41, 16  ;;  %1045 = vst.msk [vmem:[#allocation4 + $0x14] sm:$0xf] %vm440_vm2, %v1031_v1  ;;  %v2361_v25 = vld [vmem:[#allocation2] sm:$0x8]  ;;  %7208 = vmatpush3.bf16.msra.mxu1 %v7504_v54 }
 0x216   : > { %1297 = vrot.lane.b32.xlu1 %v1210_v14, %s9566_s16  ;;  %v1711_v50 = vrot.slane %v1710_v32, 4  ;;  %v2208_v63 = vrot.slane %v2206_v37, 6  ;;  %v2211_v17 = vrot.slane %v2209_v9, 7  ;;  %v2218_v35 = vshll.u32 %v2040_v41, 16  ;;  %v1077_v53 = vld [vmem:[#allocation2 + $0x5c] sm:$0x1] }
 0x217   : > { %v2203_v30 = vor.u32 %v2202_v27, %v2199_v2  ;;  %v2217_v38 = vrot.slane %v2215_v8, 6  ;;  %v2224_v21 = vshrl.u32 %v2041_v10, 16  ;;  %v2227_v52 = vshll.u32 %v2041_v10, 16  ;;  %v1032_v32 = vld [vmem:[#allocation2 + $0x30] sm:$0xf] }
 0x218   : > { %v1719_v55 = vor.u32 %v1718_v5, %v1715_v48  ;;  %v2212_v51 = vor.u32 %v2211_v17, %v2208_v63  ;;  %v2220_v34 = vrot.slane %v2218_v35, 7  ;;  %v1226_v58 = vshrl.u32 %v1074_v39, 16  ;;  %v2362_v2 = vld [vmem:[#allocation2 + $0x4] sm:$0x7]  ;;  %v1076_v37 = vld [vmem:[#allocation2 + $0x58] sm:$0xf] }
 0x219   : > { %1299 = vrot.lane.b32.xlu0 %v1224_v23, %s9566_s16  ;;  %v2204_v7 = vrot.slane %v2203_v30, 4  ;;  %v2226_v59 = vrot.slane %v2224_v21, 6  ;;  %v2229_v24 = vrot.slane %v2227_v52, 7  ;;  %v1229_v12 = vshll.u32 %v1074_v39, 16  ;;  %1046 = vst.msk [vmem:[#allocation4 + $0x18] sm:$0xf] %vm440_vm2, %v1032_v32 }
 0x21a   : > { %1809 = vrot.lane.b32.xlu1 %v1702_v45, %s7711_s30  ;;  %v2221_v18 = vor.u32 %v2220_v34, %v2217_v38  ;;  %v1228_v14 = vrot.slane %v1226_v58, 4  ;;  %v6621_v26 = vrot.slane %v1850_v43, 10  ;;  %v1911_v41 = vrot.slane %v1851_v3, 6  ;;  %v1030_v27 = vld [vmem:[#allocation2 + $0x20] sm:$0xf]  ;;  %v7506_v21 = vld [vmem:[%s9502_s5 + $0x8] sm:$0xff]  }
 0x21b   : > { %v1231_v31 = vrot.slane %v1229_v12, 5  ;;  %v1720_v48 = vsel %vm7985_vm10, %v1711_v50, %v1719_v55  ;;  %v2230_v13 = vor.u32 %v2229_v24, %v2226_v59  ;;  %v1235_v5 = vshll.u32 %v1075_v0, 16  ;;  %v1033_v8 = vld [vmem:[#allocation2 + $0x38] sm:$0xf]  ;;  %v8335_v39 = vld [vmem:[#allocation2 + $0x5c] sm:$0x1]  ;;  %7209 = vmatprep.subr.bf16.mxu1 %v7506_v21 }
 0x21c   : > { %v2222_v29 = vrot.slane %v2221_v18, 4  ;;  %v2213_v9 = vsel %vm7945_vm7, %v2204_v7, %v2212_v51  ;;  %v6635_v23 = vrot.slane %v2361_v25, 11  ;;  %v1249_v45 = vshll.u32 %v1077_v53, 16  ;;  %1044 = vst.msk [vmem:[#allocation4 + $0x10] sm:$0xf] %vm440_vm2, %v1030_v27  ;;  %v7510_v51 = vld [vmem:[%s9502_s5] sm:$0xff]   ;;  %7210 = vmatpush3.bf16.msra.mxu1 %v7506_v21 }
 0x21d   : > { %1811 = vrot.lane.b32.xlu0 %v1720_v48, %s7711_s30  ;;  %v1232_v10 = vor.u32 %v1231_v31, %v1228_v14  ;;  %1047 = vst.msk [vmem:[#allocation4 + $0x1c] sm:$0xf] %vm440_vm2, %v1033_v8  ;;  %v1034_v47 = vld [vmem:[#allocation2 + $0x40] sm:$0xf]  ;;  %v1035_v50 = vld [vmem:[#allocation2 + $0x48] sm:$0xf]  ;;  %v1912_v63 = vsel %vm7922_vm14, %v6621_v26, %v1911_v41  ;;  %7211 = vmatprep.subr.bf16.mxu1 %v7510_v51 }
 0x21e   : > { %2320 = vrot.lane.b32.xlu1 %v2213_v9, %s9564_s15  ;;  %v2422_v17 = vrot.slane %v2362_v2, 7  ;;  %v1240_v35 = vshrl.u32 %v1076_v37, 16  ;;  %v1243_v30 = vshll.u32 %v1076_v37, 16  ;;  %1048 = vst.msk [vmem:[#allocation4 + $0x20] sm:$0xf] %vm440_vm2, %v1034_v47  ;;  %v2231_v52 = vsel %vm7945_vm7, %v2222_v29, %v2230_v13  ;;  %v7486_v59 = vld [vmem:[#allocation4 + $0x4] sm:$0xff]  }
 0x21f   : > { %1049 = vst.msk [vmem:[#allocation4 + $0x24] sm:$0xf] %vm440_vm2, %v1035_v50  ;;  %v1036_v38 = vld [vmem:[#allocation2 + $0x50] sm:$0xf]  ;;  %v1233_v43 = vrot.slane %v1232_v10, 4  ;;  %v1237_v54 = vrot.slane %v1235_v5, 5 }
 0x220   : > { %v536_v55 = vld [vmem:[#allocation2 + $0x5c] sm:$0x6]  ;;  %1050 = vst.msk [vmem:[#allocation4 + $0x28] sm:$0xf] %vm440_vm2, %v1036_v38  ;;  %v1242_v34 = vrot.slane %v1240_v35, 4  ;;  %v1245_v3 = vrot.slane %v1243_v30, 5  ;;  %v2423_v18 = vsel %vm7934_vm1, %v6635_v23, %v2422_v17  ;;  %7212 = vmatpush3.bf16.msra.mxu1 %v7510_v51 }
 0x221   : > { %2322 = vrot.lane.b32.xlu0 %v2231_v52, %s9564_s15  ;;  %v1251_v58 = vrot.slane %v1249_v45, 5  ;;  %v1360_v1 = vld [vmem:[#allocation2 + $0x58] sm:$0xe]  ;;  %v1356_v24 = vld [vmem:[#allocation2 + $0x48] sm:$0xe]  ;;  %v1443_v26 = vrot.slane %v8335_v39, 5  ;;  %v1238_v31 = vsel %vm7961_vm15, %v1233_v43, %v1237_v54 }
 0x222   : > { %v1532_v7 = vld [vmem:[#allocation2 + $0x58] sm:$0xe]  ;;  %1965 = vrot.lane.b32.xlu1 %v1912_v63, %s9565_s22  ;;  %v1357_v0 = vld [vmem:[#allocation2 + $0x4c] sm:$0x1]  ;;  %v1868_v12 = vld [vmem:[#allocation2 + $0x48] sm:$0xc]  ;;  %v1246_v53 = vor.u32 %v1245_v3, %v1242_v34 }
 0x223   : > { %v1869_v14 = vld [vmem:[#allocation2 + $0x4c] sm:$0x3]  ;;  %v2379_v25 = vld [vmem:[#allocation2 + $0x48] sm:$0x8]  ;;  %v8360_v41 = vld [vmem:[%s9502_s5 + $0xd8] sm:$0xff]   ;;  %v537_v29 = vsel %vm7903_vm9, 0, %v536_v55 }
 0x224   : > { %v2380_v32 = vld [vmem:[#allocation2 + $0x4c] sm:$0x7]  ;;  %v1530_v48 = vld [vmem:[#allocation2 + $0x50] sm:$0xe]  ;;  %v1740_v13 = vshrl.u32 %v1532_v7, 16  ;;  %v6616_v5 = vrot.slane %v1356_v24, 9  ;;  %7243 = vmatprep.subr.bf16.mxu1 %v8360_v41 }
 0x225   : > { %1301 = vrot.lane.b32.xlu0 %v1238_v31, %s9566_s16  ;;  %v1435_v2 = vrot.slane %v1357_v0, 5  ;;  %v1247_v37 = vrot.slane %v1246_v53, 4  ;;  %v1531_v9 = vld [vmem:[#allocation2 + $0x54] sm:$0x3]  ;;  %538 = vst [vmem:[#allocation2 + $0x5c] sm:$0x6] %v537_v29 }
 0x226   : > { %v1743_v10 = vshll.u32 %v1532_v7, 16  ;;  %v2044_v23 = vld [vmem:[#allocation2 + $0x58] sm:$0xc]  ;;  %2476 = vrot.lane.b32.xlu1 %v2423_v18, %s9567_s20  ;;  %v6630_v45 = vrot.slane %v1868_v12, 10  ;;  %v1947_v27 = vrot.slane %v1869_v14, 6  ;;  %v6618_v39 = vrot.slane %v1360_v1, 9 }
 0x227   : > { %v8368_v8 = vld [vmem:[#allocation2 + $0x50] sm:$0xe]  ;;  %vm2641_vm4 = vcmask 916480   ;;  %v8370_v47 = vld [vmem:[#allocation2 + $0x54] sm:$0x1]  ;;  %v1252_v50 = vsel %vm7961_vm15, %v1247_v37, %v1251_v58  ;;  %v1722_v63 = vshrl.u32 %v1530_v48, 16  ;;  %v1436_v54 = vsel %vm7917_vm13, %v6616_v5, %v1435_v2 }
 0x228   : > { %v1742_v17 = vrot.slane %v1740_v13, 5  ;;  %v1745_v35 = vrot.slane %v1743_v10, 6  ;;  %7191 = vmatprep.mubr.msk.bf16.mxu0 %vm2641_vm4, %v7486_v59  ;;  %v6644_v30 = vrot.slane %v2379_v25, 11  ;;  %v2458_v38 = vrot.slane %v2380_v32, 7  ;;  %v494_v43 = vld [vmem:[#allocation2 + $0x60] sm:$0x3] }
 0x229   : > { %v1725_v21 = vshll.u32 %v1530_v48, 16  ;;  %v1731_v52 = vshrl.u32 %v1531_v9, 16  ;;  %1303 = vrot.lane.b32.xlu0 %v1252_v50, %s9566_s16  ;;  %v1734_v55 = vshll.u32 %v1531_v9, 16  ;;  %v1037_v51 = vld [vmem:[#allocation2 + $0x58] sm:$0xf]  ;;  %v6617_v34 = vrot.slane %v8368_v8, 9 }
 0x22a   : > { %1471 = vrot.lane.b32.xlu1 %v1436_v54, %s9568_s24  ;;  %v1444_v3 = vsel %vm7917_vm13, %v6618_v39, %v1443_v26  ;;  %v2042_v58 = vld [vmem:[#allocation2 + $0x50] sm:$0xc]  ;;  %v2251_v1 = vshrl.u32 %v2044_v23, 16  ;;  %v2254_v7 = vshll.u32 %v2044_v23, 16  ;;  %1051 = vst.msk [vmem:[#allocation4 + $0x2c] sm:$0xf] %vm440_vm2, %v1037_v51  ;;  %v1746_v0 = vor.u32 %v1745_v35, %v1742_v17 }
 0x22b   : > { %v1439_v59 = vrot.slane %v8370_v47, 5  ;;  %v1724_v24 = vrot.slane %v1722_v63, 5  ;;  %v1872_v12 = vld [vmem:[#allocation2 + $0x58] sm:$0xc]  ;;  %v495_v18 = vsel %vm7896_vm6, 0, %v494_v43  ;;  %v1948_v14 = vsel %vm7922_vm14, %v6630_v45, %v1947_v27 }
 0x22c   : > { %v2459_v25 = vsel %vm7934_vm1, %v6644_v30, %v2458_v38  ;;  %v1727_v53 = vrot.slane %v1725_v21, 6  ;;  %v8391_v26 = vrot.slane %v1731_v52, 5  ;;  %v1533_v31 = vld [vmem:[#allocation2 + $0x5c] sm:$0x3]  ;;  %496 = vst [vmem:[#allocation2 + $0x60] sm:$0x3] %v495_v18 }
 0x22d   : > { %v2045_v32 = vld [vmem:[#allocation2 + $0x5c] sm:$0x7]  ;;  %v1736_v48 = vrot.slane %v1734_v55, 6  ;;  %1475 = vrot.lane.b32.xlu0 %v1444_v3, %s9568_s24  ;;  %v1749_v29 = vshrl.u32 %v1533_v31, 16  ;;  %v1752_v13 = vshll.u32 %v1533_v31, 16  ;;  %v2233_v5 = vshrl.u32 %v2042_v58, 16 }
 0x22e   : > { %v1873_v2 = vld [vmem:[#allocation2 + $0x5c] sm:$0x3]  ;;  %1983 = vrot.lane.b32.xlu1 %v1948_v14, %s9565_s22  ;;  %v2253_v37 = vrot.slane %v2251_v1, 6  ;;  %v2256_v9 = vrot.slane %v2254_v7, 7  ;;  %v2260_v10 = vshrl.u32 %v2045_v32, 16  ;;  %v2263_v23 = vshll.u32 %v2045_v32, 16 }
 0x22f   : > { %v539_v45 = vld [vmem:[#allocation2 + $0x64] sm:$0x6]  ;;  %v1747_v27 = vrot.slane %v1746_v0, 4  ;;  %v1751_v8 = vrot.slane %v1749_v29, 5  ;;  %v1754_v39 = vrot.slane %v1752_v13, 6  ;;  %v2236_v50 = vshll.u32 %v2042_v58, 16 }
 0x230   : > { %v2043_v47 = vld [vmem:[#allocation2 + $0x54] sm:$0x7]  ;;  %v1728_v63 = vor.u32 %v1727_v53, %v1724_v24  ;;  %v6632_v17 = vrot.slane %v1872_v12, 10  ;;  %v1955_v35 = vrot.slane %v1873_v2, 6  ;;  %v2257_v30 = vor.u32 %v2256_v9, %v2253_v37  ;;  %v1079_v54 = vld [vmem:[#allocation2 + $0x64] sm:$0x1] }
 0x231   : > { %v1755_v38 = vor.u32 %v1754_v39, %v1751_v8  ;;  %v2262_v21 = vrot.slane %v2260_v10, 6  ;;  %v2265_v52 = vrot.slane %v2263_v23, 7  ;;  %v540_v43 = vsel %vm7903_vm9, 0, %v539_v45  ;;  %v497_v58 = vld [vmem:[#allocation2 + $0x68] sm:$0x3] }
 0x232   : > { %2494 = vrot.lane.b32.xlu1 %v2459_v25, %s9567_s20  ;;  %v1440_v55 = vsel %vm7917_vm13, %v6617_v34, %v1439_v59  ;;  %v1737_v51 = vor.u32 %v1736_v48, %v8391_v26  ;;  %v2242_v3 = vshrl.u32 %v2043_v47, 16  ;;  %541 = vst [vmem:[#allocation2 + $0x64] sm:$0x6] %v540_v43  ;;  %v2235_v7 = vrot.slane %v2233_v5, 6  ;;  %v1870_v14 = vld [vmem:[#allocation2 + $0x50] sm:$0xc] }
 0x233   : > { %v1756_v1 = vsel %vm7985_vm10, %v1747_v27, %v1755_v38  ;;  %v2238_v24 = vrot.slane %v2236_v50, 7  ;;  %v2245_v0 = vshll.u32 %v2043_v47, 16  ;;  %v1078_v12 = vld [vmem:[#allocation2 + $0x60] sm:$0xf]  ;;  %v1729_v18 = vrot.slane %v1728_v63, 4 }
 0x234   : > { %1815 = vrot.lane.b32.xlu0 %v1756_v1, %s7711_s30  ;;  %v1956_v25 = vsel %vm7922_vm14, %v6632_v17, %v1955_v35  ;;  %v2258_v34 = vrot.slane %v2257_v30, 4  ;;  %v1263_v59 = vshll.u32 %v1079_v54, 16  ;;  %v1871_v53 = vld [vmem:[#allocation2 + $0x54] sm:$0x3]  ;;  %v2266_v26 = vor.u32 %v2265_v52, %v2262_v21  ;;  %v1534_v16 = vld [vmem:[#allocation2 + $0x60] sm:$0xe] }
 0x235   : > { %v1254_v31 = vshrl.u32 %v1078_v12, 16  ;;  %v1257_v32 = vshll.u32 %v1078_v12, 16  ;;  %v498_v48 = vsel %vm7896_vm6, 0, %v497_v58  ;;  %v2244_v29 = vrot.slane %v2242_v3, 6  ;;  %v2381_v39 = vld [vmem:[#allocation2 + $0x50] sm:$0x8] }
 0x236   : > { %1473 = vrot.lane.b32.xlu1 %v1440_v55, %s9568_s24  ;;  %499 = vst [vmem:[#allocation2 + $0x68] sm:$0x3] %v498_v48  ;;  %v2239_v13 = vor.u32 %v2238_v24, %v2235_v7  ;;  %v2247_v5 = vrot.slane %v2245_v0, 7  ;;  %v6631_v9 = vrot.slane %v1870_v14, 10  ;;  %v1951_v10 = vrot.slane %v1871_v53, 6 }
 0x237   : > { %v1256_v2 = vrot.slane %v1254_v31, 4  ;;  %v1259_v37 = vrot.slane %v1257_v32, 5  ;;  %v1738_v23 = vsel %vm7985_vm10, %v1729_v18, %v1737_v51  ;;  %v2267_v45 = vsel %vm7945_vm7, %v2258_v34, %v2266_v26  ;;  %v8415_v47 = vld [vmem:[#allocation2 + $0x58] sm:$0x8]  ;;  %v2382_v17 = vld [vmem:[#allocation2 + $0x54] sm:$0x7] }
 0x238   : > { %1987 = vrot.lane.b32.xlu0 %v1956_v25, %s9565_s22  ;;  %v1265_v8 = vrot.slane %v1263_v59, 5  ;;  %v2240_v50 = vrot.slane %v2239_v13, 4  ;;  %v2248_v63 = vor.u32 %v2247_v5, %v2244_v29  ;;  %v1081_v30 = vld [vmem:[#allocation2 + $0x6c] sm:$0x1]  ;;  %v2384_v38 = vld [vmem:[#allocation2 + $0x5c] sm:$0x7]  ;;  %v1952_v55 = vsel %vm7922_vm14, %v6631_v9, %v1951_v10 }
 0x239   : > { %v1260_v27 = vor.u32 %v1259_v37, %v1256_v2  ;;  %v1363_v21 = vld [vmem:[#allocation2 + $0x64] sm:$0x1]  ;;  %v1758_v52 = vshrl.u32 %v1534_v16, 16  ;;  %v1761_v43 = vshll.u32 %v1534_v16, 16  ;;  %v542_v54 = vld [vmem:[#allocation2 + $0x6c] sm:$0x6] }
 0x23a   : > { %1813 = vrot.lane.b32.xlu1 %v1738_v23, %s7711_s30  ;;  %v6645_v51 = vrot.slane %v2381_v39, 11  ;;  %v1362_v3 = vld [vmem:[#allocation2 + $0x60] sm:$0xe]  ;;  %v2462_v7 = vrot.slane %v2382_v17, 7  ;;  %v1277_v12 = vshll.u32 %v1081_v30, 16  ;;  %v2249_v14 = vsel %vm7945_vm7, %v2240_v50, %v2248_v63 }
 0x23b   : > { %v1261_v35 = vrot.slane %v1260_v27, 4  ;;  %v6646_v25 = vrot.slane %v8415_v47, 11  ;;  %v2466_v34 = vrot.slane %v2384_v38, 7  ;;  %v1535_v59 = vld [vmem:[#allocation2 + $0x64] sm:$0x3]  ;;  %v543_v26 = vsel %vm7903_vm9, 0, %v542_v54 }
 0x23c   : > { %2326 = vrot.lane.b32.xlu0 %v2267_v45, %s9564_s15  ;;  %v1365_v53 = vld [vmem:[#allocation2 + $0x6c] sm:$0x1]  ;;  %v1760_v31 = vrot.slane %v1758_v52, 5  ;;  %v1763_v32 = vrot.slane %v1761_v43, 6  ;;  %544 = vst [vmem:[#allocation2 + $0x6c] sm:$0x6] %v543_v26 }
 0x23d   : > { %v1266_v58 = vsel %vm7961_vm15, %v1261_v35, %v1265_v8  ;;  %v1080_v1 = vld [vmem:[#allocation2 + $0x68] sm:$0xf]  ;;  %v6619_v5 = vrot.slane %v1362_v3, 9  ;;  %v1447_v2 = vrot.slane %v1363_v21, 5  ;;  %v1767_v45 = vshrl.u32 %v1535_v59, 16 }
 0x23e   : > { %1985 = vrot.lane.b32.xlu1 %v1952_v55, %s9565_s22  ;;  %v1268_v24 = vshrl.u32 %v1080_v1, 16  ;;  %v1271_v0 = vshll.u32 %v1080_v1, 16  ;;  %v1536_v18 = vld [vmem:[#allocation2 + $0x68] sm:$0xe]  ;;  %v1770_v20 = vshll.u32 %v1535_v59, 16  ;;  %v1279_v27 = vrot.slane %v1277_v12, 5 }
 0x23f   : > { %v2048_v13 = vld [vmem:[#allocation2 + $0x68] sm:$0xc]  ;;  %v1776_v9 = vshrl.u32 %v1536_v18, 16  ;;  %v1779_v10 = vshll.u32 %v1536_v18, 16  ;;  %v8430_v23 = vpop.permute.xlu0 %1463  ;;  %v2046_v8 = vld [vmem:[#allocation2 + $0x60] sm:$0xc]  ;;  %v1764_v17 = vor.u32 %v1763_v32, %v1760_v31  ;;  %v2463_v21 = vsel %vm7934_vm1, %v6645_v51, %v2462_v7 }
 0x240   : > { %1305 = vrot.lane.b32.xlu0 %v1266_v58, %s9566_s16  ;;  %v1270_v48 = vrot.slane %v1268_v24, 4  ;;  %v1273_v29 = vrot.slane %v1271_v0, 5  ;;  %v1364_v37 = vld [vmem:[#allocation2 + $0x68] sm:$0xe]  ;;  %v2287_v50 = vshrl.u32 %v2048_v13, 16  ;;  %v2290_v63 = vshll.u32 %v2048_v13, 16 }
 0x241   : > { %v1778_v39 = vrot.slane %v1776_v9, 5  ;;  %v1781_v47 = vrot.slane %v1779_v10, 6  ;;  %v6620_v30 = vrot.slane %v1364_v37, 9  ;;  %v1451_v38 = vrot.slane %v1365_v53, 5  ;;  %v1038_v54 = vld [vmem:[#allocation2 + $0x60] sm:$0xf] }
 0x242   : > { %2324 = vrot.lane.b32.xlu1 %v2249_v14, %s9564_s15  ;;  %v1274_v16 = vor.u32 %v1273_v29, %v1270_v48  ;;  %v2269_v52 = vshrl.u32 %v2046_v8, 16  ;;  %v2272_v43 = vshll.u32 %v2046_v8, 16  ;;  %v2467_v3 = vsel %vm7934_vm1, %v6646_v25, %v2466_v34  ;;  %v2047_v24 = vld [vmem:[#allocation2 + $0x64] sm:$0x7]  ;;  %v1876_v12 = vld [vmem:[#allocation2 + $0x68] sm:$0xc] }
 0x243   : > { %v8435_v55 = vpop.permute.xlu0 %1975  ;;  %v1448_v58 = vsel %vm7917_vm13, %v6619_v5, %v1447_v2  ;;  %v1782_v0 = vor.u32 %v1781_v47, %v1778_v39  ;;  %1052 = vst.msk [vmem:[#allocation4 + $0x30] sm:$0xf] %vm440_vm2, %v1038_v54  ;;  %v1769_v7 = vrot.slane %v1767_v45, 5  ;;  %v1772_v18 = vrot.slane %v1770_v20, 6  ;;  %v1537_v14 = vld [vmem:[#allocation2 + $0x6c] sm:$0x3] }
 0x244   : > { %v1275_v35 = vrot.slane %v1274_v16, 4  ;;  %v2289_v59 = vrot.slane %v2287_v50, 6  ;;  %v2292_v25 = vrot.slane %v2290_v63, 7  ;;  %v1765_v34 = vrot.slane %v1764_v17, 4  ;;  %v2049_v32 = vld [vmem:[#allocation2 + $0x6c] sm:$0x7] }
 0x245   : > { %v8444_v51 = vpop.permute.xlu1 %1465  ;;  %v1452_v53 = vsel %vm7917_vm13, %v6620_v30, %v1451_v38  ;;  %v1785_v26 = vshrl.u32 %v1537_v14, 16  ;;  %v1788_v31 = vshll.u32 %v1537_v14, 16  ;;  %v2271_v48 = vrot.slane %v2269_v52, 6  ;;  %v1877_v13 = vld [vmem:[#allocation2 + $0x6c] sm:$0x3] }
 0x246   : > { %2496 = vrot.lane.b32.xlu1 %v2463_v21, %s9567_s20  ;;  %v1280_v1 = vsel %vm7961_vm15, %v1275_v35, %v1279_v27  ;;  %v2274_v29 = vrot.slane %v2272_v43, 7  ;;  %v2296_v5 = vshrl.u32 %v2049_v32, 16  ;;  %v2299_v2 = vshll.u32 %v2049_v32, 16  ;;  %v1039_v16 = vld [vmem:[#allocation2 + $0x68] sm:$0xf] }
 0x247   : > { %1307 = vrot.lane.b32.xlu0 %v1280_v1, %s9566_s16  ;;  %v8450_v37 = vpop.permute.xlu0 %2486  ;;  %v2278_v9 = vshrl.u32 %v2047_v24, 16  ;;  %v1783_v10 = vrot.slane %v1782_v0, 4  ;;  %v1787_v45 = vrot.slane %v1785_v26, 5  ;;  %v1790_v20 = vrot.slane %v1788_v31, 6  ;;  %v1874_v39 = vld [vmem:[#allocation2 + $0x60] sm:$0xc] }
 0x248   : > { %v1773_v8 = vor.u32 %v1772_v18, %v1769_v7  ;;  %v1875_v47 = vld [vmem:[#allocation2 + $0x64] sm:$0x3]  ;;  %v2281_v50 = vshll.u32 %v2047_v24, 16  ;;  %v6634_v63 = vrot.slane %v1876_v12, 10  ;;  %v2293_v17 = vor.u32 %v2292_v25, %v2289_v59  ;;  %1053 = vst.msk [vmem:[#allocation4 + $0x34] sm:$0xf] %vm440_vm2, %v1039_v16  ;;  %vm9569_vm2 = vmmov %vm9563_vm12 }
 0x249   : > { %v8452_v27 = vpop.permute.xlu1 %1977  ;;  %v1791_v35 = vor.u32 %v1790_v20, %v1787_v45  ;;  %v1963_v30 = vrot.slane %v1877_v13, 6  ;;  %v2298_v38 = vrot.slane %v2296_v5, 6  ;;  %v2301_v21 = vrot.slane %v2299_v2, 7  ;;  %v2386_v32 = vld [vmem:[#allocation2 + $0x64] sm:$0x7]  ;;  %vm9570_vm6 = vmmov %vm9569_vm2 }
 0x24a   : > { %2498 = vrot.lane.b32.xlu1 %v2467_v3, %s9567_s20  ;;  %v6633_v43 = vrot.slane %v1874_v39, 10  ;;  %v1959_v54 = vrot.slane %v1875_v47, 6  ;;  %v1774_v24 = vsel %vm7985_vm10, %v1765_v34, %v1773_v8  ;;  %v2275_v0 = vor.u32 %v2274_v29, %v2271_v48  ;;  %v2385_v34 = vld [vmem:[#allocation2 + $0x60] sm:$0x8]  ;;  %v2388_v45 = vld [vmem:[#allocation2 + $0x6c] sm:$0x7]  ;;  %vm9572_vm12 = vmmov %vm9569_vm2 }
 0x24b   : > { %1479 = vrot.lane.b32.xlu0 %v1452_v53, %s9568_s24  ;;  %v1460_v52 = vpop.permute.xlu0 %1459  ;;  %v1792_v3 = vsel %vm7985_vm10, %v1783_v10, %v1791_v35  ;;  %v2280_v12 = vrot.slane %v2278_v9, 6  ;;  %v2283_v7 = vrot.slane %v2281_v50, 7  ;;  %v1964_v18 = vsel %vm7922_vm14, %v6634_v63, %v1963_v30  ;;  %v2387_v10 = vld [vmem:[#allocation2 + $0x68] sm:$0x8] }
 0x24c   : > { %v2294_v14 = vrot.slane %v2293_v17, 4  ;;  %v1960_v53 = vsel %vm7922_vm14, %v6633_v43, %v1959_v54  ;;  %v2276_v26 = vrot.slane %v2275_v0, 4  ;;  %v6647_v2 = vrot.slane %v2385_v34, 11 }
 0x24d   : > { %v2489_v1 = vpop.permute.xlu1 %2488  ;;  %v2284_v31 = vor.u32 %v2283_v7, %v2280_v12  ;;  %v2470_v9 = vrot.slane %v2386_v32, 7  ;;  %v6648_v39 = vrot.slane %v2387_v10, 11  ;;  %v2474_v47 = vrot.slane %v2388_v45, 7  ;;  %v7499_v12 = vld [vmem:[%s9502_s5 + $0x98] sm:$0xff]   ;;  %v7511_v10 = vld [vmem:[%s9502_s5 + $0x70] sm:$0xff]  }
 0x24e   : > { %1477 = vrot.lane.b32.xlu1 %v1448_v58, %s9568_s24  ;;  %v2302_v58 = vor.u32 %v2301_v21, %v2298_v38  ;;  %vm9571_vm9 = vcmask 650752   ;;  %s7712_s24 = smov 4  }
 0x24f   : > { %1819 = vrot.lane.b32.xlu0 %v1792_v3, %s7711_s30  ;;  %v1972_v59 = vpop.permute.xlu0 %1971  ;;  %v2285_v5 = vsel %vm7945_vm7, %v2276_v26, %v2284_v31  ;;  %v2471_v8 = vsel %vm7934_vm1, %v6647_v2, %v2470_v9  ;;  %v2475_v17 = vsel %vm7934_vm1, %v6648_v39, %v2474_v47  ;;  %v7503_v31 = vld [vmem:[%s9502_s5 + $0x88] sm:$0xff]  }
 0x250   : > { %v2303_v48 = vsel %vm7945_vm7, %v2294_v14, %v2302_v58 }
 0x251   : > { %v1288_v25 = vpop.permute.xlu1 %1287 }
 0x252   : > { %1817 = vrot.lane.b32.xlu1 %v1774_v24, %s7711_s30  ;;  %1327 = vst.msk [vmem:[#allocation4 + $0xc] sm:$0xf] %vm1323_vm11, %v1288_v25  ;;  %v7501_v25 = vld [vmem:[%s9502_s5 + $0x90] sm:$0xff]   ;;  %s9530_s30 = smov 8  }
 0x253   : > { %1991 = vrot.lane.b32.xlu0 %v1964_v18, %s9565_s22  ;;  %1499 = vst.msk [vmem:[#allocation4 + $0xc] sm:$0xf] %vm9569_vm2, %v1460_v52  ;;  %v2483_v29 = vpop.permute.xlu0 %2482  ;;  %vm9573_vm2 = vmmov %vm9571_vm9 }
 0x255   : > { %v1462_v13 = vpop.permute.xlu1 %1461 }
 0x256   : > { %1989 = vrot.lane.b32.xlu1 %v1960_v53, %s9565_s22  ;;  %s7715_s22 = smov 20  }
 0x257   : > { %2330 = vrot.lane.b32.xlu0 %v2303_v48, %s9564_s15  ;;  %v1292_v20 = vpop.permute.xlu0 %1291  ;;  %v7505_v48 = vld [vmem:[%s9502_s5 + $0x80] sm:$0xff]  }
 0x258   : > { %1329 = vst.msk [vmem:[#allocation4 + $0x14] sm:$0xf] %vm1323_vm11, %v1292_v20 }
 0x259   : > { %v1974_v16 = vpop.permute.xlu1 %1973  ;;  %1501 = vst.msk [vmem:[#allocation4 + $0x14] sm:$0xf] %vm9570_vm6, %v8430_v23  ;;  %vm9574_vm6 = vmmov %vm9573_vm2 }
 0x25a   : > { %2328 = vrot.lane.b32.xlu1 %v2285_v5, %s9564_s15  ;;  %v7507_v5 = vld [vmem:[%s9502_s5 + $0x78] sm:$0xff]   ;;  %s7714_s15 = smov 12  }
 0x25b   : > { %v1804_v50 = vpop.permute.xlu0 %1803 }
 0x25c   : > { %1841 = vst.msk [vmem:[#allocation4 + $0x14] sm:$0xf] %vm1835_vm3, %v1804_v50 }
 0x25d   : > { %v2485_v63 = vpop.permute.xlu1 %2484  ;;  %2013 = vst.msk [vmem:[#allocation4 + $0x14] sm:$0xf] %vm9571_vm9, %v8435_v55  ;;  %vm9575_vm9 = vmmov %vm9572_vm12 }
 0x25e   : > { %2500 = vrot.lane.b32.xlu1 %v2471_v8, %s9567_s20 }
 0x25f   : > { %v2315_v35 = vpop.permute.xlu0 %2314 }
 0x260   : > { %2352 = vst.msk [vmem:[#allocation4 + $0x14] sm:$0xf] %vm2346_vm0, %v2315_v35 }
 0x261   : > { %v1294_v30 = vpop.permute.xlu1 %1293  ;;  %2524 = vst.msk [vmem:[#allocation4 + $0x14] sm:$0xf] %vm2518_vm5, %v8450_v37 }
 0x262   : > { %2502 = vrot.lane.b32.xlu1 %v2475_v17, %s9567_s20  ;;  %1330 = vst.msk [vmem:[#allocation4 + $0x18] sm:$0xf] %vm1323_vm11, %v1294_v30 }
 0x263   : > { %1502 = vst.msk [vmem:[#allocation4 + $0x18] sm:$0xf] %vm9572_vm12, %v8444_v51  ;;  %v1800_v23 = vpop.permute.xlu0 %1799  ;;  %vm9576_vm12 = vmmov %vm9573_vm2 }
 0x264   : > { %1839 = vst.msk [vmem:[#allocation4 + $0xc] sm:$0xf] %vm1835_vm3, %v1800_v23 }
 0x265   : > { %v1806_v38 = vpop.permute.xlu1 %1805  ;;  %2011 = vst.msk [vmem:[#allocation4 + $0xc] sm:$0xf] %vm9573_vm2, %v1972_v59  ;;  %vm9577_vm2 = vmmov %vm9575_vm9  ;;  %v7642_v59 = vld [vmem:[%s9502_s5 + $0xa0] sm:$0xff]  }
 0x266   : > { %1842 = vst.msk [vmem:[#allocation4 + $0x18] sm:$0xf] %vm1835_vm3, %v1806_v38  ;;  %v7519_v38 = vld [vmem:[%s9502_s5 + $0xd0] sm:$0xff]  }
 0x267   : > { %2014 = vst.msk [vmem:[#allocation4 + $0x18] sm:$0xf] %vm9574_vm6, %v8452_v27 }
 0x269   : > { %v2311_v55 = vpop.permute.xlu0 %2310 }
 0x26a   : > { %2350 = vst.msk [vmem:[#allocation4 + $0xc] sm:$0xf] %vm2346_vm0, %v2311_v55  ;;  %v7520_v55 = vld [vmem:[%s9502_s5 + $0x108] sm:$0xff]  }
 0x26b   : > { %2522 = vst.msk [vmem:[#allocation4 + $0xc] sm:$0xf] %vm2518_vm5, %v2483_v29 }
 0x26c   : > { %v2317_v37 = vpop.permute.xlu1 %2316 }
 0x26d   : > { %2353 = vst.msk [vmem:[#allocation4 + $0x18] sm:$0xf] %vm2346_vm0, %v2317_v37  ;;  %v1468_v51 = vpop.permute.xlu0 %1467 }
 0x26e   : > { %2525 = vst.msk [vmem:[#allocation4 + $0x18] sm:$0xf] %vm2518_vm5, %v2489_v1 }
 0x270   : > { %v1290_v21 = vpop.permute.xlu1 %1289 }
 0x271   : > { %1328 = vst.msk [vmem:[#allocation4 + $0x10] sm:$0xf] %vm1323_vm11, %v1290_v21  ;;  %v1980_v52 = vpop.permute.xlu0 %1979 }
 0x272   : > { %1500 = vst.msk [vmem:[#allocation4 + $0x10] sm:$0xf] %vm9575_vm9, %v1462_v13  ;;  %vm9578_vm9 = vmmov %vm9577_vm2  ;;  %v7509_v39 = vld [vmem:[#allocation4 + $0x8] sm:$0xff]  }
 0x273   : > { %v7515_v30 = vld [vmem:[#allocation4 + $0x8] sm:$0xff]  }
 0x274   : > { %v1802_v43 = vpop.permute.xlu1 %1801 }
 0x275   : > { %1840 = vst.msk [vmem:[#allocation4 + $0x10] sm:$0xf] %vm1835_vm3, %v1802_v43  ;;  %v7495_v18 = vld [vmem:[#allocation4 + $0x14] sm:$0xff]   ;;  %v7522_v43 = vld [vmem:[%s9502_s5 + $0x100] sm:$0xff]  }
 0x276   : > { %2012 = vst.msk [vmem:[#allocation4 + $0x10] sm:$0xf] %vm9576_vm12, %v1974_v16  ;;  %v1296_v27 = vpop.permute.xlu0 %1295  ;;  %vm9579_vm12 = vmmov %vm9574_vm6  ;;  %v7514_v16 = vld [vmem:[%s9502_s5 + $0x110] sm:$0xff]  }
 0x277   : > { %1331 = vst.msk [vmem:[#allocation4 + $0x1c] sm:$0xf] %vm1323_vm11, %v1296_v27 }
 0x278   : > { %1503 = vst.msk [vmem:[#allocation4 + $0x1c] sm:$0xf] %vm9577_vm2, %v1468_v51  ;;  %v2313_v54 = vpop.permute.xlu1 %2312  ;;  %vm9580_vm2 = vmmov %vm9574_vm6 }
 0x279   : > { %2351 = vst.msk [vmem:[#allocation4 + $0x10] sm:$0xf] %vm2346_vm0, %v2313_v54 }
 0x27a   : > { %2523 = vst.msk [vmem:[#allocation4 + $0x10] sm:$0xf] %vm2518_vm5, %v2485_v63  ;;  %v1808_v3 = vpop.permute.xlu0 %1807 }
 0x27b   : > { %1843 = vst.msk [vmem:[#allocation4 + $0x1c] sm:$0xf] %vm1835_vm3, %v1808_v3  ;;  %v7526_v3 = vld [vmem:[%s9502_s5 + $0xc0] sm:$0xff]  }
 0x27c   : > { %2015 = vst.msk [vmem:[#allocation4 + $0x1c] sm:$0xf] %vm9574_vm6, %v1980_v52  ;;  %v2491_v1 = vpop.permute.xlu1 %2490  ;;  %vm9581_vm6 = vmmov %vm9578_vm9  ;;  %v7521_v52 = vld [vmem:[%s9502_s5 + $0xc8] sm:$0xff]  }
 0x27f   : > { %v2319_v24 = vpop.permute.xlu0 %2318 }
 0x280   : > { %2354 = vst.msk [vmem:[#allocation4 + $0x1c] sm:$0xf] %vm2346_vm0, %v2319_v24  ;;  %v1470_v0 = vpop.permute.xlu1 %1469 }
 0x281   : > { %2526 = vst.msk [vmem:[#allocation4 + $0x1c] sm:$0xf] %vm2518_vm5, %v2491_v1  ;;  %v7494_v7 = vld [vmem:[#allocation4 + $0xc] sm:$0xff]   ;;  %v7527_v1 = vld [vmem:[%s9502_s5 + $0xf8] sm:$0xff]  }
 0x282   : > { %7192 = vmatmul.mubr.msk.bf16.vlgmr.msra.gmra.mxu0 %vm2641_vm4, %v7494_v7  ;;  %v7516_v23 = vld [vmem:[#allocation4 + $0x10] sm:$0xff]  }
 0x283   : > { %v2493_v14 = vpop.permute.xlu0 %2492  ;;  %7195 = vmatprep.mubr.msk.bf16.mxu0 %vm2641_vm4, %v7495_v18  ;;  %7222 = vmatpush3.bf16.msra.mxu0 %v7642_v59  ;;  %v7517_v37 = vld [vmem:[#allocation4 + $0x10] sm:$0xff]  }
 0x284   : > { %v1982_v58 = vpop.permute.xlu1 %1981  ;;  %7223 = vmatprep.subr.bf16.mxu0 %v7499_v12  ;;  %v7530_v7 = vld [vmem:[%s9502_s5 + $0xf0] sm:$0xff]  }
 0x287   : > { %v2305_v53 = vpop.permute.xlu0 %2304  ;;  %7224 = vmatpush3.bf16.msra.mxu0 %v7499_v12  ;;  %v7529_v12 = vld [vmem:[%s9502_s5 + $0xb8] sm:$0xff]  }
 0x288   : > { %v1298_v26 = vpop.permute.xlu1 %1297  ;;  %7225 = vmatprep.subr.bf16.mxu0 %v7501_v25  ;;  %v7518_v51 = vld [vmem:[#allocation4 + $0x18] sm:$0xff]  }
 0x289   : > { %1332 = vst.msk [vmem:[#allocation4 + $0x20] sm:$0xf] %vm1323_vm11, %v1298_v26  ;;  %v7523_v54 = vld [vmem:[#allocation4 + $0x18] sm:$0xff]   ;;  %v7532_v26 = vld [vmem:[%s9502_s5 + $0xe8] sm:$0xff]  }
 0x28a   : > { %1504 = vst.msk [vmem:[#allocation4 + $0x20] sm:$0xf] %vm9578_vm9, %v1470_v0  ;;  %vm9582_vm9 = vmmov %vm9581_vm6  ;;  %v7524_v0 = vld [vmem:[#allocation4 + $0xc] sm:$0xff]  }
 0x28b   : > { %v1300_v34 = vpop.permute.xlu0 %1299  ;;  %7226 = vmatpush3.bf16.msra.mxu0 %v7501_v25 }
 0x28c   : > { %1333 = vst.msk [vmem:[#allocation4 + $0x24] sm:$0xf] %vm1323_vm11, %v1300_v34  ;;  %v1810_v32 = vpop.permute.xlu1 %1809  ;;  %7227 = vmatprep.subr.bf16.mxu0 %v7503_v31 }
 0x28d   : > { %1844 = vst.msk [vmem:[#allocation4 + $0x20] sm:$0xf] %vm1835_vm3, %v1810_v32  ;;  %v7533_v32 = vld [vmem:[%s9502_s5 + $0xa8] sm:$0xff]  }
 0x28e   : > { %2016 = vst.msk [vmem:[#allocation4 + $0x20] sm:$0xf] %vm9579_vm12, %v1982_v58  ;;  %vm9583_vm12 = vmmov %vm9580_vm2  ;;  %v7528_v58 = vld [vmem:[#allocation4 + $0x10] sm:$0xff]  }
 0x28f   : > { %v1812_v29 = vpop.permute.xlu0 %1811  ;;  %7228 = vmatpush3.bf16.msra.mxu0 %v7503_v31 }
 0x290   : > { %v2321_v13 = vpop.permute.xlu1 %2320  ;;  %7229 = vmatprep.subr.bf16.mxu0 %v7505_v48 }
 0x291   : > { %2355 = vst.msk [vmem:[#allocation4 + $0x20] sm:$0xf] %vm2346_vm0, %v2321_v13  ;;  %v7537_v13 = vld [vmem:[%s9502_s5 + $0x148] sm:$0xff]  }
 0x292   : > { %2527 = vst.msk [vmem:[#allocation4 + $0x20] sm:$0xf] %vm2518_vm5, %v2493_v14 }
 0x293   : > { %v2323_v2 = vpop.permute.xlu0 %2322  ;;  %7230 = vmatpush3.bf16.msra.mxu0 %v7505_v48  ;;  %v7534_v48 = vld [vmem:[%s9502_s5 + $0xe0] sm:$0xff]  }
 0x294   : > { %v1966_v9 = vpop.permute.xlu1 %1965  ;;  %7231 = vmatprep.subr.bf16.mxu0 %v7507_v5 }
 0x295   : > { %2008 = vst.msk [vmem:[#allocation4] sm:$0xf] %vm9580_vm2, %v1966_v9  ;;  %vm9584_vm2 = vmmov %vm9581_vm6 }
 0x296   : > { %2347 = vst.msk [vmem:[#allocation4] sm:$0xf] %vm2346_vm0, %v2305_v53  ;;  %v7531_v53 = vld [vmem:[%s9502_s5 + $0xb0] sm:$0xff]  }
 0x297   : > { %v1302_v45 = vpop.permute.xlu0 %1301  ;;  %7232 = vmatpush3.bf16.msra.mxu0 %v7507_v5  ;;  %v7538_v5 = vld [vmem:[%s9502_s5 + $0x180] sm:$0xff]  }
 0x298   : > { %1334 = vst.msk [vmem:[#allocation4 + $0x28] sm:$0xf] %vm1323_vm11, %v1302_v45  ;;  %v2477_v20 = vpop.permute.xlu1 %2476  ;;  %7233 = vmatprep.subr.bf16.mxu0 %v7511_v10  ;;  %v7536_v45 = vld [vmem:[#allocation4 + $0x18] sm:$0xff]  }
 0x299   : > { %2519 = vst.msk [vmem:[#allocation4] sm:$0xf] %vm2518_vm5, %v2477_v20  ;;  %v7508_v8 = vld [vmem:[#allocation4 + $0x1c] sm:$0xff]  }
 0x29a   : > { %7196 = vmatmul.mubr.msk.bf16.gmra.mxu0 %vm2641_vm4, %v7508_v8  ;;  %v7541_v20 = vld [vmem:[%s9502_s5 + $0x140] sm:$0xff]  }
 0x29b   : > { %v1304_v47 = vpop.permute.xlu0 %1303  ;;  %7235 = vmatprep.mubr.msk.bf16.mxu0 %vm2641_vm4, %v7509_v39  ;;  %7234 = vmatpush3.bf16.msra.mxu0 %v7511_v10  ;;  %v7535_v10 = vld [vmem:[#allocation4 + $0x14] sm:$0xff]   ;;  %v7539_v8 = vld [vmem:[#allocation4 + $0x1c] sm:$0xff]  }
 0x29c   : > { %v1472_v50 = vpop.permute.xlu1 %1471  ;;  %1335 = vst.msk [vmem:[#allocation4 + $0x2c] sm:$0xf] %vm1323_vm11, %v1304_v47  ;;  %7265 = vmatprep.subr.bf16.mxu0 %v7514_v16  ;;  %v7542_v47 = vld [vmem:[%s9502_s5 + $0x178] sm:$0xff]  }
 0x29d   : > { %1505 = vst.msk [vmem:[#allocation4 + $0x24] sm:$0xf] %vm9581_vm6, %v1472_v50  ;;  %vm9585_vm6 = vmmov %vm9583_vm12 }
 0x29e   : > { %1845 = vst.msk [vmem:[#allocation4 + $0x24] sm:$0xf] %vm1835_vm3, %v1812_v29 }
 0x29f   : > { %v1476_v63 = vpop.permute.xlu0 %1475 }
 0x2a0   : > { %v1984_v17 = vpop.permute.xlu1 %1983  ;;  %v7512_v35 = vld [vmem:[#allocation4] sm:$0xff]   ;;  %1507 = vst.msk [vmem:[#allocation4 + $0x2c] sm:$0xf] %vm9582_vm9, %v1476_v63  ;;  %vm9586_vm9 = vmmov %vm9585_vm6 }
 0x2a1   : > { %2017 = vst.msk [vmem:[#allocation4 + $0x24] sm:$0xf] %vm9583_vm12, %v1984_v17  ;;  %7213 = vmatprep.mubr.msk.bf16.mxu1 %vm2641_vm4, %v7512_v35  ;;  %vm9588_vm12 = vmmov %vm9584_vm2  ;;  %v7545_v17 = vld [vmem:[%s9502_s5 + $0x138] sm:$0xff]   ;;  %v7546_v35 = vld [vmem:[%s9502_s5 + $0x170] sm:$0xff]  }
 0x2a2   : > { %2356 = vst.msk [vmem:[#allocation4 + $0x24] sm:$0xf] %vm2346_vm0, %v2323_v2  ;;  %7214 = vmatmul.mubr.msk.bf16.vlgmr.msra.gmra.mxu1 %vm2641_vm4, %v7515_v30  ;;  %7236 = vmatmul.mubr.msk.bf16.vlgmr.msra.gmra.mxu0 %vm2641_vm4, %v7516_v23 }
 0x2a3   : > { %7244 = vmatpush3.bf16.msra.mxu1 %v8360_v41  ;;  %7266 = vmatpush3.bf16.msra.mxu0 %v7514_v16 }
 0x2a4   : > { %v2495_v21 = vpop.permute.xlu1 %2494  ;;  %7217 = vmatprep.mubr.msk.bf16.mxu1 %vm2641_vm4, %v7517_v37  ;;  %7239 = vmatprep.mubr.msk.bf16.mxu0 %vm2641_vm4, %v7518_v51  ;;  %v7547_v51 = vld [vmem:[#allocation4 + $0x14] sm:$0xff]  }
 0x2a5   : > { %2528 = vst.msk [vmem:[#allocation4 + $0x24] sm:$0xf] %vm2518_vm5, %v2495_v21  ;;  %7245 = vmatprep.subr.bf16.mxu1 %v7519_v38  ;;  %7267 = vmatprep.subr.bf16.mxu0 %v7520_v55  ;;  %v7548_v21 = vld [vmem:[#allocation4 + $0x18] sm:$0xff]  }
 0x2a6   : > { %v1816_v27 = vpop.permute.xlu0 %1815 }
 0x2a7   : > { %1847 = vst.msk [vmem:[#allocation4 + $0x2c] sm:$0xf] %vm1835_vm3, %v1816_v27  ;;  %7246 = vmatpush3.bf16.msra.mxu1 %v7519_v38  ;;  %7268 = vmatpush3.bf16.msra.mxu0 %v7520_v55  ;;  %v7549_v55 = vld [vmem:[%s9502_s5 + $0x130] sm:$0xff]  }
 0x2a8   : > { %v1474_v41 = vpop.permute.xlu1 %1473  ;;  %7247 = vmatprep.subr.bf16.mxu1 %v7521_v52  ;;  %7269 = vmatprep.subr.bf16.mxu0 %v7522_v43 }
 0x2a9   : > { %1506 = vst.msk [vmem:[#allocation4 + $0x28] sm:$0xf] %vm9584_vm2, %v1474_v41  ;;  %v7551_v41 = vld [vmem:[%s9502_s5 + $0x128] sm:$0xff]  }
 0x2aa   : > { %v1988_v24 = vpop.permute.xlu0 %1987  ;;  %7218 = vmatmul.mubr.msk.bf16.gmra.mxu1 %vm2641_vm4, %v7523_v54  ;;  %v7552_v54 = vld [vmem:[%s9502_s5 + $0x160] sm:$0xff]  }
 0x2ab   : > { %2019 = vst.msk [vmem:[#allocation4 + $0x2c] sm:$0xf] %vm9585_vm6, %v1988_v24  ;;  %7248 = vmatpush3.bf16.msra.mxu1 %v7521_v52  ;;  %7270 = vmatpush3.bf16.msra.mxu0 %v7522_v43  ;;  %v7550_v52 = vld [vmem:[%s9502_s5 + $0x168] sm:$0xff]   ;;  %v7554_v24 = vld [vmem:[%s9502_s5 + $0x158] sm:$0xff]  }
 0x2ac   : > { %v1814_v18 = vpop.permute.xlu1 %1813  ;;  %v7525_v14 = vld [vmem:[#allocation4 + $0x20] sm:$0xff]   ;;  %7257 = vmatprep.mubr.msk.bf16.mxu1 %vm2641_vm4, %v7524_v0  ;;  %7249 = vmatprep.subr.bf16.mxu1 %v7526_v3 }
 0x2ad   : > { %1846 = vst.msk [vmem:[#allocation4 + $0x28] sm:$0xf] %vm1835_vm3, %v1814_v18  ;;  %7240 = vmatmul.mubr.msk.bf16.gmra.mxu0 %vm2641_vm4, %v7525_v14  ;;  %7271 = vmatprep.subr.bf16.mxu0 %v7527_v1  ;;  %v7540_v39 = vld [vmem:[#allocation4 + $0x20] sm:$0xff]  }
 0x2ae   : > { %v2327_v59 = vpop.permute.xlu0 %2326  ;;  %7279 = vmatprep.mubr.msk.bf16.mxu0 %vm2641_vm4, %v7528_v58  ;;  %v7557_v14 = vld [vmem:[#allocation4 + $0x1c] sm:$0xff]  }
 0x2af   : > { %2358 = vst.msk [vmem:[#allocation4 + $0x2c] sm:$0xf] %vm2346_vm0, %v2327_v59  ;;  %7250 = vmatpush3.bf16.msra.mxu1 %v7526_v3  ;;  %7272 = vmatpush3.bf16.msra.mxu0 %v7527_v1  ;;  %v7553_v1 = vld [vmem:[%s9502_s5 + $0x120] sm:$0xff]  }
 0x2b0   : > { %v1986_v25 = vpop.permute.xlu1 %1985  ;;  %7251 = vmatprep.subr.bf16.mxu1 %v7529_v12  ;;  %7273 = vmatprep.subr.bf16.mxu0 %v7530_v7  ;;  %v7558_v58 = vld [vmem:[#allocation4 + $0x20] sm:$0xff]  }
 0x2b1   : > { %2018 = vst.msk [vmem:[#allocation4 + $0x28] sm:$0xf] %vm9586_vm9, %v1986_v25 }
 0x2b2   : > { %v1306_v31 = vpop.permute.xlu0 %1305 }
 0x2b3   : > { %1336 = vst.msk [vmem:[#allocation4 + $0x30] sm:$0xf] %vm1323_vm11, %v1306_v31  ;;  %7252 = vmatpush3.bf16.msra.mxu1 %v7529_v12  ;;  %7274 = vmatpush3.bf16.msra.mxu0 %v7530_v7  ;;  %v7555_v12 = vld [vmem:[%s9502_s5 + $0x118] sm:$0xff]   ;;  %v7556_v7 = vld [vmem:[%s9502_s5 + $0x150] sm:$0xff]  }
 0x2b4   : > { %v2325_v34 = vpop.permute.xlu1 %2324  ;;  %7253 = vmatprep.subr.bf16.mxu1 %v7531_v53  ;;  %7275 = vmatprep.subr.bf16.mxu0 %v7532_v26 }
 0x2b5   : > { %2357 = vst.msk [vmem:[#allocation4 + $0x28] sm:$0xf] %vm2346_vm0, %v2325_v34 }
 0x2b7   : > { %7254 = vmatpush3.bf16.msra.mxu1 %v7531_v53  ;;  %7276 = vmatpush3.bf16.msra.mxu0 %v7532_v26 }
 0x2b8   : > { %v2497_v29 = vpop.permute.xlu1 %2496  ;;  %7255 = vmatprep.subr.bf16.mxu1 %v7533_v32  ;;  %7277 = vmatprep.subr.bf16.mxu0 %v7534_v48 }
 0x2b9   : > { %2529 = vst.msk [vmem:[#allocation4 + $0x28] sm:$0xf] %vm2518_vm5, %v2497_v29  ;;  %v1308_v2 = vpop.permute.xlu0 %1307 }
 0x2ba   : > { %1337 = vst.msk [vmem:[#allocation4 + $0x34] sm:$0xf] %vm1323_vm11, %v1308_v2  ;;  %vm9587_vm11 = vmmov %vm9584_vm2 }
 0x2bb   : > { %7256 = vmatpush3.bf16.msra.mxu1 %v7533_v32  ;;  %7278 = vmatpush3.bf16.msra.mxu0 %v7534_v48  ;;  %vm9589_vm2 = vmmov %vm9585_vm6  ;;  %vm9591_vm6 = vsmask.f32 1280 }
 0x2bc   : > { %v2499_v9 = vpop.permute.xlu1 %2498  ;;  %7287 = vmatprep.subr.bf16.mxu1 %v7537_v13  ;;  %7309 = vmatprep.subr.bf16.mxu0 %v7538_v5 }
 0x2bd   : > { %2530 = vst.msk [vmem:[#allocation4 + $0x2c] sm:$0xf] %vm2518_vm5, %v2499_v9  ;;  %v1480_v16 = vpop.permute.xlu0 %1479 }
 0x2be   : > { %1509 = vst.msk [vmem:[#allocation4 + $0x34] sm:$0xf] %vm9587_vm11, %v1480_v16  ;;  %7258 = vmatmul.mubr.msk.bf16.vlgmr.msra.gmra.mxu1 %vm2641_vm4, %v7535_v10  ;;  %7280 = vmatmul.mubr.msk.bf16.vlgmr.msra.gmra.mxu0 %vm2641_vm4, %v7536_v45  ;;  %vm604_vm11 = vcmask 26625  }
 0x2bf   : > { %7261 = vmatprep.mubr.msk.bf16.mxu1 %vm2641_vm4, %v7539_v8  ;;  %7283 = vmatprep.mubr.msk.bf16.mxu0 %vm2641_vm4, %v7540_v39  ;;  %v577_v8 = vld [vmem:[#allocation3 + $0x28] sm:$0x3] }
 0x2c0   : > { %v1478_v50 = vpop.permute.xlu1 %1477  ;;  %7288 = vmatpush3.bf16.msra.mxu1 %v7537_v13  ;;  %7310 = vmatpush3.bf16.msra.mxu0 %v7538_v5  ;;  %v7543_v38 = vld [vmem:[#allocation4 + $0x24] sm:$0xff]  }
 0x2c1   : > { %1508 = vst.msk [vmem:[#allocation4 + $0x30] sm:$0xf] %vm9588_vm12, %v1478_v50  ;;  %v1820_v63 = vpop.permute.xlu0 %1819  ;;  %7289 = vmatprep.subr.bf16.mxu1 %v7541_v20  ;;  %7311 = vmatprep.subr.bf16.mxu0 %v7542_v47  ;;  %v7559_v59 = vld [vmem:[#allocation4 + $0x24] sm:$0xff]   ;;  %vm8713_vm12 = vmand %vm604_vm11, %vm501_vm8  ;;  %vm5220_vm11 = vcmask 191648  }
 0x2c2   : > { %1849 = vst.msk [vmem:[#allocation4 + $0x34] sm:$0xf] %vm1835_vm3, %v1820_v63 }
 0x2c4   : > { %v1818_v30 = vpop.permute.xlu1 %1817  ;;  %v7544_v23 = vld [vmem:[#allocation4 + $0x28] sm:$0xff]   ;;  %7290 = vmatpush3.bf16.msra.mxu1 %v7541_v20  ;;  %7312 = vmatpush3.bf16.msra.mxu0 %v7542_v47  ;;  %v621_v47 = vld [vmem:[#allocation3 + $0x2c] sm:$0x6] }
 0x2c5   : > { %1848 = vst.msk [vmem:[#allocation4 + $0x30] sm:$0xf] %vm1835_vm3, %v1818_v30  ;;  %v1992_v37 = vpop.permute.xlu0 %1991  ;;  %7291 = vmatprep.subr.bf16.mxu1 %v7545_v17  ;;  %7313 = vmatprep.subr.bf16.mxu0 %v7546_v35  ;;  %vm9590_vm3 = vmmov %vm9589_vm2  ;;  %v7560_v25 = vld [vmem:[#allocation4 + $0x28] sm:$0xff]   ;;  %v622_v63 = vsel %vm8713_vm12, 0, %v621_v47 }
 0x2c6   : > { %2021 = vst.msk [vmem:[#allocation4 + $0x34] sm:$0xf] %vm9589_vm2, %v1992_v37  ;;  %7262 = vmatmul.mubr.msk.bf16.gmra.mxu1 %vm2641_vm4, %v7543_v38  ;;  %7284 = vmatmul.mubr.msk.bf16.gmra.mxu0 %vm2641_vm4, %v7544_v23  ;;  %623 = vst [vmem:[#allocation3 + $0x2c] sm:$0x6] %v622_v63  ;;  %vm4208_vm2 = vcmask 60448  }
 0x2c7   : > { %7301 = vmatprep.mubr.msk.bf16.mxu1 %vm2641_vm4, %v7547_v51  ;;  %7323 = vmatprep.mubr.msk.bf16.mxu0 %vm2641_vm4, %v7548_v21 }
 0x2c8   : > { %v1990_v43 = vpop.permute.xlu1 %1989  ;;  %7292 = vmatpush3.bf16.msra.mxu1 %v7545_v17  ;;  %7314 = vmatpush3.bf16.msra.mxu0 %v7546_v35 }
 0x2c9   : > { %2020 = vst.msk [vmem:[#allocation4 + $0x30] sm:$0xf] %vm9590_vm3, %v1990_v43  ;;  %v2331_v27 = vpop.permute.xlu0 %2330  ;;  %7293 = vmatprep.subr.bf16.mxu1 %v7549_v55  ;;  %7315 = vmatprep.subr.bf16.mxu0 %v7550_v52  ;;  %vm4377_vm3 = vcmask 93248  }
 0x2ca   : > { %2360 = vst.msk [vmem:[#allocation4 + $0x34] sm:$0xf] %vm2346_vm0, %v2331_v27 }
 0x2cc   : > { %v2329_v3 = vpop.permute.xlu1 %2328  ;;  %7294 = vmatpush3.bf16.msra.mxu1 %v7549_v55  ;;  %7316 = vmatpush3.bf16.msra.mxu0 %v7550_v52 }
 0x2cd   : > { %2359 = vst.msk [vmem:[#allocation4 + $0x30] sm:$0xf] %vm2346_vm0, %v2329_v3  ;;  %7295 = vmatprep.subr.bf16.mxu1 %v7551_v41  ;;  %7317 = vmatprep.subr.bf16.mxu0 %v7552_v54  ;;  %vm9528_vm0 = vcmask 27648  }
 0x2ce   : > { %549 = vst.msk [vmem:[#allocation3 + $0x8] sm:$0xf] %vm9528_vm0, %v7705_v15  ;;  %546 = vst.msk [vmem:[#allocation3] sm:$0xf] %vm9528_vm0, %v7705_v15 }
 0x2cf   : > { %551 = vst.msk [vmem:[#allocation3 + $0x10] sm:$0xf] %vm9528_vm0, %v7705_v15  ;;  %554 = vst.msk [vmem:[#allocation3 + $0x58] sm:$0xf] %vm9528_vm0, %v7705_v15 }
 0x2d0   : > { %v2501_v0 = vpop.permute.xlu1 %2500  ;;  %7296 = vmatpush3.bf16.msra.mxu1 %v7551_v41  ;;  %7318 = vmatpush3.bf16.msra.mxu0 %v7552_v54  ;;  %556 = vst.msk [vmem:[#allocation3 + $0x60] sm:$0xf] %vm9528_vm0, %v7705_v15  ;;  %558 = vst.msk [vmem:[#allocation3 + $0x68] sm:$0xf] %vm9528_vm0, %v7705_v15 }
 0x2d1   : > { %2531 = vst.msk [vmem:[#allocation4 + $0x30] sm:$0xf] %vm2518_vm5, %v2501_v0  ;;  %7297 = vmatprep.subr.bf16.mxu1 %v7553_v1  ;;  %7319 = vmatprep.subr.bf16.mxu0 %v7554_v24 }
 0x2d4   : > { %v2503_v18 = vpop.permute.xlu1 %2502  ;;  %7298 = vmatpush3.bf16.msra.mxu1 %v7553_v1  ;;  %7320 = vmatpush3.bf16.msra.mxu0 %v7554_v24 }
 0x2d5   : > { %2532 = vst.msk [vmem:[#allocation4 + $0x34] sm:$0xf] %vm2518_vm5, %v2503_v18  ;;  %7299 = vmatprep.subr.bf16.mxu1 %v7555_v12  ;;  %7321 = vmatprep.subr.bf16.mxu0 %v7556_v7  ;;  %vm547_vm5 = vcmask 26624   ;;  %v565_v34 = vld [vmem:[#allocation3 + $0x8] sm:$0x3] }
 0x2d6   : > { %550 = vst.msk [vmem:[#allocation3 + $0xc] sm:$0x7] %vm547_vm5, %v7705_v15  ;;  %548 = vst.msk [vmem:[#allocation3 + $0x4] sm:$0x7] %vm547_vm5, %v7705_v15  ;;  %v568_v32 = vld [vmem:[#allocation3 + $0x10] sm:$0x3] }
 0x2d7   : > { %552 = vst.msk [vmem:[#allocation3 + $0x14] sm:$0x7] %vm547_vm5, %v7705_v15  ;;  %555 = vst.msk [vmem:[#allocation3 + $0x5c] sm:$0x7] %vm547_vm5, %v7705_v15 }
 0x2d8   : > { %7300 = vmatpush3.bf16.msra.mxu1 %v7555_v12  ;;  %7322 = vmatpush3.bf16.msra.mxu0 %v7556_v7  ;;  %v7561_v26 = vld [vmem:[#allocation4 + $0x2c] sm:$0xff]   ;;  %557 = vst.msk [vmem:[#allocation3 + $0x64] sm:$0x7] %vm547_vm5, %v7705_v15  ;;  %559 = vst.msk [vmem:[#allocation3 + $0x6c] sm:$0x7] %vm547_vm5, %v7705_v15  ;;  %vm9529_vm5 = vcmask 126048  }
 0x2db   : > { %7302 = vmatmul.mubr.msk.bf16.vlgmr.msra.gmra.mxu1 %vm2641_vm4, %v7557_v14  ;;  %7324 = vmatmul.mubr.msk.bf16.vlgmr.msra.gmra.mxu0 %vm2641_vm4, %v7558_v58 }
 0x2dc   : > { %7305 = vmatprep.mubr.msk.bf16.mxu1 %vm2641_vm4, %v7559_v59  ;;  %7327 = vmatprep.mubr.msk.bf16.mxu0 %vm2641_vm4, %v7560_v25  ;;  %v7562_v53 = vld [vmem:[#allocation4 + $0x30] sm:$0xff]  }
 0x2dd   : > { %v3945_v29 = vld [vmem:[#allocation3 + $0xc] sm:$0x1]  ;;  %v609_v15 = vld [vmem:[#allocation3 + $0xc] sm:$0x6] }
 0x2de   : > { %v3994_v2 = vshll.u32 %v3945_v29, 16  ;;  %v3947_v9 = vld [vmem:[#allocation3 + $0x14] sm:$0x1]  ;;  %v610_v10 = vsel %vm8713_vm12, 0, %v609_v15  ;;  %v612_v45 = vld [vmem:[#allocation3 + $0x14] sm:$0x6] }
 0x2df   : > { %v4226_v20 = vld [vmem:[#allocation3 + $0xc] sm:$0x1]  ;;  %611 = vst [vmem:[#allocation3 + $0xc] sm:$0x6] %v610_v10  ;;  %v613_v16 = vsel %vm8713_vm12, 0, %v612_v45  ;;  %v4008_v50 = vshll.u32 %v3947_v9, 16 }
 0x2e0   : > { %614 = vst [vmem:[#allocation3 + $0x14] sm:$0x6] %v613_v16  ;;  %v3996_v17 = vrot.slane %v3994_v2, 5  ;;  %v4285_v35 = vrot.slane %v4226_v20, 5  ;;  %v4228_v30 = vld [vmem:[#allocation3 + $0x14] sm:$0x1] }
 0x2e1   : > { %v4010_v27 = vrot.slane %v4008_v50, 5  ;;  %v4289_v41 = vrot.slane %v4228_v30, 5 }
 0x2e3   : > { %7306 = vmatmul.mubr.msk.bf16.gmra.mxu1 %vm2641_vm4, %v7561_v26  ;;  %7328 = vmatmul.mubr.msk.bf16.gmra.mxu0 %vm2641_vm4, %v7562_v53  ;;  %vm560_vm4 = vcmask 25600  }
 0x2e4   : > { %vm8704_vm9 = vmand %vm560_vm4, %vm9591_vm6  ;;  %vm3864_vm4 = vcmask 27649   ;;  %vm4883_vm6 = vcmask 158848  }
 0x2e5   : > { %v566_v48 = vsel %vm8704_vm9, 0, %v565_v34  ;;  %v569_v13 = vsel %vm8704_vm9, 0, %v568_v32  ;;  %v578_v39 = vsel %vm8704_vm9, 0, %v577_v8 }
 0x2e6   : > { %567 = vst [vmem:[#allocation3 + $0x8] sm:$0x3] %v566_v48  ;;  %570 = vst [vmem:[#allocation3 + $0x10] sm:$0x3] %v569_v13  ;;  %v4395_v7 = vld [vmem:[#allocation3 + $0xc] sm:$0x3] }
 0x2e7   : > { %579 = vst [vmem:[#allocation3 + $0x28] sm:$0x3] %v578_v39  ;;  %v4448_v26 = vshrl.u32 %v4395_v7, 16  ;;  %v4451_v34 = vshll.u32 %v4395_v7, 16  ;;  %v4397_v32 = vld [vmem:[#allocation3 + $0x14] sm:$0x3] }
 0x2e8   : > { %v4466_v39 = vshrl.u32 %v4397_v32, 16  ;;  %v4469_v63 = vshll.u32 %v4397_v32, 16  ;;  %v571_v7 = vld [vmem:[#allocation3 + $0x18] sm:$0x3] }
 0x2e9   : > { %v4450_v10 = vrot.slane %v4448_v26, 5  ;;  %v4453_v45 = vrot.slane %v4451_v34, 6  ;;  %v4901_v26 = vld [vmem:[#allocation3 + $0xc] sm:$0x7] }
 0x2ed   : > { %v3944_v23 = vld [vmem:[#allocation3 + $0x8] sm:$0xf]  ;;  %v3946_v38 = vld [vmem:[#allocation3 + $0x10] sm:$0xf] }
 0x2ee   : > { %v4225_v55 = vld [vmem:[#allocation3 + $0x8] sm:$0xe]  ;;  %v3985_v37 = vshrl.u32 %v3944_v23, 16  ;;  %v3988_v51 = vshll.u32 %v3944_v23, 16  ;;  %v3999_v21 = vshrl.u32 %v3946_v38, 16  ;;  %v4002_v52 = vshll.u32 %v3946_v38, 16 }
 0x2ef   : > { %v4227_v43 = vld [vmem:[#allocation3 + $0x10] sm:$0xe]  ;;  %v4394_v54 = vld [vmem:[#allocation3 + $0x8] sm:$0xe]  ;;  %v6849_v18 = vrot.slane %v4225_v55, 9  ;;  %v4468_v38 = vrot.slane %v4466_v39, 5 }
 0x2f0   : > { %v4396_v3 = vld [vmem:[#allocation3 + $0x10] sm:$0xe]  ;;  %v3987_v1 = vrot.slane %v3985_v37, 4  ;;  %v3990_v24 = vrot.slane %v3988_v51, 5  ;;  %v4001_v0 = vrot.slane %v3999_v21, 4  ;;  %v4004_v12 = vrot.slane %v4002_v52, 5 }
 0x2f1   : > { %v6850_v14 = vrot.slane %v4227_v43, 9  ;;  %v4439_v58 = vshrl.u32 %v4394_v54, 16  ;;  %v4442_v59 = vshll.u32 %v4394_v54, 16  ;;  %v4457_v13 = vshrl.u32 %v4396_v3, 16  ;;  %v4731_v21 = vld [vmem:[#allocation3 + $0x8] sm:$0xc] }
 0x2f2   : > { %v3991_v25 = vor.u32 %v3990_v24, %v3987_v1  ;;  %v4005_v53 = vor.u32 %v4004_v12, %v4001_v0  ;;  %v4460_v15 = vshll.u32 %v4396_v3, 16  ;;  %v4286_v30 = vsel %vm7917_vm13, %v6849_v18, %v4285_v35  ;;  %v4733_v52 = vld [vmem:[#allocation3 + $0x10] sm:$0xc]  ;;  %v4734_v54 = vld [vmem:[#allocation3 + $0x14] sm:$0x3] }
 0x2f3   : > { %v4441_v48 = vrot.slane %v4439_v58, 5  ;;  %v4444_v29 = vrot.slane %v4442_v59, 6  ;;  %v4459_v16 = vrot.slane %v4457_v13, 5  ;;  %v4290_v55 = vsel %vm7917_vm13, %v6850_v14, %v4289_v41  ;;  %v615_v18 = vld [vmem:[#allocation3 + $0x1c] sm:$0x6] }
 0x2f4   : > { %v3992_v2 = vrot.slane %v3991_v25, 4  ;;  %v4006_v9 = vrot.slane %v4005_v53, 4  ;;  %v4462_v8 = vrot.slane %v4460_v15, 6  ;;  %v4454_v51 = vor.u32 %v4453_v45, %v4450_v10  ;;  %v4900_v53 = vld [vmem:[#allocation3 + $0x8] sm:$0xc] }
 0x2f5   : > { %v4445_v20 = vor.u32 %v4444_v29, %v4441_v48  ;;  %v6863_v35 = vrot.slane %v4731_v21, 10  ;;  %v6864_v1 = vrot.slane %v4733_v52, 10  ;;  %v4795_v12 = vrot.slane %v4734_v54, 6  ;;  %v4902_v13 = vld [vmem:[#allocation3 + $0x10] sm:$0xc] }
 0x2f6   : > { %v3997_v47 = vsel %vm7961_vm15, %v3992_v2, %v3996_v17  ;;  %v4011_v50 = vsel %vm7961_vm15, %v4006_v9, %v4010_v27  ;;  %v4463_v23 = vor.u32 %v4462_v8, %v4459_v16  ;;  %v4471_v17 = vrot.slane %v4469_v63, 6  ;;  %v4732_v27 = vld [vmem:[#allocation3 + $0xc] sm:$0x3]  ;;  %v4903_v15 = vld [vmem:[#allocation3 + $0x14] sm:$0x7] }
 0x2f7   : > { %4168 = vrot.lane.b32.xlu0 %v3997_v47, %s7712_s24  ;;  %4170 = vrot.lane.b32.xlu1 %v4011_v50, %s7712_s24  ;;  %v4446_v37 = vrot.slane %v4445_v20, 4  ;;  %v4791_v0 = vrot.slane %v4732_v27, 6  ;;  %v572_v14 = vsel %vm8704_vm9, 0, %v571_v7  ;;  %v616_v58 = vsel %vm8713_vm12, 0, %v615_v18  ;;  %v580_v10 = vld [vmem:[#allocation3 + $0x30] sm:$0x3] }
 0x2f8   : > { %v4464_v43 = vrot.slane %v4463_v23, 4  ;;  %v4472_v3 = vor.u32 %v4471_v17, %v4468_v38  ;;  %v4796_v25 = vsel %vm7922_vm14, %v6864_v1, %v4795_v12  ;;  %573 = vst [vmem:[#allocation3 + $0x18] sm:$0x3] %v572_v14  ;;  %617 = vst [vmem:[#allocation3 + $0x1c] sm:$0x6] %v616_v58  ;;  %v4945_v34 = vshrl.u32 %v4900_v53, 16 }
 0x2f9   : > { %v4455_v24 = vsel %vm7985_vm10, %v4446_v37, %v4454_v51  ;;  %v4792_v59 = vsel %vm7922_vm14, %v6863_v35, %v4791_v0  ;;  %v4948_v32 = vshll.u32 %v4900_v53, 16  ;;  %v4954_v48 = vshrl.u32 %v4901_v26, 16  ;;  %v624_v39 = vld [vmem:[#allocation3 + $0x34] sm:$0x6]  ;;  %v574_v23 = vld [vmem:[#allocation3 + $0x20] sm:$0x3] }
 0x2fa   : > { %v4473_v41 = vsel %vm7985_vm10, %v4464_v43, %v4472_v3  ;;  %v4957_v29 = vshll.u32 %v4901_v26, 16  ;;  %v4963_v2 = vshrl.u32 %v4902_v13, 16  ;;  %v4966_v9 = vshll.u32 %v4902_v13, 16  ;;  %v618_v17 = vld [vmem:[#allocation3 + $0x24] sm:$0x6] }
 0x2fb   : > { %4337 = vrot.lane.b32.xlu0 %v4286_v30, %s9530_s30  ;;  %4339 = vrot.lane.b32.xlu1 %v4290_v55, %s9530_s30  ;;  %v4947_v45 = vrot.slane %v4945_v34, 6  ;;  %v4950_v20 = vrot.slane %v4948_v32, 7  ;;  %v4956_v16 = vrot.slane %v4954_v48, 6  ;;  %v4972_v63 = vshrl.u32 %v4903_v15, 16  ;;  %v5237_v21 = vld [vmem:[#allocation3 + $0x8] sm:$0x8] }
 0x2fc   : > { %v4959_v8 = vrot.slane %v4957_v29, 7  ;;  %v4965_v47 = vrot.slane %v4963_v2, 6  ;;  %v4968_v50 = vrot.slane %v4966_v9, 7  ;;  %v4975_v30 = vshll.u32 %v4903_v15, 16  ;;  %v5238_v3 = vld [vmem:[#allocation3 + $0xc] sm:$0x7] }
 0x2fd   : > { %v4951_v38 = vor.u32 %v4950_v20, %v4947_v45  ;;  %v581_v37 = vsel %vm8704_vm9, 0, %v580_v10  ;;  %v625_v51 = vsel %vm8713_vm12, 0, %v624_v39  ;;  %v4974_v43 = vrot.slane %v4972_v63, 6  ;;  %v5239_v7 = vld [vmem:[#allocation3 + $0x10] sm:$0x8] }
 0x2fe   : > { %v4960_v55 = vor.u32 %v4959_v8, %v4956_v16  ;;  %v4969_v52 = vor.u32 %v4968_v50, %v4965_v47  ;;  %v4977_v27 = vrot.slane %v4975_v30, 7  ;;  %582 = vst [vmem:[#allocation3 + $0x30] sm:$0x3] %v581_v37  ;;  %626 = vst [vmem:[#allocation3 + $0x34] sm:$0x6] %v625_v51  ;;  %v575_v54 = vsel %vm8704_vm9, 0, %v574_v23 }
 0x2ff   : > { %4674 = vrot.lane.b32.xlu0 %v4455_v24, %s7714_s15  ;;  %4676 = vrot.lane.b32.xlu1 %v4473_v41, %s7714_s15  ;;  %v4952_v35 = vrot.slane %v4951_v38, 4  ;;  %576 = vst [vmem:[#allocation3 + $0x20] sm:$0x3] %v575_v54  ;;  %v619_v1 = vsel %vm8713_vm12, 0, %v618_v17  ;;  %v6877_v0 = vrot.slane %v5237_v21, 11  ;;  %v5297_v12 = vrot.slane %v5238_v3, 7 }
 0x300   : > { %v4970_v24 = vrot.slane %v4969_v52, 4  ;;  %v4978_v41 = vor.u32 %v4977_v27, %v4974_v43  ;;  %620 = vst [vmem:[#allocation3 + $0x24] sm:$0x6] %v619_v1  ;;  %v5240_v14 = vld [vmem:[#allocation3 + $0x14] sm:$0x7]  ;;  %v6878_v58 = vrot.slane %v5239_v7, 11 }
 0x301   : > { %v4961_v18 = vsel %vm7945_vm7, %v4952_v35, %v4960_v55  ;;  %v5301_v53 = vrot.slane %v5240_v14, 7  ;;  %v633_v34 = vld [vmem:[#allocation3 + $0x4c] sm:$0x6]  ;;  %v562_v32 = vld [vmem:[#allocation3] sm:$0x3]  ;;  %v5298_v48 = vsel %vm7934_vm1, %v6877_v0, %v5297_v12 }
 0x302   : > { %v634_v29 = vsel %vm8713_vm12, 0, %v633_v34  ;;  %v563_v13 = vsel %vm8704_vm9, 0, %v562_v32  ;;  %v583_v2 = vld [vmem:[#allocation3 + $0x38] sm:$0x3]  ;;  %v627_v9 = vld [vmem:[#allocation3 + $0x3c] sm:$0x6] }
 0x303   : > { %4843 = vrot.lane.b32.xlu0 %v4792_v59, %s9566_s16  ;;  %4845 = vrot.lane.b32.xlu1 %v4796_v25, %s9566_s16  ;;  %v589_v59 = vld [vmem:[#allocation3 + $0x48] sm:$0x3]  ;;  %v4979_v25 = vsel %vm7945_vm7, %v4970_v24, %v4978_v41  ;;  %v5302_v15 = vsel %vm7934_vm1, %v6878_v58, %v5301_v53  ;;  %635 = vst [vmem:[#allocation3 + $0x4c] sm:$0x6] %v634_v29  ;;  %564 = vst [vmem:[#allocation3] sm:$0x3] %v563_v13 }
 0x304   : > { %v590_v26 = vsel %vm8704_vm9, 0, %v589_v59  ;;  %v584_v10 = vsel %vm8704_vm9, 0, %v583_v2  ;;  %v628_v45 = vsel %vm8713_vm12, 0, %v627_v9  ;;  %v592_v20 = vld [vmem:[#allocation3 + $0x50] sm:$0x3] }
 0x305   : > { %591 = vst [vmem:[#allocation3 + $0x48] sm:$0x3] %v590_v26  ;;  %585 = vst [vmem:[#allocation3 + $0x38] sm:$0x3] %v584_v10  ;;  %v4224_v16 = vld [vmem:[#allocation3 + $0x4] sm:$0x1] }
 0x306   : > { %629 = vst [vmem:[#allocation3 + $0x3c] sm:$0x6] %v628_v45  ;;  %v593_v8 = vsel %vm8704_vm9, 0, %v592_v20  ;;  %v636_v39 = vld [vmem:[#allocation3 + $0x54] sm:$0x6]  ;;  %v4281_v63 = vrot.slane %v4224_v16, 5 }
 0x307   : > { %5180 = vrot.lane.b32.xlu0 %v4961_v18, %s7715_s22  ;;  %5182 = vrot.lane.b32.xlu1 %v4979_v25, %s7715_s22  ;;  %v3943_v47 = vld [vmem:[#allocation3 + $0x4] sm:$0x1]  ;;  %594 = vst [vmem:[#allocation3 + $0x50] sm:$0x3] %v593_v8  ;;  %v637_v50 = vsel %vm8713_vm12, 0, %v636_v39 }
 0x308   : > { %638 = vst [vmem:[#allocation3 + $0x54] sm:$0x6] %v637_v50  ;;  %v606_v30 = vld [vmem:[#allocation3 + $0x4] sm:$0x6]  ;;  %v3980_v38 = vshll.u32 %v3943_v47, 16 }
 0x309   : > { %v607_v21 = vsel %vm8713_vm12, 0, %v606_v30  ;;  %v586_v1 = vld [vmem:[#allocation3 + $0x40] sm:$0x3]  ;;  %v4729_v0 = vld [vmem:[#allocation3] sm:$0xc] }
 0x30a   : > { %v3942_v23 = vld [vmem:[#allocation3] sm:$0xf]  ;;  %608 = vst [vmem:[#allocation3 + $0x4] sm:$0x6] %v607_v21  ;;  %v587_v12 = vsel %vm8704_vm9, 0, %v586_v1  ;;  %v3982_v18 = vrot.slane %v3980_v38, 5 }
 0x30b   : > { %5349 = vrot.lane.b32.xlu0 %v5298_v48, %s7716_s0  ;;  %5351 = vrot.lane.b32.xlu1 %v5302_v15, %s7716_s0  ;;  %v4223_v55 = vld [vmem:[#allocation3] sm:$0xe]  ;;  %v3971_v37 = vshrl.u32 %v3942_v23, 16  ;;  %v3974_v51 = vshll.u32 %v3942_v23, 16  ;;  %588 = vst [vmem:[#allocation3 + $0x40] sm:$0x3] %v587_v12 }
 0x30c   : > { %v6848_v17 = vrot.slane %v4223_v55, 9  ;;  %v4392_v52 = vld [vmem:[#allocation3] sm:$0xe]  ;;  %v630_v14 = vld [vmem:[#allocation3 + $0x44] sm:$0x6]  ;;  %v6862_v48 = vrot.slane %v4729_v0, 10 }
 0x30d   : > { %v4421_v43 = vshrl.u32 %v4392_v52, 16  ;;  %v4424_v27 = vshll.u32 %v4392_v52, 16  ;;  %v3973_v54 = vrot.slane %v3971_v37, 4  ;;  %v3976_v3 = vrot.slane %v3974_v51, 5  ;;  %v4898_v58 = vld [vmem:[#allocation3] sm:$0xc] }
 0x30e   : > { %v4282_v35 = vsel %vm7917_vm13, %v6848_v17, %v4281_v63  ;;  %v631_v25 = vsel %vm8713_vm12, 0, %v630_v14  ;;  %v4927_v53 = vshrl.u32 %v4898_v58, 16  ;;  %v4930_v26 = vshll.u32 %v4898_v58, 16  ;;  %v5235_v34 = vld [vmem:[#allocation3] sm:$0x8] }
 0x30f   : > { %4335 = vrot.lane.b32.xlu1 %v4282_v35, %s9530_s30  ;;  %v4423_v24 = vrot.slane %v4421_v43, 5  ;;  %v4426_v41 = vrot.slane %v4424_v27, 6  ;;  %v3977_v7 = vor.u32 %v3976_v3, %v3973_v54  ;;  %632 = vst [vmem:[#allocation3 + $0x44] sm:$0x6] %v631_v25  ;;  %v6876_v2 = vrot.slane %v5235_v34, 11 }
 0x310   : > { %v4929_v13 = vrot.slane %v4927_v53, 6  ;;  %v4932_v15 = vrot.slane %v4930_v26, 7 }
 0x311   : > { %v3978_v32 = vrot.slane %v3977_v7, 4  ;;  %v4427_v29 = vor.u32 %v4426_v41, %v4423_v24  ;;  %v4393_v10 = vld [vmem:[#allocation3 + $0x4] sm:$0x3] }
 0x312   : > { %v4730_v45 = vld [vmem:[#allocation3 + $0x4] sm:$0x3]  ;;  %v4430_v8 = vshrl.u32 %v4393_v10, 16  ;;  %v4433_v39 = vshll.u32 %v4393_v10, 16  ;;  %v4933_v50 = vor.u32 %v4932_v15, %v4929_v13 }
 0x313   : > { %v3983_v9 = vsel %vm7961_vm15, %v3978_v32, %v3982_v18  ;;  %v4899_v20 = vld [vmem:[#allocation3 + $0x4] sm:$0x7]  ;;  %v4787_v47 = vrot.slane %v4730_v45, 6  ;;  %v4428_v55 = vrot.slane %v4427_v29, 4 }
 0x314   : > { %4166 = vrot.lane.b32.xlu0 %v3983_v9, %s7712_s24  ;;  %v5236_v63 = vld [vmem:[#allocation3 + $0x4] sm:$0x7]  ;;  %v4936_v30 = vshrl.u32 %v4899_v20, 16  ;;  %v4939_v23 = vshll.u32 %v4899_v20, 16  ;;  %v4432_v37 = vrot.slane %v4430_v8, 5  ;;  %v4435_v51 = vrot.slane %v4433_v39, 6 }
 0x315   : > { %v5293_v38 = vrot.slane %v5236_v63, 7  ;;  %v4788_v17 = vsel %vm7922_vm14, %v6862_v48, %v4787_v47  ;;  %v4934_v54 = vrot.slane %v4933_v50, 4  ;;  %v3915_v8 = vld [vmem:[#allocation3 + $0x8] sm:$0xf] }
 0x316   : > { %4841 = vrot.lane.b32.xlu1 %v4788_v17, %s9566_s16  ;;  %v4938_v21 = vrot.slane %v4936_v30, 6  ;;  %v4941_v52 = vrot.slane %v4939_v23, 7  ;;  %v4436_v27 = vor.u32 %v4435_v51, %v4432_v37  ;;  %3929 = vst.msk [vmem:[#allocation5 + $0x4] sm:$0xf] %vm9528_vm0, %v3915_v8  ;;  %v3916_v30 = vld [vmem:[#allocation3 + $0x10] sm:$0xf] }
 0x317   : > { %v5294_v3 = vsel %vm7934_vm1, %v6876_v2, %v5293_v38  ;;  %3930 = vst.msk [vmem:[#allocation5 + $0x8] sm:$0xf] %vm9528_vm0, %v3916_v30  ;;  %v595_v8 = vld [vmem:[#allocation3 + $0x58] sm:$0x3]  ;;  %v3914_v30 = vld [vmem:[#allocation3] sm:$0xf] }
 0x318   : > { %v4942_v35 = vor.u32 %v4941_v52, %v4938_v21  ;;  %v4437_v1 = vsel %vm7985_vm10, %v4428_v55, %v4436_v27  ;;  %v596_v33 = vsel %vm8704_vm9, 0, %v595_v8  ;;  %3928 = vst.msk [vmem:[#allocation5] sm:$0xf] %vm9528_vm0, %v3914_v30  ;;  %vm5389_vm0 = vcmask 224448  }
 0x319   : > { %4672 = vrot.lane.b32.xlu0 %v4437_v1, %s7714_s15  ;;  %597 = vst [vmem:[#allocation3 + $0x58] sm:$0x3] %v596_v33 }
 0x31a   : > { %5347 = vrot.lane.b32.xlu1 %v5294_v3, %s7716_s0  ;;  %v4943_v41 = vsel %vm7945_vm7, %v4934_v54, %v4942_v35 }
 0x31d   : > { %5178 = vrot.lane.b32.xlu0 %v4943_v41, %s7715_s22 }
 0x342   : > { %v8794_v59 = vpop.f32.mrf.mxu0 }
 0x344   : > { %v8800_v16 = vpop.f32.mrf.mxu0 }
 0x346   : > { %v7194_v43 = vpop.f32.mrf.mxu0 }
 0x348   : > { %v2691_v24 = vpop.f32.mrf.mxu0 }
 0x35a   : > { %v7197_v0 = vpop.f32.mrf.mxu0 }
 0x35c   : > { %v2704_v12 = vpop.f32.mrf.mxu0 }
 0x35e   : > { %v7198_v7 = vpop.f32.mrf.mxu0 }
 0x360   : > { %v2707_v18 = vpop.f32.mrf.mxu0 }
 0x362   : > { %v7215_v14 = vpop.f32.mrf.mxu1  ;;  %v7237_v58 = vpop.f32.mrf.mxu0 }
 0x363   : > { %v2836_v21 = vadd.f32 %v7215_v14, %v8794_v59 }
 0x364   : > { %v2827_v25 = vpop.f32.mrf.mxu1  ;;  %v2990_v53 = vpop.f32.mrf.mxu0 }
 0x365   : > { %v2828_v54 = vadd.f32 %v2827_v25, %v8800_v16  ;;  %v3023_v3 = vadd.f32 %v7237_v58, %v2836_v21 }
 0x366   : > { %v7216_v26 = vpop.f32.mrf.mxu1  ;;  %v7238_v34 = vpop.f32.mrf.mxu0 }
 0x367   : > { %v2839_v35 = vadd.f32 %v7216_v26, %v7194_v43  ;;  %v3021_v36 = vadd.f32 %v2990_v53, %v2828_v54 }
 0x368   : > { %v2830_v32 = vpop.f32.mrf.mxu1  ;;  %v2993_v48 = vpop.f32.mrf.mxu0 }
 0x369   : > { %v2831_v57 = vadd.f32 %v2830_v32, %v2691_v24  ;;  %v3024_v14 = vadd.f32 %v7238_v34, %v2839_v35  ;;  %v4171_v33 = vpop.permute.xlu1 %4170 }
 0x36a   : > { %v7219_v29 = vpop.f32.mrf.mxu1  ;;  %4211 = vst.msk [vmem:[#allocation5 + $0x8] sm:$0xf] %vm4208_vm2, %v4171_v33 }
 0x36b   : > { %v2852_v59 = vadd.f32 %v7219_v29, %v7197_v0  ;;  %v3022_v21 = vadd.f32 %v2993_v48, %v2831_v57  ;;  %v4169_v0 = vpop.permute.xlu0 %4168  ;;  %v3964_v29 = vld [vmem:[#allocation3 + $0x58] sm:$0xf] }
 0x36c   : > { %v2843_v15 = vpop.f32.mrf.mxu1  ;;  %4210 = vst.msk [vmem:[#allocation5 + $0x4] sm:$0xf] %vm4208_vm2, %v4169_v0 }
 0x36d   : > { %v7241_v13 = vpop.f32.mrf.mxu0  ;;  %v2844_v40 = vadd.f32 %v2843_v15, %v2704_v12 }
 0x36e   : > { %v7220_v9 = vpop.f32.mrf.mxu1  ;;  %v3027_v24 = vadd.f32 %v7241_v13, %v2852_v59  ;;  %v3965_v13 = vld [vmem:[#allocation3 + $0x5c] sm:$0x1] }
 0x36f   : > { %v3006_v2 = vpop.f32.mrf.mxu0  ;;  %v2855_v58 = vadd.f32 %v7220_v9, %v7198_v7  ;;  %v8833_v7 = vld [vmem:[%s9503_s6] ss:$0 sm:$0xff]  ;;  %v4134_v30 = vshll.u32 %v3965_v13, 16 }
 0x370   : > { %v2846_v45 = vpop.f32.mrf.mxu1 }
 0x371   : > { %v7242_v10 = vpop.f32.mrf.mxu0  ;;  %v2847_v43 = vadd.f32 %v2846_v45, %v2707_v18  ;;  %v8842_v45 = vld [vmem:[%s9504_s7] ss:$0 sm:$0xff] }
 0x372   : > { %v3028_v34 = vadd.f32 %v7242_v10, %v2855_v58  ;;  %v8851_v58 = vld [vmem:[#allocation3 + $0x58] sm:$0xe] }
 0x373   : > { %v3009_v20 = vpop.f32.mrf.mxu0  ;;  %v4622_v13 = vshll.u32 %v8851_v58, 16 }
 0x374   : > { %v3026_v12 = vadd.f32 %v3009_v20, %v2847_v43 }
 0x37e   : > { %v7259_v39 = vpop.f32.mrf.mxu1  ;;  %v7281_v47 = vpop.f32.mrf.mxu0 }
 0x37f   : > { %v3194_v19 = vadd.f32 %v7259_v39, %v3023_v3  ;;  %v3025_v39 = vadd.f32 %v3006_v2, %v2844_v40  ;;  %v639_v40 = vld [vmem:[#allocation3 + $0x5c] sm:$0x6] }
 0x380   : > { %v3161_v50 = vpop.f32.mrf.mxu1  ;;  %v3332_v63 = vpop.f32.mrf.mxu0  ;;  %v640_v15 = vsel %vm8713_vm12, 0, %v639_v40 }
 0x381   : > { %v3192_v16 = vadd.f32 %v3161_v50, %v3021_v36  ;;  %v3365_v28 = vadd.f32 %v7281_v47, %v3194_v19  ;;  %641 = vst [vmem:[#allocation3 + $0x5c] sm:$0x6] %v640_v15 }
 0x382   : > { %v7260_v23 = vpop.f32.mrf.mxu1  ;;  %v7282_v38 = vpop.f32.mrf.mxu0 }
 0x383   : > { %v3195_v60 = vadd.f32 %v7260_v23, %v3024_v14  ;;  %v3363_v54 = vadd.f32 %v3332_v63, %v3192_v16 }
 0x384   : > { %v3164_v55 = vpop.f32.mrf.mxu1  ;;  %v8817_v37 = vpop.f32.mrf.mxu0 }
 0x385   : > { %v3193_v3 = vadd.f32 %v3164_v55, %v3022_v21  ;;  %v3366_v18 = vadd.f32 %v7282_v38, %v3195_v60  ;;  %v4338_v38 = vpop.permute.xlu0 %4337  ;;  %v4340_v55 = vpop.permute.xlu1 %4339 }
 0x386   : > { %v7263_v51 = vpop.f32.mrf.mxu1  ;;  %v8819_v17 = vpop.f32.mrf.mxu0  ;;  %4379 = vst.msk [vmem:[#allocation5 + $0x4] sm:$0xf] %vm4377_vm3, %v4338_v38  ;;  %4380 = vst.msk [vmem:[#allocation5 + $0x8] sm:$0xf] %vm4377_vm3, %v4340_v55 }
 0x387   : > { %v3198_v36 = vadd.f32 %v7263_v51, %v3027_v24  ;;  %v3364_v60 = vadd.f32 %v8817_v37, %v3193_v3 }
 0x388   : > { %v3177_v52 = vpop.f32.mrf.mxu1  ;;  %v8822_v27 = vpop.f32.mrf.mxu0 }
 0x389   : > { %v3196_v2 = vadd.f32 %v3177_v52, %v3025_v39  ;;  %v3369_v51 = vadd.f32 %v8819_v17, %v3198_v36  ;;  %v4677_v0 = vpop.permute.xlu1 %4676 }
 0x38a   : > { %v7264_v1 = vpop.f32.mrf.mxu1  ;;  %v8825_v41 = vpop.f32.mrf.mxu0  ;;  %4717 = vst.msk [vmem:[#allocation5 + $0x8] sm:$0xf] %vm9529_vm5, %v4677_v0 }
 0x38b   : > { %v3199_v9 = vadd.f32 %v7264_v1, %v3028_v34  ;;  %v4125_v1 = vshrl.u32 %v3964_v29, 16  ;;  %v3367_v43 = vadd.f32 %v8822_v27, %v3196_v2 }
 0x38c   : > { %v3180_v25 = vpop.f32.mrf.mxu1  ;;  %v3351_v26 = vpop.f32.mrf.mxu0 }
 0x38d   : > { %v3197_v10 = vadd.f32 %v3180_v25, %v3026_v12  ;;  %v3370_v17 = vadd.f32 %v8825_v41, %v3199_v9  ;;  %v8859_v27 = vrot.slane %v4125_v1, 4  ;;  %v8861_v41 = vrot.slane %v4134_v30, 5  ;;  %v3878_v30 = vld [vmem:[#allocation3 + $0x28] sm:$0xe] }
 0x38f   : > { %v3368_v25 = vadd.f32 %v3351_v26, %v3197_v10  ;;  %v4619_v26 = vshrl.u32 %v8851_v58, 16 }
 0x39b   : > { %v7303_v53 = vpop.f32.mrf.mxu1  ;;  %v7325_v32 = vpop.f32.mrf.mxu0 }
 0x39c   : > { %v3536_v8 = vadd.f32 %v7303_v53, %v3365_v28  ;;  %v4128_v53 = vshll.u32 %v3964_v29, 16 }
 0x39d   : > { %v3503_v19 = vpop.f32.mrf.mxu1  ;;  %v3674_v57 = vpop.f32.mrf.mxu0 }
 0x39e   : > { %v3707_v28 = vadd.f32 %v7325_v32, %v3536_v8  ;;  %v3534_v48 = vadd.f32 %v3503_v19, %v3363_v54  ;;  %v4675_v8 = vpop.permute.xlu0 %4674  ;;  %v8866_v29 = vrot.slane %v4128_v53, 5 }
 0x39f   : > { %v7304_v20 = vpop.f32.mrf.mxu1  ;;  %v7326_v47 = vpop.f32.mrf.mxu0  ;;  %4716 = vst.msk [vmem:[#allocation5 + $0x4] sm:$0xf] %vm9529_vm5, %v4675_v8  ;;  %vm8875_vm5 = vmand %vm3864_vm4, %vm501_vm8  ;;  %vm9598_vm8 = vcmask 126048  }
 0x3a0   : > { %v3722_v50 = vmul.f32 %v8833_v7, %v3707_v28  ;;  %v3705_v63 = vadd.f32 %v3674_v57, %v3534_v48  ;;  %v3537_v23 = vadd.f32 %v7304_v20, %v3366_v18 }
 0x3a1   : > { %v3506_v52 = vpop.f32.mrf.mxu1  ;;  %v3677_v35 = vpop.f32.mrf.mxu0 }
 0x3a2   : > { %v3737_v37 = vadd.f32 %v8842_v45, %v3722_v50  ;;  %v3720_v59 = vmul.f32 %v8833_v7, %v3705_v63  ;;  %v3708_v14 = vadd.f32 %v7326_v47, %v3537_v23  ;;  %v3535_v16 = vadd.f32 %v3506_v52, %v3364_v60  ;;  %v4844_v20 = vpop.permute.xlu0 %4843  ;;  %v4846_v47 = vpop.permute.xlu1 %4845 }
 0x3a3   : > { %v7307_v21 = vpop.f32.mrf.mxu1  ;;  %v7329_v24 = vpop.f32.mrf.mxu0  ;;  %4885 = vst.msk [vmem:[#allocation5 + $0x4] sm:$0xf] %vm4883_vm6, %v4844_v20  ;;  %4886 = vst.msk [vmem:[#allocation5 + $0x8] sm:$0xf] %vm4883_vm6, %v4846_v47 }
 0x3a4   : > { %v3745_v32 = vmax.f32 %v3737_v37, 0.0  ;;  %v3735_v39 = vadd.f32 %v8842_v45, %v3720_v59  ;;  %v3723_v54 = vmul.f32 %v8833_v7, %v3708_v14  ;;  %v3706_v3 = vadd.f32 %v3677_v35, %v3535_v16 }
 0x3a5   : > { %v3540_v33 = vadd.f32 %v7307_v21, %v3369_v51  ;;  %v3519_v34 = vpop.f32.mrf.mxu1  ;;  %v3690_v40 = vpop.f32.mrf.mxu0 }
 0x3a6   : > { %v7016_v12 = vpack.c.bf16 %v3745_v32, %v3745_v32  ;;  %v3743_v36 = vmax.f32 %v3735_v39, 0.0  ;;  %v3738_v19 = vadd.f32 %v8842_v45, %v3723_v54  ;;  %v3721_v57 = vmul.f32 %v8833_v7, %v3706_v3  ;;  %v3866_v32 = vld [vmem:[#allocation3 + $0x18] sm:$0xe]  ;;  %v5183_v20 = vpop.permute.xlu1 %5182 }
 0x3a7   : > { %v3538_v18 = vadd.f32 %v3519_v34, %v3367_v43  ;;  %v3711_v28 = vadd.f32 %v7329_v24, %v3540_v33  ;;  %v7308_v48 = vpop.f32.mrf.mxu1  ;;  %v7330_v0 = vpop.f32.mrf.mxu0  ;;  %5223 = vst.msk [vmem:[#allocation5 + $0x8] sm:$0xf] %vm5220_vm11, %v5183_v20 }
 0x3a8   : > { %v3794_v15 = vshrl.u32 %v7016_v12, 16  ;;  %v3797_v2 = vshll.u32 %v7016_v12, 16  ;;  %v7014_v9 = vpack.c.bf16 %v3743_v36, %v3743_v36  ;;  %v3746_v10 = vmax.f32 %v3738_v19, 0.0  ;;  %v3869_v19 = vld [vmem:[#allocation3 + $0x1c] sm:$0x3] }
 0x3a9   : > { %v3736_v60 = vadd.f32 %v8842_v45, %v3721_v57  ;;  %v3726_v50 = vmul.f32 %v8833_v7, %v3711_v28  ;;  %v3541_v63 = vadd.f32 %v7308_v48, %v3370_v17  ;;  %v3709_v23 = vadd.f32 %v3690_v40, %v3538_v18  ;;  %v3522_v38 = vpop.f32.mrf.mxu1  ;;  %v3881_v17 = vld [vmem:[#allocation3 + $0x2c] sm:$0x3] }
 0x3aa   : > { %v3796_v55 = vrot.slane %v3794_v15, 6  ;;  %v3799_v51 = vrot.slane %v3797_v2, 7  ;;  %v3776_v52 = vshrl.u32 %v7014_v9, 16  ;;  %v3779_v35 = vshll.u32 %v7014_v9, 16  ;;  %v3884_v9 = vld [vmem:[#allocation3 + $0x30] sm:$0xe] }
 0x3ab   : > { %v7017_v37 = vpack.c.bf16 %v3746_v10, %v3746_v10  ;;  %v3744_v59 = vmax.f32 %v3736_v60, 0.0  ;;  %v3741_v14 = vadd.f32 %v8842_v45, %v3726_v50  ;;  %v3724_v16 = vmul.f32 %v8833_v7, %v3709_v23 }
 0x3ac   : > { %v3800_v43 = vor.u32 %v3799_v51, %v3796_v55  ;;  %v3778_v21 = vrot.slane %v3776_v52, 6  ;;  %v3781_v24 = vrot.slane %v3779_v35, 7  ;;  %v3539_v53 = vadd.f32 %v3522_v38, %v3368_v25  ;;  %v5181_v25 = vpop.permute.xlu0 %5180  ;;  %v3693_v38 = vpop.f32.mrf.mxu0  ;;  %v3887_v51 = vld [vmem:[#allocation3 + $0x34] sm:$0x3]  ;;  %v3872_v52 = vld [vmem:[#allocation3 + $0x20] sm:$0xe] }
 0x3ad   : > { %v3803_v39 = vshrl.u32 %v7017_v37, 16  ;;  %v3806_v54 = vshll.u32 %v7017_v37, 16  ;;  %v7015_v3 = vpack.c.bf16 %v3744_v59, %v3744_v59  ;;  %v3749_v8 = vmax.f32 %v3741_v14, 0.0  ;;  %5222 = vst.msk [vmem:[#allocation5 + $0x4] sm:$0xf] %vm5220_vm11, %v5181_v25 }
 0x3ae   : > { %v3801_v33 = vrot.slane %v3800_v43, 4  ;;  %v3879_v34 = vsel %vm8875_vm5, %v3800_v43, %v3878_v30  ;;  %v3782_v12 = vor.u32 %v3781_v24, %v3778_v21  ;;  %v3739_v36 = vadd.f32 %v8842_v45, %v3724_v16  ;;  %v3875_v21 = vld [vmem:[#allocation3 + $0x24] sm:$0x3] }
 0x3af   : > { %3880 = vst [vmem:[#allocation3 + $0x28] sm:$0xe] %v3879_v34  ;;  %v3805_v57 = vrot.slane %v3803_v39, 6  ;;  %v3808_v40 = vrot.slane %v3806_v54, 7  ;;  %v3785_v18 = vshrl.u32 %v7015_v3, 16  ;;  %v3788_v28 = vshll.u32 %v7015_v3, 16  ;;  %v5352_v3 = vpop.permute.xlu1 %5351 }
 0x3b0   : > { %v3882_v48 = vsel %vm8704_vm9, %v3801_v33, %v3881_v17  ;;  %v3783_v15 = vrot.slane %v3782_v12, 4  ;;  %v3867_v2 = vsel %vm8875_vm5, %v3782_v12, %v3866_v32  ;;  %v7020_v10 = vpack.c.bf16 %v3749_v8, %v3749_v8  ;;  %v5350_v17 = vpop.permute.xlu0 %5349  ;;  %v3902_v33 = vld [vmem:[#allocation3 + $0x48] sm:$0xe]  ;;  %v3905_v34 = vld [vmem:[#allocation3 + $0x4c] sm:$0x3] }
 0x3b1   : > { %3883 = vst [vmem:[#allocation3 + $0x2c] sm:$0x3] %v3882_v48  ;;  %3868 = vst [vmem:[#allocation3 + $0x18] sm:$0xe] %v3867_v2  ;;  %v3809_v47 = vor.u32 %v3808_v40, %v3805_v57  ;;  %v3787_v60 = vrot.slane %v3785_v18, 6  ;;  %v3790_v50 = vrot.slane %v3788_v28, 7  ;;  %v3712_v37 = vadd.f32 %v7330_v0, %v3541_v63 }
 0x3b2   : > { %v3747_v23 = vmax.f32 %v3739_v36, 0.0  ;;  %v3870_v55 = vsel %vm8704_vm9, %v3783_v15, %v3869_v19  ;;  %v3830_v35 = vshrl.u32 %v7020_v10, 16  ;;  %v3833_v30 = vshll.u32 %v7020_v10, 16  ;;  %5391 = vst.msk [vmem:[#allocation5 + $0x4] sm:$0xf] %vm5389_vm0, %v5350_v17 }
 0x3b3   : > { %3871 = vst [vmem:[#allocation3 + $0x1c] sm:$0x3] %v3870_v55  ;;  %v3810_v59 = vrot.slane %v3809_v47, 4  ;;  %v3885_v14 = vsel %vm8875_vm5, %v3809_v47, %v3884_v9  ;;  %v3791_v16 = vor.u32 %v3790_v50, %v3787_v60  ;;  %v3727_v39 = vmul.f32 %v8833_v7, %v3712_v37  ;;  %5392 = vst.msk [vmem:[#allocation5 + $0x8] sm:$0xf] %vm5389_vm0, %v5352_v3 }
 0x3b4   : > { %v7018_v43 = vpack.c.bf16 %v3747_v23, %v3747_v23  ;;  %3886 = vst [vmem:[#allocation3 + $0x30] sm:$0xe] %v3885_v14  ;;  %v3832_v24 = vrot.slane %v3830_v35, 6  ;;  %v3835_v32 = vrot.slane %v3833_v30, 7  ;;  %v3710_v54 = vadd.f32 %v3693_v38, %v3539_v53  ;;  %v3890_v48 = vld [vmem:[#allocation3 + $0x38] sm:$0xe] }
 0x3b5   : > { %v3888_v63 = vsel %vm8704_vm9, %v3810_v59, %v3887_v51  ;;  %v3792_v8 = vrot.slane %v3791_v16, 4  ;;  %v3873_v0 = vsel %vm8875_vm5, %v3791_v16, %v3872_v52  ;;  %v3742_v53 = vadd.f32 %v8842_v45, %v3727_v39  ;;  %v3893_v52 = vld [vmem:[#allocation3 + $0x3c] sm:$0x3] }
 0x3b6   : > { %v3812_v12 = vshrl.u32 %v7018_v43, 16  ;;  %3889 = vst [vmem:[#allocation3 + $0x34] sm:$0x3] %v3888_v63  ;;  %3874 = vst [vmem:[#allocation3 + $0x20] sm:$0xe] %v3873_v0  ;;  %v3836_v36 = vor.u32 %v3835_v32, %v3832_v24  ;;  %v3815_v19 = vshll.u32 %v7018_v43, 16  ;;  %v3725_v57 = vmul.f32 %v8833_v7, %v3710_v54 }
 0x3b7   : > { %v4233_v40 = vld [vmem:[#allocation3 + $0x28] sm:$0xe]  ;;  %v3876_v28 = vsel %vm8704_vm9, %v3792_v8, %v3875_v21  ;;  %v8907_v2 = vrot.slane %v4619_v26, 5  ;;  %v3750_v47 = vmax.f32 %v3742_v53, 0.0  ;;  %v4131_v21 = vor.u32 %v8866_v29, %v8859_v27  ;;  %v3908_v8 = vld [vmem:[#allocation3 + $0x50] sm:$0xe] }
 0x3b8   : > { %v4739_v18 = vld [vmem:[#allocation3 + $0x28] sm:$0xc]  ;;  %v3814_v25 = vrot.slane %v3812_v12, 6  ;;  %v6853_v15 = vrot.slane %v4233_v40, 9  ;;  %3877 = vst [vmem:[#allocation3 + $0x24] sm:$0x3] %v3876_v28  ;;  %v3903_v10 = vsel %vm8875_vm5, %v3836_v36, %v3902_v33  ;;  %v3740_v60 = vadd.f32 %v8842_v45, %v3725_v57 }
 0x3b9   : > { %v3837_v9 = vrot.slane %v3836_v36, 4  ;;  %v3817_v20 = vrot.slane %v3815_v19, 7  ;;  %v4234_v7 = vld [vmem:[#allocation3 + $0x2c] sm:$0x1]  ;;  %3904 = vst [vmem:[#allocation3 + $0x48] sm:$0xe] %v3903_v10  ;;  %v7021_v35 = vpack.c.bf16 %v3750_v47, %v3750_v47 }
 0x3ba   : > { %v4301_v50 = vrot.slane %v4234_v7, 5  ;;  %v4740_v23 = vld [vmem:[#allocation3 + $0x2c] sm:$0x3]  ;;  %v6867_v38 = vrot.slane %v4739_v18, 10  ;;  %v5245_v37 = vld [vmem:[#allocation3 + $0x28] sm:$0x8] }
 0x3bb   : > { %v5246_v55 = vld [vmem:[#allocation3 + $0x2c] sm:$0x7]  ;;  %v3906_v51 = vsel %vm8704_vm9, %v3837_v9, %v3905_v34  ;;  %v3818_v26 = vor.u32 %v3817_v20, %v3814_v25  ;;  %v4807_v30 = vrot.slane %v4740_v23, 6  ;;  %v3748_v59 = vmax.f32 %v3740_v60, 0.0  ;;  %v4235_v16 = vld [vmem:[#allocation3 + $0x30] sm:$0xe] }
 0x3bc   : > { %3907 = vst [vmem:[#allocation3 + $0x4c] sm:$0x3] %v3906_v51  ;;  %v4302_v14 = vsel %vm7917_vm13, %v6853_v15, %v4301_v50  ;;  %v5313_v43 = vrot.slane %v5246_v55, 7  ;;  %v4741_v45 = vld [vmem:[#allocation3 + $0x30] sm:$0xc]  ;;  %v3839_v39 = vshrl.u32 %v7021_v35, 16  ;;  %v4336_v51 = vpop.permute.xlu1 %4335 }
 0x3bd   : > { %v8916_v17 = vld [vmem:[#allocation3 + $0x1c] sm:$0x1]  ;;  %v3819_v24 = vrot.slane %v3818_v26, 4  ;;  %v3891_v32 = vsel %vm8875_vm5, %v3818_v26, %v3890_v48  ;;  %v3842_v54 = vshll.u32 %v7021_v35, 16  ;;  %4345 = vrot.lane.b32.xlu0 %v4302_v14, %s9530_s30  ;;  %v4229_v3 = vld [vmem:[#allocation3 + $0x18] sm:$0xe]  ;;  %v7019_v0 = vpack.c.bf16 %v3748_v59, %v3748_v59 }
 0x3be   : > { %v8923_v63 = vld [vmem:[#allocation3 + $0x30] sm:$0x8]  ;;  %3892 = vst [vmem:[#allocation3 + $0x38] sm:$0xe] %v3891_v32  ;;  %v4808_v33 = vsel %vm7922_vm14, %v6867_v38, %v4807_v30  ;;  %v4236_v34 = vld [vmem:[#allocation3 + $0x34] sm:$0x1]  ;;  %v4167_v32 = vpop.permute.xlu0 %4166 }
 0x3bf   : > { %v6854_v12 = vrot.slane %v4235_v16, 9  ;;  %v6881_v36 = vrot.slane %v5245_v37, 11  ;;  %v4742_v19 = vld [vmem:[#allocation3 + $0x34] sm:$0x3]  ;;  %v3894_v53 = vsel %vm8704_vm9, %v3819_v24, %v3893_v52  ;;  %v3841_v57 = vrot.slane %v3839_v39, 6 }
 0x3c0   : > { %v3844_v40 = vrot.slane %v3842_v54, 7  ;;  %v4305_v18 = vrot.slane %v4236_v34, 5  ;;  %v5248_v28 = vld [vmem:[#allocation3 + $0x34] sm:$0x7]  ;;  %3895 = vst [vmem:[#allocation3 + $0x3c] sm:$0x3] %v3894_v53 }
 0x3c1   : > { %v3911_v25 = vld [vmem:[#allocation3 + $0x54] sm:$0x3]  ;;  %v3821_v48 = vshrl.u32 %v7019_v0, 16  ;;  %v3824_v15 = vshll.u32 %v7019_v0, 16  ;;  %v5314_v9 = vsel %vm7934_vm1, %v6881_v36, %v5313_v43  ;;  %v4811_v10 = vrot.slane %v4742_v19, 6  ;;  %4851 = vrot.lane.b32.xlu0 %v4808_v33, %s9566_s16 }
 0x3c2   : > { %v4735_v20 = vld [vmem:[#allocation3 + $0x18] sm:$0xc]  ;;  %v3845_v47 = vor.u32 %v3844_v40, %v3841_v57  ;;  %v3896_v7 = vld [vmem:[#allocation3 + $0x40] sm:$0xe]  ;;  %v4306_v60 = vsel %vm7917_vm13, %v6854_v12, %v4305_v18  ;;  %v6868_v50 = vrot.slane %v4741_v45, 10  ;;  %v4293_v23 = vrot.slane %v8916_v17, 5 }
 0x3c3   : > { %v4736_v38 = vld [vmem:[#allocation3 + $0x1c] sm:$0x3]  ;;  %v4231_v55 = vld [vmem:[#allocation3 + $0x20] sm:$0xe]  ;;  %v3823_v26 = vrot.slane %v3821_v48, 6  ;;  %v3826_v52 = vrot.slane %v3824_v15, 7  ;;  %4347 = vrot.lane.b32.xlu1 %v4306_v60, %s9530_s30 }
 0x3c4   : > { %v6851_v35 = vrot.slane %v4229_v3, 9  ;;  %v6882_v30 = vrot.slane %v8923_v63, 11  ;;  %v4232_v37 = vld [vmem:[#allocation3 + $0x24] sm:$0x1]  ;;  %v3846_v59 = vrot.slane %v3845_v47, 4  ;;  %v3909_v14 = vsel %vm8875_vm5, %v3845_v47, %v3908_v8  ;;  %v4842_v47 = vpop.permute.xlu1 %4841 }
 0x3c5   : > { %v3899_v16 = vld [vmem:[#allocation3 + $0x44] sm:$0x3]  ;;  %v4812_v43 = vsel %vm7922_vm14, %v6868_v50, %v4811_v10  ;;  %v5317_v45 = vrot.slane %v5248_v28, 7  ;;  %v5241_v17 = vld [vmem:[#allocation3 + $0x18] sm:$0x8]  ;;  %v3827_v39 = vor.u32 %v3826_v52, %v3823_v26  ;;  %v6865_v54 = vrot.slane %v4735_v20, 10  ;;  %5357 = vrot.lane.b32.xlu0 %v5314_v9, %s7716_s0 }
 0x3c6   : > { %v5242_v24 = vld [vmem:[#allocation3 + $0x1c] sm:$0x7]  ;;  %3910 = vst [vmem:[#allocation3 + $0x50] sm:$0xe] %v3909_v14  ;;  %v4799_v0 = vrot.slane %v4736_v38, 6  ;;  %v6852_v3 = vrot.slane %v4231_v55, 9  ;;  %v3912_v63 = vsel %vm8704_vm9, %v3846_v59, %v3911_v25  ;;  %v4294_v8 = vsel %vm7917_vm13, %v6851_v35, %v4293_v23 }
 0x3c7   : > { %v4737_v33 = vld [vmem:[#allocation3 + $0x20] sm:$0xc]  ;;  %4209 = vst.msk [vmem:[#allocation5] sm:$0xf] %vm4208_vm2, %v4167_v32  ;;  %v4297_v34 = vrot.slane %v4232_v37, 5  ;;  %v6879_v12 = vrot.slane %v5241_v17, 11  ;;  %v3897_v57 = vsel %vm8875_vm5, %v3827_v39, %v3896_v7  ;;  %4853 = vrot.lane.b32.xlu1 %v4812_v43, %s9566_s16  ;;  %v5318_v40 = vsel %vm7934_vm1, %v6882_v30, %v5317_v45  ;;  %v4673_v43 = vpop.permute.xlu0 %4672 }
 0x3c8   : > { %v4738_v36 = vld [vmem:[#allocation3 + $0x24] sm:$0x3]  ;;  %v3952_v19 = vld [vmem:[#allocation3 + $0x28] sm:$0xf]  ;;  %4378 = vst.msk [vmem:[#allocation5] sm:$0xf] %vm4377_vm3, %v4336_v51  ;;  %v4800_v48 = vsel %vm7922_vm14, %v6865_v54, %v4799_v0 }
 0x3c9   : > { %3913 = vst [vmem:[#allocation3 + $0x54] sm:$0x3] %v3912_v63  ;;  %v3828_v53 = vrot.slane %v3827_v39, 4  ;;  %v5305_v18 = vrot.slane %v5242_v24, 7  ;;  %v3953_v28 = vld [vmem:[#allocation3 + $0x2c] sm:$0x1]  ;;  %v4298_v7 = vsel %vm7917_vm13, %v6852_v3, %v4297_v34  ;;  %4341 = vrot.lane.b32.xlu0 %v4294_v8, %s9530_s30 }
 0x3ca   : > { %v5243_v25 = vld [vmem:[#allocation3 + $0x20] sm:$0x8]  ;;  %3898 = vst [vmem:[#allocation3 + $0x40] sm:$0xe] %v3897_v57  ;;  %v6866_v15 = vrot.slane %v4737_v33, 10  ;;  %v4803_v9 = vrot.slane %v4738_v36, 6 }
 0x3cb   : > { %v4041_v10 = vshrl.u32 %v3952_v19, 16  ;;  %v5244_v20 = vld [vmem:[#allocation3 + $0x24] sm:$0x7]  ;;  %v3900_v1 = vsel %vm8704_vm9, %v3828_v53, %v3899_v16  ;;  %v4044_v60 = vshll.u32 %v3952_v19, 16  ;;  %v4050_v50 = vshll.u32 %v3953_v28, 16  ;;  %5359 = vrot.lane.b32.xlu1 %v5318_v40, %s7716_s0  ;;  %v5348_v19 = vpop.permute.xlu1 %5347 }
 0x3cc   : > { %v4402_v23 = vld [vmem:[#allocation3 + $0x28] sm:$0xe]  ;;  %v4403_v38 = vld [vmem:[#allocation3 + $0x2c] sm:$0x3]  ;;  %3901 = vst [vmem:[#allocation3 + $0x44] sm:$0x3] %v3900_v1  ;;  %v5306_v55 = vsel %vm7934_vm1, %v6879_v12, %v5305_v18  ;;  %v4804_v51 = vsel %vm7922_vm14, %v6866_v15, %v4803_v9 }
 0x3cd   : > { %v4043_v26 = vrot.slane %v4041_v10, 4  ;;  %v6880_v52 = vrot.slane %v5243_v25, 11  ;;  %v3954_v35 = vld [vmem:[#allocation3 + $0x30] sm:$0xf]  ;;  %v4046_v30 = vrot.slane %v4044_v60, 5  ;;  %v5309_v37 = vrot.slane %v5244_v20, 7  ;;  %4847 = vrot.lane.b32.xlu0 %v4800_v48, %s9566_s16  ;;  %v5179_v25 = vpop.permute.xlu0 %5178 }
 0x3ce   : > { %v4511_v59 = vshrl.u32 %v4402_v23, 16  ;;  %v4514_v14 = vshll.u32 %v4402_v23, 16  ;;  %v3955_v16 = vld [vmem:[#allocation3 + $0x34] sm:$0x1]  ;;  %v4052_v45 = vrot.slane %v4050_v50, 5  ;;  %v4520_v17 = vshrl.u32 %v4403_v38, 16 }
 0x3cf   : > { %v4523_v24 = vshll.u32 %v4403_v38, 16  ;;  %v4055_v32 = vshrl.u32 %v3954_v35, 16  ;;  %v4908_v39 = vld [vmem:[#allocation3 + $0x28] sm:$0xc]  ;;  %4715 = vst.msk [vmem:[#allocation5] sm:$0xf] %vm9598_vm8, %v4673_v43  ;;  %v4047_v54 = vor.u32 %v4046_v30, %v4043_v26  ;;  %4343 = vrot.lane.b32.xlu1 %v4298_v7, %s9530_s30  ;;  %v5310_v15 = vsel %vm7934_vm1, %v6880_v52, %v5309_v37 }
 0x3d0   : > { %v4513_v0 = vrot.slane %v4511_v59, 5  ;;  %v4516_v3 = vrot.slane %v4514_v14, 6  ;;  %v4058_v33 = vshll.u32 %v3954_v35, 16  ;;  %v4909_v63 = vld [vmem:[#allocation3 + $0x2c] sm:$0x7]  ;;  %v4522_v8 = vrot.slane %v4520_v17, 5 }
 0x3d1   : > { %4884 = vst.msk [vmem:[#allocation5] sm:$0xf] %vm4883_vm6, %v4842_v47  ;;  %v4525_v34 = vrot.slane %v4523_v24, 6  ;;  %v4057_v12 = vrot.slane %v4055_v32, 4  ;;  %v4064_v36 = vshll.u32 %v3955_v16, 16  ;;  %v4048_v53 = vrot.slane %v4047_v54, 4  ;;  %5353 = vrot.lane.b32.xlu0 %v5306_v55, %s7716_s0 }
 0x3d2   : > { %v4517_v57 = vor.u32 %v4516_v3, %v4513_v0  ;;  %v4060_v40 = vrot.slane %v4058_v33, 5  ;;  %v5017_v18 = vshrl.u32 %v4908_v39, 16  ;;  %v4404_v28 = vld [vmem:[#allocation3 + $0x30] sm:$0xe]  ;;  %v5020_v10 = vshll.u32 %v4908_v39, 16 }
 0x3d3   : > { %v4526_v9 = vor.u32 %v4525_v34, %v4522_v8  ;;  %v5026_v20 = vshrl.u32 %v4909_v63, 16  ;;  %v4405_v48 = vld [vmem:[#allocation3 + $0x34] sm:$0x3]  ;;  %5221 = vst.msk [vmem:[#allocation5] sm:$0xf] %vm5220_vm11, %v5179_v25  ;;  %v4066_v60 = vrot.slane %v4064_v36, 5  ;;  %4849 = vrot.lane.b32.xlu1 %v4804_v51, %s9566_s16  ;;  %v4053_v52 = vsel %vm7961_vm15, %v4048_v53, %v4052_v45 }
 0x3d4   : > { %v4518_v47 = vrot.slane %v4517_v57, 4  ;;  %v4061_v1 = vor.u32 %v4060_v40, %v4057_v12  ;;  %v5019_v50 = vrot.slane %v5017_v18, 6  ;;  %5390 = vst.msk [vmem:[#allocation5] sm:$0xf] %vm5389_vm0, %v5348_v19  ;;  %v5022_v7 = vrot.slane %v5020_v10, 7 }
 0x3d5   : > { %v5028_v23 = vrot.slane %v5026_v20, 6  ;;  %v5029_v38 = vshll.u32 %v4909_v63, 16  ;;  %v4529_v26 = vshrl.u32 %v4404_v28, 16  ;;  %v3948_v35 = vld [vmem:[#allocation3 + $0x18] sm:$0xf]  ;;  %v4532_v37 = vshll.u32 %v4404_v28, 16  ;;  %4176 = vrot.lane.b32.xlu0 %v4053_v52, %s7712_s24 }
 0x3d6   : > { %v4062_v30 = vrot.slane %v4061_v1, 4  ;;  %v4538_v59 = vshrl.u32 %v4405_v48, 16  ;;  %v3949_v14 = vld [vmem:[#allocation3 + $0x1c] sm:$0x1]  ;;  %v5023_v16 = vor.u32 %v5022_v7, %v5019_v50  ;;  %v4541_v24 = vshll.u32 %v4405_v48, 16 }
 0x3d7   : > { %v5031_v43 = vrot.slane %v5029_v38, 7  ;;  %v4531_v17 = vrot.slane %v4529_v26, 5  ;;  %v4910_v32 = vld [vmem:[#allocation3 + $0x30] sm:$0xc]  ;;  %v4527_v55 = vsel %vm7985_vm10, %v4518_v47, %v4526_v9  ;;  %v4534_v39 = vrot.slane %v4532_v37, 6  ;;  %5355 = vrot.lane.b32.xlu1 %v5310_v15, %s7716_s0 }
 0x3d8   : > { %v4540_v54 = vrot.slane %v4538_v59, 5  ;;  %v4013_v0 = vshrl.u32 %v3948_v35, 16  ;;  %v5024_v51 = vrot.slane %v5023_v16, 4  ;;  %v4543_v45 = vrot.slane %v4541_v24, 6  ;;  %v4911_v63 = vld [vmem:[#allocation3 + $0x34] sm:$0x7] }
 0x3d9   : > { %v5032_v3 = vor.u32 %v5031_v43, %v5028_v23  ;;  %v4016_v33 = vshll.u32 %v3948_v35, 16  ;;  %v4535_v8 = vor.u32 %v4534_v39, %v4531_v17  ;;  %v4022_v12 = vshll.u32 %v3949_v14, 16  ;;  %v4398_v19 = vld [vmem:[#allocation3 + $0x18] sm:$0xe]  ;;  %v4399_v28 = vld [vmem:[#allocation3 + $0x1c] sm:$0x3]  ;;  %4682 = vrot.lane.b32.xlu0 %v4527_v55, %s7714_s15 }
 0x3da   : > { %v4015_v34 = vrot.slane %v4013_v0, 4  ;;  %v5035_v36 = vshrl.u32 %v4910_v32, 16  ;;  %v4067_v53 = vsel %vm7961_vm15, %v4062_v30, %v4066_v60  ;;  %v5038_v18 = vshll.u32 %v4910_v32, 16  ;;  %v4241_v50 = vld [vmem:[#allocation3 + $0x48] sm:$0xe] }
 0x3db   : > { %v5033_v57 = vsel %vm7945_vm7, %v5024_v51, %v5032_v3  ;;  %v4018_v40 = vrot.slane %v4016_v33, 5  ;;  %v4536_v25 = vrot.slane %v4535_v8, 4  ;;  %v4544_v9 = vor.u32 %v4543_v45, %v4540_v54  ;;  %4178 = vrot.lane.b32.xlu1 %v4067_v53, %s7712_s24  ;;  %v4242_v26 = vld [vmem:[#allocation3 + $0x4c] sm:$0x1]  ;;  %v4904_v59 = vld [vmem:[#allocation3 + $0x18] sm:$0xc] }
 0x3dc   : > { %v5037_v10 = vrot.slane %v5035_v36, 6  ;;  %v5044_v20 = vshrl.u32 %v4911_v63, 16  ;;  %v5040_v48 = vrot.slane %v5038_v18, 7  ;;  %v5047_v47 = vshll.u32 %v4911_v63, 16  ;;  %v4905_v24 = vld [vmem:[#allocation3 + $0x1c] sm:$0x7] }
 0x3dd   : > { %v4019_v15 = vor.u32 %v4018_v40, %v4015_v34  ;;  %v4475_v1 = vshrl.u32 %v4398_v19, 16  ;;  %v4024_v60 = vrot.slane %v4022_v12, 5  ;;  %v4478_v23 = vshll.u32 %v4398_v19, 16  ;;  %5188 = vrot.lane.b32.xlu0 %v5033_v57, %s7715_s22  ;;  %v4747_v0 = vld [vmem:[#allocation3 + $0x48] sm:$0xc] }
 0x3de   : > { %v5046_v7 = vrot.slane %v5044_v20, 6  ;;  %v4484_v38 = vshrl.u32 %v4399_v28, 16  ;;  %v5041_v52 = vor.u32 %v5040_v48, %v5037_v10  ;;  %v5049_v30 = vrot.slane %v5047_v47, 7  ;;  %v4748_v63 = vld [vmem:[#allocation3 + $0x4c] sm:$0x3] }
 0x3df   : > { %v4020_v35 = vrot.slane %v4019_v15, 4  ;;  %v4477_v37 = vrot.slane %v4475_v1, 5  ;;  %v4545_v14 = vsel %vm7985_vm10, %v4536_v25, %v4544_v9  ;;  %v4480_v16 = vrot.slane %v4478_v23, 6  ;;  %v3950_v19 = vld [vmem:[#allocation3 + $0x20] sm:$0xf] }
 0x3e0   : > { %v4486_v43 = vrot.slane %v4484_v38, 5  ;;  %v4487_v17 = vshll.u32 %v4399_v28, 16  ;;  %v5042_v32 = vrot.slane %v5041_v52, 4  ;;  %v5050_v55 = vor.u32 %v5049_v30, %v5046_v7  ;;  %4684 = vrot.lane.b32.xlu1 %v4545_v14, %s7714_s15  ;;  %v3951_v53 = vld [vmem:[#allocation3 + $0x24] sm:$0x1] }
 0x3e1   : > { %v6857_v39 = vrot.slane %v4241_v50, 9  ;;  %v4317_v54 = vrot.slane %v4242_v26, 5  ;;  %v4481_v51 = vor.u32 %v4480_v16, %v4477_v37  ;;  %v4981_v45 = vshrl.u32 %v4904_v59, 16  ;;  %v4237_v25 = vld [vmem:[#allocation3 + $0x38] sm:$0xe] }
 0x3e2   : > { %v4489_v3 = vrot.slane %v4487_v17, 6  ;;  %v4984_v33 = vshll.u32 %v4904_v59, 16  ;;  %v4025_v8 = vsel %vm7961_vm15, %v4020_v35, %v4024_v60  ;;  %v5051_v34 = vsel %vm7945_vm7, %v5042_v32, %v5050_v55  ;;  %v4238_v48 = vld [vmem:[#allocation3 + $0x3c] sm:$0x1]  ;;  %v4400_v7 = vld [vmem:[#allocation3 + $0x20] sm:$0xe] }
 0x3e3   : > { %v4990_v12 = vshrl.u32 %v4905_v24, 16  ;;  %v4993_v36 = vshll.u32 %v4905_v24, 16  ;;  %v4482_v57 = vrot.slane %v4481_v51, 4  ;;  %v4983_v18 = vrot.slane %v4981_v45, 6  ;;  %4172 = vrot.lane.b32.xlu0 %v4025_v8, %s7712_s24  ;;  %v4401_v23 = vld [vmem:[#allocation3 + $0x24] sm:$0x3] }
 0x3e4   : > { %v4490_v40 = vor.u32 %v4489_v3, %v4486_v43  ;;  %v4986_v28 = vrot.slane %v4984_v33, 7  ;;  %v6871_v20 = vrot.slane %v4747_v0, 10  ;;  %v4823_v15 = vrot.slane %v4748_v63, 6  ;;  %5190 = vrot.lane.b32.xlu1 %v5051_v34, %s7715_s22  ;;  %v4744_v16 = vld [vmem:[#allocation3 + $0x3c] sm:$0x3] }
 0x3e5   : > { %v4992_v9 = vrot.slane %v4990_v12, 6  ;;  %v4995_v10 = vrot.slane %v4993_v36, 7  ;;  %v4318_v47 = vsel %vm7917_vm13, %v6857_v39, %v4317_v54  ;;  %v4027_v50 = vshrl.u32 %v3950_v19, 16  ;;  %v4906_v55 = vld [vmem:[#allocation3 + $0x20] sm:$0xc] }
 0x3e6   : > { %v4987_v1 = vor.u32 %v4986_v28, %v4983_v18  ;;  %v4030_v60 = vshll.u32 %v3950_v19, 16  ;;  %v4491_v38 = vsel %vm7985_vm10, %v4482_v57, %v4490_v40  ;;  %v4824_v35 = vsel %vm7922_vm14, %v6871_v20, %v4823_v15  ;;  %v4743_v3 = vld [vmem:[#allocation3 + $0x38] sm:$0xc]  ;;  %v4907_v45 = vld [vmem:[#allocation3 + $0x24] sm:$0x7] }
 0x3e7   : > { %v4996_v26 = vor.u32 %v4995_v10, %v4992_v9  ;;  %v4036_v52 = vshll.u32 %v3951_v53, 16  ;;  %v4029_v37 = vrot.slane %v4027_v50, 4  ;;  %v4309_v14 = vrot.slane %v4238_v48, 5  ;;  %4678 = vrot.lane.b32.xlu0 %v4491_v38, %s7714_s15  ;;  %v5249_v12 = vld [vmem:[#allocation3 + $0x38] sm:$0x8] }
 0x3e8   : > { %v4988_v30 = vrot.slane %v4987_v1, 4  ;;  %v4032_v59 = vrot.slane %v4030_v60, 5  ;;  %v6855_v43 = vrot.slane %v4237_v25, 9  ;;  %v4493_v17 = vshrl.u32 %v4400_v7, 16  ;;  %4353 = vrot.lane.b32.xlu1 %v4318_v47, %s9530_s30  ;;  %v5250_v40 = vld [vmem:[#allocation3 + $0x3c] sm:$0x7] }
 0x3e9   : > { %v4496_v24 = vshll.u32 %v4400_v7, 16  ;;  %v4502_v32 = vshrl.u32 %v4401_v23, 16  ;;  %v4038_v0 = vrot.slane %v4036_v52, 5  ;;  %v4505_v51 = vshll.u32 %v4401_v23, 16  ;;  %v3960_v10 = vld [vmem:[#allocation3 + $0x48] sm:$0xf] }
 0x3ea   : > { %v4997_v39 = vsel %vm7945_vm7, %v4988_v30, %v4996_v26  ;;  %v4033_v54 = vor.u32 %v4032_v59, %v4029_v37  ;;  %v4310_v33 = vsel %vm7917_vm13, %v6855_v43, %v4309_v14  ;;  %v4495_v63 = vrot.slane %v4493_v17, 5  ;;  %v3961_v1 = vld [vmem:[#allocation3 + $0x4c] sm:$0x1]  ;;  %v4239_v50 = vld [vmem:[#allocation3 + $0x40] sm:$0xe] }
 0x3eb   : > { %v4498_v8 = vrot.slane %v4496_v24, 6  ;;  %v4504_v34 = vrot.slane %v4502_v32, 5  ;;  %v4507_v19 = vrot.slane %v4505_v51, 6  ;;  %v4815_v53 = vrot.slane %v4744_v16, 6  ;;  %5184 = vrot.lane.b32.xlu0 %v4997_v39, %s7715_s22  ;;  %v4240_v26 = vld [vmem:[#allocation3 + $0x44] sm:$0x1] }
 0x3ec   : > { %v4034_v36 = vrot.slane %v4033_v54, 4  ;;  %v4999_v57 = vshrl.u32 %v4906_v55, 16  ;;  %v5002_v28 = vshll.u32 %v4906_v55, 16  ;;  %v5008_v25 = vshrl.u32 %v4907_v45, 16  ;;  %4859 = vrot.lane.b32.xlu1 %v4824_v35, %s9566_s16  ;;  %v4410_v14 = vld [vmem:[#allocation3 + $0x48] sm:$0xe] }
 0x3ed   : > { %v4499_v18 = vor.u32 %v4498_v8, %v4495_v63  ;;  %v5011_v9 = vshll.u32 %v4907_v45, 16  ;;  %v4508_v15 = vor.u32 %v4507_v19, %v4504_v34  ;;  %v6869_v48 = vrot.slane %v4743_v3, 10  ;;  %v4411_v24 = vld [vmem:[#allocation3 + $0x4c] sm:$0x3]  ;;  %v4746_v63 = vld [vmem:[#allocation3 + $0x44] sm:$0x3] }
 0x3ee   : > { %v4039_v20 = vsel %vm7961_vm15, %v4034_v36, %v4038_v0  ;;  %v5001_v47 = vrot.slane %v4999_v57, 6  ;;  %v5004_v7 = vrot.slane %v5002_v28, 7  ;;  %v5010_v23 = vrot.slane %v5008_v25, 6  ;;  %v4745_v0 = vld [vmem:[#allocation3 + $0x40] sm:$0xc] }
 0x3ef   : > { %v4500_v60 = vrot.slane %v4499_v18, 4  ;;  %v5013_v38 = vrot.slane %v5011_v9, 7  ;;  %v6883_v52 = vrot.slane %v5249_v12, 11  ;;  %v5321_v30 = vrot.slane %v5250_v40, 7  ;;  %4349 = vrot.lane.b32.xlu0 %v4310_v33, %s9530_s30  ;;  %v3956_v19 = vld [vmem:[#allocation3 + $0x38] sm:$0xf] }
 0x3f0   : > { %v4097_v37 = vshrl.u32 %v3960_v10, 16  ;;  %v4100_v59 = vshll.u32 %v3960_v10, 16  ;;  %v4816_v35 = vsel %vm7922_vm14, %v6869_v48, %v4815_v53  ;;  %v5005_v16 = vor.u32 %v5004_v7, %v5001_v47  ;;  %4174 = vrot.lane.b32.xlu1 %v4039_v20, %s7712_s24  ;;  %v3957_v28 = vld [vmem:[#allocation3 + $0x3c] sm:$0x1]  ;;  %v5251_v25 = vld [vmem:[#allocation3 + $0x40] sm:$0x8] }
 0x3f1   : > { %v5014_v43 = vor.u32 %v5013_v38, %v5010_v23  ;;  %v4106_v17 = vshll.u32 %v3961_v1, 16  ;;  %v4509_v32 = vsel %vm7985_vm10, %v4500_v60, %v4508_v15  ;;  %v5322_v55 = vsel %vm7934_vm1, %v6883_v52, %v5321_v30  ;;  %v5252_v48 = vld [vmem:[#allocation3 + $0x44] sm:$0x7]  ;;  %v4406_v7 = vld [vmem:[#allocation3 + $0x38] sm:$0xe] }
 0x3f2   : > { %v4099_v39 = vrot.slane %v4097_v37, 4  ;;  %v4102_v54 = vrot.slane %v4100_v59, 5  ;;  %v5006_v51 = vrot.slane %v5005_v16, 4  ;;  %v6856_v3 = vrot.slane %v4239_v50, 9  ;;  %v4407_v30 = vld [vmem:[#allocation3 + $0x3c] sm:$0x3] }
 0x3f3   : > { %v4313_v45 = vrot.slane %v4240_v26, 5  ;;  %v4583_v33 = vshrl.u32 %v4410_v14, 16  ;;  %v4586_v34 = vshll.u32 %v4410_v14, 16  ;;  %v4592_v12 = vshrl.u32 %v4411_v24, 16  ;;  %4855 = vrot.lane.b32.xlu0 %v4816_v35, %s9566_s16  ;;  %v3958_v37 = vld [vmem:[#allocation3 + $0x40] sm:$0xf] }
 0x3f4   : > { %v4103_v8 = vor.u32 %v4102_v54, %v4099_v39  ;;  %v4595_v36 = vshll.u32 %v4411_v24, 16  ;;  %v5015_v53 = vsel %vm7945_vm7, %v5006_v51, %v5014_v43  ;;  %v4108_v57 = vrot.slane %v4106_v17, 5  ;;  %4680 = vrot.lane.b32.xlu1 %v4509_v32, %s7714_s15  ;;  %v3959_v39 = vld [vmem:[#allocation3 + $0x44] sm:$0x1]  ;;  %v4412_v58 = vld [vmem:[#allocation3 + $0x50] sm:$0xe] }
 0x3f5   : > { %v4314_v40 = vsel %vm7917_vm13, %v6856_v3, %v4313_v45  ;;  %v4585_v18 = vrot.slane %v4583_v33, 5  ;;  %v4588_v10 = vrot.slane %v4586_v34, 6  ;;  %v4594_v20 = vrot.slane %v4592_v12, 5  ;;  %v4912_v45 = vld [vmem:[#allocation3 + $0x38] sm:$0xc] }
 0x3f6   : > { %v4104_v9 = vrot.slane %v4103_v8, 4  ;;  %v4597_v15 = vrot.slane %v4595_v36, 6  ;;  %v6870_v47 = vrot.slane %v4745_v0, 10  ;;  %v4819_v1 = vrot.slane %v4746_v63, 6  ;;  %v4913_v34 = vld [vmem:[#allocation3 + $0x3c] sm:$0x7] }
 0x3f7   : > { %v4069_v50 = vshrl.u32 %v3956_v19, 16  ;;  %v4072_v60 = vshll.u32 %v3956_v19, 16  ;;  %v4589_v38 = vor.u32 %v4588_v10, %v4585_v18  ;;  %v4078_v52 = vshll.u32 %v3957_v28, 16  ;;  %5361 = vrot.lane.b32.xlu0 %v5322_v55, %s7716_s0  ;;  %v3921_v27 = vld [vmem:[#allocation3 + $0x38] sm:$0xf] }
 0x3f8   : > { %v4109_v23 = vsel %vm7961_vm15, %v4104_v9, %v4108_v57  ;;  %v4598_v26 = vor.u32 %v4597_v15, %v4594_v20  ;;  %v4820_v59 = vsel %vm7922_vm14, %v6870_v47, %v4819_v1  ;;  %v6884_v16 = vrot.slane %v5251_v25, 11  ;;  %5186 = vrot.lane.b32.xlu1 %v5015_v53, %s7715_s22  ;;  %v4408_v9 = vld [vmem:[#allocation3 + $0x40] sm:$0xe]  ;;  %v4409_v47 = vld [vmem:[#allocation3 + $0x44] sm:$0x3] }
 0x3f9   : > { %v4071_v14 = vrot.slane %v4069_v50, 4  ;;  %v4074_v35 = vrot.slane %v4072_v60, 5  ;;  %v4590_v43 = vrot.slane %v4589_v38, 4  ;;  %v5325_v17 = vrot.slane %v5252_v48, 7  ;;  %v3922_v29 = vld [vmem:[#allocation3 + $0x40] sm:$0xf] }
 0x3fa   : > { %v4547_v24 = vshrl.u32 %v4406_v7, 16  ;;  %v4550_v32 = vshll.u32 %v4406_v7, 16  ;;  %v4556_v0 = vshrl.u32 %v4407_v30, 16  ;;  %v4559_v51 = vshll.u32 %v4407_v30, 16 }
 0x3fb   : > { %v4075_v54 = vor.u32 %v4074_v35, %v4071_v14  ;;  %v4083_v3 = vshrl.u32 %v3958_v37, 16  ;;  %v4599_v55 = vsel %vm7985_vm10, %v4590_v43, %v4598_v26  ;;  %v4080_v33 = vrot.slane %v4078_v52, 5  ;;  %4184 = vrot.lane.b32.xlu0 %v4109_v23, %s7712_s24  ;;  %v4916_v52 = vld [vmem:[#allocation3 + $0x48] sm:$0xc] }
 0x3fc   : > { %v4549_v63 = vrot.slane %v4547_v24, 5  ;;  %v4552_v8 = vrot.slane %v4550_v32, 6  ;;  %v4558_v36 = vrot.slane %v4556_v0, 5  ;;  %v4561_v19 = vrot.slane %v4559_v51, 6  ;;  %4351 = vrot.lane.b32.xlu1 %v4314_v40, %s9530_s30 }
 0x3fd   : > { %v4076_v12 = vrot.slane %v4075_v54, 4  ;;  %v4085_v53 = vrot.slane %v4083_v3, 4  ;;  %v4086_v18 = vshll.u32 %v3958_v37, 16  ;;  %v4092_v28 = vshll.u32 %v3959_v39, 16 }
 0x3fe   : > { %v4553_v57 = vor.u32 %v4552_v8, %v4549_v63  ;;  %v5053_v25 = vshrl.u32 %v4912_v45, 16  ;;  %v5326_v20 = vsel %vm7934_vm1, %v6884_v16, %v5325_v17  ;;  %v5056_v15 = vshll.u32 %v4912_v45, 16  ;;  %v4917_v16 = vld [vmem:[#allocation3 + $0x4c] sm:$0x7] }
 0x3ff   : > { %v4081_v10 = vsel %vm7961_vm15, %v4076_v12, %v4080_v33  ;;  %v5062_v48 = vshrl.u32 %v4913_v34, 16  ;;  %v4562_v50 = vor.u32 %v4561_v19, %v4558_v36  ;;  %v4088_v60 = vrot.slane %v4086_v18, 5  ;;  %4690 = vrot.lane.b32.xlu0 %v4599_v55, %s7714_s15  ;;  %v4914_v33 = vld [vmem:[#allocation3 + $0x40] sm:$0xc]  ;;  %v4915_v36 = vld [vmem:[#allocation3 + $0x44] sm:$0x7] }
 0x400   : > { %v4554_v1 = vrot.slane %v4553_v57, 4  ;;  %v5055_v7 = vrot.slane %v5053_v25, 6  ;;  %v4094_v40 = vrot.slane %v4092_v28, 5  ;;  %v5058_v23 = vrot.slane %v5056_v15, 7  ;;  %4857 = vrot.lane.b32.xlu1 %v4820_v59, %s9566_s16  ;;  %v3962_v28 = vld [vmem:[#allocation3 + $0x50] sm:$0xf] }
 0x401   : > { %v5065_v38 = vshll.u32 %v4913_v34, 16  ;;  %v4565_v26 = vshrl.u32 %v4408_v9, 16  ;;  %v4089_v30 = vor.u32 %v4088_v60, %v4085_v53  ;;  %v5064_v37 = vrot.slane %v5062_v48, 6  ;;  %v3919_v60 = vld [vmem:[#allocation3 + $0x28] sm:$0xf] }
 0x402   : > { %v4568_v14 = vshll.u32 %v4408_v9, 16  ;;  %v4574_v35 = vshrl.u32 %v4409_v47, 16  ;;  %v5059_v43 = vor.u32 %v5058_v23, %v5055_v7  ;;  %v4577_v32 = vshll.u32 %v4409_v47, 16 }
 0x403   : > { %v5067_v17 = vrot.slane %v5065_v38, 7  ;;  %v4567_v24 = vrot.slane %v4565_v26, 5  ;;  %v4090_v39 = vrot.slane %v4089_v30, 4  ;;  %v5089_v51 = vshrl.u32 %v4916_v52, 16  ;;  %4180 = vrot.lane.b32.xlu0 %v4081_v10, %s7712_s24  ;;  %v9051_v38 = vld [vmem:[#allocation3 + $0x48] sm:$0x8] }
 0x404   : > { %v4570_v54 = vrot.slane %v4568_v14, 6  ;;  %v4576_v0 = vrot.slane %v4574_v35, 5  ;;  %v4563_v3 = vsel %vm7985_vm10, %v4554_v1, %v4562_v50  ;;  %v5060_v45 = vrot.slane %v5059_v43, 4  ;;  %5363 = vrot.lane.b32.xlu1 %v5326_v20, %s7716_s0  ;;  %v3963_v50 = vld [vmem:[#allocation3 + $0x54] sm:$0x1] }
 0x405   : > { %v4579_v59 = vrot.slane %v4577_v32, 6  ;;  %v5092_v55 = vshll.u32 %v4916_v52, 16  ;;  %v5068_v63 = vor.u32 %v5067_v17, %v5064_v37  ;;  %v5091_v34 = vrot.slane %v5089_v51, 6  ;;  %v3920_v52 = vld [vmem:[#allocation3 + $0x30] sm:$0xf] }
 0x406   : > { %v4571_v8 = vor.u32 %v4570_v54, %v4567_v24  ;;  %v5098_v12 = vshrl.u32 %v4917_v16, 16  ;;  %v4095_v19 = vsel %vm7961_vm15, %v4090_v39, %v4094_v40  ;;  %v5101_v18 = vshll.u32 %v4917_v16, 16  ;;  %v3917_v16 = vld [vmem:[#allocation3 + $0x18] sm:$0xf]  ;;  %v5254_v39 = vld [vmem:[#allocation3 + $0x4c] sm:$0x7] }
 0x407   : > { %v4580_v53 = vor.u32 %v4579_v59, %v4576_v0  ;;  %v5094_v57 = vrot.slane %v5092_v55, 7  ;;  %v5071_v10 = vshrl.u32 %v4914_v33, 16  ;;  %v5074_v15 = vshll.u32 %v4914_v33, 16  ;;  %4686 = vrot.lane.b32.xlu0 %v4563_v3, %s7714_s15  ;;  %v4243_v51 = vld [vmem:[#allocation3 + $0x50] sm:$0xe] }
 0x408   : > { %v4572_v25 = vrot.slane %v4571_v8, 4  ;;  %v5100_v9 = vrot.slane %v5098_v12, 6  ;;  %v5103_v20 = vrot.slane %v5101_v18, 7  ;;  %v5080_v47 = vshrl.u32 %v4915_v36, 16  ;;  %4182 = vrot.lane.b32.xlu1 %v4095_v19, %s7712_s24  ;;  %v4413_v3 = vld [vmem:[#allocation3 + $0x54] sm:$0x3] }
 0x409   : > { %v5095_v48 = vor.u32 %v5094_v57, %v5091_v34  ;;  %v5083_v1 = vshll.u32 %v4915_v36, 16  ;;  %v5073_v7 = vrot.slane %v5071_v10, 6  ;;  %v5076_v40 = vrot.slane %v5074_v15, 7  ;;  %v4244_v33 = vld [vmem:[#allocation3 + $0x54] sm:$0x1] }
 0x40a   : > { %v4111_v23 = vshrl.u32 %v3962_v28, 16  ;;  %v9055_v26 = vrot.slane %v4622_v13, 6  ;;  %vm9599_vm5 = vcmask 27648   ;;  %v5069_v30 = vsel %vm7945_vm7, %v5060_v45, %v5068_v63  ;;  %v3918_v13 = vld [vmem:[#allocation3 + $0x20] sm:$0xf] }
 0x40b   : > { %3933 = vst.msk [vmem:[#allocation5 + $0x14] sm:$0xf] %vm9599_vm5, %v3919_v60  ;;  %v5096_v37 = vrot.slane %v5095_v48, 4  ;;  %v5082_v14 = vrot.slane %v5080_v47, 6  ;;  %v5085_v35 = vrot.slane %v5083_v1, 7  ;;  %vm9600_vm4 = vmmov %vm9599_vm5  ;;  %v5104_v43 = vor.u32 %v5103_v20, %v5100_v9  ;;  %5192 = vrot.lane.b32.xlu0 %v5069_v30, %s7715_s22 }
 0x40c   : > { %3934 = vst.msk [vmem:[#allocation5 + $0x18] sm:$0xf] %vm9600_vm4, %v3920_v52  ;;  %v5077_v17 = vor.u32 %v5076_v40, %v5073_v7  ;;  %v4113_v24 = vrot.slane %v4111_v23, 4  ;;  %v4114_v32 = vshll.u32 %v3962_v28, 16  ;;  %vm9601_vm8 = vmmov %vm9600_vm4  ;;  %v4581_v54 = vsel %vm7985_vm10, %v4572_v25, %v4580_v53  ;;  %v4415_v8 = vld [vmem:[#allocation3 + $0x5c] sm:$0x3] }
 0x40d   : > { %3931 = vst.msk [vmem:[#allocation5 + $0xc] sm:$0xf] %vm9601_vm8, %v3917_v16  ;;  %v5086_v0 = vor.u32 %v5085_v35, %v5082_v14  ;;  %vm9602_vm5 = vmmov %vm9600_vm4  ;;  %4688 = vrot.lane.b32.xlu1 %v4581_v54, %s7714_s15  ;;  %v4120_v55 = vshll.u32 %v3963_v50, 16  ;;  %v9070_v63 = vrot.slane %v4131_v21, 4  ;;  %v6885_v34 = vrot.slane %v9051_v38, 11 }
 0x40e   : > { %3932 = vst.msk [vmem:[#allocation5 + $0x10] sm:$0xf] %vm9602_vm5, %v3918_v13  ;;  %v5078_v45 = vrot.slane %v5077_v17, 4  ;;  %v4116_v59 = vrot.slane %v4114_v32, 5  ;;  %v4601_v12 = vshrl.u32 %v4412_v58, 16  ;;  %v4604_v36 = vshll.u32 %v4412_v58, 16  ;;  %vm9603_vm8 = vmmov %vm9600_vm4 }
 0x40f   : > { %v4625_v19 = vor.u32 %v9055_v26, %v8907_v2  ;;  %v3923_v53 = vld [vmem:[#allocation3 + $0x48] sm:$0xf]  ;;  %v5105_v57 = vsel %vm7945_vm7, %v5096_v37, %v5104_v43  ;;  %v4610_v28 = vshrl.u32 %v4413_v3, 16  ;;  %v4613_v25 = vshll.u32 %v4413_v3, 16  ;;  %v4245_v2 = vld [vmem:[#allocation3 + $0x58] sm:$0xe]  ;;  %vm9604_vm5 = vmmov %vm9600_vm4 }
 0x410   : > { %v4117_v18 = vor.u32 %v4116_v59, %v4113_v24  ;;  %3937 = vst.msk [vmem:[#allocation5 + $0x24] sm:$0xf] %vm9600_vm4, %v3923_v53  ;;  %5196 = vrot.lane.b32.xlu0 %v5105_v57, %s7715_s22  ;;  %v5087_v21 = vsel %vm7945_vm7, %v5078_v45, %v5086_v0  ;;  %v5329_v9 = vrot.slane %v5254_v39, 7  ;;  %v4603_v10 = vrot.slane %v4601_v12, 5  ;;  %v4246_v48 = vld [vmem:[#allocation3 + $0x5c] sm:$0x1] }
 0x411   : > { %v4606_v15 = vrot.slane %v4604_v36, 6  ;;  %v4918_v20 = vld [vmem:[#allocation3 + $0x50] sm:$0xc]  ;;  %3935 = vst.msk [vmem:[#allocation5 + $0x1c] sm:$0xf] %vm9603_vm8, %v3921_v27  ;;  %5194 = vrot.lane.b32.xlu1 %v5087_v21, %s7715_s22  ;;  %v4122_v1 = vrot.slane %v4120_v55, 5  ;;  %vm9605_vm8 = vmmov %vm9600_vm4  ;;  %v4137_v39 = vsel %vm7961_vm15, %v9070_v63, %v8861_v41 }
 0x412   : > { %3936 = vst.msk [vmem:[#allocation5 + $0x20] sm:$0xf] %vm9604_vm5, %v3922_v29  ;;  %v4118_v47 = vrot.slane %v4117_v18, 4  ;;  %v6858_v50 = vrot.slane %v4243_v51, 9  ;;  %v4321_v60 = vrot.slane %v4244_v33, 5  ;;  %v4612_v23 = vrot.slane %v4610_v28, 5 }
 0x413   : > { %v9084_v7 = vld [vmem:[#allocation3 + $0x58] sm:$0xc]  ;;  %v3924_v40 = vld [vmem:[#allocation3 + $0x50] sm:$0xf]  ;;  %v4615_v38 = vrot.slane %v4613_v25, 6  ;;  %v4628_v26 = vshrl.u32 %v4415_v8, 16  ;;  %v5330_v16 = vsel %vm7934_vm1, %v6885_v34, %v5329_v9  ;;  %v4607_v43 = vor.u32 %v4606_v15, %v4603_v10 }
 0x414   : > { %v4631_v52 = vshll.u32 %v4415_v8, 16  ;;  %3938 = vst.msk [vmem:[#allocation5 + $0x28] sm:$0xf] %vm9600_vm4, %v3924_v40  ;;  %v3925_v30 = vld [vmem:[#allocation3 + $0x58] sm:$0xf]  ;;  %v4123_v37 = vsel %vm7961_vm15, %v4118_v47, %v4122_v1  ;;  %v5107_v14 = vshrl.u32 %v4918_v20, 16  ;;  %v4322_v0 = vsel %vm7917_vm13, %v6858_v50, %v4321_v60 }
 0x415   : > { %v5110_v35 = vshll.u32 %v4918_v20, 16  ;;  %3939 = vst.msk [vmem:[#allocation5 + $0x2c] sm:$0xf] %vm9605_vm8, %v3925_v30  ;;  %4186 = vrot.lane.b32.xlu0 %v4123_v37, %s7712_s24  ;;  %v4630_v17 = vrot.slane %v4628_v26, 5  ;;  %v4919_v32 = vld [vmem:[#allocation3 + $0x54] sm:$0x7]  ;;  %5365 = vrot.lane.b32.xlu1 %v5330_v16, %s7716_s0  ;;  %v4616_v51 = vor.u32 %v4615_v38, %v4612_v23 }
 0x416   : > { %v4633_v24 = vrot.slane %v4631_v52, 6  ;;  %v6859_v58 = vrot.slane %v4245_v2, 9  ;;  %v4325_v13 = vrot.slane %v4246_v48, 5  ;;  %v4920_v54 = vld [vmem:[#allocation3 + $0x58] sm:$0xc]  ;;  %v4626_v3 = vrot.slane %v4625_v19, 4 }
 0x417   : > { %v6873_v45 = vrot.slane %v9084_v7, 10  ;;  %v4921_v59 = vld [vmem:[#allocation3 + $0x5c] sm:$0x7]  ;;  %v4750_v55 = vld [vmem:[#allocation3 + $0x54] sm:$0x3]  ;;  %v5109_v33 = vrot.slane %v5107_v14, 6 }
 0x418   : > { %v5112_v8 = vrot.slane %v5110_v35, 7  ;;  %v5116_v34 = vshrl.u32 %v4919_v32, 16  ;;  %v5119_v12 = vshll.u32 %v4919_v32, 16  ;;  %v9101_v36 = vld [vmem:[#allocation3 + $0x5c] sm:$0x3]  ;;  %v4608_v41 = vrot.slane %v4607_v43, 4 }
 0x419   : > { %4188 = vrot.lane.b32.xlu0 %v4137_v39, %s7712_s24  ;;  %v4634_v63 = vor.u32 %v4633_v24, %v4630_v17  ;;  %v5125_v53 = vshrl.u32 %v4920_v54, 16  ;;  %v5128_v57 = vshll.u32 %v4920_v54, 16  ;;  %v598_v18 = vld [vmem:[#allocation3 + $0x60] sm:$0x3]  ;;  %4355 = vrot.lane.b32.xlu1 %v4322_v0, %s9530_s30  ;;  %v4326_v19 = vsel %vm7917_vm13, %v6859_v58, %v4325_v13  ;;  %v601_v27 = vld [vmem:[#allocation3 + $0x68] sm:$0x3] }
 0x41a   : > { %v5134_v28 = vshrl.u32 %v4921_v59, 16  ;;  %v5137_v25 = vshll.u32 %v4921_v59, 16  ;;  %v642_v29 = vld [vmem:[#allocation3 + $0x64] sm:$0x6]  ;;  %v4749_v21 = vld [vmem:[#allocation3 + $0x50] sm:$0xc]  ;;  %v5113_v20 = vor.u32 %v5112_v8, %v5109_v33  ;;  %v4617_v23 = vsel %vm7985_vm10, %v4608_v41, %v4616_v51 }
 0x41b   : > { %v4827_v9 = vrot.slane %v4750_v55, 6  ;;  %v5127_v10 = vrot.slane %v5125_v53, 6  ;;  %v5130_v15 = vrot.slane %v5128_v57, 7  ;;  %v3967_v2 = vld [vmem:[#allocation3 + $0x64] sm:$0x1]  ;;  %v7563_v48 = vld [vmem:[#allocation5 + $0x4] sm:$0xff]   ;;  %v4635_v38 = vsel %vm7985_vm10, %v4626_v3, %v4634_v63 }
 0x41c   : > { %v5118_v47 = vrot.slane %v5116_v34, 6  ;;  %v5121_v1 = vrot.slane %v5119_v12, 7  ;;  %v5256_v50 = vld [vmem:[#allocation3 + $0x54] sm:$0x7]  ;;  %v599_v60 = vsel %vm8704_vm9, 0, %v598_v18  ;;  %v4831_v26 = vrot.slane %v9101_v36, 6 }
 0x41d   : > { %v3969_v40 = vld [vmem:[#allocation3 + $0x6c] sm:$0x1]  ;;  %4357 = vrot.lane.b32.xlu0 %v4326_v19, %s9530_s30  ;;  %v5255_v52 = vld [vmem:[#allocation3 + $0x50] sm:$0x8]  ;;  %v5136_v30 = vrot.slane %v5134_v28, 6  ;;  %4692 = vrot.lane.b32.xlu1 %v4617_v23, %s7714_s15  ;;  %v5131_v14 = vor.u32 %v5130_v15, %v5127_v10  ;;  %v5139_v35 = vrot.slane %v5137_v25, 7 }
 0x41e   : > { %600 = vst [vmem:[#allocation3 + $0x60] sm:$0x3] %v599_v60  ;;  %v645_v37 = vld [vmem:[#allocation3 + $0x6c] sm:$0x6]  ;;  %v9116_v16 = vld [vmem:[#allocation3 + $0x58] sm:$0x8]  ;;  %v5122_v51 = vor.u32 %v5121_v1, %v5118_v47  ;;  %v4832_v5 = vsel %vm7922_vm14, %v6873_v45, %v4831_v26 }
 0x41f   : > { %v9118_v43 = vld [vmem:[#allocation3 + $0x5c] sm:$0x7]  ;;  %v9120_v17 = vld [vmem:[#allocation3 + $0x64] sm:$0x1]  ;;  %vm5461_vm5 = vcmask 228352   ;;  %v602_v24 = vsel %vm8704_vm9, 0, %v601_v27  ;;  %v5140_v36 = vor.u32 %v5139_v35, %v5136_v30 }
 0x420   : > { %v9124_v32 = vld [vmem:[#allocation3 + $0x60] sm:$0xc]  ;;  %v6872_v39 = vrot.slane %v4749_v21, 10  ;;  %v5333_v58 = vrot.slane %v5256_v50, 7  ;;  %7335 = vmatprep.mubr.msk.bf16.mxu1 %vm5461_vm5, %v7563_v48  ;;  %603 = vst [vmem:[#allocation3 + $0x68] sm:$0x3] %v602_v24 }
 0x421   : > { %v643_v13 = vsel %vm8713_vm12, 0, %v642_v29  ;;  %v9132_v54 = vld [vmem:[%s9505_s8 + $0x18] sm:$0x3f]   ;;  %v5114_v0 = vrot.slane %v5113_v20, 4  ;;  %v4148_v3 = vshll.u32 %v3967_v2, 16  ;;  %v646_v31 = vsel %vm8713_vm12, 0, %v645_v37  ;;  %4694 = vrot.lane.b32.xlu0 %v4635_v38, %s7714_s15  ;;  %vm9606_vm12 = vmmov %vm9600_vm4 }
 0x422   : > { %644 = vst [vmem:[#allocation3 + $0x64] sm:$0x6] %v643_v13  ;;  %v9139_v59 = vld [vmem:[%s9505_s8 + $0x28] sm:$0x3f]   ;;  %v4828_v55 = vsel %vm7922_vm14, %v6872_v39, %v4827_v9  ;;  %v6886_v33 = vrot.slane %v5255_v52, 11  ;;  %v4162_v8 = vshll.u32 %v3969_v40, 16 }
 0x423   : > { %v9144_v34 = vld [vmem:[#allocation3 + $0x6c] sm:$0x1]  ;;  %647 = vst [vmem:[#allocation3 + $0x6c] sm:$0x6] %v646_v31  ;;  %4861 = vrot.lane.b32.xlu1 %v4828_v55, %s9566_s16  ;;  %v5132_v12 = vrot.slane %v5131_v14, 4  ;;  %v5143_v41 = vshrl.u32 %v9124_v32, 16  ;;  %v5123_v19 = vsel %vm7945_vm7, %v5114_v0, %v5122_v51 }
 0x424   : > { %v6887_v63 = vrot.slane %v9116_v16, 11  ;;  %v5337_v53 = vrot.slane %v9118_v43, 7  ;;  %v4329_v57 = vrot.slane %v9120_v17, 5  ;;  %v9155_v18 = vld [vmem:[#allocation3 + $0x68] sm:$0xc]  ;;  %vm5474_vm9 = vcmask 1045504  }
 0x425   : > { %v5334_v7 = vsel %vm7934_vm1, %v6886_v33, %v5333_v58  ;;  %v3966_v45 = vld [vmem:[#allocation3 + $0x60] sm:$0xf]  ;;  %v4150_v28 = vrot.slane %v4148_v3, 5  ;;  %v4333_v27 = vrot.slane %v9144_v34, 5  ;;  %7426 = vmatprep.subr.msk.bf16.mxu1 %vm5474_vm9, %v9132_v54  ;;  %7428 = vmatprep.subr.msk.bf16.mxu0 %vm5474_vm9, %v9139_v59  ;;  %v9167_v9 = vrot.slane %v4162_v8, 5  ;;  %s9607_s30 = smov 8  }
 0x426   : > { %v4416_v25 = vld [vmem:[#allocation3 + $0x60] sm:$0xe]  ;;  %4863 = vrot.lane.b32.xlu0 %v4832_v5, %s9566_s16  ;;  %v4139_v29 = vshrl.u32 %v3966_v45, 16  ;;  %v4142_v21 = vshll.u32 %v3966_v45, 16  ;;  %v5141_v2 = vsel %vm7945_vm7, %v5132_v12, %v5140_v36  ;;  %v9172_v47 = vrot.slane %v5143_v41, 6 }
 0x427   : > { %v4637_v10 = vshrl.u32 %v4416_v25, 16  ;;  %v3926_v15 = vld [vmem:[#allocation3 + $0x60] sm:$0xf]  ;;  %5198 = vrot.lane.b32.xlu1 %v5123_v19, %s7715_s22  ;;  %v3968_v48 = vld [vmem:[#allocation3 + $0x68] sm:$0xf]  ;;  %v4640_v20 = vshll.u32 %v4416_v25, 16  ;;  %v5338_v35 = vsel %vm7934_vm1, %v6887_v63, %v5337_v53 }
 0x428   : > { %v5146_v1 = vshll.u32 %v9124_v32, 16  ;;  %3940 = vst.msk [vmem:[#allocation5 + $0x30] sm:$0xf] %vm9606_vm12, %v3926_v15  ;;  %v4141_v50 = vrot.slane %v4139_v29, 4  ;;  %v4144_v60 = vrot.slane %v4142_v21, 5  ;;  %v4153_v40 = vshrl.u32 %v3968_v48, 16 }
 0x429   : > { %v4417_v23 = vld [vmem:[#allocation3 + $0x64] sm:$0x3]  ;;  %v5161_v38 = vshrl.u32 %v9155_v18, 16  ;;  %v4247_v26 = vld [vmem:[#allocation3 + $0x60] sm:$0xe]  ;;  %v4156_v52 = vshll.u32 %v3968_v48, 16 }
 0x42a   : > { %v4639_v30 = vrot.slane %v4637_v10, 5  ;;  %v4642_v37 = vrot.slane %v4640_v20, 6  ;;  %v4646_v14 = vshrl.u32 %v4417_v23, 16  ;;  %5200 = vrot.lane.b32.xlu0 %v5141_v2, %s7715_s22  ;;  %v4145_v16 = vor.u32 %v4144_v60, %v4141_v50  ;;  %v4249_v32 = vld [vmem:[#allocation3 + $0x68] sm:$0xe] }
 0x42b   : > { %v4155_v43 = vrot.slane %v4153_v40, 4  ;;  %v4649_v24 = vshll.u32 %v4417_v23, 16  ;;  %v4418_v39 = vld [vmem:[#allocation3 + $0x68] sm:$0xe]  ;;  %5367 = vrot.lane.b32.xlu1 %v5334_v7, %s7716_s0  ;;  %v4158_v58 = vrot.slane %v4156_v52, 5  ;;  %v5164_v3 = vshll.u32 %v9155_v18, 16 }
 0x42c   : > { %v4643_v13 = vor.u32 %v4642_v37, %v4639_v30  ;;  %v4648_v0 = vrot.slane %v4646_v14, 5  ;;  %v4419_v51 = vld [vmem:[#allocation3 + $0x6c] sm:$0x3]  ;;  %v4146_v31 = vrot.slane %v4145_v16, 4  ;;  %v6860_v55 = vrot.slane %v4247_v26, 9 }
 0x42d   : > { %v4651_v33 = vrot.slane %v4649_v24, 6  ;;  %v4753_v8 = vld [vmem:[#allocation3 + $0x60] sm:$0xc]  ;;  %v4655_v5 = vshrl.u32 %v4418_v39, 16  ;;  %v4159_v12 = vor.u32 %v4158_v58, %v4155_v43  ;;  %v6861_v36 = vrot.slane %v4249_v32, 9  ;;  %v7568_v32 = vld [vmem:[%s9505_s8 + $0x20] sm:$0xff]  }
 0x42e   : > { %v4658_v41 = vshll.u32 %v4418_v39, 16  ;;  %v4923_v63 = vld [vmem:[#allocation3 + $0x64] sm:$0x7]  ;;  %v5148_v53 = vrot.slane %v5146_v1, 7  ;;  %v4151_v19 = vsel %vm7961_vm15, %v4146_v31, %v4150_v28  ;;  %v4644_v7 = vrot.slane %v4643_v13, 4 }
 0x42f   : > { %v4754_v45 = vld [vmem:[#allocation3 + $0x64] sm:$0x3]  ;;  %v4657_v25 = vrot.slane %v4655_v5, 5  ;;  %v4664_v29 = vshrl.u32 %v4419_v51, 16  ;;  %5369 = vrot.lane.b32.xlu1 %v5338_v35, %s7716_s0  ;;  %4190 = vrot.lane.b32.xlu0 %v4151_v19, %s7712_s24  ;;  %v4160_v18 = vrot.slane %v4159_v12, 4  ;;  %v4652_v21 = vor.u32 %v4651_v33, %v4648_v0  ;;  %v9203_v16 = vpop.permute.xlu0 %4345 }
 0x430   : > { %v4660_v10 = vrot.slane %v4658_v41, 6  ;;  %v4667_v15 = vshll.u32 %v4419_v51, 16  ;;  %v3927_v2 = vld [vmem:[#allocation3 + $0x68] sm:$0xf]  ;;  %v4330_v48 = vsel %vm7917_vm13, %v6860_v55, %v4329_v57  ;;  %v5152_v28 = vshrl.u32 %v4923_v63, 16 }
 0x431   : > { %v4666_v20 = vrot.slane %v4664_v29, 5  ;;  %v5155_v1 = vshll.u32 %v4923_v63, 16  ;;  %3941 = vst.msk [vmem:[#allocation5 + $0x34] sm:$0xf] %vm9600_vm4, %v3927_v2  ;;  %v4165_v50 = vsel %vm7961_vm15, %v4160_v18, %v9167_v9  ;;  %v6874_v60 = vrot.slane %v4753_v8, 10 }
 0x432   : > { %v4661_v40 = vor.u32 %v4660_v10, %v4657_v25  ;;  %v4669_v23 = vrot.slane %v4667_v15, 6  ;;  %v4925_v26 = vld [vmem:[#allocation3 + $0x6c] sm:$0x7]  ;;  %v4334_v17 = vsel %vm7917_vm13, %v6861_v36, %v4333_v27  ;;  %v4835_v52 = vrot.slane %v4754_v45, 6  ;;  %v4755_v14 = vld [vmem:[#allocation3 + $0x68] sm:$0xc] }
 0x433   : > { %v5149_v57 = vor.u32 %v5148_v53, %v9172_v47  ;;  %v5163_v30 = vrot.slane %v5161_v38, 6  ;;  %4359 = vrot.lane.b32.xlu1 %v4330_v48, %s9607_s30  ;;  %4192 = vrot.lane.b32.xlu0 %v4165_v50, %s7712_s24  ;;  %v4653_v61 = vsel %vm7985_vm10, %v4644_v7, %v4652_v21  ;;  %v5154_v9 = vrot.slane %v5152_v28, 6  ;;  %v4756_v27 = vld [vmem:[#allocation3 + $0x6c] sm:$0x3]  ;;  %v7567_v47 = vld [vmem:[%s9505_s8 + $0x10] sm:$0xff]   ;;  %v4852_v31 = vpop.permute.xlu0 %4851  ;;  %s431_s24 = sand.u32 1, %s7695_s26  }
 0x434   : > { %v5157_v37 = vrot.slane %v5155_v1, 7  ;;  %v5166_v35 = vrot.slane %v5164_v3, 7  ;;  %v4662_v34 = vrot.slane %v4661_v40, 4  ;;  %v4670_v42 = vor.u32 %v4669_v23, %v4666_v20  ;;  %v5260_v33 = vld [vmem:[#allocation3 + $0x64] sm:$0x7] }
 0x435   : > { %v5170_v43 = vshrl.u32 %v4925_v26, 16  ;;  %v5173_v24 = vshll.u32 %v4925_v26, 16  ;;  %v5476_v38 = vsel %vm5474_vm9, %v9132_v54, 0  ;;  %v6875_v39 = vrot.slane %v4755_v14, 10  ;;  %v5259_v54 = vld [vmem:[#allocation3 + $0x60] sm:$0x8]  ;;  %v4348_v36 = vpop.permute.xlu1 %4347 }
 0x436   : > { %7332 = vmatpush3.bf16.msra.mxu1 %v5476_v38  ;;  %v5712_v58 = vsel %vm5474_vm9, %v9139_v59, 0  ;;  %v4836_v13 = vsel %vm7922_vm14, %v6874_v60, %v4835_v52  ;;  %v5150_v0 = vrot.slane %v5149_v57, 4  ;;  %v5158_v51 = vor.u32 %v5157_v37, %v5154_v9  ;;  %v9224_v59 = vld [vmem:[%s9505_s8 + $0x8] sm:$0x3f]   ;;  %v5261_v18 = vld [vmem:[#allocation3 + $0x68] sm:$0x8] }
 0x437   : > { %4696 = vrot.lane.b32.xlu1 %v4653_v61, %s7714_s15  ;;  %4361 = vrot.lane.b32.xlu0 %v4334_v17, %s9607_s30  ;;  %v4839_v3 = vrot.slane %v4756_v27, 6  ;;  %v4671_v55 = vsel %vm7985_vm10, %v4662_v34, %v4670_v42  ;;  %v5167_v8 = vor.u32 %v5166_v35, %v5163_v30  ;;  %v5172_v5 = vrot.slane %v5170_v43, 6  ;;  %v9229_v41 = vld [vmem:[%s9505_s8 + $0x48] sm:$0x3f]   ;;  %v5358_v53 = vpop.permute.xlu0 %5357  ;;  %v5262_v21 = vld [vmem:[#allocation3 + $0x6c] sm:$0x7] }
 0x438   : > { %v5175_v12 = vrot.slane %v5173_v24, 7  ;;  %7356 = vmatpush3.bf16.msra.mxu0 %v5712_v58  ;;  %7333 = vmatprep.subr.bf16.mxu1 %v7567_v47  ;;  %v6888_v62 = vrot.slane %v5259_v54, 11  ;;  %v5341_v63 = vrot.slane %v5260_v33, 7  ;;  %v5159_v19 = vsel %vm7945_vm7, %v5150_v0, %v5158_v51  ;;  %v7575_v58 = vld [vmem:[%s9505_s8] sm:$0xff]  }
 0x439   : > { %7357 = vmatprep.subr.bf16.mxu0 %v7568_v32  ;;  %v4840_v7 = vsel %vm7922_vm14, %v6875_v39, %v4839_v3  ;;  %v5168_v45 = vrot.slane %v5167_v8, 4  ;;  %v4854_v29 = vpop.permute.xlu1 %4853  ;;  %v6889_v2 = vrot.slane %v5261_v18, 11  ;;  %v5345_v48 = vrot.slane %v5262_v21, 7  ;;  %v7582_v8 = vld [vmem:[%s9505_s8 + $0x38] sm:$0x3f]  }
 0x43a   : > { %7334 = vmatpush3.bf16.msra.mxu1 %v7567_v47  ;;  %v5176_v25 = vor.u32 %v5175_v12, %v5172_v5  ;;  %v5342_v46 = vsel %vm7934_vm1, %v6888_v62, %v5341_v63  ;;  %vm9608_vm13 = vcmask 126048   ;;  %v5587_v54 = vsel %vm5474_vm9, %v9224_v59, 0  ;;  %v7592_v5 = vld [vmem:[%s9505_s8 + $0x68] sm:$0x3f]   ;;  %v7576_v18 = vld [vmem:[#allocation5] sm:$0xff]  }
 0x43b   : > { %4865 = vrot.lane.b32.xlu1 %v4836_v13, %s9566_s16  ;;  %4698 = vrot.lane.b32.xlu0 %v4671_v55, %s7714_s15  ;;  %v4342_v10 = vpop.permute.xlu0 %4341  ;;  %v5346_v1 = vsel %vm7934_vm1, %v6889_v2, %v5345_v48  ;;  %vm9609_vm14 = vmmov %vm9608_vm13  ;;  %v7580_v13 = vld [vmem:[%s9505_s8 + $0x40] sm:$0xff]   ;;  %s6585_s15 = sshll.u32 %s431_s24, 6 }
 0x43c   : > { %7358 = vmatpush3.bf16.msra.mxu0 %v7568_v32  ;;  %7427 = vmatprep.subr.msk.bf16.mxu1 %vm5474_vm9, %v9224_v59  ;;  %v5177_v15 = vsel %vm7945_vm7, %v5168_v45, %v5176_v25  ;;  %vm9610_vm1 = vmmov %vm9608_vm13 }
 0x43d   : > { %7430 = vmatprep.subr.msk.bf16.mxu0 %vm5474_vm9, %v9229_v41  ;;  %v5360_v20 = vpop.permute.xlu1 %5359  ;;  %vm9611_vm7 = vmmov %vm9610_vm1 }
 0x43e   : > { %vm9612_vm15 = vmmov %vm9610_vm1 }
 0x43f   : > { %5202 = vrot.lane.b32.xlu1 %v5159_v19, %s7715_s22  ;;  %4867 = vrot.lane.b32.xlu0 %v4840_v7, %s9566_s16  ;;  %v4848_v28 = vpop.permute.xlu0 %4847  ;;  %vm9613_vm10 = vmmov %vm9610_vm1 }
 0x440   : > { %vm9614_vm8 = vmmov %vm9610_vm1 }
 0x441   : > { %v4344_v50 = vpop.permute.xlu1 %4343  ;;  %vm9615_vm12 = vmmov %vm9610_vm1 }
 0x442   : > { %vm9616_vm4 = vmmov %vm9610_vm1 }
 0x443   : > { %5371 = vrot.lane.b32.xlu1 %v5342_v46, %s7716_s0  ;;  %5204 = vrot.lane.b32.xlu0 %v5177_v15, %s7715_s22  ;;  %v5354_v60 = vpop.permute.xlu0 %5353  ;;  %s9427_s22 = scalar_lea.vmem [#allocation6], %s6585_s15 }
 0x444   : > { %s6519_s23 = sshll.u32 %s9427_s22, 4  ;;  %s9450_s23 = int_to_ptr.vmem [resolvable:$true] %s6519_s23 }
 0x445   : > { %v4850_v40 = vpop.permute.xlu1 %4849  ;;  %s7643_s15 = scalar_lea.vmem %s9450_s23, 1024 }
 0x446   : > { %p7644_p11 = scmp.ne.s32.totalorder %s9450_s23, %s7643_s15 }
 0x447   : > { %5373 = vrot.lane.b32.xlu1 %v5346_v1, %s7716_s0  ;;  %v4177_v23 = vpop.permute.xlu0 %4176  ;;  %v7587_v1 = vld [vmem:[%s9505_s8 + $0x30] sm:$0xff]   ;;  %s7022_s0 = sshll.u32 %s7810_s29, 10  ;;  %s9456_s29 = scalar_lea.sflag [#allocation7], %s431_s24 }
 0x448   : > { %4214 = vst.msk [vmem:[#allocation5 + $0x14] sm:$0xf] %vm4208_vm2, %v4177_v23  ;;  %s9446_s16 = scalar_lea.hbm %s9510_s13, %s7022_s0  ;;  %p7645_p12 = pnand %p7644_p11, %p7827_p5 }
 0x449   : > { %v5356_v11 = vpop.permute.xlu1 %5355  ;;  %4383 = vst.msk [vmem:[#allocation5 + $0x14] sm:$0xf] %vm4377_vm3, %v9203_v16  ;;  %s7717_s0 = smov [#allocation6]  }
 0x44a   : > { %p7646_p13 = pneg %p7645_p12  ;;  %s7647_s20 = sshll.u32 %s7717_s0, 4  ;;  %s7648_s20 = int_to_ptr.vmem [resolvable:$false] %s7647_s20 }
 0x44b   : > { %v4683_v26 = vpop.permute.xlu0 %4682  ;;  %s7649_s21 = scalar_lea.vmem %s7648_s20, 2048  ;;  %p7650_p0 = scmp.lt.s32.totalorder %s9450_s23, %s7648_s20 }
 0x44c   : > { %4720 = vst.msk [vmem:[#allocation5 + $0x14] sm:$0xf] %vm9608_vm13, %v4683_v26  ;;  %v7595_v26 = vld [vmem:[%s9505_s8 + $0x60] sm:$0xff]   ;;  %vm9617_vm13 = vmmov %vm9610_vm1  ;;  %p7651_p1 = scmp.lt.s32.totalorder %s7649_s21, %s7643_s15 }
 0x44d   : > { %v4179_v17 = vpop.permute.xlu1 %4178  ;;  %4889 = vst.msk [vmem:[#allocation5 + $0x14] sm:$0xf] %vm4883_vm6, %v4852_v31  ;;  %v5978_v31 = vsel %vm5474_vm9, %v9229_v41, 0 }
 0x44e   : > { %4215 = vst.msk [vmem:[#allocation5 + $0x18] sm:$0xf] %vm4208_vm2, %v4179_v17  ;;  %p7652_p2 = por %p7651_p1, %p7650_p0 }
 0x44f   : > { %4384 = vst.msk [vmem:[#allocation5 + $0x18] sm:$0xf] %vm4377_vm3, %v4348_v36  ;;  %v5189_v6 = vpop.permute.xlu0 %5188 }
 0x450   : > { %5226 = vst.msk [vmem:[#allocation5 + $0x14] sm:$0xf] %vm5220_vm11, %v5189_v6  ;;  %v7590_v6 = vld [vmem:[%s9505_s8 + $0x58] sm:$0x3f]   ;;  %p7653_p3 = pnand %p7652_p2, %p7646_p13 }
 0x451   : > { %5395 = vst.msk [vmem:[#allocation5 + $0x14] sm:$0xf] %vm5389_vm0, %v5358_v53 }
 0x452   : > { %v4685_v52 = vpop.permute.xlu1 %4684 }
 0x453   : > { %4721 = vst.msk [vmem:[#allocation5 + $0x18] sm:$0xf] %vm9609_vm14, %v4685_v52 }
 0x454   : > { %4890 = vst.msk [vmem:[#allocation5 + $0x18] sm:$0xf] %vm4883_vm6, %v4854_v29 }
 0x455   : > { %v4173_v57 = vpop.permute.xlu0 %4172 }
 0x456   : > { %4212 = vst.msk [vmem:[#allocation5 + $0xc] sm:$0xf] %vm4208_vm2, %v4173_v57  ;;  %v5191_v30 = vpop.permute.xlu1 %5190 }
 0x457   : > { %4381 = vst.msk [vmem:[#allocation5 + $0xc] sm:$0xf] %vm4377_vm3, %v4342_v10 }
 0x458   : > { %5227 = vst.msk [vmem:[#allocation5 + $0x18] sm:$0xf] %vm5220_vm11, %v5191_v30 }
 0x459   : > { %5396 = vst.msk [vmem:[#allocation5 + $0x18] sm:$0xf] %vm5389_vm0, %v5360_v20  ;;  %v4679_v61 = vpop.permute.xlu0 %4678 }
 0x45a   : > { %4718 = vst.msk [vmem:[#allocation5 + $0xc] sm:$0xf] %vm9610_vm1, %v4679_v61  ;;  %v4354_v9 = vpop.permute.xlu1 %4353 }
 0x45b   : > { %4887 = vst.msk [vmem:[#allocation5 + $0xc] sm:$0xf] %vm4883_vm6, %v4848_v28  ;;  %v5845_v28 = vsel %vm5474_vm9, %v7582_v8, 0 }
 0x45d   : > { %v5185_v37 = vpop.permute.xlu0 %5184 }
 0x45e   : > { %5224 = vst.msk [vmem:[#allocation5 + $0xc] sm:$0xf] %vm5220_vm11, %v5185_v37  ;;  %v4860_v14 = vpop.permute.xlu1 %4859 }
 0x45f   : > { %5393 = vst.msk [vmem:[#allocation5 + $0xc] sm:$0xf] %vm5389_vm0, %v5354_v60 }
 0x460   : > { %v7571_v3 = vld [vmem:[#allocation5 + $0x14] sm:$0xff]  }
 0x461   : > { %v4350_v35 = vpop.permute.xlu0 %4349 }
 0x462   : > { %v4175_v16 = vpop.permute.xlu1 %4174 }
 0x463   : > { %4213 = vst.msk [vmem:[#allocation5 + $0x10] sm:$0xf] %vm4208_vm2, %v4175_v16  ;;  %v7597_v16 = vld [vmem:[%s9505_s8 + $0x50] sm:$0xff]  }
 0x464   : > { %4382 = vst.msk [vmem:[#allocation5 + $0x10] sm:$0xf] %vm4377_vm3, %v4344_v50 }
 0x465   : > { %v4856_v34 = vpop.permute.xlu0 %4855 }
 0x466   : > { %v4681_v42 = vpop.permute.xlu1 %4680  ;;  %v7564_v27 = vld [vmem:[#allocation5 + $0x8] sm:$0xff]  }
 0x467   : > { %4719 = vst.msk [vmem:[#allocation5 + $0x10] sm:$0xf] %vm9611_vm7, %v4681_v42  ;;  %7359 = vmatprep.mubr.msk.bf16.mxu0 %vm5461_vm5, %v7564_v27  ;;  %v7581_v20 = vld [vmem:[#allocation5 + $0x8] sm:$0xff]   ;;  %v6111_v42 = vsel %vm5474_vm9, %v7590_v6, 0 }
 0x468   : > { %4888 = vst.msk [vmem:[#allocation5 + $0x10] sm:$0xf] %vm4883_vm6, %v4850_v40 }
 0x469   : > { %v5362_v43 = vpop.permute.xlu0 %5361 }
 0x46a   : > { %v5187_v24 = vpop.permute.xlu1 %5186 }
 0x46b   : > { %5225 = vst.msk [vmem:[#allocation5 + $0x10] sm:$0xf] %vm5220_vm11, %v5187_v24 }
 0x46c   : > { %5394 = vst.msk [vmem:[#allocation5 + $0x10] sm:$0xf] %vm5389_vm0, %v5356_v11  ;;  %v6244_v11 = vsel %vm5474_vm9, %v7592_v5, 0 }
 0x46d   : > { %v4185_v47 = vpop.permute.xlu0 %4184 }
 0x46e   : > { %4218 = vst.msk [vmem:[#allocation5 + $0x24] sm:$0xf] %vm4208_vm2, %v4185_v47  ;;  %v4352_v38 = vpop.permute.xlu1 %4351 }
 0x46f   : > { %4387 = vst.msk [vmem:[#allocation5 + $0x24] sm:$0xf] %vm4377_vm3, %v4354_v9 }
 0x471   : > { %v4691_v32 = vpop.permute.xlu0 %4690 }
 0x472   : > { %4724 = vst.msk [vmem:[#allocation5 + $0x24] sm:$0xf] %vm9612_vm15, %v4691_v32  ;;  %v4858_v39 = vpop.permute.xlu1 %4857  ;;  %v7605_v32 = vld [vmem:[%s9508_s11] sm:$0xff]  }
 0x473   : > { %4893 = vst.msk [vmem:[#allocation5 + $0x24] sm:$0xf] %vm4883_vm6, %v4860_v14  ;;  %v7569_v0 = vld [vmem:[#allocation5 + $0xc] sm:$0xff]  }
 0x474   : > { %v7570_v51 = vld [vmem:[#allocation5 + $0x10] sm:$0xff]   ;;  %7336 = vmatmul.mubr.msk.bf16.vlgmr.msra.gmra.mxu1 %vm5461_vm5, %v7569_v0 }
 0x475   : > { %v4181_v55 = vpop.permute.xlu0 %4180  ;;  %7360 = vmatmul.mubr.msk.bf16.vlgmr.msra.gmra.mxu0 %vm5461_vm5, %v7570_v51  ;;  %7339 = vmatprep.mubr.msk.bf16.mxu1 %vm5461_vm5, %v7571_v3  ;;  %v7579_v15 = vld [vmem:[#allocation5 + $0x10] sm:$0xff]  }
 0x476   : > { %4216 = vst.msk [vmem:[#allocation5 + $0x1c] sm:$0xf] %vm4208_vm2, %v4181_v55  ;;  %v5364_v33 = vpop.permute.xlu1 %5363  ;;  %7344 = vmatpush3.bf16.msra.mxu1 %v5587_v54  ;;  %7380 = vmatpush3.bf16.msra.mxu0 %v5978_v31  ;;  %v7583_v50 = vld [vmem:[#allocation5 + $0x10] sm:$0xff]  }
 0x477   : > { %4385 = vst.msk [vmem:[#allocation5 + $0x1c] sm:$0xf] %vm4377_vm3, %v4350_v35  ;;  %7345 = vmatprep.subr.bf16.mxu1 %v7575_v58  ;;  %7381 = vmatprep.subr.bf16.mxu0 %v7580_v13  ;;  %v7588_v61 = vld [vmem:[#allocation5 + $0xc] sm:$0xff]   ;;  %v7598_v0 = vld [vmem:[#allocation5 + $0x14] sm:$0xff]  }
 0x479   : > { %v4687_v12 = vpop.permute.xlu0 %4686 }
 0x47a   : > { %4722 = vst.msk [vmem:[#allocation5 + $0x1c] sm:$0xf] %vm9613_vm10, %v4687_v12  ;;  %v4183_v59 = vpop.permute.xlu1 %4182  ;;  %7346 = vmatpush3.bf16.msra.mxu1 %v7575_v58  ;;  %7382 = vmatpush3.bf16.msra.mxu0 %v7580_v13 }
 0x47b   : > { %4891 = vst.msk [vmem:[#allocation5 + $0x1c] sm:$0xf] %vm4883_vm6, %v4856_v34  ;;  %7429 = vmatprep.subr.msk.bf16.mxu1 %vm5474_vm9, %v7582_v8  ;;  %7432 = vmatprep.subr.msk.bf16.mxu0 %vm5474_vm9, %v7592_v5  ;;  %v7589_v34 = vld [vmem:[#allocation5 + $0x14] sm:$0xff]  }
 0x47c   : > { %4217 = vst.msk [vmem:[#allocation5 + $0x20] sm:$0xf] %vm4208_vm2, %v4183_v59 }
 0x47d   : > { %4386 = vst.msk [vmem:[#allocation5 + $0x20] sm:$0xf] %vm4377_vm3, %v4352_v38  ;;  %v5193_v36 = vpop.permute.xlu0 %5192 }
 0x47e   : > { %5228 = vst.msk [vmem:[#allocation5 + $0x1c] sm:$0xf] %vm5220_vm11, %v5193_v36  ;;  %v9619_v36 = vpack.c.bf16 %v8084_v22, %v8053_v56 }
 0x47f   : > { %v4689_v41 = vpop.permute.xlu1 %4688  ;;  %5397 = vst.msk [vmem:[#allocation5 + $0x1c] sm:$0xf] %vm5389_vm0, %v5362_v43 }
 0x480   : > { %4723 = vst.msk [vmem:[#allocation5 + $0x20] sm:$0xf] %vm9614_vm8, %v4689_v41 }
 0x481   : > { %4892 = vst.msk [vmem:[#allocation5 + $0x20] sm:$0xf] %vm4883_vm6, %v4858_v39 }
 0x482   : > { %v5197_v62 = vpop.permute.xlu0 %5196 }
 0x483   : > { %5230 = vst.msk [vmem:[#allocation5 + $0x24] sm:$0xf] %vm5220_vm11, %v5197_v62  ;;  %v5195_v63 = vpop.permute.xlu1 %5194  ;;  %v9621_v62 = vpack.c.bf16 %v8061_v4, %v8045_v49 }
 0x484   : > { %5229 = vst.msk [vmem:[#allocation5 + $0x20] sm:$0xf] %vm5220_vm11, %v5195_v63  ;;  %v9623_v63 = vld [vmem:[#allocation10_spill] sm:$0xff] }
 0x485   : > { %5398 = vst.msk [vmem:[#allocation5 + $0x20] sm:$0xf] %vm5389_vm0, %v5364_v33 }
 0x486   : > { %v7573_v7 = vld [vmem:[#allocation5 + $0x18] sm:$0xff]  }
 0x487   : > { %v4187_v53 = vpop.permute.xlu0 %4186  ;;  %v5366_v19 = vpop.permute.xlu1 %5365  ;;  %7363 = vmatprep.mubr.msk.bf16.mxu0 %vm5461_vm5, %v7573_v7  ;;  %v7584_v23 = vld [vmem:[#allocation5 + $0x18] sm:$0xff]  }
 0x488   : > { %4219 = vst.msk [vmem:[#allocation5 + $0x28] sm:$0xf] %vm4208_vm2, %v4187_v53  ;;  %v7586_v30 = vld [vmem:[#allocation5 + $0x18] sm:$0xff]   ;;  %v9624_v53 = vpack.c.bf16 %v8133_v44, %v9623_v63 }
 0x489   : > { %5399 = vst.msk [vmem:[#allocation5 + $0x24] sm:$0xf] %vm5389_vm0, %v5366_v19  ;;  %v7594_v38 = vld [vmem:[#allocation5 + $0x18] sm:$0xff]   ;;  %v9626_v19 = vld [vmem:[#allocation11_spill] sm:$0xff] }
 0x48a   : > { %v9627_v7 = vld [vmem:[#allocation9_spill] sm:$0xff] }
 0x48b   : > { %v4189_v45 = vpop.permute.xlu0 %4188  ;;  %v4356_v25 = vpop.permute.xlu1 %4355 }
 0x48c   : > { %4220 = vst.msk [vmem:[#allocation5 + $0x2c] sm:$0xf] %vm4208_vm2, %v4189_v45  ;;  %v7574_v29 = vld [vmem:[#allocation5 + $0x1c] sm:$0xff]   ;;  %v9628_v45 = vpack.c.bf16 %v9626_v19, %v9627_v7 }
 0x48d   : > { %4388 = vst.msk [vmem:[#allocation5 + $0x28] sm:$0xf] %vm4377_vm3, %v4356_v25  ;;  %7340 = vmatmul.mubr.msk.bf16.gmra.mxu1 %vm5461_vm5, %v7574_v29  ;;  %v7591_v27 = vld [vmem:[#allocation5 + $0x1c] sm:$0xff]  }
 0x48e   : > { %7347 = vmatprep.mubr.msk.bf16.mxu1 %vm5461_vm5, %v7576_v18  ;;  %v7601_v8 = vld [vmem:[#allocation5 + $0x1c] sm:$0xff]  }
 0x48f   : > { %v4358_v21 = vpop.permute.xlu0 %4357  ;;  %v4693_v10 = vpop.permute.xlu1 %4692 }
 0x490   : > { %4389 = vst.msk [vmem:[#allocation5 + $0x2c] sm:$0xf] %vm4377_vm3, %v4358_v21  ;;  %v7578_v46 = vld [vmem:[#allocation5 + $0x20] sm:$0xff]  }
 0x491   : > { %4725 = vst.msk [vmem:[#allocation5 + $0x28] sm:$0xf] %vm9615_vm12, %v4693_v10  ;;  %7364 = vmatmul.mubr.msk.bf16.gmra.mxu0 %vm5461_vm5, %v7578_v46  ;;  %v7585_v17 = vld [vmem:[#allocation5 + $0x20] sm:$0xff]  }
 0x492   : > { %7383 = vmatprep.mubr.msk.bf16.mxu0 %vm5461_vm5, %v7579_v15  ;;  %v7599_v54 = vld [vmem:[#allocation5 + $0x20] sm:$0xff]  }
 0x493   : > { %v4695_v2 = vpop.permute.xlu0 %4694 }
 0x494   : > { %4726 = vst.msk [vmem:[#allocation5 + $0x2c] sm:$0xf] %vm9616_vm4, %v4695_v2 }
 0x495   : > { %v4862_v48 = vpop.permute.xlu1 %4861  ;;  %7348 = vmatmul.mubr.msk.bf16.vlgmr.msra.gmra.mxu1 %vm5461_vm5, %v7581_v20 }
 0x496   : > { %4894 = vst.msk [vmem:[#allocation5 + $0x28] sm:$0xf] %vm4883_vm6, %v4862_v48  ;;  %7351 = vmatprep.mubr.msk.bf16.mxu1 %vm5461_vm5, %v7583_v50  ;;  %7368 = vmatpush3.bf16.msra.mxu1 %v5845_v28 }
 0x497   : > { %7369 = vmatprep.subr.bf16.mxu1 %v7587_v1 }
 0x498   : > { %v4864_v60 = vpop.permute.xlu0 %4863 }
 0x499   : > { %v5199_v40 = vpop.permute.xlu1 %5198  ;;  %4895 = vst.msk [vmem:[#allocation5 + $0x2c] sm:$0xf] %vm4883_vm6, %v4864_v60  ;;  %7384 = vmatmul.mubr.msk.bf16.vlgmr.msra.gmra.mxu0 %vm5461_vm5, %v7584_v23 }
 0x49a   : > { %5231 = vst.msk [vmem:[#allocation5 + $0x28] sm:$0xf] %vm5220_vm11, %v5199_v40  ;;  %7387 = vmatprep.mubr.msk.bf16.mxu0 %vm5461_vm5, %v7585_v17  ;;  %7404 = vmatpush3.bf16.msra.mxu0 %v6244_v11 }
 0x49b   : > { %7370 = vmatpush3.bf16.msra.mxu1 %v7587_v1  ;;  %7405 = vmatprep.subr.bf16.mxu0 %v7595_v26 }
 0x49c   : > { %v5201_v52 = vpop.permute.xlu0 %5200  ;;  %7431 = vmatprep.subr.msk.bf16.mxu1 %vm5474_vm9, %v7590_v6 }
 0x49d   : > { %v5368_v57 = vpop.permute.xlu1 %5367  ;;  %5232 = vst.msk [vmem:[#allocation5 + $0x2c] sm:$0xf] %vm5220_vm11, %v5201_v52  ;;  %7352 = vmatmul.mubr.msk.bf16.gmra.mxu1 %vm5461_vm5, %v7586_v30 }
 0x49e   : > { %5400 = vst.msk [vmem:[#allocation5 + $0x28] sm:$0xf] %vm5389_vm0, %v5368_v57  ;;  %7406 = vmatpush3.bf16.msra.mxu0 %v7595_v26  ;;  %7371 = vmatprep.mubr.msk.bf16.mxu1 %vm5461_vm5, %v7588_v61 }
 0x4a1   : > { %v5370_v9 = vpop.permute.xlu1 %5369  ;;  %v4191_v37 = vpop.permute.xlu0 %4190 }
 0x4a2   : > { %5401 = vst.msk [vmem:[#allocation5 + $0x2c] sm:$0xf] %vm5389_vm0, %v5370_v9 }
 0x4a3   : > { %4221 = vst.msk [vmem:[#allocation5 + $0x30] sm:$0xf] %vm4208_vm2, %v4191_v37 }
 0x4a5   : > { %v4360_v14 = vpop.permute.xlu1 %4359  ;;  %v4193_v35 = vpop.permute.xlu0 %4192  ;;  %7372 = vmatmul.mubr.msk.bf16.vlgmr.msra.gmra.mxu1 %vm5461_vm5, %v7589_v34  ;;  %v7596_v13 = vld [vmem:[#allocation5 + $0x24] sm:$0xff]  }
 0x4a6   : > { %4390 = vst.msk [vmem:[#allocation5 + $0x30] sm:$0xf] %vm4377_vm3, %v4360_v14  ;;  %7375 = vmatprep.mubr.msk.bf16.mxu1 %vm5461_vm5, %v7591_v27  ;;  %7392 = vmatpush3.bf16.msra.mxu1 %v6111_v42  ;;  %v7602_v5 = vld [vmem:[#allocation5 + $0x24] sm:$0xff]  }
 0x4a7   : > { %4222 = vst.msk [vmem:[#allocation5 + $0x34] sm:$0xf] %vm4208_vm2, %v4193_v35  ;;  %7393 = vmatprep.subr.bf16.mxu1 %v7597_v16  ;;  %vm9618_vm2 = vmmov %vm9610_vm1 }
 0x4a9   : > { %v4697_v43 = vpop.permute.xlu1 %4696  ;;  %v4362_v24 = vpop.permute.xlu0 %4361  ;;  %v7593_v47 = vld [vmem:[#allocation5 + $0x28] sm:$0xff]  }
 0x4aa   : > { %4727 = vst.msk [vmem:[#allocation5 + $0x30] sm:$0xf] %vm9617_vm13, %v4697_v43  ;;  %7388 = vmatmul.mubr.msk.bf16.gmra.mxu0 %vm5461_vm5, %v7593_v47  ;;  %7394 = vmatpush3.bf16.msra.mxu1 %v7597_v16  ;;  %v7600_v31 = vld [vmem:[#allocation5 + $0x28] sm:$0xff]  }
 0x4ab   : > { %4391 = vst.msk [vmem:[#allocation5 + $0x34] sm:$0xf] %vm4377_vm3, %v4362_v24  ;;  %7407 = vmatprep.mubr.msk.bf16.mxu0 %vm5461_vm5, %v7594_v38  ;;  %7415 = vmatprep.subr.bf16.mxu1 %v7605_v32  ;;  %vm9620_vm3 = vcmask 130048  }
 0x4ad   : > { %v4866_v39 = vpop.permute.xlu1 %4865  ;;  %v4699_v58 = vpop.permute.xlu0 %4698  ;;  %7376 = vmatmul.mubr.msk.bf16.gmra.mxu1 %vm5461_vm5, %v7596_v13 }
 0x4ae   : > { %4896 = vst.msk [vmem:[#allocation5 + $0x30] sm:$0xf] %vm4883_vm6, %v4866_v39  ;;  %7395 = vmatprep.mubr.msk.bf16.mxu1 %vm5461_vm5, %v7598_v0 }
 0x4af   : > { %4728 = vst.msk [vmem:[#allocation5 + $0x34] sm:$0xf] %vm9618_vm2, %v4699_v58 }
 0x4b1   : > { %v5203_v51 = vpop.permute.xlu1 %5202  ;;  %v4868_v3 = vpop.permute.xlu0 %4867 }
 0x4b2   : > { %5233 = vst.msk [vmem:[#allocation5 + $0x30] sm:$0xf] %vm5220_vm11, %v5203_v51  ;;  %7408 = vmatmul.mubr.msk.bf16.vlgmr.msra.gmra.mxu0 %vm5461_vm5, %v7599_v54 }
 0x4b3   : > { %4897 = vst.msk [vmem:[#allocation5 + $0x34] sm:$0xf] %vm4883_vm6, %v4868_v3  ;;  %7411 = vmatprep.mubr.msk.bf16.mxu0 %vm5461_vm5, %v7600_v31  ;;  %vm9622_vm6 = vmmov %vm9620_vm3 }
 0x4b5   : > { %v5372_v55 = vpop.permute.xlu1 %5371  ;;  %v5205_v33 = vpop.permute.xlu0 %5204  ;;  %7396 = vmatmul.mubr.msk.bf16.vlgmr.msra.gmra.mxu1 %vm5461_vm5, %v7601_v8 }
 0x4b6   : > { %5402 = vst.msk [vmem:[#allocation5 + $0x30] sm:$0xf] %vm5389_vm0, %v5372_v55  ;;  %7399 = vmatprep.mubr.msk.bf16.mxu1 %vm5461_vm5, %v7602_v5  ;;  %7416 = vmatpush3.bf16.msra.mxu1 %v7605_v32 }
 0x4b7   : > { %5234 = vst.msk [vmem:[#allocation5 + $0x34] sm:$0xf] %vm5220_vm11, %v5205_v33 }
 0x4b9   : > { %v5374_v12 = vpop.permute.xlu1 %5373 }
 0x4ba   : > { %5403 = vst.msk [vmem:[#allocation5 + $0x34] sm:$0xf] %vm5389_vm0, %v5374_v12  ;;  %vm9625_vm0 = vmmov %vm9620_vm3 }
 0x4bb   : > { %vm9629_vm11 = vmmov %vm9625_vm0 }
 0x4bc   : > { %vm9631_vm9 = vmmov %vm9625_vm0 }
 0x4bd   : > { %v7603_v59 = vld [vmem:[#allocation5 + $0x2c] sm:$0xff]   ;;  %vm9632_vm14 = vmmov %vm9625_vm0 }
 0x4be   : > { %7400 = vmatmul.mubr.msk.bf16.gmra.mxu1 %vm5461_vm5, %v7603_v59  ;;  %vm9633_vm1 = vmmov %vm9625_vm0 }
 0x4bf   : > { %7417 = vmatprep.mubr.msk.bf16.mxu1 %vm9620_vm3, %v9619_v36  ;;  %vm9634_vm7 = vmmov %vm9625_vm0 }
 0x4c0   : > { %vm9635_vm15 = vmmov %vm9625_vm0 }
 0x4c1   : > { %v7604_v41 = vld [vmem:[#allocation5 + $0x30] sm:$0xff]   ;;  %vm9636_vm10 = vmmov %vm9625_vm0 }
 0x4c2   : > { %7412 = vmatmul.mubr.msk.bf16.gmra.mxu0 %vm5461_vm5, %v7604_v41  ;;  %vm9630_vm5 = vmmov %vm9625_vm0 }
 0x4c3   : > { %vm9637_vm8 = vmmov %vm9625_vm0 }
 0x4c6   : > { %7418 = vmatmul.mubr.msk.bf16.vlgmr.msra.gmra.mxu1 %vm9622_vm6, %v9621_v62 }
 0x4c7   : > { %7421 = vmatprep.mubr.msk.bf16.mxu1 %vm9625_vm0, %v9624_v53 }
 0x4ce   : > { %7422 = vmatmul.mubr.msk.bf16.gmra.mxu1 %vm9629_vm11, %v9628_v45  ;;  %v9406_v45 = vld [vmem:[%s9506_s9] ss:$0 sm:$0xff] }
 0x534   : > { %v7337_v56 = vpop.f32.mrf.mxu1 }
 0x535   : > { %v7361_v22 = vpop.f32.mrf.mxu0 }
 0x536   : > { %v5512_v25 = vpop.f32.mrf.mxu1 }
 0x537   : > { %v5748_v29 = vpop.f32.mrf.mxu0 }
 0x538   : > { %v7338_v18 = vpop.f32.mrf.mxu1 }
 0x539   : > { %v7362_v21 = vpop.f32.mrf.mxu0 }
 0x53a   : > { %v5515_v10 = vpop.f32.mrf.mxu1 }
 0x53b   : > { %v5751_v4 = vpop.f32.mrf.mxu0 }
 0x54d   : > { %v7341_v49 = vpop.f32.mrf.mxu1 }
 0x54f   : > { %v5528_v46 = vpop.f32.mrf.mxu1 }
 0x551   : > { %v7365_v15 = vpop.f32.mrf.mxu0  ;;  %v7342_v2 = vpop.f32.mrf.mxu1 }
 0x553   : > { %v5764_v44 = vpop.f32.mrf.mxu0  ;;  %v5531_v48 = vpop.f32.mrf.mxu1 }
 0x555   : > { %v7366_v20 = vpop.f32.mrf.mxu0  ;;  %v7349_v28 = vpop.f32.mrf.mxu1 }
 0x556   : > { %v5632_v35 = vadd.f32 %v7349_v28, %v7337_v56 }
 0x557   : > { %v9399_v1 = vpop.f32.mrf.mxu0  ;;  %v5623_v50 = vpop.f32.mrf.mxu1 }
 0x558   : > { %v5624_v42 = vadd.f32 %v5623_v50, %v5512_v25  ;;  %v5781_v47 = vadd.f32 %v7361_v22, %v5632_v35 }
 0x559   : > { %v7350_v60 = vpop.f32.mrf.mxu1  ;;  %v7385_v40 = vpop.f32.mrf.mxu0 }
 0x55a   : > { %v5635_v24 = vadd.f32 %v7350_v60, %v7338_v18  ;;  %v5779_v13 = vadd.f32 %v5748_v29, %v5624_v42 }
 0x55b   : > { %v5626_v23 = vpop.f32.mrf.mxu1  ;;  %v6014_v26 = vpop.f32.mrf.mxu0 }
 0x55c   : > { %v5627_v39 = vadd.f32 %v5626_v23, %v5515_v10  ;;  %v5782_v54 = vadd.f32 %v7362_v21, %v5635_v24 }
 0x55d   : > { %v7353_v11 = vpop.f32.mrf.mxu1  ;;  %v7386_v52 = vpop.f32.mrf.mxu0 }
 0x55e   : > { %v5648_v31 = vadd.f32 %v7353_v11, %v7341_v49  ;;  %v5780_v8 = vadd.f32 %v5751_v4, %v5627_v39  ;;  %v6985_v4 = vld [vmem:[%s9507_s10] ss:$0 sm:$0xff] }
 0x55f   : > { %v5639_v17 = vpop.f32.mrf.mxu1  ;;  %v6017_v61 = vpop.f32.mrf.mxu0 }
 0x560   : > { %v5640_v12 = vadd.f32 %v5639_v17, %v5528_v46  ;;  %v5785_v7 = vadd.f32 %v7365_v15, %v5648_v31 }
 0x561   : > { %v7354_v6 = vpop.f32.mrf.mxu1 }
 0x562   : > { %v5651_v59 = vadd.f32 %v7354_v6, %v7342_v2  ;;  %v5783_v21 = vadd.f32 %v5764_v44, %v5640_v12 }
 0x563   : > { %v5642_v57 = vpop.f32.mrf.mxu1 }
 0x564   : > { %v5643_v19 = vadd.f32 %v5642_v57, %v5531_v48  ;;  %v5786_v10 = vadd.f32 %v7366_v20, %v5651_v59 }
 0x565   : > { %v7373_v30 = vpop.f32.mrf.mxu1 }
 0x566   : > { %v5914_v58 = vadd.f32 %v7373_v30, %v5781_v47 }
 0x567   : > { %v5881_v9 = vpop.f32.mrf.mxu1 }
 0x568   : > { %v5912_v3 = vadd.f32 %v5881_v9, %v5779_v13  ;;  %v6047_v5 = vadd.f32 %v7385_v40, %v5914_v58  ;;  %v5784_v40 = vadd.f32 %v9399_v1, %v5643_v19 }
 0x569   : > { %v7374_v14 = vpop.f32.mrf.mxu1 }
 0x56a   : > { %v7389_v37 = vpop.f32.mrf.mxu0  ;;  %v5915_v33 = vadd.f32 %v7374_v14, %v5782_v54  ;;  %v6045_v53 = vadd.f32 %v6014_v26, %v5912_v3 }
 0x56b   : > { %v5884_v34 = vpop.f32.mrf.mxu1 }
 0x56c   : > { %v6030_v16 = vpop.f32.mrf.mxu0  ;;  %v5913_v62 = vadd.f32 %v5884_v34, %v5780_v8  ;;  %v6048_v29 = vadd.f32 %v7386_v52, %v5915_v33 }
 0x56d   : > { %v7377_v43 = vpop.f32.mrf.mxu1 }
 0x56e   : > { %v7390_v27 = vpop.f32.mrf.mxu0  ;;  %v5918_v18 = vadd.f32 %v7377_v43, %v5785_v7  ;;  %v6046_v28 = vadd.f32 %v6017_v61, %v5913_v62 }
 0x56f   : > { %v5897_v32 = vpop.f32.mrf.mxu1 }
 0x570   : > { %v9401_v38 = vpop.f32.mrf.mxu0  ;;  %v5916_v50 = vadd.f32 %v5897_v32, %v5783_v21  ;;  %v6051_v52 = vadd.f32 %v7389_v37, %v5918_v18 }
 0x571   : > { %v7378_v51 = vpop.f32.mrf.mxu1 }
 0x572   : > { %v7409_v0 = vpop.f32.mrf.mxu0  ;;  %v5919_v60 = vadd.f32 %v7378_v51, %v5786_v10  ;;  %v6049_v34 = vadd.f32 %v6030_v16, %v5916_v50 }
 0x573   : > { %v5900_v55 = vpop.f32.mrf.mxu1 }
 0x574   : > { %v6280_v36 = vpop.f32.mrf.mxu0  ;;  %v5917_v17 = vadd.f32 %v5900_v55, %v5784_v40  ;;  %v6052_v43 = vadd.f32 %v7390_v27, %v5919_v60 }
 0x575   : > { %v7397_v41 = vpop.f32.mrf.mxu1 }
 0x576   : > { %v6180_v63 = vadd.f32 %v7397_v41, %v6047_v5  ;;  %v7410_v49 = vpop.f32.mrf.mxu0  ;;  %v6050_v37 = vadd.f32 %v9401_v38, %v5917_v17 }
 0x577   : > { %v6147_v56 = vpop.f32.mrf.mxu1 }
 0x578   : > { %v6313_v22 = vadd.f32 %v7409_v0, %v6180_v63  ;;  %v6178_v25 = vadd.f32 %v6147_v56, %v6045_v53  ;;  %v6283_v6 = vpop.f32.mrf.mxu0 }
 0x579   : > { %v7398_v46 = vpop.f32.mrf.mxu1 }
 0x57a   : > { %v6328_v15 = vmul.f32 %v9406_v45, %v6313_v22  ;;  %v6311_v2 = vadd.f32 %v6280_v36, %v6178_v25  ;;  %v6181_v48 = vadd.f32 %v7398_v46, %v6048_v29 }
 0x57b   : > { %v6150_v23 = vpop.f32.mrf.mxu1 }
 0x57c   : > { %v6343_v11 = vadd.f32 %v6985_v4, %v6328_v15  ;;  %v6326_v44 = vmul.f32 %v9406_v45, %v6311_v2  ;;  %v6314_v20 = vadd.f32 %v7410_v49, %v6181_v48  ;;  %v6179_v26 = vadd.f32 %v6150_v23, %v6046_v28 }
 0x57e   : > { %v7401_v57 = vpop.f32.mrf.mxu1  ;;  %v6988_v30 = vmul.f32 -1.442695, %v6343_v11  ;;  %v6341_v9 = vadd.f32 %v6985_v4, %v6326_v44  ;;  %v6329_v14 = vmul.f32 %v9406_v45, %v6314_v20  ;;  %v6312_v35 = vadd.f32 %v6283_v6, %v6179_v26  ;;  %v6994_v11 = vld [vmem:[%s9509_s12] ss:$0 sm:$0xff] }
 0x57f   : > { %v6184_v61 = vadd.f32 %v7401_v57, %v6051_v52 }
 0x580   : > { %v6163_v42 = vpop.f32.mrf.mxu1  ;;  %7606 = vpow2.f32 %v6988_v30  ;;  %v6986_v1 = vmul.f32 -1.442695, %v6341_v9  ;;  %v6344_v24 = vadd.f32 %v6985_v4, %v6329_v14  ;;  %v6327_v47 = vmul.f32 %v9406_v45, %v6312_v35 }
 0x581   : > { %v6182_v39 = vadd.f32 %v6163_v42, %v6049_v34 }
 0x582   : > { %v7413_v32 = vpop.f32.mrf.mxu0  ;;  %v7402_v13 = vpop.f32.mrf.mxu1  ;;  %7608 = vpow2.f32 %v6986_v1  ;;  %v6989_v0 = vmul.f32 -1.442695, %v6344_v24  ;;  %v6342_v51 = vadd.f32 %v6985_v4, %v6327_v47 }
 0x583   : > { %v6317_v58 = vadd.f32 %v7413_v32, %v6184_v61  ;;  %v6185_v3 = vadd.f32 %v7402_v13, %v6052_v43 }
 0x584   : > { %v6296_v54 = vpop.f32.mrf.mxu0  ;;  %v6166_v27 = vpop.f32.mrf.mxu1  ;;  %7610 = vpow2.f32 %v6989_v0  ;;  %v6987_v55 = vmul.f32 -1.442695, %v6342_v51 }
 0x585   : > { %v6332_v16 = vmul.f32 %v9406_v45, %v6317_v58  ;;  %v6315_v31 = vadd.f32 %v6296_v54, %v6182_v39  ;;  %v6183_v33 = vadd.f32 %v6166_v27, %v6050_v37 }
 0x586   : > { %v7414_v8 = vpop.f32.mrf.mxu0  ;;  %7612 = vpow2.f32 %v6987_v55  ;;  %v7419_v25 = vpop.f32.mrf.mxu1 }
 0x587   : > { %v6347_v5 = vadd.f32 %v6985_v4, %v6332_v16  ;;  %v6330_v12 = vmul.f32 %v9406_v45, %v6315_v31  ;;  %v6318_v59 = vadd.f32 %v7414_v8, %v6185_v3  ;;  %v6467_v17 = vadd.f32 %v7419_v25, %v6994_v11 }
 0x588   : > { %v6299_v36 = vpop.f32.mrf.mxu0  ;;  %v6458_v46 = vpop.f32.mrf.mxu1 }
 0x589   : > { %v6992_v38 = vmul.f32 -1.442695, %v6347_v5  ;;  %v6345_v41 = vadd.f32 %v6985_v4, %v6330_v12  ;;  %v6333_v62 = vmul.f32 %v9406_v45, %v6318_v59  ;;  %v6316_v63 = vadd.f32 %v6299_v36, %v6183_v33 }
 0x58a   : > { %v7420_v28 = vpop.f32.mrf.mxu1  ;;  %v6459_v9 = vadd.f32 %v6994_v11, %v6458_v46 }
 0x58b   : > { %7614 = vpow2.f32 %v6992_v38  ;;  %v6990_v53 = vmul.f32 -1.442695, %v6345_v41  ;;  %v6348_v19 = vadd.f32 %v6985_v4, %v6333_v62  ;;  %v6331_v7 = vmul.f32 %v9406_v45, %v6316_v63 }
 0x58c   : > { %v6461_v40 = vpop.f32.mrf.mxu1  ;;  %v6470_v61 = vadd.f32 %v7420_v28, %v6994_v11 }
 0x58d   : > { %7616 = vpow2.f32 %v6990_v53  ;;  %v6993_v56 = vmul.f32 -1.442695, %v6348_v19  ;;  %v6346_v22 = vadd.f32 %v6985_v4, %v6331_v7  ;;  %v7607_v29 = vpop.eup %7606  ;;  %v6462_v1 = vadd.f32 %v6994_v11, %v6461_v40 }
 0x58e   : > { %v6375_v21 = vadd.f32 1.0, %v7607_v29  ;;  %v7423_v6 = vpop.f32.mrf.mxu1 }
 0x58f   : > { %7618 = vpow2.f32 %v6993_v56  ;;  %v6991_v18 = vmul.f32 -1.442695, %v6346_v22  ;;  %v7609_v10 = vpop.eup %7608  ;;  %v6483_v39 = vadd.f32 %v7423_v6, %v6994_v11 }
 0x590   : > { %v6373_v49 = vadd.f32 1.0, %v7609_v10  ;;  %v6474_v34 = vpop.f32.mrf.mxu1 }
 0x591   : > { %7620 = vpow2.f32 %v6991_v18  ;;  %v7611_v15 = vpop.eup %7610  ;;  %v6475_v37 = vadd.f32 %v6994_v11, %v6474_v34 }
 0x592   : > { %7622 = vrcp.f32 %v6375_v21  ;;  %v6376_v2 = vadd.f32 1.0, %v7611_v15  ;;  %v7424_v32 = vpop.f32.mrf.mxu1 }
 0x593   : > { %7624 = vrcp.f32 %v6373_v49  ;;  %v7613_v48 = vpop.eup %7612  ;;  %v6486_v54 = vadd.f32 %v7424_v32, %v6994_v11 }
 0x594   : > { %7626 = vrcp.f32 %v6376_v2  ;;  %v6374_v45 = vadd.f32 1.0, %v7613_v48  ;;  %v6477_v51 = vpop.f32.mrf.mxu1 }
 0x595   : > { %v6478_v27 = vadd.f32 %v6994_v11, %v6477_v51 }
 0x596   : > { %7628 = vrcp.f32 %v6374_v45 }
 0x598   : > { %v7615_v4 = vpop.eup %7614 }
 0x599   : > { %v6379_v50 = vadd.f32 1.0, %v7615_v4 }
 0x59a   : > { %v7617_v60 = vpop.eup %7616 }
 0x59b   : > { %7630 = vrcp.f32 %v6379_v50  ;;  %v6377_v23 = vadd.f32 1.0, %v7617_v60 }
 0x59c   : > { %v7619_v44 = vpop.eup %7618 }
 0x59d   : > { %7632 = vrcp.f32 %v6377_v23  ;;  %v6380_v20 = vadd.f32 1.0, %v7619_v44 }
 0x59e   : > { %v7621_v26 = vpop.eup %7620 }
 0x59f   : > { %v7623_v52 = vpop.eup %7622  ;;  %7634 = vrcp.f32 %v6380_v20  ;;  %v6378_v57 = vadd.f32 1.0, %v7621_v26 }
 0x5a0   : > { %v6491_v30 = vmul.f32 %v7623_v52, %v6467_v17  ;;  %v7625_v14 = vpop.eup %7624 }
 0x5a1   : > { %7636 = vrcp.f32 %v6378_v57  ;;  %v6489_v35 = vmul.f32 %v7625_v14, %v6459_v9  ;;  %v7627_v42 = vpop.eup %7626 }
 0x5a2   : > { %6499 = vst.msk [vmem:[%s9427_s22 + $0x10] sm:$0xff] %vm9630_vm5, %v6491_v30  ;;  %v6492_v43 = vmul.f32 %v7627_v42, %v6470_v61 }
 0x5a3   : > { %6497 = vst.msk [vmem:[%s9427_s22] sm:$0xff] %vm9631_vm9, %v6489_v35  ;;  %v7629_v24 = vpop.eup %7628 }
 0x5a4   : > { %6500 = vst.msk [vmem:[%s9427_s22 + $0x18] sm:$0xff] %vm9632_vm14, %v6492_v43  ;;  %v6490_v47 = vmul.f32 %v7629_v24, %v6462_v1 }
 0x5a6   : > { %6498 = vst.msk [vmem:[%s9427_s22 + $0x8] sm:$0xff] %vm9633_vm1, %v6490_v47 }
 0x5a8   : > { %v7631_v58 = vpop.eup %7630 }
 0x5a9   : > { %v6495_v13 = vmul.f32 %v7631_v58, %v6483_v39 }
 0x5aa   : > { %v7633_v0 = vpop.eup %7632 }
 0x5ab   : > { %6503 = vst.msk [vmem:[%s9427_s22 + $0x30] sm:$0xff] %vm9634_vm7, %v6495_v13  ;;  %v6493_v3 = vmul.f32 %v7633_v0, %v6475_v37 }
 0x5ac   : > { %v7635_v16 = vpop.eup %7634 }
 0x5ad   : > { %6501 = vst.msk [vmem:[%s9427_s22 + $0x20] sm:$0xff] %vm9635_vm15, %v6493_v3  ;;  %v6496_v31 = vmul.f32 %v7635_v16, %v6486_v54 }
 0x5ae   : > { %v7637_v55 = vpop.eup %7636 }
 0x5af   : > { %6504 = vst.msk [vmem:[%s9427_s22 + $0x38] sm:$0xff] %vm9636_vm10, %v6496_v31  ;;  %v6494_v33 = vmul.f32 %v7637_v55, %v6478_v27 }
 0x5b1   : > { %6502 = vst.msk [vmem:[%s9427_s22 + $0x28] sm:$0xff] %vm9637_vm8, %v6494_v33 }
 0x5b2   : > { %7656 = shalt.err (!%p7653_p3)
}
 0x5b3   : > { %s7657_s24 = scalar_lea.hbm %s9446_s16, 1024  ;;  %s7661_s0 = scalar_lea.hbm %s9510_s13, 2048 }
 0x5b4   : > { %p7658_p4 = scmp.ne.s32.totalorder %s9446_s16, %s7657_s24  ;;  %p7662_p9 = scmp.lt.s32.totalorder %s9446_s16, %s9510_s13 }
 0x5b5   : > { %p7663_p10 = scmp.lt.s32.totalorder %s7661_s0, %s7657_s24 }
 0x5b6   : > { %p7659_p7 = pnand %p7658_p4, %p7827_p5 }
 0x5b7   : > { %p7664_p11 = por %p7663_p10, %p7662_p9 }
 0x5b8   : > { %p7660_p8 = pneg %p7659_p7 }
 0x5ba   : > { %p7665_p12 = pnand %p7664_p11, %p7660_p8 }
 0x5bc   : > { %7668 = shalt.err (!%p7665_p12)
}
 0x5bd   : > { %s7718_s15 = smov 128  }
 0x5be   : > { %7433 = dma.vmem_to_hbm [thread:$0]  (%p7827_p5), %s9450_s23, 1024, %s9446_s16, %s9456_s29, %s7718_s15, %s7718_s15, %s9607_s30  }
 0x5bf PF: > { %p7439_p13 = scmp.ge.s32.totalorder %s7703_s28, 2  ;;  %s6534_s1 = sand.u32 1, %s7691_s25  }
 0x5c0   : > { %s6535_s2 = scalar_lea.sflag [#allocation7], %s6534_s1 }
 0x5c1   : > { %p7436_p0 = pnand %p7439_p13, %p7831_p6 }
 0x5c3   : > { %p7437_p1 = pneg %p7436_p0 }
 0x5c5   : > { %7686 = dma.done.wait (%p7437_p1), %s6535_s2, 1024  }
 0x5c6   : > { %7688 = vsyncadd (%p7437_p1), %s6535_s2, 4294966272  ;;  %p23_p2 = scmp.ge.s32.totalorder %s7814_s14, 4   ;;  %s9638_s25 = smov %s7695_s26 }
 0x5c7   : > { %s9639_s26 = smov %s7699_s27  ;;  %s9640_s27 = smov %s7825_s17 }
 0x5c8   : > { %s9641_s28 = smov %s7814_s14  ;;  %25 = sbr.rel (!%p23_p2) target bundleno = 8 (0x8), region = 135 }
 0x5cd   :  { %6540 = vsyncpa [#allocation7], 1 }
 0x5ce   :  { %6542 = vsyncpa [#allocation7 + $0x1], 1 }

</bundles_post_ra>
